<compile_context>
chip_gen: v6e
topology: v6e:2x2x1
jax: 0.10.0
libtpu: 0.0.40
codegen_flags: <defaults>
</compile_context>

<pallas_src>
import numpy as np
import jax
import jax.numpy as jnp
from jax.experimental import pallas as pl
from jax.experimental.pallas import tpu as pltpu


_VMEM_LIMIT = 32 * 1024 * 1024  # explicit scoped-VMEM cap; safe on v5e/v6e/v7x


def _round_up(x, m):
    return ((x + m - 1) // m) * m


# ----------------------------------------------------------------------------
# Kernel 1: M-tiled fused  relu(X @ W + b)   (conv1 / conv2 via im2col)
# ----------------------------------------------------------------------------
def _matmul_bias_relu_kernel(x_ref, w_ref, b_ref, o_ref):
    acc = jnp.dot(x_ref[...], w_ref[...], preferred_element_type=jnp.float32)
    acc = acc + b_ref[...].astype(jnp.float32)
    o_ref[...] = jnp.maximum(acc, 0.0).astype(o_ref.dtype)


def matmul_bias_relu(x, w, b, *, out_dtype=jnp.bfloat16, tile_m=1024):
    """x: [M, K], w: [K, N] (bf16 kernel layout), b: [1, N] f32 -> relu(x@w+b)."""
    M, K = x.shape
    K2, N = w.shape
    assert K == K2
    x = x.astype(jnp.bfloat16)
    w = w.astype(jnp.bfloat16)
    b = b.astype(jnp.float32)

    tile_m = min(tile_m, _round_up(M, 8))
    m_pad = _round_up(M, tile_m)
    if m_pad != M:
        x = jnp.pad(x, ((0, m_pad - M), (0, 0)))
    grid = (m_pad // tile_m,)

    out_isize = jnp.dtype(out_dtype).itemsize
    bytes_accessed = (m_pad * K + K * N) * 2 + N * 4 + m_pad * N * out_isize
    out = pl.pallas_call(
        _matmul_bias_relu_kernel,
        out_shape=jax.ShapeDtypeStruct((m_pad, N), out_dtype),
        grid_spec=pltpu.PrefetchScalarGridSpec(
            num_scalar_prefetch=0,
            grid=grid,
            in_specs=[
                pl.BlockSpec((tile_m, K), lambda i: (i, 0)),   # X tile (pipelined)
                pl.BlockSpec((K, N), lambda i: (0, 0)),        # full W, VMEM-resident
                pl.BlockSpec((1, N), lambda i: (0, 0)),        # bias
            ],
            out_specs=pl.BlockSpec((tile_m, N), lambda i: (i, 0)),
        ),
        compiler_params=pltpu.CompilerParams(
            dimension_semantics=("parallel",),
            vmem_limit_bytes=_VMEM_LIMIT,
        ),
        cost_estimate=pl.CostEstimate(
            flops=int(2 * m_pad * K * N),
            transcendentals=0,
            bytes_accessed=int(bytes_accessed),
        ),
    )(x, w, b)
    return out[:M] if m_pad != M else out


# ----------------------------------------------------------------------------
# Kernel 2: fused conv3 (as im2col matmul) + flatten + fc1 + fc2, tiled over batch.
# Intermediates (conv3 activations, fc1 latent) stay in VMEM/vregs.
# ----------------------------------------------------------------------------
def _tail_kernel(p3_ref, w3_ref, b3_ref, w1_ref, b1_ref, w2_ref, b2_ref, o_ref):
    tb = p3_ref.shape[0]          # batch tile
    n_pos = p3_ref.shape[1]       # 16 conv3 output positions (4x4)
    latent = w1_ref.shape[2]

    w3 = w3_ref[...]                              # [576, 32] bf16
    b3 = b3_ref[...].astype(jnp.float32)          # [1, 32]

    h1 = jnp.zeros((tb, latent), jnp.float32)
    for p in range(n_pos):  # static unroll over the 16 spatial positions
        xp = p3_ref[:, p, :]                                          # [TB, 576] bf16
        c3 = jnp.dot(xp, w3, preferred_element_type=jnp.float32)      # conv3
        c3 = jnp.maximum(c3 + b3, 0.0)                                # conv3 ReLU
        h1 = h1 + jnp.dot(c3.astype(jnp.bfloat16), w1_ref[p],         # fc1 partial
                          preferred_element_type=jnp.float32)
    h1 = jnp.maximum(h1 + b1_ref[...].astype(jnp.float32), 0.0)       # fc1 ReLU
    out = jnp.dot(h1.astype(jnp.bfloat16), w2_ref[...],               # fc2
                  preferred_element_type=jnp.float32)
    out = jnp.maximum(out + b2_ref[...].astype(jnp.float32), 0.0)     # fc2 ReLU
    o_ref[...] = out.astype(o_ref.dtype)


def conv3_fc_fused(p3, w3, b3, w1, b1, w2, b2, *, out_dtype=jnp.float32, tile_b=256):
    """p3: [N, P=16, K3=576] conv3 im2col patches. Returns [N, output_size]."""
    N, P, K3 = p3.shape
    C3 = w3.shape[1]
    L = w1.shape[2]
    O = w2.shape[1]
    p3 = p3.astype(jnp.bfloat16)

    tile_b = min(tile_b, _round_up(N, 8))
    n_pad = _round_up(N, tile_b)
    if n_pad != N:
        p3 = jnp.pad(p3, ((0, n_pad - N), (0, 0), (0, 0)))
    grid = (n_pad // tile_b,)

    flops = 2 * n_pad * (P * K3 * C3 + P * C3 * L + L * O)
    bytes_accessed = (p3.size * 2 + (K3 * C3 + P * C3 * L + L * O) * 2
                      + (C3 + L + O) * 4 + n_pad * O * 4)
    out = pl.pallas_call(
        _tail_kernel,
        out_shape=jax.ShapeDtypeStruct((n_pad, O), out_dtype),
        grid_spec=pltpu.PrefetchScalarGridSpec(
            num_scalar_prefetch=0,
            grid=grid,
            in_specs=[
                pl.BlockSpec((tile_b, P, K3), lambda i: (i, 0, 0)),   # patch tile
                pl.BlockSpec((K3, C3), lambda i: (0, 0)),             # conv3 W
                pl.BlockSpec((1, C3), lambda i: (0, 0)),              # conv3 b
                pl.BlockSpec((P, C3, L), lambda i: (0, 0, 0)),        # fc1 W [p,c,L]
                pl.BlockSpec((1, L), lambda i: (0, 0)),               # fc1 b
                pl.BlockSpec((L, O), lambda i: (0, 0)),               # fc2 W
                pl.BlockSpec((1, O), lambda i: (0, 0)),               # fc2 b
            ],
            out_specs=pl.BlockSpec((tile_b, O), lambda i: (i, 0)),
        ),
        compiler_params=pltpu.CompilerParams(
            dimension_semantics=("parallel",),
            vmem_limit_bytes=_VMEM_LIMIT,
        ),
        cost_estimate=pl.CostEstimate(
            flops=int(flops), transcendentals=0, bytes_accessed=int(bytes_accessed)),
    )(p3, w3, b3, w1, b1, w2, b2)
    return out[:N] if n_pad != N else out


# ----------------------------------------------------------------------------
# Glue: NHWC im2col (strided slices + concat; fused by XLA under jit)
# ----------------------------------------------------------------------------
def im2col_nhwc(x, kh, kw, stride):
    """x: [N, H, W, C] -> ([N, OH, OW, KH*KW*C], OH, OW); feature order (kh, kw, c)."""
    n, h, w, c = x.shape
    oh = (h - kh) // stride + 1
    ow = (w - kw) // stride + 1
    cols = []
    for i in range(kh):
        for j in range(kw):
            cols.append(x[:, i:i + stride * oh:stride, j:j + stride * ow:stride, :])
    return jnp.concatenate(cols, axis=-1), oh, ow


# ----------------------------------------------------------------------------
# Parameter init (PyTorch layouts) + one-time conversion to kernel layouts
# ----------------------------------------------------------------------------
def orthogonal_init(key, shape, gain):
    rows = shape[0]
    cols = int(np.prod(shape[1:]))
    a = jax.random.normal(key, (max(rows, cols), min(rows, cols)), jnp.float32)
    q, r = jnp.linalg.qr(a)
    q = q * jnp.sign(jnp.diagonal(r))
    if rows < cols:
        q = q.T
    return (gain * q[:rows, :cols]).reshape(shape).astype(jnp.float32)


def make_torch_layout_params(key, img_channels, latent_size, output_size):
    """Params in PyTorch layouts: Conv2d [OC,IC,KH,KW], Linear [out,in]."""
    gain = float(np.sqrt(2.0))  # nn.init.calculate_gain('relu')
    ks = jax.random.split(key, 5)
    return {
        "conv1_w": orthogonal_init(ks[0], (32, img_channels, 8, 8), gain),
        "conv1_b": jnp.zeros((32,), jnp.float32),
        "conv2_w": orthogonal_init(ks[1], (64, 32, 4, 4), gain),
        "conv2_b": jnp.zeros((64,), jnp.float32),
        "conv3_w": orthogonal_init(ks[2], (32, 64, 3, 3), gain),
        "conv3_b": jnp.zeros((32,), jnp.float32),
        "fc1_w": orthogonal_init(ks[3], (latent_size, 32 * 4 * 4), gain),
        "fc1_b": jnp.zeros((latent_size,), jnp.float32),
        "fc2_w": orthogonal_init(ks[4], (output_size, latent_size), gain),
        "fc2_b": jnp.zeros((output_size,), jnp.float32),
    }


def _conv_w_to_kernel(w):
    """[OC, IC, KH, KW] -> [KH*KW*IC, OC] bf16 (matches im2col (kh,kw,c) order)."""
    oc, ic, kh, kw = w.shape
    return jnp.transpose(w, (2, 3, 1, 0)).reshape(kh * kw * ic, oc).astype(jnp.bfloat16)


def prepare_params(tp, latent_size):
    """One-time conversion to the exact layouts the Pallas kernels consume."""
    # fc1 input index in PyTorch flatten order is c*16 + h*4 + w; re-order to
    # [p = h*4+w, c, latent] so it consumes NHWC conv3 activations directly.
    fc1_3d = jnp.transpose(tp["fc1_w"].reshape(latent_size, 32, 4, 4),
                           (2, 3, 1, 0)).reshape(16, 32, latent_size).astype(jnp.bfloat16)
    return {
        "conv1_w": _conv_w_to_kernel(tp["conv1_w"]),
        "conv1_b": tp["conv1_b"].reshape(1, -1).astype(jnp.float32),
        "conv2_w": _conv_w_to_kernel(tp["conv2_w"]),
        "conv2_b": tp["conv2_b"].reshape(1, -1).astype(jnp.float32),
        "conv3_w": _conv_w_to_kernel(tp["conv3_w"]),
        "conv3_b": tp["conv3_b"].reshape(1, -1).astype(jnp.float32),
        "fc1_w": fc1_3d,
        "fc1_b": tp["fc1_b"].reshape(1, -1).astype(jnp.float32),
        "fc2_w": jnp.transpose(tp["fc2_w"]).astype(jnp.bfloat16),   # [latent, out]
        "fc2_b": tp["fc2_b"].reshape(1, -1).astype(jnp.float32),
    }


# ----------------------------------------------------------------------------
# AtariNatureEncoder forward
# ----------------------------------------------------------------------------
def atari_nature_encoder(params, x_nchw):
    """x_nchw: [N, img_channels, 60, 60] f32 (PyTorch layout) -> [N, output_size] f32."""
    n = x_nchw.shape[0]
    x = jnp.transpose(x_nchw, (0, 2, 3, 1)).astype(jnp.bfloat16)   # NHWC once

    # conv1: 8x8 stride 4 + ReLU
    p1, oh1, ow1 = im2col_nhwc(x, 8, 8, 4)
    y1 = matmul_bias_relu(p1.reshape(n * oh1 * ow1, p1.shape[-1]),
                          params["conv1_w"], params["conv1_b"])
    y1 = y1.reshape(n, oh1, ow1, -1)

    # conv2: 4x4 stride 2 + ReLU
    p2, oh2, ow2 = im2col_nhwc(y1, 4, 4, 2)
    y2 = matmul_bias_relu(p2.reshape(n * oh2 * ow2, p2.shape[-1]),
                          params["conv2_w"], params["conv2_b"])
    y2 = y2.reshape(n, oh2, ow2, -1)

    # conv3 (3x3 stride 1) + flatten + fc1 + fc2, fused in one Pallas kernel
    p3, oh3, ow3 = im2col_nhwc(y2, 3, 3, 1)
    p3 = p3.reshape(n, oh3 * ow3, p3.shape[-1])
    return conv3_fc_fused(p3, params["conv3_w"], params["conv3_b"],
                          params["fc1_w"], params["fc1_b"],
                          params["fc2_w"], params["fc2_b"])


atari_nature_encoder_jit = jax.jit(atari_nature_encoder)


# ----------------------------------------------------------------------------
# Pure-XLA f32 reference (PyTorch semantics) for a correctness cross-check
# ----------------------------------------------------------------------------
def reference_forward(tp, x):
    dn = ("NCHW", "OIHW", "NCHW")
    y = jax.lax.conv_general_dilated(x, tp["conv1_w"], (4, 4), "VALID", dimension_numbers=dn)
    y = jax.nn.relu(y + tp["conv1_b"][None, :, None, None])
    y = jax.lax.conv_general_dilated(y, tp["conv2_w"], (2, 2), "VALID", dimension_numbers=dn)
    y = jax.nn.relu(y + tp["conv2_b"][None, :, None, None])
    y = jax.lax.conv_general_dilated(y, tp["conv3_w"], (1, 1), "VALID", dimension_numbers=dn)
    y = jax.nn.relu(y + tp["conv3_b"][None, :, None, None])
    y = y.reshape(y.shape[0], -1)
    y = jax.nn.relu(y @ tp["fc1_w"].T + tp["fc1_b"])
    y = jax.nn.relu(y @ tp["fc2_w"].T + tp["fc2_b"])
    return y


if __name__ == "__main__":
    img_channels = 4
    latent_size = 32
    output_size = 16
    batch = 2
    # Input must be 60x60: 60 -(8,s4)-> 14 -(4,s2)-> 6 -(3,s1)-> 4, so flatten
    # gives 32*4*4 = 512 features, matching fc1's expected input size.
    key = jax.random.PRNGKey(0)
    k_param, k_x = jax.random.split(key)
    torch_params = make_torch_layout_params(k_param, img_channels, latent_size, output_size)
    params = prepare_params(torch_params, latent_size)
    x = jax.random.normal(k_x, (batch, img_channels, 60, 60), jnp.float32)

    out = jax.block_until_ready(atari_nature_encoder_jit(params, x))
    assert out.shape == (batch, output_size), out.shape
    assert bool(jnp.all(jnp.isfinite(out)))
    assert bool(jnp.all(out >= 0.0))  # final ReLU (spec applies ReLU after fc2)

    # Cross-check vs f32 XLA reference (loose tolerance: MXU operands are bf16).
    ref = jax.block_until_ready(jax.jit(reference_forward)(torch_params, x))
    max_err = float(jnp.max(jnp.abs(out - ref)))
    assert max_err < 0.2, f"mismatch vs reference: max abs err {max_err}"

    print("KERNEL_OK")
</pallas_src>

<mosaic_0001>
module attributes {stable_mosaic.version = 11 : i64} {
  func.func @_matmul_bias_relu_kernel(%arg0: i32, %arg1: memref<392x256xbf16, #tpu.memory_space<vmem>>, %arg2: memref<256x32xbf16, #tpu.memory_space<vmem>>, %arg3: memref<1x32xf32, #tpu.memory_space<vmem>>, %arg4: memref<392x32xbf16, #tpu.memory_space<vmem>>) attributes {dimension_semantics = [#tpu.dimension_semantics<parallel>], iteration_bounds = array<i64: 1>, scalar_prefetch = 0 : i64, scratch_operands = 0 : i64, tpu.core_type = #tpu.core_type<tc>, window_params = [{transform_indices = @transform_0, window_bounds = array<i64: 392, 256>}, {pipeline_mode = #tpu.pipeline_mode<synchronous>, transform_indices = @transform_1, window_bounds = array<i64: 256, 32>}, {pipeline_mode = #tpu.pipeline_mode<synchronous>, transform_indices = @transform_2, window_bounds = array<i64: 1, 32>}, {transform_indices = @transform_3, window_bounds = array<i64: 392, 32>}]} {
    %c0 = arith.constant 0 : index
    %c0_0 = arith.constant 0 : index
    %0 = vector.load %arg1[%c0, %c0_0] : memref<392x256xbf16, #tpu.memory_space<vmem>>, vector<392x256xbf16>
    %c0_1 = arith.constant 0 : index
    %c0_2 = arith.constant 0 : index
    %1 = vector.load %arg2[%c0_1, %c0_2] : memref<256x32xbf16, #tpu.memory_space<vmem>>, vector<256x32xbf16>
    %cst = arith.constant dense<0.000000e+00> : vector<392x32xf32>
    %2 = tpu.matmul %0, %1, %cst {dimension_numbers = #tpu.dot_dimension_numbers<[1], [0], [0], [1], [0, 0, 1, 1], [], []>} : vector<392x256xbf16>, vector<256x32xbf16>, vector<392x32xf32> -> vector<392x32xf32>
    %c0_3 = arith.constant 0 : index
    %c0_4 = arith.constant 0 : index
    %3 = vector.load %arg3[%c0_3, %c0_4] : memref<1x32xf32, #tpu.memory_space<vmem>>, vector<1x32xf32>
    %4 = vector.broadcast %3 : vector<1x32xf32> to vector<392x32xf32>
    %5 = arith.addf %2, %4 : vector<392x32xf32>
    %cst_5 = arith.constant 0.000000e+00 : f32
    %6 = vector.broadcast %cst_5 : f32 to vector<392x32xf32>
    %7 = arith.maximumf %5, %6 : vector<392x32xf32>
    %8 = arith.truncf %7 : vector<392x32xf32> to vector<392x32xbf16>
    %c0_6 = arith.constant 0 : index
    %c0_7 = arith.constant 0 : index
    %9 = vector.load %arg4[%c0_6, %c0_7] : memref<392x32xbf16, #tpu.memory_space<vmem>>, vector<392x32xbf16>
    tpu.vector_store %arg4[%c0_6, %c0_7], %8 {strides = array<i32>} : memref<392x32xbf16, #tpu.memory_space<vmem>>, vector<392x32xbf16>,
    return
  }
  func.func @transform_0(%arg0: i32) -> (i32, i32) {
    %c0_i32 = arith.constant 0 : i32
    %c0_i32_0 = arith.constant 0 : i32
    return %arg0, %c0_i32 : i32, i32
  }
  func.func @transform_1(%arg0: i32) -> (i32, i32) {
    %c0_i32 = arith.constant 0 : i32
    %c0_i32_0 = arith.constant 0 : i32
    %c0_i32_1 = arith.constant 0 : i32
    return %c0_i32, %c0_i32_0 : i32, i32
  }
  func.func @transform_2(%arg0: i32) -> (i32, i32) {
    %c0_i32 = arith.constant 0 : i32
    %c0_i32_0 = arith.constant 0 : i32
    %c0_i32_1 = arith.constant 0 : i32
    return %c0_i32, %c0_i32_0 : i32, i32
  }
  func.func @transform_3(%arg0: i32) -> (i32, i32) {
    %c0_i32 = arith.constant 0 : i32
    %c0_i32_0 = arith.constant 0 : i32
    return %arg0, %c0_i32 : i32, i32
  }
}

module attributes {stable_mosaic.version = 11 : i64} {
  func.func @_matmul_bias_relu_kernel(%arg0: i32, %arg1: memref<72x512xbf16, #tpu.memory_space<vmem>>, %arg2: memref<512x64xbf16, #tpu.memory_space<vmem>>, %arg3: memref<1x64xf32, #tpu.memory_space<vmem>>, %arg4: memref<72x64xbf16, #tpu.memory_space<vmem>>) attributes {dimension_semantics = [#tpu.dimension_semantics<parallel>], iteration_bounds = array<i64: 1>, scalar_prefetch = 0 : i64, scratch_operands = 0 : i64, tpu.core_type = #tpu.core_type<tc>, window_params = [{transform_indices = @transform_0, window_bounds = array<i64: 72, 512>}, {pipeline_mode = #tpu.pipeline_mode<synchronous>, transform_indices = @transform_1, window_bounds = array<i64: 512, 64>}, {pipeline_mode = #tpu.pipeline_mode<synchronous>, transform_indices = @transform_2, window_bounds = array<i64: 1, 64>}, {transform_indices = @transform_3, window_bounds = array<i64: 72, 64>}]} {
    %c0 = arith.constant 0 : index
    %c0_0 = arith.constant 0 : index
    %0 = vector.load %arg1[%c0, %c0_0] : memref<72x512xbf16, #tpu.memory_space<vmem>>, vector<72x512xbf16>
    %c0_1 = arith.constant 0 : index
    %c0_2 = arith.constant 0 : index
    %1 = vector.load %arg2[%c0_1, %c0_2] : memref<512x64xbf16, #tpu.memory_space<vmem>>, vector<512x64xbf16>
    %cst = arith.constant dense<0.000000e+00> : vector<72x64xf32>
    %2 = tpu.matmul %0, %1, %cst {dimension_numbers = #tpu.dot_dimension_numbers<[1], [0], [0], [1], [0, 0, 1, 1], [], []>} : vector<72x512xbf16>, vector<512x64xbf16>, vector<72x64xf32> -> vector<72x64xf32>
    %c0_3 = arith.constant 0 : index
    %c0_4 = arith.constant 0 : index
    %3 = vector.load %arg3[%c0_3, %c0_4] : memref<1x64xf32, #tpu.memory_space<vmem>>, vector<1x64xf32>
    %4 = vector.broadcast %3 : vector<1x64xf32> to vector<72x64xf32>
    %5 = arith.addf %2, %4 : vector<72x64xf32>
    %cst_5 = arith.constant 0.000000e+00 : f32
    %6 = vector.broadcast %cst_5 : f32 to vector<72x64xf32>
    %7 = arith.maximumf %5, %6 : vector<72x64xf32>
    %8 = arith.truncf %7 : vector<72x64xf32> to vector<72x64xbf16>
    %c0_6 = arith.constant 0 : index
    %c0_7 = arith.constant 0 : index
    %9 = vector.load %arg4[%c0_6, %c0_7] : memref<72x64xbf16, #tpu.memory_space<vmem>>, vector<72x64xbf16>
    tpu.vector_store %arg4[%c0_6, %c0_7], %8 {strides = array<i32>} : memref<72x64xbf16, #tpu.memory_space<vmem>>, vector<72x64xbf16>,
    return
  }
  func.func @transform_0(%arg0: i32) -> (i32, i32) {
    %c0_i32 = arith.constant 0 : i32
    %c0_i32_0 = arith.constant 0 : i32
    return %arg0, %c0_i32 : i32, i32
  }
  func.func @transform_1(%arg0: i32) -> (i32, i32) {
    %c0_i32 = arith.constant 0 : i32
    %c0_i32_0 = arith.constant 0 : i32
    %c0_i32_1 = arith.constant 0 : i32
    return %c0_i32, %c0_i32_0 : i32, i32
  }
  func.func @transform_2(%arg0: i32) -> (i32, i32) {
    %c0_i32 = arith.constant 0 : i32
    %c0_i32_0 = arith.constant 0 : i32
    %c0_i32_1 = arith.constant 0 : i32
    return %c0_i32, %c0_i32_0 : i32, i32
  }
  func.func @transform_3(%arg0: i32) -> (i32, i32) {
    %c0_i32 = arith.constant 0 : i32
    %c0_i32_0 = arith.constant 0 : i32
    return %arg0, %c0_i32 : i32, i32
  }
}

module attributes {stable_mosaic.version = 11 : i64} {
  func.func @_tail_kernel(%arg0: i32, %arg1: memref<8x16x576xbf16, #tpu.memory_space<vmem>>, %arg2: memref<576x32xbf16, #tpu.memory_space<vmem>>, %arg3: memref<1x32xf32, #tpu.memory_space<vmem>>, %arg4: memref<16x32x32xbf16, #tpu.memory_space<vmem>>, %arg5: memref<1x32xf32, #tpu.memory_space<vmem>>, %arg6: memref<32x16xbf16, #tpu.memory_space<vmem>>, %arg7: memref<1x16xf32, #tpu.memory_space<vmem>>, %arg8: memref<8x16xf32, #tpu.memory_space<vmem>>) attributes {dimension_semantics = [#tpu.dimension_semantics<parallel>], iteration_bounds = array<i64: 1>, scalar_prefetch = 0 : i64, scratch_operands = 0 : i64, tpu.core_type = #tpu.core_type<tc>, window_params = [{transform_indices = @transform_0, window_bounds = array<i64: 8, 16, 576>}, {pipeline_mode = #tpu.pipeline_mode<synchronous>, transform_indices = @transform_1, window_bounds = array<i64: 576, 32>}, {pipeline_mode = #tpu.pipeline_mode<synchronous>, transform_indices = @transform_2, window_bounds = array<i64: 1, 32>}, {pipeline_mode = #tpu.pipeline_mode<synchronous>, transform_indices = @transform_3, window_bounds = array<i64: 16, 32, 32>}, {pipeline_mode = #tpu.pipeline_mode<synchronous>, transform_indices = @transform_4, window_bounds = array<i64: 1, 32>}, {pipeline_mode = #tpu.pipeline_mode<synchronous>, transform_indices = @transform_5, window_bounds = array<i64: 32, 16>}, {pipeline_mode = #tpu.pipeline_mode<synchronous>, transform_indices = @transform_6, window_bounds = array<i64: 1, 16>}, {transform_indices = @transform_7, window_bounds = array<i64: 8, 16>}]} {
    %c0 = arith.constant 0 : index
    %c0_0 = arith.constant 0 : index
    %0 = vector.load %arg2[%c0, %c0_0] : memref<576x32xbf16, #tpu.memory_space<vmem>>, vector<576x32xbf16>
    %c0_1 = arith.constant 0 : index
    %c0_2 = arith.constant 0 : index
    %1 = vector.load %arg3[%c0_1, %c0_2] : memref<1x32xf32, #tpu.memory_space<vmem>>, vector<1x32xf32>
    %cst = arith.constant 0.000000e+00 : f32
    %2 = vector.broadcast %cst : f32 to vector<8x32xf32>
    %c0_3 = arith.constant 0 : index
    %c0_4 = arith.constant 0 : index
    %c0_5 = arith.constant 0 : index
    %3 = vector.load %arg1[%c0_3, %c0_4, %c0_5] : memref<8x16x576xbf16, #tpu.memory_space<vmem>>, vector<8x1x576xbf16>
    %4 = vector.shape_cast %3 : vector<8x1x576xbf16> to vector<8x576xbf16>
    %cst_6 = arith.constant dense<0.000000e+00> : vector<8x32xf32>
    %5 = tpu.matmul %4, %0, %cst_6 {dimension_numbers = #tpu.dot_dimension_numbers<[1], [0], [0], [1], [0, 0, 1, 1], [], []>} : vector<8x576xbf16>, vector<576x32xbf16>, vector<8x32xf32> -> vector<8x32xf32>
    %6 = vector.broadcast %1 : vector<1x32xf32> to vector<8x32xf32>
    %7 = arith.addf %5, %6 : vector<8x32xf32>
    %cst_7 = arith.constant 0.000000e+00 : f32
    %8 = vector.broadcast %cst_7 : f32 to vector<8x32xf32>
    %9 = arith.maximumf %7, %8 : vector<8x32xf32>
    %10 = arith.truncf %9 : vector<8x32xf32> to vector<8x32xbf16>
    %c0_8 = arith.constant 0 : index
    %c0_9 = arith.constant 0 : index
    %c0_10 = arith.constant 0 : index
    %11 = vector.load %arg4[%c0_8, %c0_9, %c0_10] : memref<16x32x32xbf16, #tpu.memory_space<vmem>>, vector<1x32x32xbf16>
    %12 = vector.shape_cast %11 : vector<1x32x32xbf16> to vector<32x32xbf16>
    %cst_11 = arith.constant dense<0.000000e+00> : vector<8x32xf32>
    %13 = tpu.matmul %10, %12, %cst_11 {dimension_numbers = #tpu.dot_dimension_numbers<[1], [0], [0], [1], [0, 0, 1, 1], [], []>} : vector<8x32xbf16>, vector<32x32xbf16>, vector<8x32xf32> -> vector<8x32xf32>
    %14 = arith.addf %2, %13 : vector<8x32xf32>
    %c0_12 = arith.constant 0 : index
    %c1 = arith.constant 1 : index
    %c0_13 = arith.constant 0 : index
    %15 = vector.load %arg1[%c0_12, %c1, %c0_13] : memref<8x16x576xbf16, #tpu.memory_space<vmem>>, vector<8x1x576xbf16>
    %16 = vector.shape_cast %15 : vector<8x1x576xbf16> to vector<8x576xbf16>
    %cst_14 = arith.constant dense<0.000000e+00> : vector<8x32xf32>
    %17 = tpu.matmul %16, %0, %cst_14 {dimension_numbers = #tpu.dot_dimension_numbers<[1], [0], [0], [1], [0, 0, 1, 1], [], []>} : vector<8x576xbf16>, vector<576x32xbf16>, vector<8x32xf32> -> vector<8x32xf32>
    %18 = vector.broadcast %1 : vector<1x32xf32> to vector<8x32xf32>
    %19 = arith.addf %17, %18 : vector<8x32xf32>
    %cst_15 = arith.constant 0.000000e+00 : f32
    %20 = vector.broadcast %cst_15 : f32 to vector<8x32xf32>
    %21 = arith.maximumf %19, %20 : vector<8x32xf32>
    %22 = arith.truncf %21 : vector<8x32xf32> to vector<8x32xbf16>
    %c1_16 = arith.constant 1 : index
    %c0_17 = arith.constant 0 : index
    %c0_18 = arith.constant 0 : index
    %23 = vector.load %arg4[%c1_16, %c0_17, %c0_18] : memref<16x32x32xbf16, #tpu.memory_space<vmem>>, vector<1x32x32xbf16>
    %24 = vector.shape_cast %23 : vector<1x32x32xbf16> to vector<32x32xbf16>
    %cst_19 = arith.constant dense<0.000000e+00> : vector<8x32xf32>
    %25 = tpu.matmul %22, %24, %cst_19 {dimension_numbers = #tpu.dot_dimension_numbers<[1], [0], [0], [1], [0, 0, 1, 1], [], []>} : vector<8x32xbf16>, vector<32x32xbf16>, vector<8x32xf32> -> vector<8x32xf32>
    %26 = arith.addf %14, %25 : vector<8x32xf32>
    %c0_20 = arith.constant 0 : index
    %c2 = arith.constant 2 : index
    %c0_21 = arith.constant 0 : index
    %27 = vector.load %arg1[%c0_20, %c2, %c0_21] : memref<8x16x576xbf16, #tpu.memory_space<vmem>>, vector<8x1x576xbf16>
    %28 = vector.shape_cast %27 : vector<8x1x576xbf16> to vector<8x576xbf16>
    %cst_22 = arith.constant dense<0.000000e+00> : vector<8x32xf32>
    %29 = tpu.matmul %28, %0, %cst_22 {dimension_numbers = #tpu.dot_dimension_numbers<[1], [0], [0], [1], [0, 0, 1, 1], [], []>} : vector<8x576xbf16>, vector<576x32xbf16>, vector<8x32xf32> -> vector<8x32xf32>
    %30 = vector.broadcast %1 : vector<1x32xf32> to vector<8x32xf32>
    %31 = arith.addf %29, %30 : vector<8x32xf32>
    %cst_23 = arith.constant 0.000000e+00 : f32
    %32 = vector.broadcast %cst_23 : f32 to vector<8x32xf32>
    %33 = arith.maximumf %31, %32 : vector<8x32xf32>
    %34 = arith.truncf %33 : vector<8x32xf32> to vector<8x32xbf16>
    %c2_24 = arith.constant 2 : index
    %c0_25 = arith.constant 0 : index
    %c0_26 = arith.constant 0 : index
    %35 = vector.load %arg4[%c2_24, %c0_25, %c0_26] : memref<16x32x32xbf16, #tpu.memory_space<vmem>>, vector<1x32x32xbf16>
    %36 = vector.shape_cast %35 : vector<1x32x32xbf16> to vector<32x32xbf16>
    %cst_27 = arith.constant dense<0.000000e+00> : vector<8x32xf32>
    %37 = tpu.matmul %34, %36, %cst_27 {dimension_numbers = #tpu.dot_dimension_numbers<[1], [0], [0], [1], [0, 0, 1, 1], [], []>} : vector<8x32xbf16>, vector<32x32xbf16>, vector<8x32xf32> -> vector<8x32xf32>
    %38 = arith.addf %26, %37 : vector<8x32xf32>
    %c0_28 = arith.constant 0 : index
    %c3 = arith.constant 3 : index
    %c0_29 = arith.constant 0 : index
    %39 = vector.load %arg1[%c0_28, %c3, %c0_29] : memref<8x16x576xbf16, #tpu.memory_space<vmem>>, vector<8x1x576xbf16>
    %40 = vector.shape_cast %39 : vector<8x1x576xbf16> to vector<8x576xbf16>
    %cst_30 = arith.constant dense<0.000000e+00> : vector<8x32xf32>
    %41 = tpu.matmul %40, %0, %cst_30 {dimension_numbers = #tpu.dot_dimension_numbers<[1], [0], [0], [1], [0, 0, 1, 1], [], []>} : vector<8x576xbf16>, vector<576x32xbf16>, vector<8x32xf32> -> vector<8x32xf32>
    %42 = vector.broadcast %1 : vector<1x32xf32> to vector<8x32xf32>
    %43 = arith.addf %41, %42 : vector<8x32xf32>
    %cst_31 = arith.constant 0.000000e+00 : f32
    %44 = vector.broadcast %cst_31 : f32 to vector<8x32xf32>
    %45 = arith.maximumf %43, %44 : vector<8x32xf32>
    %46 = arith.truncf %45 : vector<8x32xf32> to vector<8x32xbf16>
    %c3_32 = arith.constant 3 : index
    %c0_33 = arith.constant 0 : index
    %c0_34 = arith.constant 0 : index
    %47 = vector.load %arg4[%c3_32, %c0_33, %c0_34] : memref<16x32x32xbf16, #tpu.memory_space<vmem>>, vector<1x32x32xbf16>
    %48 = vector.shape_cast %47 : vector<1x32x32xbf16> to vector<32x32xbf16>
    %cst_35 = arith.constant dense<0.000000e+00> : vector<8x32xf32>
    %49 = tpu.matmul %46, %48, %cst_35 {dimension_numbers = #tpu.dot_dimension_numbers<[1], [0], [0], [1], [0, 0, 1, 1], [], []>} : vector<8x32xbf16>, vector<32x32xbf16>, vector<8x32xf32> -> vector<8x32xf32>
    %50 = arith.addf %38, %49 : vector<8x32xf32>
    %c0_36 = arith.constant 0 : index
    %c4 = arith.constant 4 : index
    %c0_37 = arith.constant 0 : index
    %51 = vector.load %arg1[%c0_36, %c4, %c0_37] : memref<8x16x576xbf16, #tpu.memory_space<vmem>>, vector<8x1x576xbf16>
    %52 = vector.shape_cast %51 : vector<8x1x576xbf16> to vector<8x576xbf16>
    %cst_38 = arith.constant dense<0.000000e+00> : vector<8x32xf32>
    %53 = tpu.matmul %52, %0, %cst_38 {dimension_numbers = #tpu.dot_dimension_numbers<[1], [0], [0], [1], [0, 0, 1, 1], [], []>} : vector<8x576xbf16>, vector<576x32xbf16>, vector<8x32xf32> -> vector<8x32xf32>
    %54 = vector.broadcast %1 : vector<1x32xf32> to vector<8x32xf32>
    %55 = arith.addf %53, %54 : vector<8x32xf32>
    %cst_39 = arith.constant 0.000000e+00 : f32
    %56 = vector.broadcast %cst_39 : f32 to vector<8x32xf32>
    %57 = arith.maximumf %55, %56 : vector<8x32xf32>
    %58 = arith.truncf %57 : vector<8x32xf32> to vector<8x32xbf16>
    %c4_40 = arith.constant 4 : index
    %c0_41 = arith.constant 0 : index
    %c0_42 = arith.constant 0 : index
    %59 = vector.load %arg4[%c4_40, %c0_41, %c0_42] : memref<16x32x32xbf16, #tpu.memory_space<vmem>>, vector<1x32x32xbf16>
    %60 = vector.shape_cast %59 : vector<1x32x32xbf16> to vector<32x32xbf16>
    %cst_43 = arith.constant dense<0.000000e+00> : vector<8x32xf32>
    %61 = tpu.matmul %58, %60, %cst_43 {dimension_numbers = #tpu.dot_dimension_numbers<[1], [0], [0], [1], [0, 0, 1, 1], [], []>} : vector<8x32xbf16>, vector<32x32xbf16>, vector<8x32xf32> -> vector<8x32xf32>
    %62 = arith.addf %50, %61 : vector<8x32xf32>
    %c0_44 = arith.constant 0 : index
    %c5 = arith.constant 5 : index
    %c0_45 = arith.constant 0 : index
    %63 = vector.load %arg1[%c0_44, %c5, %c0_45] : memref<8x16x576xbf16, #tpu.memory_space<vmem>>, vector<8x1x576xbf16>
    %64 = vector.shape_cast %63 : vector<8x1x576xbf16> to vector<8x576xbf16>
    %cst_46 = arith.constant dense<0.000000e+00> : vector<8x32xf32>
    %65 = tpu.matmul %64, %0, %cst_46 {dimension_numbers = #tpu.dot_dimension_numbers<[1], [0], [0], [1], [0, 0, 1, 1], [], []>} : vector<8x576xbf16>, vector<576x32xbf16>, vector<8x32xf32> -> vector<8x32xf32>
    %66 = vector.broadcast %1 : vector<1x32xf32> to vector<8x32xf32>
    %67 = arith.addf %65, %66 : vector<8x32xf32>
    %cst_47 = arith.constant 0.000000e+00 : f32
    %68 = vector.broadcast %cst_47 : f32 to vector<8x32xf32>
    %69 = arith.maximumf %67, %68 : vector<8x32xf32>
    %70 = arith.truncf %69 : vector<8x32xf32> to vector<8x32xbf16>
    %c5_48 = arith.constant 5 : index
    %c0_49 = arith.constant 0 : index
    %c0_50 = arith.constant 0 : index
    %71 = vector.load %arg4[%c5_48, %c0_49, %c0_50] : memref<16x32x32xbf16, #tpu.memory_space<vmem>>, vector<1x32x32xbf16>
    %72 = vector.shape_cast %71 : vector<1x32x32xbf16> to vector<32x32xbf16>
    %cst_51 = arith.constant dense<0.000000e+00> : vector<8x32xf32>
    %73 = tpu.matmul %70, %72, %cst_51 {dimension_numbers = #tpu.dot_dimension_numbers<[1], [0], [0], [1], [0, 0, 1, 1], [], []>} : vector<8x32xbf16>, vector<32x32xbf16>, vector<8x32xf32> -> vector<8x32xf32>
    %74 = arith.addf %62, %73 : vector<8x32xf32>
    %c0_52 = arith.constant 0 : index
    %c6 = arith.constant 6 : index
    %c0_53 = arith.constant 0 : index
    %75 = vector.load %arg1[%c0_52, %c6, %c0_53] : memref<8x16x576xbf16, #tpu.memory_space<vmem>>, vector<8x1x576xbf16>
    %76 = vector.shape_cast %75 : vector<8x1x576xbf16> to vector<8x576xbf16>
    %cst_54 = arith.constant dense<0.000000e+00> : vector<8x32xf32>
    %77 = tpu.matmul %76, %0, %cst_54 {dimension_numbers = #tpu.dot_dimension_numbers<[1], [0], [0], [1], [0, 0, 1, 1], [], []>} : vector<8x576xbf16>, vector<576x32xbf16>, vector<8x32xf32> -> vector<8x32xf32>
    %78 = vector.broadcast %1 : vector<1x32xf32> to vector<8x32xf32>
    %79 = arith.addf %77, %78 : vector<8x32xf32>
    %cst_55 = arith.constant 0.000000e+00 : f32
    %80 = vector.broadcast %cst_55 : f32 to vector<8x32xf32>
    %81 = arith.maximumf %79, %80 : vector<8x32xf32>
    %82 = arith.truncf %81 : vector<8x32xf32> to vector<8x32xbf16>
    %c6_56 = arith.constant 6 : index
    %c0_57 = arith.constant 0 : index
    %c0_58 = arith.constant 0 : index
    %83 = vector.load %arg4[%c6_56, %c0_57, %c0_58] : memref<16x32x32xbf16, #tpu.memory_space<vmem>>, vector<1x32x32xbf16>
    %84 = vector.shape_cast %83 : vector<1x32x32xbf16> to vector<32x32xbf16>
    %cst_59 = arith.constant dense<0.000000e+00> : vector<8x32xf32>
    %85 = tpu.matmul %82, %84, %cst_59 {dimension_numbers = #tpu.dot_dimension_numbers<[1], [0], [0], [1], [0, 0, 1, 1], [], []>} : vector<8x32xbf16>, vector<32x32xbf16>, vector<8x32xf32> -> vector<8x32xf32>
    %86 = arith.addf %74, %85 : vector<8x32xf32>
    %c0_60 = arith.constant 0 : index
    %c7 = arith.constant 7 : index
    %c0_61 = arith.constant 0 : index
    %87 = vector.load %arg1[%c0_60, %c7, %c0_61] : memref<8x16x576xbf16, #tpu.memory_space<vmem>>, vector<8x1x576xbf16>
    %88 = vector.shape_cast %87 : vector<8x1x576xbf16> to vector<8x576xbf16>
    %cst_62 = arith.constant dense<0.000000e+00> : vector<8x32xf32>
    %89 = tpu.matmul %88, %0, %cst_62 {dimension_numbers = #tpu.dot_dimension_numbers<[1], [0], [0], [1], [0, 0, 1, 1], [], []>} : vector<8x576xbf16>, vector<576x32xbf16>, vector<8x32xf32> -> vector<8x32xf32>
    %90 = vector.broadcast %1 : vector<1x32xf32> to vector<8x32xf32>
    %91 = arith.addf %89, %90 : vector<8x32xf32>
    %cst_63 = arith.constant 0.000000e+00 : f32
    %92 = vector.broadcast %cst_63 : f32 to vector<8x32xf32>
    %93 = arith.maximumf %91, %92 : vector<8x32xf32>
    %94 = arith.truncf %93 : vector<8x32xf32> to vector<8x32xbf16>
    %c7_64 = arith.constant 7 : index
    %c0_65 = arith.constant 0 : index
    %c0_66 = arith.constant 0 : index
    %95 = vector.load %arg4[%c7_64, %c0_65, %c0_66] : memref<16x32x32xbf16, #tpu.memory_space<vmem>>, vector<1x32x32xbf16>
    %96 = vector.shape_cast %95 : vector<1x32x32xbf16> to vector<32x32xbf16>
    %cst_67 = arith.constant dense<0.000000e+00> : vector<8x32xf32>
    %97 = tpu.matmul %94, %96, %cst_67 {dimension_numbers = #tpu.dot_dimension_numbers<[1], [0], [0], [1], [0, 0, 1, 1], [], []>} : vector<8x32xbf16>, vector<32x32xbf16>, vector<8x32xf32> -> vector<8x32xf32>
    %98 = arith.addf %86, %97 : vector<8x32xf32>
    %c0_68 = arith.constant 0 : index
    %c8 = arith.constant 8 : index
    %c0_69 = arith.constant 0 : index
    %99 = vector.load %arg1[%c0_68, %c8, %c0_69] : memref<8x16x576xbf16, #tpu.memory_space<vmem>>, vector<8x1x576xbf16>
    %100 = vector.shape_cast %99 : vector<8x1x576xbf16> to vector<8x576xbf16>
    %cst_70 = arith.constant dense<0.000000e+00> : vector<8x32xf32>
    %101 = tpu.matmul %100, %0, %cst_70 {dimension_numbers = #tpu.dot_dimension_numbers<[1], [0], [0], [1], [0, 0, 1, 1], [], []>} : vector<8x576xbf16>, vector<576x32xbf16>, vector<8x32xf32> -> vector<8x32xf32>
    %102 = vector.broadcast %1 : vector<1x32xf32> to vector<8x32xf32>
    %103 = arith.addf %101, %102 : vector<8x32xf32>
    %cst_71 = arith.constant 0.000000e+00 : f32
    %104 = vector.broadcast %cst_71 : f32 to vector<8x32xf32>
    %105 = arith.maximumf %103, %104 : vector<8x32xf32>
    %106 = arith.truncf %105 : vector<8x32xf32> to vector<8x32xbf16>
    %c8_72 = arith.constant 8 : index
    %c0_73 = arith.constant 0 : index
    %c0_74 = arith.constant 0 : index
    %107 = vector.load %arg4[%c8_72, %c0_73, %c0_74] : memref<16x32x32xbf16, #tpu.memory_space<vmem>>, vector<1x32x32xbf16>
    %108 = vector.shape_cast %107 : vector<1x32x32xbf16> to vector<32x32xbf16>
    %cst_75 = arith.constant dense<0.000000e+00> : vector<8x32xf32>
    %109 = tpu.matmul %106, %108, %cst_75 {dimension_numbers = #tpu.dot_dimension_numbers<[1], [0], [0], [1], [0, 0, 1, 1], [], []>} : vector<8x32xbf16>, vector<32x32xbf16>, vector<8x32xf32> -> vector<8x32xf32>
    %110 = arith.addf %98, %109 : vector<8x32xf32>
    %c0_76 = arith.constant 0 : index
    %c9 = arith.constant 9 : index
    %c0_77 = arith.constant 0 : index
    %111 = vector.load %arg1[%c0_76, %c9, %c0_77] : memref<8x16x576xbf16, #tpu.memory_space<vmem>>, vector<8x1x576xbf16>
    %112 = vector.shape_cast %111 : vector<8x1x576xbf16> to vector<8x576xbf16>
    %cst_78 = arith.constant dense<0.000000e+00> : vector<8x32xf32>
    %113 = tpu.matmul %112, %0, %cst_78 {dimension_numbers = #tpu.dot_dimension_numbers<[1], [0], [0], [1], [0, 0, 1, 1], [], []>} : vector<8x576xbf16>, vector<576x32xbf16>, vector<8x32xf32> -> vector<8x32xf32>
    %114 = vector.broadcast %1 : vector<1x32xf32> to vector<8x32xf32>
    %115 = arith.addf %113, %114 : vector<8x32xf32>
    %cst_79 = arith.constant 0.000000e+00 : f32
    %116 = vector.broadcast %cst_79 : f32 to vector<8x32xf32>
    %117 = arith.maximumf %115, %116 : vector<8x32xf32>
    %118 = arith.truncf %117 : vector<8x32xf32> to vector<8x32xbf16>
    %c9_80 = arith.constant 9 : index
    %c0_81 = arith.constant 0 : index
    %c0_82 = arith.constant 0 : index
    %119 = vector.load %arg4[%c9_80, %c0_81, %c0_82] : memref<16x32x32xbf16, #tpu.memory_space<vmem>>, vector<1x32x32xbf16>
    %120 = vector.shape_cast %119 : vector<1x32x32xbf16> to vector<32x32xbf16>
    %cst_83 = arith.constant dense<0.000000e+00> : vector<8x32xf32>
    %121 = tpu.matmul %118, %120, %cst_83 {dimension_numbers = #tpu.dot_dimension_numbers<[1], [0], [0], [1], [0, 0, 1, 1], [], []>} : vector<8x32xbf16>, vector<32x32xbf16>, vector<8x32xf32> -> vector<8x32xf32>
    %122 = arith.addf %110, %121 : vector<8x32xf32>
    %c0_84 = arith.constant 0 : index
    %c10 = arith.constant 10 : index
    %c0_85 = arith.constant 0 : index
    %123 = vector.load %arg1[%c0_84, %c10, %c0_85] : memref<8x16x576xbf16, #tpu.memory_space<vmem>>, vector<8x1x576xbf16>
    %124 = vector.shape_cast %123 : vector<8x1x576xbf16> to vector<8x576xbf16>
    %cst_86 = arith.constant dense<0.000000e+00> : vector<8x32xf32>
    %125 = tpu.matmul %124, %0, %cst_86 {dimension_numbers = #tpu.dot_dimension_numbers<[1], [0], [0], [1], [0, 0, 1, 1], [], []>} : vector<8x576xbf16>, vector<576x32xbf16>, vector<8x32xf32> -> vector<8x32xf32>
    %126 = vector.broadcast %1 : vector<1x32xf32> to vector<8x32xf32>
    %127 = arith.addf %125, %126 : vector<8x32xf32>
    %cst_87 = arith.constant 0.000000e+00 : f32
    %128 = vector.broadcast %cst_87 : f32 to vector<8x32xf32>
    %129 = arith.maximumf %127, %128 : vector<8x32xf32>
    %130 = arith.truncf %129 : vector<8x32xf32> to vector<8x32xbf16>
    %c10_88 = arith.constant 10 : index
    %c0_89 = arith.constant 0 : index
    %c0_90 = arith.constant 0 : index
    %131 = vector.load %arg4[%c10_88, %c0_89, %c0_90] : memref<16x32x32xbf16, #tpu.memory_space<vmem>>, vector<1x32x32xbf16>
    %132 = vector.shape_cast %131 : vector<1x32x32xbf16> to vector<32x32xbf16>
    %cst_91 = arith.constant dense<0.000000e+00> : vector<8x32xf32>
    %133 = tpu.matmul %130, %132, %cst_91 {dimension_numbers = #tpu.dot_dimension_numbers<[1], [0], [0], [1], [0, 0, 1, 1], [], []>} : vector<8x32xbf16>, vector<32x32xbf16>, vector<8x32xf32> -> vector<8x32xf32>
    %134 = arith.addf %122, %133 : vector<8x32xf32>
    %c0_92 = arith.constant 0 : index
    %c11 = arith.constant 11 : index
    %c0_93 = arith.constant 0 : index
    %135 = vector.load %arg1[%c0_92, %c11, %c0_93] : memref<8x16x576xbf16, #tpu.memory_space<vmem>>, vector<8x1x576xbf16>
    %136 = vector.shape_cast %135 : vector<8x1x576xbf16> to vector<8x576xbf16>
    %cst_94 = arith.constant dense<0.000000e+00> : vector<8x32xf32>
    %137 = tpu.matmul %136, %0, %cst_94 {dimension_numbers = #tpu.dot_dimension_numbers<[1], [0], [0], [1], [0, 0, 1, 1], [], []>} : vector<8x576xbf16>, vector<576x32xbf16>, vector<8x32xf32> -> vector<8x32xf32>
    %138 = vector.broadcast %1 : vector<1x32xf32> to vector<8x32xf32>
    %139 = arith.addf %137, %138 : vector<8x32xf32>
    %cst_95 = arith.constant 0.000000e+00 : f32
    %140 = vector.broadcast %cst_95 : f32 to vector<8x32xf32>
    %141 = arith.maximumf %139, %140 : vector<8x32xf32>
    %142 = arith.truncf %141 : vector<8x32xf32> to vector<8x32xbf16>
    %c11_96 = arith.constant 11 : index
    %c0_97 = arith.constant 0 : index
    %c0_98 = arith.constant 0 : index
    %143 = vector.load %arg4[%c11_96, %c0_97, %c0_98] : memref<16x32x32xbf16, #tpu.memory_space<vmem>>, vector<1x32x32xbf16>
    %144 = vector.shape_cast %143 : vector<1x32x32xbf16> to vector<32x32xbf16>
    %cst_99 = arith.constant dense<0.000000e+00> : vector<8x32xf32>
    %145 = tpu.matmul %142, %144, %cst_99 {dimension_numbers = #tpu.dot_dimension_numbers<[1], [0], [0], [1], [0, 0, 1, 1], [], []>} : vector<8x32xbf16>, vector<32x32xbf16>, vector<8x32xf32> -> vector<8x32xf32>
    %146 = arith.addf %134, %145 : vector<8x32xf32>
    %c0_100 = arith.constant 0 : index
    %c12 = arith.constant 12 : index
    %c0_101 = arith.constant 0 : index
    %147 = vector.load %arg1[%c0_100, %c12, %c0_101] : memref<8x16x576xbf16, #tpu.memory_space<vmem>>, vector<8x1x576xbf16>
    %148 = vector.shape_cast %147 : vector<8x1x576xbf16> to vector<8x576xbf16>
    %cst_102 = arith.constant dense<0.000000e+00> : vector<8x32xf32>
    %149 = tpu.matmul %148, %0, %cst_102 {dimension_numbers = #tpu.dot_dimension_numbers<[1], [0], [0], [1], [0, 0, 1, 1], [], []>} : vector<8x576xbf16>, vector<576x32xbf16>, vector<8x32xf32> -> vector<8x32xf32>
    %150 = vector.broadcast %1 : vector<1x32xf32> to vector<8x32xf32>
    %151 = arith.addf %149, %150 : vector<8x32xf32>
    %cst_103 = arith.constant 0.000000e+00 : f32
    %152 = vector.broadcast %cst_103 : f32 to vector<8x32xf32>
    %153 = arith.maximumf %151, %152 : vector<8x32xf32>
    %154 = arith.truncf %153 : vector<8x32xf32> to vector<8x32xbf16>
    %c12_104 = arith.constant 12 : index
    %c0_105 = arith.constant 0 : index
    %c0_106 = arith.constant 0 : index
    %155 = vector.load %arg4[%c12_104, %c0_105, %c0_106] : memref<16x32x32xbf16, #tpu.memory_space<vmem>>, vector<1x32x32xbf16>
    %156 = vector.shape_cast %155 : vector<1x32x32xbf16> to vector<32x32xbf16>
    %cst_107 = arith.constant dense<0.000000e+00> : vector<8x32xf32>
    %157 = tpu.matmul %154, %156, %cst_107 {dimension_numbers = #tpu.dot_dimension_numbers<[1], [0], [0], [1], [0, 0, 1, 1], [], []>} : vector<8x32xbf16>, vector<32x32xbf16>, vector<8x32xf32> -> vector<8x32xf32>
    %158 = arith.addf %146, %157 : vector<8x32xf32>
    %c0_108 = arith.constant 0 : index
    %c13 = arith.constant 13 : index
    %c0_109 = arith.constant 0 : index
    %159 = vector.load %arg1[%c0_108, %c13, %c0_109] : memref<8x16x576xbf16, #tpu.memory_space<vmem>>, vector<8x1x576xbf16>
    %160 = vector.shape_cast %159 : vector<8x1x576xbf16> to vector<8x576xbf16>
    %cst_110 = arith.constant dense<0.000000e+00> : vector<8x32xf32>
    %161 = tpu.matmul %160, %0, %cst_110 {dimension_numbers = #tpu.dot_dimension_numbers<[1], [0], [0], [1], [0, 0, 1, 1], [], []>} : vector<8x576xbf16>, vector<576x32xbf16>, vector<8x32xf32> -> vector<8x32xf32>
    %162 = vector.broadcast %1 : vector<1x32xf32> to vector<8x32xf32>
    %163 = arith.addf %161, %162 : vector<8x32xf32>
    %cst_111 = arith.constant 0.000000e+00 : f32
    %164 = vector.broadcast %cst_111 : f32 to vector<8x32xf32>
    %165 = arith.maximumf %163, %164 : vector<8x32xf32>
    %166 = arith.truncf %165 : vector<8x32xf32> to vector<8x32xbf16>
    %c13_112 = arith.constant 13 : index
    %c0_113 = arith.constant 0 : index
    %c0_114 = arith.constant 0 : index
    %167 = vector.load %arg4[%c13_112, %c0_113, %c0_114] : memref<16x32x32xbf16, #tpu.memory_space<vmem>>, vector<1x32x32xbf16>
    %168 = vector.shape_cast %167 : vector<1x32x32xbf16> to vector<32x32xbf16>
    %cst_115 = arith.constant dense<0.000000e+00> : vector<8x32xf32>
    %169 = tpu.matmul %166, %168, %cst_115 {dimension_numbers = #tpu.dot_dimension_numbers<[1], [0], [0], [1], [0, 0, 1, 1], [], []>} : vector<8x32xbf16>, vector<32x32xbf16>, vector<8x32xf32> -> vector<8x32xf32>
    %170 = arith.addf %158, %169 : vector<8x32xf32>
    %c0_116 = arith.constant 0 : index
    %c14 = arith.constant 14 : index
    %c0_117 = arith.constant 0 : index
    %171 = vector.load %arg1[%c0_116, %c14, %c0_117] : memref<8x16x576xbf16, #tpu.memory_space<vmem>>, vector<8x1x576xbf16>
    %172 = vector.shape_cast %171 : vector<8x1x576xbf16> to vector<8x576xbf16>
    %cst_118 = arith.constant dense<0.000000e+00> : vector<8x32xf32>
    %173 = tpu.matmul %172, %0, %cst_118 {dimension_numbers = #tpu.dot_dimension_numbers<[1], [0], [0], [1], [0, 0, 1, 1], [], []>} : vector<8x576xbf16>, vector<576x32xbf16>, vector<8x32xf32> -> vector<8x32xf32>
    %174 = vector.broadcast %1 : vector<1x32xf32> to vector<8x32xf32>
    %175 = arith.addf %173, %174 : vector<8x32xf32>
    %cst_119 = arith.constant 0.000000e+00 : f32
    %176 = vector.broadcast %cst_119 : f32 to vector<8x32xf32>
    %177 = arith.maximumf %175, %176 : vector<8x32xf32>
    %178 = arith.truncf %177 : vector<8x32xf32> to vector<8x32xbf16>
    %c14_120 = arith.constant 14 : index
    %c0_121 = arith.constant 0 : index
    %c0_122 = arith.constant 0 : index
    %179 = vector.load %arg4[%c14_120, %c0_121, %c0_122] : memref<16x32x32xbf16, #tpu.memory_space<vmem>>, vector<1x32x32xbf16>
    %180 = vector.shape_cast %179 : vector<1x32x32xbf16> to vector<32x32xbf16>
    %cst_123 = arith.constant dense<0.000000e+00> : vector<8x32xf32>
    %181 = tpu.matmul %178, %180, %cst_123 {dimension_numbers = #tpu.dot_dimension_numbers<[1], [0], [0], [1], [0, 0, 1, 1], [], []>} : vector<8x32xbf16>, vector<32x32xbf16>, vector<8x32xf32> -> vector<8x32xf32>
    %182 = arith.addf %170, %181 : vector<8x32xf32>
    %c0_124 = arith.constant 0 : index
    %c15 = arith.constant 15 : index
    %c0_125 = arith.constant 0 : index
    %183 = vector.load %arg1[%c0_124, %c15, %c0_125] : memref<8x16x576xbf16, #tpu.memory_space<vmem>>, vector<8x1x576xbf16>
    %184 = vector.shape_cast %183 : vector<8x1x576xbf16> to vector<8x576xbf16>
    %cst_126 = arith.constant dense<0.000000e+00> : vector<8x32xf32>
    %185 = tpu.matmul %184, %0, %cst_126 {dimension_numbers = #tpu.dot_dimension_numbers<[1], [0], [0], [1], [0, 0, 1, 1], [], []>} : vector<8x576xbf16>, vector<576x32xbf16>, vector<8x32xf32> -> vector<8x32xf32>
    %186 = vector.broadcast %1 : vector<1x32xf32> to vector<8x32xf32>
    %187 = arith.addf %185, %186 : vector<8x32xf32>
    %cst_127 = arith.constant 0.000000e+00 : f32
    %188 = vector.broadcast %cst_127 : f32 to vector<8x32xf32>
    %189 = arith.maximumf %187, %188 : vector<8x32xf32>
    %190 = arith.truncf %189 : vector<8x32xf32> to vector<8x32xbf16>
    %c15_128 = arith.constant 15 : index
    %c0_129 = arith.constant 0 : index
    %c0_130 = arith.constant 0 : index
    %191 = vector.load %arg4[%c15_128, %c0_129, %c0_130] : memref<16x32x32xbf16, #tpu.memory_space<vmem>>, vector<1x32x32xbf16>
    %192 = vector.shape_cast %191 : vector<1x32x32xbf16> to vector<32x32xbf16>
    %cst_131 = arith.constant dense<0.000000e+00> : vector<8x32xf32>
    %193 = tpu.matmul %190, %192, %cst_131 {dimension_numbers = #tpu.dot_dimension_numbers<[1], [0], [0], [1], [0, 0, 1, 1], [], []>} : vector<8x32xbf16>, vector<32x32xbf16>, vector<8x32xf32> -> vector<8x32xf32>
    %194 = arith.addf %182, %193 : vector<8x32xf32>
    %c0_132 = arith.constant 0 : index
    %c0_133 = arith.constant 0 : index
    %195 = vector.load %arg5[%c0_132, %c0_133] : memref<1x32xf32, #tpu.memory_space<vmem>>, vector<1x32xf32>
    %196 = vector.broadcast %195 : vector<1x32xf32> to vector<8x32xf32>
    %197 = arith.addf %194, %196 : vector<8x32xf32>
    %cst_134 = arith.constant 0.000000e+00 : f32
    %198 = vector.broadcast %cst_134 : f32 to vector<8x32xf32>
    %199 = arith.maximumf %197, %198 : vector<8x32xf32>
    %200 = arith.truncf %199 : vector<8x32xf32> to vector<8x32xbf16>
    %c0_135 = arith.constant 0 : index
    %c0_136 = arith.constant 0 : index
    %201 = vector.load %arg6[%c0_135, %c0_136] : memref<32x16xbf16, #tpu.memory_space<vmem>>, vector<32x16xbf16>
    %cst_137 = arith.constant dense<0.000000e+00> : vector<8x16xf32>
    %202 = tpu.matmul %200, %201, %cst_137 {dimension_numbers = #tpu.dot_dimension_numbers<[1], [0], [0], [1], [0, 0, 1, 1], [], []>} : vector<8x32xbf16>, vector<32x16xbf16>, vector<8x16xf32> -> vector<8x16xf32>
    %c0_138 = arith.constant 0 : index
    %c0_139 = arith.constant 0 : index
    %203 = vector.load %arg7[%c0_138, %c0_139] : memref<1x16xf32, #tpu.memory_space<vmem>>, vector<1x16xf32>
    %204 = vector.broadcast %203 : vector<1x16xf32> to vector<8x16xf32>
    %205 = arith.addf %202, %204 : vector<8x16xf32>
    %cst_140 = arith.constant 0.000000e+00 : f32
    %206 = vector.broadcast %cst_140 : f32 to vector<8x16xf32>
    %207 = arith.maximumf %205, %206 : vector<8x16xf32>
    %c0_141 = arith.constant 0 : index
    %c0_142 = arith.constant 0 : index
    %208 = vector.load %arg8[%c0_141, %c0_142] : memref<8x16xf32, #tpu.memory_space<vmem>>, vector<8x16xf32>
    tpu.vector_store %arg8[%c0_141, %c0_142], %207 {strides = array<i32>} : memref<8x16xf32, #tpu.memory_space<vmem>>, vector<8x16xf32>,
    return
  }
  func.func @transform_0(%arg0: i32) -> (i32, i32, i32) {
    %c0_i32 = arith.constant 0 : i32
    %c0_i32_0 = arith.constant 0 : i32
    %c0_i32_1 = arith.constant 0 : i32
    return %arg0, %c0_i32, %c0_i32_0 : i32, i32, i32
  }
  func.func @transform_1(%arg0: i32) -> (i32, i32) {
    %c0_i32 = arith.constant 0 : i32
    %c0_i32_0 = arith.constant 0 : i32
    %c0_i32_1 = arith.constant 0 : i32
    return %c0_i32, %c0_i32_0 : i32, i32
  }
  func.func @transform_2(%arg0: i32) -> (i32, i32) {
    %c0_i32 = arith.constant 0 : i32
    %c0_i32_0 = arith.constant 0 : i32
    %c0_i32_1 = arith.constant 0 : i32
    return %c0_i32, %c0_i32_0 : i32, i32
  }
  func.func @transform_3(%arg0: i32) -> (i32, i32, i32) {
    %c0_i32 = arith.constant 0 : i32
    %c0_i32_0 = arith.constant 0 : i32
    %c0_i32_1 = arith.constant 0 : i32
    %c0_i32_2 = arith.constant 0 : i32
    return %c0_i32, %c0_i32_0, %c0_i32_1 : i32, i32, i32
  }
  func.func @transform_4(%arg0: i32) -> (i32, i32) {
    %c0_i32 = arith.constant 0 : i32
    %c0_i32_0 = arith.constant 0 : i32
    %c0_i32_1 = arith.constant 0 : i32
    return %c0_i32, %c0_i32_0 : i32, i32
  }
  func.func @transform_5(%arg0: i32) -> (i32, i32) {
    %c0_i32 = arith.constant 0 : i32
    %c0_i32_0 = arith.constant 0 : i32
    %c0_i32_1 = arith.constant 0 : i32
    return %c0_i32, %c0_i32_0 : i32, i32
  }
  func.func @transform_6(%arg0: i32) -> (i32, i32) {
    %c0_i32 = arith.constant 0 : i32
    %c0_i32_0 = arith.constant 0 : i32
    %c0_i32_1 = arith.constant 0 : i32
    return %c0_i32, %c0_i32_0 : i32, i32
  }
  func.func @transform_7(%arg0: i32) -> (i32, i32) {
    %c0_i32 = arith.constant 0 : i32
    %c0_i32_0 = arith.constant 0 : i32
    return %arg0, %c0_i32 : i32, i32
  }
}

</mosaic_0001>

<bundles_post_ra>
// kernel: atari_nature_encoder.3
= control target key start
LH: loop header
LB: loop body
LE: loop exit
PB: predicated region body
PF: predicated region fallthrough
CT: control target
= control target key end

     0   :  { %v1266_v0 = vmov 0   ;;  %vm924_vm0 = vcmask 257024   ;;  %s1764_s1 = inlined_call_operand.vmem [shape: bf16[256,32], index: 1, kind: input, shape index: {}]   ;;  %s1765_s0 = inlined_call_operand.vmem [shape: bf16[392,256], index: 0, kind: input, shape index: {}]   ;;  %s1766_s2 = inlined_call_operand.vmem [shape: f32[1,32], index: 2, kind: input, shape index: {}]   ;;  %s1767_s3 = inlined_call_operand.vmem [shape: bf16[392,32], index: 3, kind: output, shape index: {}]  }
   0x1   :  { %446 = vmatprep.subr.bf16.mxu0 %v1266_v0  ;;  %v1176_v1 = vld [vmem:[%s1764_s1 + $0x38] sm:$0xff]   ;;  %1143 = vmatprep.subr.bf16.mxu1 %v1266_v0  ;;  %v1177_v2 = vld [vmem:[%s1764_s1 + $0x30] sm:$0xff]   ;;  %v1178_v3 = vld [vmem:[%s1764_s1 + $0x28] sm:$0xff]  }
   0x2   :  { %447 = vmatpush1.bf16.msra.mxu0 %v1176_v1  ;;  %1159 = vmatpush1.bf16.msra.mxu1 %v1176_v1  ;;  %v1179_v4 = vld [vmem:[%s1764_s1 + $0x20] sm:$0xff]   ;;  %v1180_v5 = vld [vmem:[%s1764_s1 + $0x18] sm:$0xff]   ;;  %v1181_v7 = vld [vmem:[%s1764_s1 + $0x10] sm:$0xff]  }
   0x3   :  { %448 = vmatprep.subr.bf16.mxu0 %v1266_v0  ;;  %1144 = vmatprep.subr.bf16.mxu1 %v1266_v0  ;;  %v1194_v6 = vld [vmem:[%s1765_s0 + $0x4] ss:$8 sps:$4 sm:$0xff]   ;;  %v1197_v8 = vld [vmem:[%s1765_s0 + $0xd4] ss:$8 sps:$4 sm:$0xff]   ;;  %v1192_v19 = vld [vmem:[%s1765_s0] ss:$8 sps:$4 sm:$0xff]  }
   0x4   :  { %478 = vmatprep.mubr.bf16.mxu0 %v1194_v6  ;;  %582 = vmatprep.mubr.bf16.mxu1 %v1197_v8  ;;  %v1182_v9 = vld [vmem:[%s1764_s1 + $0x8] sm:$0xff]   ;;  %v1183_v10 = vld [vmem:[%s1764_s1] sm:$0xff]   ;;  %v1184_v11 = vld [vmem:[%s1764_s1 + $0x78] sm:$0xff]  }
   0x5   :  { %v1185_v12 = vld [vmem:[%s1764_s1 + $0x70] sm:$0xff]   ;;  %v1186_v13 = vld [vmem:[%s1764_s1 + $0x68] sm:$0xff]   ;;  %v1187_v14 = vld [vmem:[%s1764_s1 + $0x60] sm:$0xff]  }
   0x6   :  { %449 = vmatpush1.bf16.msra.mxu0 %v1177_v2  ;;  %1160 = vmatpush1.bf16.msra.mxu1 %v1177_v2  ;;  %v1188_v15 = vld [vmem:[%s1764_s1 + $0x58] sm:$0xff]   ;;  %v1189_v16 = vld [vmem:[%s1764_s1 + $0x50] sm:$0xff]   ;;  %v1190_v17 = vld [vmem:[%s1764_s1 + $0x48] sm:$0xff]  }
   0x7   :  { %450 = vmatprep.subr.bf16.mxu0 %v1266_v0  ;;  %1145 = vmatprep.subr.bf16.mxu1 %v1266_v0  ;;  %v1191_v18 = vld [vmem:[%s1764_s1 + $0x40] sm:$0xff]   ;;  %v1195_v20 = vld [vmem:[%s1765_s0 + $0xd0] ss:$8 sps:$4 sm:$0xff]   ;;  %v1198_v21 = vld [vmem:[%s1765_s0 + $0x14] ss:$8 sps:$4 sm:$0xff]  }
   0x8   :  { %v1201_v22 = vld [vmem:[%s1765_s0 + $0xe4] ss:$8 sps:$4 sm:$0xff]   ;;  %v1200_v23 = vld [vmem:[%s1765_s0 + $0x10] ss:$8 sps:$4 sm:$0xff]   ;;  %v1203_v24 = vld [vmem:[%s1765_s0 + $0xe0] ss:$8 sps:$4 sm:$0xff]  }
   0x9   :  { %v1204_v25 = vld [vmem:[%s1765_s0 + $0x24] ss:$8 sps:$4 sm:$0xff]   ;;  %v1207_v26 = vld [vmem:[%s1765_s0 + $0xf4] ss:$8 sps:$4 sm:$0xff]   ;;  %v1206_v27 = vld [vmem:[%s1765_s0 + $0x20] ss:$8 sps:$4 sm:$0xff]  }
   0xa   :  { %451 = vmatpush1.bf16.msra.mxu0 %v1178_v3  ;;  %1161 = vmatpush1.bf16.msra.mxu1 %v1178_v3  ;;  %v1209_v28 = vld [vmem:[%s1765_s0 + $0xf0] ss:$8 sps:$4 sm:$0xff]   ;;  %v1210_v29 = vld [vmem:[%s1765_s0 + $0x34] ss:$8 sps:$4 sm:$0xff]   ;;  %v1213_v30 = vld [vmem:[%s1765_s0 + $0x104] ss:$8 sps:$4 sm:$0xff]  }
   0xb   :  { %452 = vmatprep.subr.bf16.mxu0 %v1266_v0  ;;  %1146 = vmatprep.subr.bf16.mxu1 %v1266_v0  ;;  %v1212_v31 = vld [vmem:[%s1765_s0 + $0x30] ss:$8 sps:$4 sm:$0xff]   ;;  %v1215_v32 = vld [vmem:[%s1765_s0 + $0x100] ss:$8 sps:$4 sm:$0xff]   ;;  %v1216_v33 = vld [vmem:[%s1765_s0 + $0x44] ss:$8 sps:$4 sm:$0xff]  }
   0xc   :  { %v1219_v34 = vld [vmem:[%s1765_s0 + $0x114] ss:$8 sps:$4 sm:$0xff]   ;;  %v1218_v35 = vld [vmem:[%s1765_s0 + $0x40] ss:$8 sps:$4 sm:$0xff]   ;;  %v1221_v36 = vld [vmem:[%s1765_s0 + $0x110] ss:$8 sps:$4 sm:$0xff]  }
   0xd   :  { %v1222_v37 = vld [vmem:[%s1765_s0 + $0x54] ss:$8 sps:$4 sm:$0xff]   ;;  %v1225_v38 = vld [vmem:[%s1765_s0 + $0x124] ss:$8 sps:$4 sm:$0xff]   ;;  %v1224_v39 = vld [vmem:[%s1765_s0 + $0x50] ss:$8 sps:$4 sm:$0xff]  }
   0xe   :  { %453 = vmatpush1.bf16.msra.mxu0 %v1179_v4  ;;  %1162 = vmatpush1.bf16.msra.mxu1 %v1179_v4  ;;  %v1227_v40 = vld [vmem:[%s1765_s0 + $0x120] ss:$8 sps:$4 sm:$0xff]   ;;  %v1228_v41 = vld [vmem:[%s1765_s0 + $0x64] ss:$8 sps:$4 sm:$0xff]   ;;  %v1231_v42 = vld [vmem:[%s1765_s0 + $0x134] ss:$8 sps:$4 sm:$0xff]  }
   0xf   :  { %454 = vmatprep.subr.bf16.mxu0 %v1266_v0  ;;  %1147 = vmatprep.subr.bf16.mxu1 %v1266_v0  ;;  %v1230_v43 = vld [vmem:[%s1765_s0 + $0x60] ss:$8 sps:$4 sm:$0xff]   ;;  %v1233_v44 = vld [vmem:[%s1765_s0 + $0x130] ss:$8 sps:$4 sm:$0xff]   ;;  %v1234_v45 = vld [vmem:[%s1765_s0 + $0x74] ss:$8 sps:$4 sm:$0xff]  }
  0x10   :  { %v1237_v46 = vld [vmem:[%s1765_s0 + $0x144] ss:$8 sps:$4 sm:$0xff]   ;;  %v1236_v47 = vld [vmem:[%s1765_s0 + $0x70] ss:$8 sps:$4 sm:$0xff]   ;;  %v1239_v48 = vld [vmem:[%s1765_s0 + $0x140] ss:$8 sps:$4 sm:$0xff]  }
  0x11   :  { %v1240_v49 = vld [vmem:[%s1765_s0 + $0x84] ss:$8 sps:$4 sm:$0xff]   ;;  %v1243_v50 = vld [vmem:[%s1765_s0 + $0x154] ss:$8 sps:$4 sm:$0xff]   ;;  %v1242_v51 = vld [vmem:[%s1765_s0 + $0x80] ss:$8 sps:$4 sm:$0xff]  }
  0x12   :  { %455 = vmatpush1.bf16.msra.mxu0 %v1180_v5  ;;  %1163 = vmatpush1.bf16.msra.mxu1 %v1180_v5  ;;  %v1245_v52 = vld [vmem:[%s1765_s0 + $0x150] ss:$8 sps:$4 sm:$0xff]   ;;  %v1246_v53 = vld [vmem:[%s1765_s0 + $0x94] ss:$8 sps:$4 sm:$0xff]   ;;  %v1249_v54 = vld [vmem:[%s1765_s0 + $0x164] ss:$8 sps:$4 sm:$0xff]  }
  0x13   :  { %456 = vmatprep.subr.bf16.mxu0 %v1266_v0  ;;  %1148 = vmatprep.subr.bf16.mxu1 %v1266_v0  ;;  %v1248_v55 = vld [vmem:[%s1765_s0 + $0x90] ss:$8 sps:$4 sm:$0xff]   ;;  %v1251_v56 = vld [vmem:[%s1765_s0 + $0x160] ss:$8 sps:$4 sm:$0xff]   ;;  %v1252_v57 = vld [vmem:[%s1765_s0 + $0xa4] ss:$8 sps:$4 sm:$0xff]  }
  0x14   :  { %v1255_v58 = vld [vmem:[%s1765_s0 + $0x174] ss:$8 sps:$4 sm:$0xff]   ;;  %v63_v59 = vld [vmem:[%s1765_s0 + $0x180] sm:$0xff]  ;;  %v1257_v61 = vld [vmem:[%s1765_s0 + $0x170] ss:$8 sps:$4 sm:$0xff]  }
  0x15   :  { %v1254_v60 = vld [vmem:[%s1765_s0 + $0xa0] ss:$8 sps:$4 sm:$0xff]   ;;  %v1258_v62 = vld [vmem:[%s1765_s0 + $0xb4] ss:$8 sps:$4 sm:$0xff]   ;;  %v1028_v63 = vcombine.high %v63_v59, %v63_v59  ;;  %v1027_v1 = vcombine.low %v63_v59, %v63_v59  ;;  %v1263_v2 = vld [vmem:[%s1765_s0 + $0xc4] ss:$8 sps:$4 sm:$0xff]  }
  0x16   :  { %457 = vmatpush1.bf16.msra.mxu0 %v1181_v7  ;;  %1164 = vmatpush1.bf16.msra.mxu1 %v1181_v7  ;;  %v1265_v3 = vld [vmem:[%s1765_s0 + $0xc0] ss:$8 sps:$4 sm:$0xff]  }
  0x17   :  { %458 = vmatprep.subr.bf16.mxu0 %v1266_v0  ;;  %1149 = vmatprep.subr.bf16.mxu1 %v1266_v0  ;;  %v1517_v4 = vld [vmem:[%s1766_s2] ss:$0 sm:$0xff] }
  0x1a   :  { %459 = vmatpush1.bf16.msra.mxu0 %v1182_v9  ;;  %1165 = vmatpush1.bf16.msra.mxu1 %v1182_v9 }
  0x1b   :  { %460 = vmatprep.subr.bf16.mxu0 %v1266_v0  ;;  %1150 = vmatprep.subr.bf16.mxu1 %v1266_v0 }
  0x1e   :  { %461 = vmatpush1.bf16.msra.mxu0 %v1183_v10  ;;  %1166 = vmatpush1.bf16.msra.mxu1 %v1183_v10 }
  0x1f   :  { %462 = vmatprep.subr.bf16.mxu0 %v1266_v0  ;;  %1151 = vmatprep.subr.bf16.mxu1 %v1266_v0 }
  0x22   :  { %463 = vmatpush2.bf16.msra.mxu0 %v1184_v11  ;;  %1167 = vmatpush2.bf16.msra.mxu1 %v1184_v11 }
  0x23   :  { %464 = vmatprep.subr.bf16.mxu0 %v1266_v0  ;;  %1152 = vmatprep.subr.bf16.mxu1 %v1266_v0 }
  0x26   :  { %465 = vmatpush2.bf16.msra.mxu0 %v1185_v12  ;;  %1168 = vmatpush2.bf16.msra.mxu1 %v1185_v12 }
  0x27   :  { %466 = vmatprep.subr.bf16.mxu0 %v1266_v0  ;;  %1153 = vmatprep.subr.bf16.mxu1 %v1266_v0 }
  0x2a   :  { %467 = vmatpush2.bf16.msra.mxu0 %v1186_v13  ;;  %1169 = vmatpush2.bf16.msra.mxu1 %v1186_v13 }
  0x2b   :  { %468 = vmatprep.subr.bf16.mxu0 %v1266_v0  ;;  %1154 = vmatprep.subr.bf16.mxu1 %v1266_v0 }
  0x2e   :  { %469 = vmatpush2.bf16.msra.mxu0 %v1187_v14  ;;  %1170 = vmatpush2.bf16.msra.mxu1 %v1187_v14 }
  0x2f   :  { %470 = vmatprep.subr.bf16.mxu0 %v1266_v0  ;;  %1155 = vmatprep.subr.bf16.mxu1 %v1266_v0 }
  0x32   :  { %471 = vmatpush2.bf16.msra.mxu0 %v1188_v15  ;;  %1171 = vmatpush2.bf16.msra.mxu1 %v1188_v15 }
  0x33   :  { %472 = vmatprep.subr.bf16.mxu0 %v1266_v0  ;;  %1156 = vmatprep.subr.bf16.mxu1 %v1266_v0 }
  0x36   :  { %473 = vmatpush2.bf16.msra.mxu0 %v1189_v16  ;;  %1172 = vmatpush2.bf16.msra.mxu1 %v1189_v16 }
  0x37   :  { %474 = vmatprep.subr.bf16.mxu0 %v1266_v0  ;;  %1157 = vmatprep.subr.bf16.mxu1 %v1266_v0 }
  0x3a   :  { %475 = vmatpush2.bf16.msra.mxu0 %v1190_v17  ;;  %1173 = vmatpush2.bf16.msra.mxu1 %v1190_v17 }
  0x3b   :  { %476 = vmatprep.subr.bf16.mxu0 %v1266_v0  ;;  %1158 = vmatprep.subr.bf16.mxu1 %v1266_v0  ;;  %v1260_v0 = vld [vmem:[%s1765_s0 + $0xb0] ss:$8 sps:$4 sm:$0xff]  }
  0x3e   :  { %477 = vmatpush2.bf16.msra.mxu0 %v1191_v18  ;;  %1174 = vmatpush2.bf16.msra.mxu1 %v1191_v18 }
  0x41   :  { %479 = vmatmul.mubr.bf16.vlgmr.msra.gmra.mxu0 %v1192_v19  ;;  %583 = vmatmul.mubr.bf16.vlgmr.msra.gmra.mxu1 %v1195_v20 }
  0x42   :  { %486 = vmatprep.mubr.bf16.mxu0 %v1198_v21  ;;  %590 = vmatprep.mubr.bf16.mxu1 %v1201_v22 }
  0x49   :  { %487 = vmatmul.mubr.bf16.gmra.mxu0 %v1200_v23  ;;  %591 = vmatmul.mubr.bf16.gmra.mxu1 %v1203_v24 }
  0x4a   :  { %494 = vmatprep.mubr.bf16.mxu0 %v1204_v25  ;;  %598 = vmatprep.mubr.bf16.mxu1 %v1207_v26 }
  0x51   :  { %495 = vmatmul.mubr.bf16.gmra.mxu0 %v1206_v27  ;;  %599 = vmatmul.mubr.bf16.gmra.mxu1 %v1209_v28 }
  0x52   :  { %502 = vmatprep.mubr.bf16.mxu0 %v1210_v29  ;;  %606 = vmatprep.mubr.bf16.mxu1 %v1213_v30 }
  0x59   :  { %503 = vmatmul.mubr.bf16.gmra.mxu0 %v1212_v31  ;;  %607 = vmatmul.mubr.bf16.gmra.mxu1 %v1215_v32 }
  0x5a   :  { %510 = vmatprep.mubr.bf16.mxu0 %v1216_v33  ;;  %614 = vmatprep.mubr.bf16.mxu1 %v1219_v34 }
  0x61   :  { %511 = vmatmul.mubr.bf16.gmra.mxu0 %v1218_v35  ;;  %615 = vmatmul.mubr.bf16.gmra.mxu1 %v1221_v36 }
  0x62   :  { %518 = vmatprep.mubr.bf16.mxu0 %v1222_v37  ;;  %622 = vmatprep.mubr.bf16.mxu1 %v1225_v38 }
  0x69   :  { %519 = vmatmul.mubr.bf16.gmra.mxu0 %v1224_v39  ;;  %623 = vmatmul.mubr.bf16.gmra.mxu1 %v1227_v40 }
  0x6a   :  { %526 = vmatprep.mubr.bf16.mxu0 %v1228_v41  ;;  %630 = vmatprep.mubr.bf16.mxu1 %v1231_v42 }
  0x71   :  { %527 = vmatmul.mubr.bf16.gmra.mxu0 %v1230_v43  ;;  %631 = vmatmul.mubr.bf16.gmra.mxu1 %v1233_v44 }
  0x72   :  { %534 = vmatprep.mubr.bf16.mxu0 %v1234_v45  ;;  %638 = vmatprep.mubr.bf16.mxu1 %v1237_v46 }
  0x79   :  { %535 = vmatmul.mubr.bf16.gmra.mxu0 %v1236_v47  ;;  %639 = vmatmul.mubr.bf16.gmra.mxu1 %v1239_v48 }
  0x7a   :  { %542 = vmatprep.mubr.bf16.mxu0 %v1240_v49  ;;  %646 = vmatprep.mubr.bf16.mxu1 %v1243_v50 }
  0x81   :  { %543 = vmatmul.mubr.bf16.gmra.mxu0 %v1242_v51  ;;  %647 = vmatmul.mubr.bf16.gmra.mxu1 %v1245_v52 }
  0x82   :  { %550 = vmatprep.mubr.bf16.mxu0 %v1246_v53  ;;  %654 = vmatprep.mubr.bf16.mxu1 %v1249_v54 }
  0x89   :  { %551 = vmatmul.mubr.bf16.gmra.mxu0 %v1248_v55  ;;  %655 = vmatmul.mubr.bf16.gmra.mxu1 %v1251_v56 }
  0x8a   :  { %558 = vmatprep.mubr.bf16.mxu0 %v1252_v57  ;;  %662 = vmatprep.mubr.bf16.mxu1 %v1255_v58 }
  0x91   :  { %559 = vmatmul.mubr.bf16.gmra.mxu0 %v1254_v60  ;;  %663 = vmatmul.mubr.bf16.gmra.mxu1 %v1257_v61 }
  0x92   :  { %566 = vmatprep.mubr.bf16.mxu0 %v1258_v62  ;;  %670 = vmatprep.mubr.bf16.mxu1 %v1028_v63 }
  0x99   :  { %567 = vmatmul.mubr.bf16.gmra.mxu0 %v1260_v0  ;;  %671 = vmatmul.mubr.bf16.gmra.mxu1 %v1027_v1 }
  0x9a   :  { %574 = vmatprep.mubr.bf16.mxu0 %v1263_v2 }
  0xa1   :  { %575 = vmatmul.mubr.bf16.gmra.mxu0 %v1265_v3 }
 0x101   :  { %v480_v5 = vpop.f32.mrf.mxu0  ;;  %v584_v6 = vpop.f32.mrf.mxu1 }
 0x102   :  { %v481_v7 = vadd.f32 %v1517_v4, %v480_v5  ;;  %v585_v8 = vadd.f32 %v1517_v4, %v584_v6 }
 0x103   :  { %v482_v9 = vpop.f32.mrf.mxu0  ;;  %v586_v10 = vpop.f32.mrf.mxu1 }
 0x104   :  { %v678_v11 = vmax.f32 %v481_v7, 0.0  ;;  %v704_v12 = vmax.f32 %v585_v8, 0.0 }
 0x105   :  { %v483_v13 = vpop.f32.mrf.mxu0  ;;  %v587_v14 = vpop.f32.mrf.mxu1 }
 0x106   :  { %v1094_v15 = vpack.c.bf16 %v678_v11, %v678_v11  ;;  %v484_v16 = vadd.f32 %v1517_v4, %v483_v13  ;;  %v1120_v17 = vpack.c.bf16 %v704_v12, %v704_v12  ;;  %v588_v18 = vadd.f32 %v1517_v4, %v587_v14 }
 0x107   :  { %v485_v19 = vpop.f32.mrf.mxu0  ;;  %v589_v20 = vpop.f32.mrf.mxu1 }
 0x108   :  { %925 = vst.msk [vmem:[%s1767_s3] sm:$0xf] %vm924_vm0, %v1094_v15  ;;  %v679_v21 = vmax.f32 %v484_v16, 0.0  ;;  %951 = vst.msk [vmem:[%s1767_s3 + $0x68] sm:$0xf] %vm924_vm0, %v1120_v17  ;;  %v705_v22 = vmax.f32 %v588_v18, 0.0 }
 0x109   :  { %v488_v23 = vpop.f32.mrf.mxu0  ;;  %v592_v24 = vpop.f32.mrf.mxu1 }
 0x10a   :  { %v1095_v25 = vpack.c.bf16 %v679_v21, %v679_v21  ;;  %v489_v26 = vadd.f32 %v1517_v4, %v488_v23  ;;  %v1121_v27 = vpack.c.bf16 %v705_v22, %v705_v22  ;;  %v593_v28 = vadd.f32 %v1517_v4, %v592_v24 }
 0x10b   :  { %v490_v29 = vpop.f32.mrf.mxu0  ;;  %v594_v30 = vpop.f32.mrf.mxu1 }
 0x10c   :  { %926 = vst.msk [vmem:[%s1767_s3 + $0x4] sm:$0xf] %vm924_vm0, %v1095_v25  ;;  %v680_v31 = vmax.f32 %v489_v26, 0.0  ;;  %952 = vst.msk [vmem:[%s1767_s3 + $0x6c] sm:$0xf] %vm924_vm0, %v1121_v27  ;;  %v706_v32 = vmax.f32 %v593_v28, 0.0 }
 0x10d   :  { %v491_v33 = vpop.f32.mrf.mxu0  ;;  %v595_v34 = vpop.f32.mrf.mxu1 }
 0x10e   :  { %v1096_v35 = vpack.c.bf16 %v680_v31, %v680_v31  ;;  %v492_v36 = vadd.f32 %v1517_v4, %v491_v33  ;;  %v1122_v37 = vpack.c.bf16 %v706_v32, %v706_v32  ;;  %v596_v38 = vadd.f32 %v1517_v4, %v595_v34 }
 0x10f   :  { %v493_v39 = vpop.f32.mrf.mxu0  ;;  %v597_v40 = vpop.f32.mrf.mxu1 }
 0x110   :  { %927 = vst.msk [vmem:[%s1767_s3 + $0x8] sm:$0xf] %vm924_vm0, %v1096_v35  ;;  %v681_v41 = vmax.f32 %v492_v36, 0.0  ;;  %953 = vst.msk [vmem:[%s1767_s3 + $0x70] sm:$0xf] %vm924_vm0, %v1122_v37  ;;  %v707_v42 = vmax.f32 %v596_v38, 0.0 }
 0x111   :  { %v496_v43 = vpop.f32.mrf.mxu0  ;;  %v600_v44 = vpop.f32.mrf.mxu1 }
 0x112   :  { %v1097_v45 = vpack.c.bf16 %v681_v41, %v681_v41  ;;  %v497_v46 = vadd.f32 %v1517_v4, %v496_v43  ;;  %v1123_v47 = vpack.c.bf16 %v707_v42, %v707_v42  ;;  %v601_v48 = vadd.f32 %v1517_v4, %v600_v44 }
 0x113   :  { %v498_v49 = vpop.f32.mrf.mxu0  ;;  %v602_v50 = vpop.f32.mrf.mxu1 }
 0x114   :  { %928 = vst.msk [vmem:[%s1767_s3 + $0xc] sm:$0xf] %vm924_vm0, %v1097_v45  ;;  %v682_v51 = vmax.f32 %v497_v46, 0.0  ;;  %954 = vst.msk [vmem:[%s1767_s3 + $0x74] sm:$0xf] %vm924_vm0, %v1123_v47  ;;  %v708_v52 = vmax.f32 %v601_v48, 0.0 }
 0x115   :  { %v499_v53 = vpop.f32.mrf.mxu0  ;;  %v603_v54 = vpop.f32.mrf.mxu1 }
 0x116   :  { %v1098_v55 = vpack.c.bf16 %v682_v51, %v682_v51  ;;  %v500_v56 = vadd.f32 %v1517_v4, %v499_v53  ;;  %v1124_v57 = vpack.c.bf16 %v708_v52, %v708_v52  ;;  %v604_v58 = vadd.f32 %v1517_v4, %v603_v54 }
 0x117   :  { %v501_v59 = vpop.f32.mrf.mxu0  ;;  %v605_v60 = vpop.f32.mrf.mxu1 }
 0x118   :  { %929 = vst.msk [vmem:[%s1767_s3 + $0x10] sm:$0xf] %vm924_vm0, %v1098_v55  ;;  %v683_v61 = vmax.f32 %v500_v56, 0.0  ;;  %955 = vst.msk [vmem:[%s1767_s3 + $0x78] sm:$0xf] %vm924_vm0, %v1124_v57  ;;  %v709_v62 = vmax.f32 %v604_v58, 0.0 }
 0x119   :  { %v504_v63 = vpop.f32.mrf.mxu0  ;;  %v608_v0 = vpop.f32.mrf.mxu1 }
 0x11a   :  { %v1099_v1 = vpack.c.bf16 %v683_v61, %v683_v61  ;;  %v505_v2 = vadd.f32 %v1517_v4, %v504_v63  ;;  %v1125_v3 = vpack.c.bf16 %v709_v62, %v709_v62  ;;  %v609_v5 = vadd.f32 %v1517_v4, %v608_v0 }
 0x11b   :  { %v506_v6 = vpop.f32.mrf.mxu0  ;;  %v610_v7 = vpop.f32.mrf.mxu1 }
 0x11c   :  { %930 = vst.msk [vmem:[%s1767_s3 + $0x14] sm:$0xf] %vm924_vm0, %v1099_v1  ;;  %v684_v8 = vmax.f32 %v505_v2, 0.0  ;;  %956 = vst.msk [vmem:[%s1767_s3 + $0x7c] sm:$0xf] %vm924_vm0, %v1125_v3  ;;  %v710_v9 = vmax.f32 %v609_v5, 0.0 }
 0x11d   :  { %v507_v10 = vpop.f32.mrf.mxu0  ;;  %v611_v11 = vpop.f32.mrf.mxu1 }
 0x11e   :  { %v1100_v12 = vpack.c.bf16 %v684_v8, %v684_v8  ;;  %v508_v13 = vadd.f32 %v1517_v4, %v507_v10  ;;  %v1126_v14 = vpack.c.bf16 %v710_v9, %v710_v9  ;;  %v612_v15 = vadd.f32 %v1517_v4, %v611_v11 }
 0x11f   :  { %v509_v16 = vpop.f32.mrf.mxu0  ;;  %v613_v17 = vpop.f32.mrf.mxu1 }
 0x120   :  { %931 = vst.msk [vmem:[%s1767_s3 + $0x18] sm:$0xf] %vm924_vm0, %v1100_v12  ;;  %v685_v18 = vmax.f32 %v508_v13, 0.0  ;;  %957 = vst.msk [vmem:[%s1767_s3 + $0x80] sm:$0xf] %vm924_vm0, %v1126_v14  ;;  %v711_v19 = vmax.f32 %v612_v15, 0.0 }
 0x121   :  { %v512_v20 = vpop.f32.mrf.mxu0  ;;  %v616_v21 = vpop.f32.mrf.mxu1 }
 0x122   :  { %v1101_v22 = vpack.c.bf16 %v685_v18, %v685_v18  ;;  %v513_v23 = vadd.f32 %v1517_v4, %v512_v20  ;;  %v1127_v24 = vpack.c.bf16 %v711_v19, %v711_v19  ;;  %v617_v25 = vadd.f32 %v1517_v4, %v616_v21 }
 0x123   :  { %v514_v26 = vpop.f32.mrf.mxu0  ;;  %v618_v27 = vpop.f32.mrf.mxu1 }
 0x124   :  { %932 = vst.msk [vmem:[%s1767_s3 + $0x1c] sm:$0xf] %vm924_vm0, %v1101_v22  ;;  %v686_v28 = vmax.f32 %v513_v23, 0.0  ;;  %958 = vst.msk [vmem:[%s1767_s3 + $0x84] sm:$0xf] %vm924_vm0, %v1127_v24  ;;  %v712_v29 = vmax.f32 %v617_v25, 0.0 }
 0x125   :  { %v515_v30 = vpop.f32.mrf.mxu0  ;;  %v619_v31 = vpop.f32.mrf.mxu1 }
 0x126   :  { %v1102_v32 = vpack.c.bf16 %v686_v28, %v686_v28  ;;  %v516_v33 = vadd.f32 %v1517_v4, %v515_v30  ;;  %v1128_v34 = vpack.c.bf16 %v712_v29, %v712_v29  ;;  %v620_v35 = vadd.f32 %v1517_v4, %v619_v31 }
 0x127   :  { %v517_v36 = vpop.f32.mrf.mxu0  ;;  %v621_v37 = vpop.f32.mrf.mxu1 }
 0x128   :  { %933 = vst.msk [vmem:[%s1767_s3 + $0x20] sm:$0xf] %vm924_vm0, %v1102_v32  ;;  %v687_v38 = vmax.f32 %v516_v33, 0.0  ;;  %959 = vst.msk [vmem:[%s1767_s3 + $0x88] sm:$0xf] %vm924_vm0, %v1128_v34  ;;  %v713_v39 = vmax.f32 %v620_v35, 0.0 }
 0x129   :  { %v520_v40 = vpop.f32.mrf.mxu0  ;;  %v624_v41 = vpop.f32.mrf.mxu1 }
 0x12a   :  { %v1103_v42 = vpack.c.bf16 %v687_v38, %v687_v38  ;;  %v521_v43 = vadd.f32 %v1517_v4, %v520_v40  ;;  %v1129_v44 = vpack.c.bf16 %v713_v39, %v713_v39  ;;  %v625_v45 = vadd.f32 %v1517_v4, %v624_v41 }
 0x12b   :  { %v522_v46 = vpop.f32.mrf.mxu0  ;;  %v626_v47 = vpop.f32.mrf.mxu1 }
 0x12c   :  { %934 = vst.msk [vmem:[%s1767_s3 + $0x24] sm:$0xf] %vm924_vm0, %v1103_v42  ;;  %v688_v48 = vmax.f32 %v521_v43, 0.0  ;;  %960 = vst.msk [vmem:[%s1767_s3 + $0x8c] sm:$0xf] %vm924_vm0, %v1129_v44  ;;  %v714_v49 = vmax.f32 %v625_v45, 0.0 }
 0x12d   :  { %v523_v50 = vpop.f32.mrf.mxu0  ;;  %v627_v51 = vpop.f32.mrf.mxu1 }
 0x12e   :  { %v1104_v52 = vpack.c.bf16 %v688_v48, %v688_v48  ;;  %v524_v53 = vadd.f32 %v1517_v4, %v523_v50  ;;  %v1130_v54 = vpack.c.bf16 %v714_v49, %v714_v49  ;;  %v628_v55 = vadd.f32 %v1517_v4, %v627_v51 }
 0x12f   :  { %v525_v56 = vpop.f32.mrf.mxu0  ;;  %v629_v57 = vpop.f32.mrf.mxu1 }
 0x130   :  { %935 = vst.msk [vmem:[%s1767_s3 + $0x28] sm:$0xf] %vm924_vm0, %v1104_v52  ;;  %v689_v58 = vmax.f32 %v524_v53, 0.0  ;;  %961 = vst.msk [vmem:[%s1767_s3 + $0x90] sm:$0xf] %vm924_vm0, %v1130_v54  ;;  %v715_v59 = vmax.f32 %v628_v55, 0.0 }
 0x131   :  { %v528_v60 = vpop.f32.mrf.mxu0  ;;  %v632_v61 = vpop.f32.mrf.mxu1 }
 0x132   :  { %v1105_v62 = vpack.c.bf16 %v689_v58, %v689_v58  ;;  %v529_v63 = vadd.f32 %v1517_v4, %v528_v60  ;;  %v1131_v0 = vpack.c.bf16 %v715_v59, %v715_v59  ;;  %v633_v1 = vadd.f32 %v1517_v4, %v632_v61 }
 0x133   :  { %v530_v2 = vpop.f32.mrf.mxu0  ;;  %v634_v3 = vpop.f32.mrf.mxu1 }
 0x134   :  { %936 = vst.msk [vmem:[%s1767_s3 + $0x2c] sm:$0xf] %vm924_vm0, %v1105_v62  ;;  %v690_v5 = vmax.f32 %v529_v63, 0.0  ;;  %962 = vst.msk [vmem:[%s1767_s3 + $0x94] sm:$0xf] %vm924_vm0, %v1131_v0  ;;  %v716_v6 = vmax.f32 %v633_v1, 0.0 }
 0x135   :  { %v531_v7 = vpop.f32.mrf.mxu0  ;;  %v635_v8 = vpop.f32.mrf.mxu1 }
 0x136   :  { %v1106_v9 = vpack.c.bf16 %v690_v5, %v690_v5  ;;  %v532_v10 = vadd.f32 %v1517_v4, %v531_v7  ;;  %v1132_v11 = vpack.c.bf16 %v716_v6, %v716_v6  ;;  %v636_v12 = vadd.f32 %v1517_v4, %v635_v8 }
 0x137   :  { %v533_v13 = vpop.f32.mrf.mxu0  ;;  %v637_v14 = vpop.f32.mrf.mxu1 }
 0x138   :  { %937 = vst.msk [vmem:[%s1767_s3 + $0x30] sm:$0xf] %vm924_vm0, %v1106_v9  ;;  %v691_v15 = vmax.f32 %v532_v10, 0.0  ;;  %963 = vst.msk [vmem:[%s1767_s3 + $0x98] sm:$0xf] %vm924_vm0, %v1132_v11  ;;  %v717_v16 = vmax.f32 %v636_v12, 0.0 }
 0x139   :  { %v536_v17 = vpop.f32.mrf.mxu0  ;;  %v640_v18 = vpop.f32.mrf.mxu1 }
 0x13a   :  { %v1107_v19 = vpack.c.bf16 %v691_v15, %v691_v15  ;;  %v537_v20 = vadd.f32 %v1517_v4, %v536_v17  ;;  %v1133_v21 = vpack.c.bf16 %v717_v16, %v717_v16  ;;  %v641_v22 = vadd.f32 %v1517_v4, %v640_v18 }
 0x13b   :  { %v538_v23 = vpop.f32.mrf.mxu0  ;;  %v642_v24 = vpop.f32.mrf.mxu1 }
 0x13c   :  { %938 = vst.msk [vmem:[%s1767_s3 + $0x34] sm:$0xf] %vm924_vm0, %v1107_v19  ;;  %v692_v25 = vmax.f32 %v537_v20, 0.0  ;;  %964 = vst.msk [vmem:[%s1767_s3 + $0x9c] sm:$0xf] %vm924_vm0, %v1133_v21  ;;  %v718_v26 = vmax.f32 %v641_v22, 0.0 }
 0x13d   :  { %v539_v27 = vpop.f32.mrf.mxu0  ;;  %v643_v28 = vpop.f32.mrf.mxu1 }
 0x13e   :  { %v1108_v29 = vpack.c.bf16 %v692_v25, %v692_v25  ;;  %v540_v30 = vadd.f32 %v1517_v4, %v539_v27  ;;  %v1134_v31 = vpack.c.bf16 %v718_v26, %v718_v26  ;;  %v644_v32 = vadd.f32 %v1517_v4, %v643_v28 }
 0x13f   :  { %v541_v33 = vpop.f32.mrf.mxu0  ;;  %v645_v34 = vpop.f32.mrf.mxu1 }
 0x140   :  { %939 = vst.msk [vmem:[%s1767_s3 + $0x38] sm:$0xf] %vm924_vm0, %v1108_v29  ;;  %v693_v35 = vmax.f32 %v540_v30, 0.0  ;;  %965 = vst.msk [vmem:[%s1767_s3 + $0xa0] sm:$0xf] %vm924_vm0, %v1134_v31  ;;  %v719_v36 = vmax.f32 %v644_v32, 0.0 }
 0x141   :  { %v544_v37 = vpop.f32.mrf.mxu0  ;;  %v648_v38 = vpop.f32.mrf.mxu1 }
 0x142   :  { %v1109_v39 = vpack.c.bf16 %v693_v35, %v693_v35  ;;  %v545_v40 = vadd.f32 %v1517_v4, %v544_v37  ;;  %v1135_v41 = vpack.c.bf16 %v719_v36, %v719_v36  ;;  %v649_v42 = vadd.f32 %v1517_v4, %v648_v38 }
 0x143   :  { %v546_v43 = vpop.f32.mrf.mxu0  ;;  %v650_v44 = vpop.f32.mrf.mxu1 }
 0x144   :  { %940 = vst.msk [vmem:[%s1767_s3 + $0x3c] sm:$0xf] %vm924_vm0, %v1109_v39  ;;  %v694_v45 = vmax.f32 %v545_v40, 0.0  ;;  %966 = vst.msk [vmem:[%s1767_s3 + $0xa4] sm:$0xf] %vm924_vm0, %v1135_v41  ;;  %v720_v46 = vmax.f32 %v649_v42, 0.0 }
 0x145   :  { %v547_v47 = vpop.f32.mrf.mxu0  ;;  %v651_v48 = vpop.f32.mrf.mxu1 }
 0x146   :  { %v1110_v49 = vpack.c.bf16 %v694_v45, %v694_v45  ;;  %v548_v50 = vadd.f32 %v1517_v4, %v547_v47  ;;  %v1136_v51 = vpack.c.bf16 %v720_v46, %v720_v46  ;;  %v652_v52 = vadd.f32 %v1517_v4, %v651_v48 }
 0x147   :  { %v549_v53 = vpop.f32.mrf.mxu0  ;;  %v653_v54 = vpop.f32.mrf.mxu1 }
 0x148   :  { %941 = vst.msk [vmem:[%s1767_s3 + $0x40] sm:$0xf] %vm924_vm0, %v1110_v49  ;;  %v695_v55 = vmax.f32 %v548_v50, 0.0  ;;  %967 = vst.msk [vmem:[%s1767_s3 + $0xa8] sm:$0xf] %vm924_vm0, %v1136_v51  ;;  %v721_v56 = vmax.f32 %v652_v52, 0.0 }
 0x149   :  { %v552_v57 = vpop.f32.mrf.mxu0  ;;  %v656_v58 = vpop.f32.mrf.mxu1 }
 0x14a   :  { %v1111_v59 = vpack.c.bf16 %v695_v55, %v695_v55  ;;  %v553_v60 = vadd.f32 %v1517_v4, %v552_v57  ;;  %v1137_v61 = vpack.c.bf16 %v721_v56, %v721_v56  ;;  %v657_v62 = vadd.f32 %v1517_v4, %v656_v58 }
 0x14b   :  { %v554_v63 = vpop.f32.mrf.mxu0  ;;  %v658_v0 = vpop.f32.mrf.mxu1 }
 0x14c   :  { %942 = vst.msk [vmem:[%s1767_s3 + $0x44] sm:$0xf] %vm924_vm0, %v1111_v59  ;;  %v696_v1 = vmax.f32 %v553_v60, 0.0  ;;  %968 = vst.msk [vmem:[%s1767_s3 + $0xac] sm:$0xf] %vm924_vm0, %v1137_v61  ;;  %v722_v2 = vmax.f32 %v657_v62, 0.0 }
 0x14d   :  { %v555_v3 = vpop.f32.mrf.mxu0  ;;  %v659_v5 = vpop.f32.mrf.mxu1 }
 0x14e   :  { %v1112_v6 = vpack.c.bf16 %v696_v1, %v696_v1  ;;  %v556_v7 = vadd.f32 %v1517_v4, %v555_v3  ;;  %v1138_v8 = vpack.c.bf16 %v722_v2, %v722_v2  ;;  %v660_v9 = vadd.f32 %v1517_v4, %v659_v5 }
 0x14f   :  { %v557_v10 = vpop.f32.mrf.mxu0  ;;  %v661_v11 = vpop.f32.mrf.mxu1 }
 0x150   :  { %943 = vst.msk [vmem:[%s1767_s3 + $0x48] sm:$0xf] %vm924_vm0, %v1112_v6  ;;  %v697_v12 = vmax.f32 %v556_v7, 0.0  ;;  %969 = vst.msk [vmem:[%s1767_s3 + $0xb0] sm:$0xf] %vm924_vm0, %v1138_v8  ;;  %v723_v13 = vmax.f32 %v660_v9, 0.0 }
 0x151   :  { %v560_v14 = vpop.f32.mrf.mxu0  ;;  %v664_v15 = vpop.f32.mrf.mxu1 }
 0x152   :  { %v1113_v16 = vpack.c.bf16 %v697_v12, %v697_v12  ;;  %v561_v17 = vadd.f32 %v1517_v4, %v560_v14  ;;  %v1139_v18 = vpack.c.bf16 %v723_v13, %v723_v13  ;;  %v665_v19 = vadd.f32 %v1517_v4, %v664_v15 }
 0x153   :  { %v562_v20 = vpop.f32.mrf.mxu0  ;;  %v666_v21 = vpop.f32.mrf.mxu1 }
 0x154   :  { %944 = vst.msk [vmem:[%s1767_s3 + $0x4c] sm:$0xf] %vm924_vm0, %v1113_v16  ;;  %v698_v22 = vmax.f32 %v561_v17, 0.0  ;;  %970 = vst.msk [vmem:[%s1767_s3 + $0xb4] sm:$0xf] %vm924_vm0, %v1139_v18  ;;  %v724_v23 = vmax.f32 %v665_v19, 0.0 }
 0x155   :  { %v563_v24 = vpop.f32.mrf.mxu0  ;;  %v667_v25 = vpop.f32.mrf.mxu1 }
 0x156   :  { %v1114_v26 = vpack.c.bf16 %v698_v22, %v698_v22  ;;  %v564_v27 = vadd.f32 %v1517_v4, %v563_v24  ;;  %v1140_v28 = vpack.c.bf16 %v724_v23, %v724_v23  ;;  %v668_v29 = vadd.f32 %v1517_v4, %v667_v25 }
 0x157   :  { %v565_v30 = vpop.f32.mrf.mxu0  ;;  %v669_v31 = vpop.f32.mrf.mxu1 }
 0x158   :  { %945 = vst.msk [vmem:[%s1767_s3 + $0x50] sm:$0xf] %vm924_vm0, %v1114_v26  ;;  %v699_v32 = vmax.f32 %v564_v27, 0.0  ;;  %971 = vst.msk [vmem:[%s1767_s3 + $0xb8] sm:$0xf] %vm924_vm0, %v1140_v28  ;;  %v725_v33 = vmax.f32 %v668_v29, 0.0 }
 0x159   :  { %v568_v34 = vpop.f32.mrf.mxu0  ;;  %v672_v35 = vpop.f32.mrf.mxu1 }
 0x15a   :  { %v1115_v36 = vpack.c.bf16 %v699_v32, %v699_v32  ;;  %v569_v37 = vadd.f32 %v1517_v4, %v568_v34  ;;  %v1141_v38 = vpack.c.bf16 %v725_v33, %v725_v33  ;;  %v673_v39 = vadd.f32 %v1517_v4, %v672_v35 }
 0x15b   :  { %v570_v40 = vpop.f32.mrf.mxu0  ;;  %v674_v41 = vpop.f32.mrf.mxu1 }
 0x15c   :  { %946 = vst.msk [vmem:[%s1767_s3 + $0x54] sm:$0xf] %vm924_vm0, %v1115_v36  ;;  %v700_v42 = vmax.f32 %v569_v37, 0.0  ;;  %972 = vst.msk [vmem:[%s1767_s3 + $0xbc] sm:$0xf] %vm924_vm0, %v1141_v38  ;;  %v726_v43 = vmax.f32 %v673_v39, 0.0 }
 0x15d   :  { %v571_v44 = vpop.f32.mrf.mxu0  ;;  %v675_v45 = vpop.f32.mrf.mxu1 }
 0x15e   :  { %v1116_v46 = vpack.c.bf16 %v700_v42, %v700_v42  ;;  %v572_v47 = vadd.f32 %v1517_v4, %v571_v44  ;;  %v1142_v48 = vpack.c.bf16 %v726_v43, %v726_v43 }
 0x15f   :  { %v573_v49 = vpop.f32.mrf.mxu0  ;;  %v676_v50 = vpop.f32.mrf.mxu1 }
 0x160   :  { %947 = vst.msk [vmem:[%s1767_s3 + $0x58] sm:$0xf] %vm924_vm0, %v1116_v46  ;;  %v701_v51 = vmax.f32 %v572_v47, 0.0  ;;  %973 = vst.msk [vmem:[%s1767_s3 + $0xc0] sm:$0xf] %vm924_vm0, %v1142_v48 }
 0x161   :  { %v576_v52 = vpop.f32.mrf.mxu0 }
 0x162   :  { %v1117_v53 = vpack.c.bf16 %v701_v51, %v701_v51  ;;  %v577_v54 = vadd.f32 %v1517_v4, %v576_v52 }
 0x163   :  { %v578_v55 = vpop.f32.mrf.mxu0 }
 0x164   :  { %948 = vst.msk [vmem:[%s1767_s3 + $0x5c] sm:$0xf] %vm924_vm0, %v1117_v53  ;;  %v702_v56 = vmax.f32 %v577_v54, 0.0 }
 0x165   :  { %v579_v57 = vpop.f32.mrf.mxu0 }
 0x166   :  { %v1118_v58 = vpack.c.bf16 %v702_v56, %v702_v56  ;;  %v580_v59 = vadd.f32 %v1517_v4, %v579_v57 }
 0x167   :  { %v581_v60 = vpop.f32.mrf.mxu0 }
 0x168   :  { %949 = vst.msk [vmem:[%s1767_s3 + $0x60] sm:$0xf] %vm924_vm0, %v1118_v58  ;;  %v703_v61 = vmax.f32 %v580_v59, 0.0 }
 0x16a   :  { %v1119_v62 = vpack.c.bf16 %v703_v61, %v703_v61 }
 0x16c   :  { %950 = vst.msk [vmem:[%s1767_s3 + $0x64] sm:$0xf] %vm924_vm0, %v1119_v62 }

// kernel: atari_nature_encoder.4
= control target key start
LH: loop header
LB: loop body
LE: loop exit
PB: predicated region body
PF: predicated region fallthrough
CT: control target
= control target key end

     0   :  { %vm580_vm0 = vcmask 519168   ;;  %s1037_s1 = inlined_call_operand.vmem [shape: bf16[512,64], index: 1, kind: input, shape index: {}]   ;;  %s1038_s0 = inlined_call_operand.vmem [shape: bf16[72,512], index: 0, kind: input, shape index: {}]   ;;  %s1039_s2 = inlined_call_operand.vmem [shape: f32[1,64], index: 2, kind: input, shape index: {}]   ;;  %s1040_s3 = inlined_call_operand.vmem [shape: bf16[72,64], index: 3, kind: output, shape index: {}]  }
   0x1   :  { %v757_v0 = vld [vmem:[%s1037_s1 + $0x78] sm:$0xff]   ;;  %v761_v4 = vld [vmem:[%s1037_s1 + $0x70] sm:$0xff]   ;;  %v765_v8 = vld [vmem:[%s1037_s1 + $0x68] sm:$0xff]  }
   0x2   :  { %v758_v1 = vld [vmem:[%s1037_s1 + $0xf8] sm:$0xff]   ;;  %665 = vmatprep.subr.bf16.mxu0 %v757_v0  ;;  %v762_v5 = vld [vmem:[%s1037_s1 + $0xf0] sm:$0xff]   ;;  %v766_v9 = vld [vmem:[%s1037_s1 + $0xe8] sm:$0xff]  }
   0x3   :  { %v759_v2 = vld [vmem:[%s1037_s1 + $0x38] sm:$0xff]   ;;  %711 = vmatprep.subr.bf16.mxu1 %v758_v1  ;;  %v763_v6 = vld [vmem:[%s1037_s1 + $0x30] sm:$0xff]   ;;  %v767_v10 = vld [vmem:[%s1037_s1 + $0x28] sm:$0xff]  }
   0x4   :  { %v760_v3 = vld [vmem:[%s1037_s1 + $0xb8] sm:$0xff]   ;;  %666 = vmatpush3.bf16.msra.mxu0 %v759_v2  ;;  %v764_v7 = vld [vmem:[%s1037_s1 + $0xb0] sm:$0xff]   ;;  %v768_v11 = vld [vmem:[%s1037_s1 + $0xa8] sm:$0xff]  }
   0x5   :  { %712 = vmatpush3.bf16.msra.mxu1 %v760_v3  ;;  %667 = vmatprep.subr.bf16.mxu0 %v761_v4  ;;  %v769_v12 = vld [vmem:[%s1037_s1 + $0x60] sm:$0xff]   ;;  %v773_v16 = vld [vmem:[%s1037_s1 + $0x58] sm:$0xff]   ;;  %v777_v20 = vld [vmem:[%s1037_s1 + $0x50] sm:$0xff]  }
   0x6   :  { %713 = vmatprep.subr.bf16.mxu1 %v762_v5  ;;  %v770_v13 = vld [vmem:[%s1037_s1 + $0xe0] sm:$0xff]   ;;  %v774_v17 = vld [vmem:[%s1037_s1 + $0xd8] sm:$0xff]   ;;  %v778_v21 = vld [vmem:[%s1037_s1 + $0xd0] sm:$0xff]  }
   0x7   :  { %v771_v14 = vld [vmem:[%s1037_s1 + $0x20] sm:$0xff]   ;;  %v775_v18 = vld [vmem:[%s1037_s1 + $0x18] sm:$0xff]   ;;  %v779_v22 = vld [vmem:[%s1037_s1 + $0x10] sm:$0xff]  }
   0x8   :  { %668 = vmatpush3.bf16.msra.mxu0 %v763_v6  ;;  %v772_v15 = vld [vmem:[%s1037_s1 + $0xa0] sm:$0xff]   ;;  %v776_v19 = vld [vmem:[%s1037_s1 + $0x98] sm:$0xff]   ;;  %v780_v23 = vld [vmem:[%s1037_s1 + $0x90] sm:$0xff]  }
   0x9   :  { %714 = vmatpush3.bf16.msra.mxu1 %v764_v7  ;;  %669 = vmatprep.subr.bf16.mxu0 %v765_v8  ;;  %v781_v24 = vld [vmem:[%s1037_s1 + $0x48] sm:$0xff]   ;;  %v785_v28 = vld [vmem:[%s1037_s1 + $0x40] sm:$0xff]  }
   0xa   :  { %715 = vmatprep.subr.bf16.mxu1 %v766_v9  ;;  %v782_v25 = vld [vmem:[%s1037_s1 + $0xc8] sm:$0xff]   ;;  %v786_v29 = vld [vmem:[%s1037_s1 + $0xc0] sm:$0xff]  }
   0xb   :  { %v783_v26 = vld [vmem:[%s1037_s1 + $0x8] sm:$0xff]   ;;  %v787_v30 = vld [vmem:[%s1037_s1] sm:$0xff]  }
   0xc   :  { %670 = vmatpush3.bf16.msra.mxu0 %v767_v10  ;;  %v784_v27 = vld [vmem:[%s1037_s1 + $0x88] sm:$0xff]   ;;  %v788_v31 = vld [vmem:[%s1037_s1 + $0x80] sm:$0xff]  }
   0xd   :  { %716 = vmatpush3.bf16.msra.mxu1 %v768_v11  ;;  %671 = vmatprep.subr.bf16.mxu0 %v769_v12  ;;  %v789_v32 = vld [vmem:[%s1038_s0] ss:$16 sps:$4 sm:$0xff]   ;;  %v791_v33 = vld [vmem:[%s1038_s0 + $0x4] ss:$16 sps:$4 sm:$0xff]   ;;  %v792_v34 = vld [vmem:[%s1038_s0 + $0x8] ss:$16 sps:$4 sm:$0xff]  }
   0xe   :  { %717 = vmatprep.subr.bf16.mxu1 %v770_v13  ;;  %v794_v35 = vld [vmem:[%s1038_s0 + $0xc] ss:$16 sps:$4 sm:$0xff]   ;;  %422 = vmatprep.mubr.bf16.mxu0 %v791_v33  ;;  %v795_v36 = vld [vmem:[%s1038_s0 + $0x24] ss:$16 sps:$4 sm:$0xff]   ;;  %v799_v38 = vld [vmem:[%s1038_s0 + $0x20] ss:$16 sps:$4 sm:$0xff]  }
   0xf   :  { %494 = vmatprep.mubr.bf16.mxu1 %v794_v35  ;;  %v797_v37 = vld [vmem:[%s1038_s0 + $0x2c] ss:$16 sps:$4 sm:$0xff]   ;;  %v800_v39 = vld [vmem:[%s1038_s0 + $0x28] ss:$16 sps:$4 sm:$0xff]   ;;  %v801_v40 = vld [vmem:[%s1038_s0 + $0x44] ss:$16 sps:$4 sm:$0xff]  }
  0x10   :  { %672 = vmatpush3.bf16.msra.mxu0 %v771_v14  ;;  %v803_v41 = vld [vmem:[%s1038_s0 + $0x4c] ss:$16 sps:$4 sm:$0xff]   ;;  %v805_v42 = vld [vmem:[%s1038_s0 + $0x40] ss:$16 sps:$4 sm:$0xff]   ;;  %v806_v43 = vld [vmem:[%s1038_s0 + $0x48] ss:$16 sps:$4 sm:$0xff]  }
  0x11   :  { %718 = vmatpush3.bf16.msra.mxu1 %v772_v15  ;;  %673 = vmatprep.subr.bf16.mxu0 %v773_v16  ;;  %v807_v44 = vld [vmem:[%s1038_s0 + $0x64] ss:$16 sps:$4 sm:$0xff]   ;;  %v809_v45 = vld [vmem:[%s1038_s0 + $0x6c] ss:$16 sps:$4 sm:$0xff]   ;;  %v811_v48 = vld [vmem:[%s1038_s0 + $0x60] ss:$16 sps:$4 sm:$0xff]  }
  0x12   :  { %719 = vmatprep.subr.bf16.mxu1 %v774_v17  ;;  %v31_v46 = vld [vmem:[%s1038_s0 + $0x80] sm:$0xff]  ;;  %v32_v47 = vld [vmem:[%s1038_s0 + $0x88] sm:$0xff] }
  0x13   :  { %v812_v49 = vld [vmem:[%s1038_s0 + $0x68] ss:$16 sps:$4 sm:$0xff]   ;;  %v612_v50 = vcombine.high %v31_v46, %v31_v46  ;;  %v614_v51 = vcombine.high %v32_v47, %v32_v47  ;;  %v611_v52 = vcombine.low %v31_v46, %v31_v46  ;;  %v613_v53 = vcombine.low %v32_v47, %v32_v47  ;;  %v990_v56 = vld [vmem:[%s1039_s2] ss:$0 sm:$0xff] }
  0x14   :  { %674 = vmatpush3.bf16.msra.mxu0 %v775_v18 }
  0x15   :  { %720 = vmatpush3.bf16.msra.mxu1 %v776_v19  ;;  %675 = vmatprep.subr.bf16.mxu0 %v777_v20 }
  0x16   :  { %721 = vmatprep.subr.bf16.mxu1 %v778_v21 }
  0x18   :  { %676 = vmatpush3.bf16.msra.mxu0 %v779_v22 }
  0x19   :  { %722 = vmatpush3.bf16.msra.mxu1 %v780_v23  ;;  %677 = vmatprep.subr.bf16.mxu0 %v781_v24 }
  0x1a   :  { %723 = vmatprep.subr.bf16.mxu1 %v782_v25 }
  0x1c   :  { %678 = vmatpush3.bf16.msra.mxu0 %v783_v26 }
  0x1d   :  { %724 = vmatpush3.bf16.msra.mxu1 %v784_v27  ;;  %679 = vmatprep.subr.bf16.mxu0 %v785_v28 }
  0x1e   :  { %725 = vmatprep.subr.bf16.mxu1 %v786_v29 }
  0x20   :  { %680 = vmatpush3.bf16.msra.mxu0 %v787_v30 }
  0x21   :  { %726 = vmatpush3.bf16.msra.mxu1 %v788_v31 }
  0x23   :  { %423 = vmatmul.mubr.bf16.vlgmr.msra.gmra.mxu0 %v789_v32 }
  0x24   :  { %495 = vmatmul.mubr.bf16.vlgmr.msra.gmra.mxu1 %v792_v34  ;;  %430 = vmatprep.mubr.bf16.mxu0 %v795_v36 }
  0x25   :  { %502 = vmatprep.mubr.bf16.mxu1 %v797_v37 }
  0x2b   :  { %431 = vmatmul.mubr.bf16.gmra.mxu0 %v799_v38 }
  0x2c   :  { %503 = vmatmul.mubr.bf16.gmra.mxu1 %v800_v39  ;;  %438 = vmatprep.mubr.bf16.mxu0 %v801_v40 }
  0x2d   :  { %510 = vmatprep.mubr.bf16.mxu1 %v803_v41 }
  0x33   :  { %439 = vmatmul.mubr.bf16.gmra.mxu0 %v805_v42 }
  0x34   :  { %511 = vmatmul.mubr.bf16.gmra.mxu1 %v806_v43  ;;  %446 = vmatprep.mubr.bf16.mxu0 %v807_v44 }
  0x35   :  { %518 = vmatprep.mubr.bf16.mxu1 %v809_v45 }
  0x3b   :  { %447 = vmatmul.mubr.bf16.gmra.mxu0 %v811_v48 }
  0x3c   :  { %519 = vmatmul.mubr.bf16.gmra.mxu1 %v812_v49  ;;  %454 = vmatprep.mubr.bf16.mxu0 %v612_v50 }
  0x3d   :  { %526 = vmatprep.mubr.bf16.mxu1 %v614_v51 }
  0x43   :  { %455 = vmatmul.mubr.bf16.gmra.mxu0 %v611_v52 }
  0x44   :  { %527 = vmatmul.mubr.bf16.gmra.mxu1 %v613_v53 }
  0xe3   :  { %v681_v54 = vpop.f32.mrf.mxu0 }
  0xe4   :  { %v727_v55 = vpop.f32.mrf.mxu1 }
  0xe5   :  { %v682_v57 = vpop.f32.mrf.mxu0 }
  0xe6   :  { %v683_v58 = vadd.f32 %v682_v57, %v681_v54  ;;  %v728_v59 = vpop.f32.mrf.mxu1 }
  0xe7   :  { %v684_v60 = vpop.f32.mrf.mxu0  ;;  %v729_v62 = vadd.f32 %v728_v59, %v727_v55 }
  0xe8   :  { %v425_v61 = vadd.f32 %v683_v58, %v990_v56  ;;  %v730_v63 = vpop.f32.mrf.mxu1 }
  0xe9   :  { %v685_v0 = vpop.f32.mrf.mxu0 }
  0xea   :  { %v497_v1 = vadd.f32 %v729_v62, %v425_v61  ;;  %v686_v2 = vadd.f32 %v685_v0, %v684_v60  ;;  %v731_v3 = vpop.f32.mrf.mxu1 }
  0xeb   :  { %v687_v4 = vpop.f32.mrf.mxu0  ;;  %v732_v7 = vadd.f32 %v731_v3, %v730_v63 }
  0xec   :  { %v534_v5 = vmax.f32 %v497_v1, 0.0  ;;  %v428_v6 = vadd.f32 %v686_v2, %v990_v56  ;;  %v733_v8 = vpop.f32.mrf.mxu1 }
  0xed   :  { %v688_v9 = vpop.f32.mrf.mxu0 }
  0xee   :  { %v656_v10 = vpack.c.bf16 %v534_v5, %v534_v5  ;;  %v500_v11 = vadd.f32 %v732_v7, %v428_v6  ;;  %v689_v12 = vadd.f32 %v688_v9, %v687_v4  ;;  %v734_v13 = vpop.f32.mrf.mxu1 }
  0xef   :  { %v690_v14 = vpop.f32.mrf.mxu0  ;;  %v735_v17 = vadd.f32 %v734_v13, %v733_v8 }
  0xf0   :  { %581 = vst.msk [vmem:[%s1040_s3] sm:$0xf] %vm580_vm0, %v656_v10  ;;  %v535_v15 = vmax.f32 %v500_v11, 0.0  ;;  %v433_v16 = vadd.f32 %v689_v12, %v990_v56  ;;  %v736_v18 = vpop.f32.mrf.mxu1 }
  0xf1   :  { %v691_v19 = vpop.f32.mrf.mxu0 }
  0xf2   :  { %v657_v20 = vpack.c.bf16 %v535_v15, %v535_v15  ;;  %v505_v21 = vadd.f32 %v735_v17, %v433_v16  ;;  %v692_v22 = vadd.f32 %v691_v19, %v690_v14  ;;  %v737_v23 = vpop.f32.mrf.mxu1 }
  0xf3   :  { %v693_v24 = vpop.f32.mrf.mxu0  ;;  %v738_v27 = vadd.f32 %v737_v23, %v736_v18 }
  0xf4   :  { %582 = vst.msk [vmem:[%s1040_s3 + $0x4] sm:$0xf] %vm580_vm0, %v657_v20  ;;  %v536_v25 = vmax.f32 %v505_v21, 0.0  ;;  %v436_v26 = vadd.f32 %v692_v22, %v990_v56  ;;  %v739_v28 = vpop.f32.mrf.mxu1 }
  0xf5   :  { %v694_v29 = vpop.f32.mrf.mxu0 }
  0xf6   :  { %v658_v30 = vpack.c.bf16 %v536_v25, %v536_v25  ;;  %v508_v31 = vadd.f32 %v738_v27, %v436_v26  ;;  %v695_v32 = vadd.f32 %v694_v29, %v693_v24  ;;  %v740_v33 = vpop.f32.mrf.mxu1 }
  0xf7   :  { %v696_v34 = vpop.f32.mrf.mxu0  ;;  %v741_v37 = vadd.f32 %v740_v33, %v739_v28 }
  0xf8   :  { %583 = vst.msk [vmem:[%s1040_s3 + $0x8] sm:$0xf] %vm580_vm0, %v658_v30  ;;  %v537_v35 = vmax.f32 %v508_v31, 0.0  ;;  %v441_v36 = vadd.f32 %v695_v32, %v990_v56  ;;  %v742_v38 = vpop.f32.mrf.mxu1 }
  0xf9   :  { %v697_v39 = vpop.f32.mrf.mxu0 }
  0xfa   :  { %v659_v40 = vpack.c.bf16 %v537_v35, %v537_v35  ;;  %v513_v41 = vadd.f32 %v741_v37, %v441_v36  ;;  %v698_v42 = vadd.f32 %v697_v39, %v696_v34  ;;  %v743_v43 = vpop.f32.mrf.mxu1 }
  0xfb   :  { %v699_v44 = vpop.f32.mrf.mxu0  ;;  %v744_v47 = vadd.f32 %v743_v43, %v742_v38 }
  0xfc   :  { %584 = vst.msk [vmem:[%s1040_s3 + $0xc] sm:$0xf] %vm580_vm0, %v659_v40  ;;  %v538_v45 = vmax.f32 %v513_v41, 0.0  ;;  %v444_v46 = vadd.f32 %v698_v42, %v990_v56  ;;  %v745_v48 = vpop.f32.mrf.mxu1 }
  0xfd   :  { %v700_v49 = vpop.f32.mrf.mxu0 }
  0xfe   :  { %v660_v50 = vpack.c.bf16 %v538_v45, %v538_v45  ;;  %v516_v51 = vadd.f32 %v744_v47, %v444_v46  ;;  %v701_v52 = vadd.f32 %v700_v49, %v699_v44  ;;  %v746_v53 = vpop.f32.mrf.mxu1 }
  0xff   :  { %v702_v54 = vpop.f32.mrf.mxu0  ;;  %v747_v58 = vadd.f32 %v746_v53, %v745_v48 }
 0x100   :  { %585 = vst.msk [vmem:[%s1040_s3 + $0x10] sm:$0xf] %vm580_vm0, %v660_v50  ;;  %v539_v55 = vmax.f32 %v516_v51, 0.0  ;;  %v449_v57 = vadd.f32 %v701_v52, %v990_v56  ;;  %v748_v59 = vpop.f32.mrf.mxu1 }
 0x101   :  { %v703_v60 = vpop.f32.mrf.mxu0 }
 0x102   :  { %v661_v61 = vpack.c.bf16 %v539_v55, %v539_v55  ;;  %v521_v62 = vadd.f32 %v747_v58, %v449_v57  ;;  %v704_v63 = vadd.f32 %v703_v60, %v702_v54  ;;  %v749_v0 = vpop.f32.mrf.mxu1 }
 0x103   :  { %v705_v1 = vpop.f32.mrf.mxu0  ;;  %v750_v4 = vadd.f32 %v749_v0, %v748_v59 }
 0x104   :  { %586 = vst.msk [vmem:[%s1040_s3 + $0x14] sm:$0xf] %vm580_vm0, %v661_v61  ;;  %v540_v2 = vmax.f32 %v521_v62, 0.0  ;;  %v452_v3 = vadd.f32 %v704_v63, %v990_v56  ;;  %v751_v5 = vpop.f32.mrf.mxu1 }
 0x105   :  { %v706_v6 = vpop.f32.mrf.mxu0 }
 0x106   :  { %v662_v7 = vpack.c.bf16 %v540_v2, %v540_v2  ;;  %v524_v8 = vadd.f32 %v750_v4, %v452_v3  ;;  %v707_v9 = vadd.f32 %v706_v6, %v705_v1  ;;  %v752_v10 = vpop.f32.mrf.mxu1 }
 0x107   :  { %v708_v11 = vpop.f32.mrf.mxu0  ;;  %v753_v14 = vadd.f32 %v752_v10, %v751_v5 }
 0x108   :  { %587 = vst.msk [vmem:[%s1040_s3 + $0x18] sm:$0xf] %vm580_vm0, %v662_v7  ;;  %v541_v12 = vmax.f32 %v524_v8, 0.0  ;;  %v457_v13 = vadd.f32 %v707_v9, %v990_v56  ;;  %v754_v15 = vpop.f32.mrf.mxu1 }
 0x109   :  { %v709_v16 = vpop.f32.mrf.mxu0 }
 0x10a   :  { %v663_v17 = vpack.c.bf16 %v541_v12, %v541_v12  ;;  %v529_v18 = vadd.f32 %v753_v14, %v457_v13  ;;  %v755_v19 = vpop.f32.mrf.mxu1 }
 0x10c   :  { %588 = vst.msk [vmem:[%s1040_s3 + $0x1c] sm:$0xf] %vm580_vm0, %v663_v17  ;;  %v542_v20 = vmax.f32 %v529_v18, 0.0 }
 0x10e   :  { %v664_v21 = vpack.c.bf16 %v542_v20, %v542_v20 }
 0x110   :  { %589 = vst.msk [vmem:[%s1040_s3 + $0x20] sm:$0xf] %vm580_vm0, %v664_v21 }

// kernel: atari_nature_encoder.5
= control target key start
LH: loop header
LB: loop body
LE: loop exit
PB: predicated region body
PF: predicated region fallthrough
CT: control target
= control target key end

     0   :  { %vm275_vm0 = vcmask 1041409   ;;  %vm278_vm1 = vcmask 1042434   ;;  %vm281_vm2 = vcmask 1043459   ;;  %v13242_v43 = vmov 0.0   ;;  %s13234_s1 = inlined_call_operand.vmem [shape: bf16[576,32], index: 1, kind: input, shape index: {}]   ;;  %s13235_s0 = inlined_call_operand.vmem [shape: bf16[8,16,576], index: 0, kind: input, shape index: {}]   ;;  %s13236_s3 = inlined_call_operand.vmem [shape: bf16[16,32,32], index: 3, kind: input, shape index: {}]   ;;  %s13237_s2 = inlined_call_operand.vmem [shape: f32[1,32], index: 2, kind: input, shape index: {}]   ;;  %s13238_s5 = inlined_call_operand.vmem [shape: bf16[32,16], index: 5, kind: input, shape index: {}]   ;;  %s13239_s4 = inlined_call_operand.vmem [shape: f32[1,32], index: 4, kind: input, shape index: {}]   ;;  %s13240_s6 = inlined_call_operand.vmem [shape: f32[1,16], index: 6, kind: input, shape index: {}]   ;;  %s13241_s7 = inlined_call_operand.vmem [shape: f32[8,16], index: 7, kind: output, shape index: {}]  }
   0x1   :  { %v8265_v0 = vld [vmem:[%s13234_s1 + $0x78] sm:$0xff]   ;;  %v8288_v4 = vld [vmem:[%s13234_s1 + $0x70] sm:$0xff]   ;;  %v8312_v8 = vld [vmem:[%s13234_s1 + $0x68] sm:$0xff]   ;;  %vm284_vm3 = vcmask 1044484   ;;  %vm287_vm4 = vcmask 1045509   ;;  %vm290_vm5 = vcmask 1046534  }
   0x2   :  { %v8270_v1 = vld [vmem:[%s13234_s1 + $0xf8] sm:$0xff]   ;;  %6481 = vmatprep.subr.bf16.mxu0 %v8265_v0  ;;  %v8294_v5 = vld [vmem:[%s13234_s1 + $0xf0] sm:$0xff]   ;;  %v8318_v9 = vld [vmem:[%s13234_s1 + $0xe8] sm:$0xff]   ;;  %vm293_vm6 = vcmask 1047559   ;;  %vm8221_vm7 = vmmov 0   ;;  %vm576_vm8 = vcmask 523264  }
   0x3   :  { %v8276_v2 = vld [vmem:[%s13234_s1 + $0x38] sm:$0xff]   ;;  %6503 = vmatprep.subr.bf16.mxu1 %v8270_v1  ;;  %v8300_v6 = vld [vmem:[%s13234_s1 + $0x30] sm:$0xff]   ;;  %13471 = vst [vmem:[#allocation2_spill] sm:$0xff] %v8318_v9  ;;  %v8324_v10 = vld [vmem:[%s13234_s1 + $0x28] sm:$0xff]   ;;  %vm927_vm9 = vcmask 261120   ;;  %vm5989_vm10 = vcmask 130048  }
   0x4   :  { %v8282_v3 = vld [vmem:[%s13234_s1 + $0xb8] sm:$0xff]   ;;  %6482 = vmatpush3.bf16.msra.mxu0 %v8276_v2  ;;  %v8306_v7 = vld [vmem:[%s13234_s1 + $0xb0] sm:$0xff]   ;;  %v8330_v11 = vld [vmem:[%s13234_s1 + $0xa8] sm:$0xff]  }
   0x5   :  { %6504 = vmatpush3.bf16.msra.mxu1 %v8282_v3  ;;  %6483 = vmatprep.subr.bf16.mxu0 %v8288_v4  ;;  %13472 = vst [vmem:[#allocation3_spill] sm:$0xff] %v8330_v11  ;;  %v8336_v12 = vld [vmem:[%s13234_s1 + $0x60] sm:$0xff]   ;;  %v8360_v16 = vld [vmem:[%s13234_s1 + $0x58] sm:$0xff]   ;;  %v8384_v20 = vld [vmem:[%s13234_s1 + $0x50] sm:$0xff]  }
   0x6   :  { %6505 = vmatprep.subr.bf16.mxu1 %v8294_v5  ;;  %v8342_v13 = vld [vmem:[%s13234_s1 + $0xe0] sm:$0xff]   ;;  %13476 = vst [vmem:[#allocation7_spill] sm:$0xff] %v8360_v16  ;;  %v8366_v17 = vld [vmem:[%s13234_s1 + $0xd8] sm:$0xff]   ;;  %13480 = vst [vmem:[#allocation11_spill] sm:$0xff] %v8384_v20 }
   0x7   :  { %13473 = vst [vmem:[#allocation4_spill] sm:$0xff] %v8342_v13  ;;  %v8348_v14 = vld [vmem:[%s13234_s1 + $0x20] sm:$0xff]   ;;  %13477 = vst [vmem:[#allocation8_spill] sm:$0xff] %v8366_v17  ;;  %v8372_v18 = vld [vmem:[%s13234_s1 + $0x18] sm:$0xff]  }
   0x8   :  { %6484 = vmatpush3.bf16.msra.mxu0 %v8300_v6  ;;  %13474 = vst [vmem:[#allocation5_spill] sm:$0xff] %v8348_v14  ;;  %v8354_v15 = vld [vmem:[%s13234_s1 + $0xa0] sm:$0xff]   ;;  %13478 = vst [vmem:[#allocation9_spill] sm:$0xff] %v8372_v18  ;;  %v8378_v19 = vld [vmem:[%s13234_s1 + $0x98] sm:$0xff]  }
   0x9   :  { %6506 = vmatpush3.bf16.msra.mxu1 %v8306_v7  ;;  %6485 = vmatprep.subr.bf16.mxu0 %v8312_v8  ;;  %13475 = vst [vmem:[#allocation6_spill] sm:$0xff] %v8354_v15  ;;  %13479 = vst [vmem:[#allocation10_spill] sm:$0xff] %v8378_v19  ;;  %v8390_v21 = vld [vmem:[%s13234_s1 + $0xd0] sm:$0xff]   ;;  %v8408_v24 = vld [vmem:[%s13234_s1 + $0x48] sm:$0xff]  }
   0xa   :  { %6507 = vmatprep.subr.bf16.mxu1 %v8318_v9  ;;  %13481 = vst [vmem:[#allocation12_spill] sm:$0xff] %v8390_v21  ;;  %v8396_v22 = vld [vmem:[%s13234_s1 + $0x10] sm:$0xff]   ;;  %13484 = vst [vmem:[#allocation15_spill] sm:$0xff] %v8408_v24  ;;  %v8414_v25 = vld [vmem:[%s13234_s1 + $0xc8] sm:$0xff]  }
   0xb   :  { %13482 = vst [vmem:[#allocation13_spill] sm:$0xff] %v8396_v22  ;;  %v8402_v23 = vld [vmem:[%s13234_s1 + $0x90] sm:$0xff]   ;;  %13485 = vst [vmem:[#allocation16_spill] sm:$0xff] %v8414_v25  ;;  %v8420_v26 = vld [vmem:[%s13234_s1 + $0x8] sm:$0xff]  }
   0xc   :  { %6486 = vmatpush3.bf16.msra.mxu0 %v8324_v10  ;;  %13483 = vst [vmem:[#allocation14_spill] sm:$0xff] %v8402_v23  ;;  %13486 = vst [vmem:[#allocation17_spill] sm:$0xff] %v8420_v26  ;;  %v8426_v27 = vld [vmem:[%s13234_s1 + $0x88] sm:$0xff]   ;;  %v8432_v28 = vld [vmem:[%s13234_s1 + $0x40] sm:$0xff]  }
   0xd   :  { %6508 = vmatpush3.bf16.msra.mxu1 %v8330_v11  ;;  %6487 = vmatprep.subr.bf16.mxu0 %v8336_v12  ;;  %13487 = vst [vmem:[#allocation18_spill] sm:$0xff] %v8426_v27  ;;  %13488 = vst [vmem:[#allocation19_spill] sm:$0xff] %v8432_v28  ;;  %v8438_v29 = vld [vmem:[%s13234_s1 + $0xc0] sm:$0xff]   ;;  %v103_v33 = vld [vmem:[%s13235_s0 + $0x28] sm:$0x11] }
   0xe   :  { %6509 = vmatprep.subr.bf16.mxu1 %v8342_v13  ;;  %13489 = vst [vmem:[#allocation20_spill] sm:$0xff] %v8438_v29  ;;  %v8444_v30 = vld [vmem:[%s13234_s1] sm:$0xff]   ;;  %v106_v34 = vld [vmem:[%s13235_s0 + $0x50] sm:$0x11]  ;;  %v109_v35 = vld [vmem:[%s13235_s0 + $0x78] sm:$0x11]  ;;  %v6002_v38 = vcombine.high %v103_v33, %v103_v33  ;;  %v6001_v47 = vcombine.low %v103_v33, %v103_v33 }
   0xf   :  { %13490 = vst [vmem:[#allocation21_spill] sm:$0xff] %v8444_v30  ;;  %v8450_v31 = vld [vmem:[%s13234_s1 + $0x80] sm:$0xff]   ;;  %v115_v37 = vld [vmem:[%s13235_s0 + $0xc8] sm:$0x11]  ;;  %v118_v39 = vld [vmem:[%s13235_s0 + $0xf0] sm:$0x11]  ;;  %v6007_v41 = vcombine.high %v106_v34, %v106_v34  ;;  %v6012_v42 = vcombine.high %v109_v35, %v109_v35  ;;  %v6006_v48 = vcombine.low %v106_v34, %v106_v34  ;;  %v6011_v51 = vcombine.low %v109_v35, %v109_v35 }
  0x10   :  { %6488 = vmatpush3.bf16.msra.mxu0 %v8348_v14  ;;  %13491 = vst [vmem:[#allocation22_spill] sm:$0xff] %v8450_v31  ;;  %v100_v32 = vld [vmem:[%s13235_s0] sm:$0x11]  ;;  %v121_v40 = vld [vmem:[%s13235_s0 + $0x118] sm:$0x11]  ;;  %v6022_v46 = vcombine.high %v115_v37, %v115_v37  ;;  %v6027_v49 = vcombine.high %v118_v39, %v118_v39  ;;  %v8480_v53 = vunpack.c.l.b16 %v6002_v38  ;;  %v6021_v55 = vcombine.low %v115_v37, %v115_v37 }
  0x11   :  { %6510 = vmatpush3.bf16.msra.mxu1 %v8354_v15  ;;  %6489 = vmatprep.subr.bf16.mxu0 %v8360_v16  ;;  %v112_v36 = vld [vmem:[%s13235_s0 + $0xa0] sm:$0x11]  ;;  %v5997_v44 = vcombine.high %v100_v32, %v100_v32  ;;  %v5996_v50 = vcombine.low %v100_v32, %v100_v32  ;;  %v6032_v52 = vcombine.high %v121_v40, %v121_v40  ;;  %v8482_v56 = vunpack.c.l.b16 %v6007_v41  ;;  %v8652_v15 = vld [vmem:[%s13235_s0 + $0x88] ss:$0 sps:$4 sm:$0x11]  }
  0x12   :  { %6511 = vmatprep.subr.bf16.mxu1 %v8366_v17  ;;  %v6017_v45 = vcombine.high %v112_v36, %v112_v36  ;;  %v6016_v54 = vcombine.low %v112_v36, %v112_v36  ;;  %v8484_v57 = vunpack.c.l.b16 %v6012_v42  ;;  %v6026_v58 = vcombine.low %v118_v39, %v118_v39 }
  0x13   :  { %v8486_v59 = vunpack.c.l.b16 %v5997_v44  ;;  %v8490_v61 = vunpack.c.l.b16 %v6022_v46  ;;  %v6031_v62 = vcombine.low %v121_v40, %v121_v40  ;;  %v8492_v63 = vunpack.c.l.b16 %v6001_v47 }
  0x14   :  { %6490 = vmatpush3.bf16.msra.mxu0 %v8372_v18  ;;  %v8488_v60 = vunpack.c.l.b16 %v6017_v45  ;;  %v8496_v32 = vunpack.c.l.b16 %v6027_v49  ;;  %v8498_v33 = vunpack.c.l.b16 %v6032_v52  ;;  %v295_v34 = vrot.slane %v8480_v53, 7 }
  0x15   :  { %6512 = vmatpush3.bf16.msra.mxu1 %v8378_v19  ;;  %6491 = vmatprep.subr.bf16.mxu0 %v8384_v20  ;;  %v297_v35 = vrot.slane %v8482_v56, 6  ;;  %v299_v36 = vrot.slane %v8484_v57, 5  ;;  %v8503_v37 = vunpack.c.l.b16 %v6011_v51  ;;  %v8505_v38 = vunpack.c.l.b16 %v6016_v54  ;;  %v8657_v20 = vld [vmem:[%s13235_s0 + $0xb0] ss:$0 sps:$4 sm:$0x11]  }
  0x16   :  { %6513 = vmatprep.subr.bf16.mxu1 %v8390_v21  ;;  %v301_v39 = vrot.slane %v8488_v60, 4  ;;  %v8508_v40 = vunpack.c.l.b16 %v5996_v50  ;;  %v8510_v41 = vunpack.c.l.b16 %v6021_v55  ;;  %v296_v42 = vsel %vm275_vm0, %v295_v34, %v8486_v59  ;;  %v104_v34 = vld [vmem:[%s13235_s0 + $0x30] sm:$0x11] }
  0x17   :  { %v303_v44 = vrot.slane %v8490_v61, 3  ;;  %v8515_v45 = vunpack.c.l.b16 %v6026_v58  ;;  %v8517_v46 = vunpack.c.l.b16 %v6031_v62  ;;  %v298_v47 = vsel %vm278_vm1, %v297_v35, %v296_v42  ;;  %v8531_v62 = vld [vmem:[%s13235_s0 + $0x8] sm:$0x11] }
  0x18   :  { %6492 = vmatpush3.bf16.msra.mxu0 %v8396_v22  ;;  %13492 = vst [vmem:[#allocation23_spill] sm:$0xff] %v8510_v41  ;;  %v300_v49 = vsel %vm281_vm2, %v299_v36, %v298_v47  ;;  %v307_v50 = vrot.slane %v8498_v33, 1  ;;  %v274_v51 = vrot.slane %v8492_v63, 7  ;;  %v280_v55 = vrot.slane %v8503_v37, 5  ;;  %v8585_v22 = vld [vmem:[%s13234_s1 + $0x110] sm:$0xff]  }
  0x19   :  { %6514 = vmatpush3.bf16.msra.mxu1 %v8402_v23  ;;  %6493 = vmatprep.subr.bf16.mxu0 %v8408_v24  ;;  %13493 = vst [vmem:[#allocation24_spill] sm:$0xff] %v8515_v45  ;;  %13494 = vst [vmem:[#allocation25_spill] sm:$0xff] %v8517_v46  ;;  %v302_v54 = vsel %vm284_vm3, %v301_v39, %v300_v49  ;;  %v283_v58 = vrot.slane %v8505_v38, 4  ;;  %v286_v39 = vrot.slane %v8510_v41, 3  ;;  %v289_v49 = vrot.slane %v8515_v45, 2 }
  0x1a   :  { %6515 = vmatprep.subr.bf16.mxu1 %v8414_v25  ;;  %v304_v35 = vsel %vm287_vm4, %v303_v44, %v302_v54  ;;  %v276_v36 = vsel %vm275_vm0, %v274_v51, %v8508_v40  ;;  %v292_v44 = vrot.slane %v8517_v46, 1  ;;  %v110_v51 = vld [vmem:[%s13235_s0 + $0x80] sm:$0x11]  ;;  %v6003_v25 = vcombine.low %v104_v34, %v104_v34  ;;  %13496 = vst [vmem:[#allocation27_spill] sm:$0xff] %v8585_v22 }
  0x1b   :  { %v8640_v46 = vld [vmem:[%s13235_s0 + $0x60] ss:$0 sps:$4 sm:$0x11]  }
  0x1c   :  { %6494 = vmatpush3.bf16.msra.mxu0 %v8420_v26 }
  0x1d   :  { %6516 = vmatpush3.bf16.msra.mxu1 %v8426_v27  ;;  %6495 = vmatprep.subr.bf16.mxu0 %v8432_v28  ;;  %v6014_v27 = vcombine.high %v110_v51, %v110_v51 }
  0x1e   :  { %6517 = vmatprep.subr.bf16.mxu1 %v8438_v29 }
  0x20   :  { %6496 = vmatpush3.bf16.msra.mxu0 %v8444_v30 }
  0x21   :  { %6518 = vmatpush3.bf16.msra.mxu1 %v8450_v31  ;;  %7316 = vmatprep.subr.bf16.mxu0 %v13242_v43  ;;  %v107_v43 = vld [vmem:[%s13235_s0 + $0x58] sm:$0x11] }
  0x22   :  { %6530 = vmatprep.subr.bf16.mxu1 %v8265_v0  ;;  %v8494_v0 = vunpack.c.l.b16 %v6006_v48  ;;  %v305_v48 = vrot.slane %v8496_v32, 2  ;;  %v6009_v54 = vcombine.high %v107_v43, %v107_v43  ;;  %v6008_v21 = vcombine.low %v107_v43, %v107_v43 }
  0x24   :  { %v277_v52 = vrot.slane %v8494_v0, 6  ;;  %v306_v42 = vsel %vm290_vm5, %v305_v48, %v304_v35  ;;  %v113_v48 = vld [vmem:[%s13235_s0 + $0xa8] sm:$0x11] }
  0x25   :  { %v308_v31 = vsel %vm293_vm6, %v307_v50, %v306_v42  ;;  %v116_v50 = vld [vmem:[%s13235_s0 + $0xd0] sm:$0x11]  ;;  %v122_v42 = vld [vmem:[%s13235_s0 + $0x120] sm:$0x11]  ;;  %v6019_v30 = vcombine.high %v113_v48, %v113_v48 }
  0x26   :  { %v279_v47 = vsel %vm278_vm1, %v277_v52, %v276_v36  ;;  %v352_v52 = vpack.c.b16 %v308_v31, %v308_v31  ;;  %v5998_v31 = vcombine.low %v8531_v62, %v8531_v62  ;;  %v6024_v23 = vcombine.high %v116_v50, %v116_v50 }
  0x27   :  { %v282_v29 = vsel %vm281_vm2, %v280_v55, %v279_v47  ;;  %v119_v55 = vld [vmem:[%s13235_s0 + $0xf8] sm:$0x11]  ;;  %v6004_v47 = vcombine.high %v104_v34, %v104_v34  ;;  %v6034_v19 = vcombine.high %v122_v42, %v122_v42  ;;  %v8591_v43 = vunpack.c.l.b16 %v6019_v30 }
  0x28   :  { %v285_v35 = vsel %vm284_vm3, %v283_v58, %v282_v29  ;;  %612 = vmatprep.mubr.bf16.mxu0 %v352_v52  ;;  %v5999_v58 = vcombine.high %v8531_v62, %v8531_v62  ;;  %v6029_v28 = vcombine.high %v119_v55, %v119_v55  ;;  %v6013_v52 = vcombine.low %v110_v51, %v110_v51 }
  0x29   :  { %v288_v36 = vsel %vm287_vm4, %v286_v39, %v285_v35  ;;  %v8575_v39 = vld [vmem:[%s13234_s1 + $0x118] sm:$0xff]   ;;  %v8578_v24 = vunpack.c.l.b16 %v6004_v47  ;;  %v8580_v62 = vunpack.c.l.b16 %v6009_v54  ;;  %v6033_v51 = vcombine.low %v122_v42, %v122_v42 }
  0x2a   :  { %v291_v29 = vsel %vm290_vm5, %v289_v49, %v288_v36  ;;  %13495 = vst [vmem:[#allocation26_spill] sm:$0xff] %v8575_v39  ;;  %v6018_v49 = vcombine.low %v113_v48, %v113_v48  ;;  %v6023_v36 = vcombine.low %v116_v50, %v116_v50  ;;  %v8587_v34 = vunpack.c.l.b16 %v5999_v58 }
  0x2b   :  { %v294_v35 = vsel %vm293_vm6, %v292_v44, %v291_v29  ;;  %v6028_v44 = vcombine.low %v119_v55, %v119_v55  ;;  %v8589_v29 = vunpack.c.l.b16 %v6014_v27  ;;  %v8593_v48 = vunpack.c.l.b16 %v6003_v25 }
  0x2c   :  { %v351_v26 = vpack.c.b16 %v294_v35, %v294_v35  ;;  %v8595_v50 = vunpack.c.l.b16 %v6024_v23  ;;  %v8597_v54 = vunpack.c.l.b16 %v6029_v28  ;;  %v13497_v47 = vmov 0.0  }
  0x2d   :  { %v8604_v55 = vunpack.c.l.b16 %v6034_v19  ;;  %v323_v27 = vrot.slane %v8578_v24, 7  ;;  %v325_v30 = vrot.slane %v8580_v62, 6  ;;  %v8609_v23 = vunpack.c.l.b16 %v6013_v52  ;;  %v8623_v19 = vld [vmem:[%s13235_s0 + $0x10] ss:$0 sps:$4 sm:$0x11]  }
  0x2e   :  { %613 = vmatmul.mubr.bf16.vlgmr.msra.gmra.mxu0 %v351_v26  ;;  %v8602_v26 = vunpack.c.l.b16 %v6008_v21  ;;  %v8611_v25 = vunpack.c.l.b16 %v6018_v49  ;;  %v327_v28 = vrot.slane %v8589_v29, 5  ;;  %v329_v42 = vrot.slane %v8591_v43, 4  ;;  %v8618_v21 = vld [vmem:[%s13234_s1 + $0x108] sm:$0xff]  }
  0x2f   :  { %7317 = vmatpush3.bf16.msra.mxu0 %v8575_v39  ;;  %7324 = vmatprep.mubr.msk.bf16.mxu0 %vm8221_vm7, %v13497_v47  ;;  %13499 = vst [vmem:[#allocation29_spill] sm:$0xff] %v8618_v21  ;;  %v8625_v58 = vunpack.c.l.b16 %v6023_v36  ;;  %v8627_v35 = vunpack.c.l.b16 %v6028_v44  ;;  %v324_v52 = vsel %vm275_vm0, %v323_v27, %v8587_v34  ;;  %v331_v49 = vrot.slane %v8595_v50, 3  ;;  %v8635_v39 = vld [vmem:[%s13235_s0 + $0x38] ss:$0 sps:$4 sm:$0x11]  }
  0x30   :  { %7318 = vmatprep.subr.bf16.mxu0 %v13497_v47  ;;  %13498 = vst [vmem:[#allocation28_spill] sm:$0xff] %v8611_v25  ;;  %v8642_v17 = vunpack.c.l.b16 %v5998_v31  ;;  %v8644_v36 = vunpack.c.l.b16 %v6033_v51  ;;  %v326_v44 = vsel %vm278_vm1, %v325_v30, %v324_v52  ;;  %v333_v27 = vrot.slane %v8597_v54, 2  ;;  %v8665_v30 = vld [vmem:[%s13235_s0 + $0xd8] ss:$0 sps:$4 sm:$0x11]  }
  0x31   :  { %13500 = vst [vmem:[#allocation30_spill] sm:$0xff] %v8625_v58  ;;  %13501 = vst [vmem:[#allocation31_spill] sm:$0xff] %v8627_v35  ;;  %v328_v31 = vsel %vm281_vm2, %v327_v28, %v326_v44  ;;  %v335_v51 = vrot.slane %v8604_v55, 1  ;;  %v8670_v52 = vld [vmem:[%s13235_s0 + $0x100] ss:$0 sps:$4 sm:$0x11]  }
  0x32   :  { %13502 = vst [vmem:[#allocation32_spill] sm:$0xff] %v8644_v36  ;;  %v330_v28 = vsel %vm284_vm3, %v329_v42, %v328_v31  ;;  %v309_v44 = vrot.slane %v8593_v48, 7  ;;  %v311_v45 = vrot.slane %v8602_v26, 6  ;;  %v313_v18 = vrot.slane %v8609_v23, 5  ;;  %v8693_v31 = vld [vmem:[%s13234_s1 + $0x100] sm:$0xff]  }
  0x33   :  { %7319 = vmatpush3.bf16.msra.mxu0 %v8585_v22  ;;  %v8675_v22 = vld [vmem:[%s13235_s0 + $0x128] ss:$0 sps:$4 sm:$0x11]   ;;  %v332_v13 = vsel %vm287_vm4, %v331_v49, %v330_v28  ;;  %v315_v11 = vrot.slane %v8611_v25, 4  ;;  %v317_v41 = vrot.slane %v8625_v58, 3  ;;  %v319_v16 = vrot.slane %v8627_v35, 2 }
  0x34   :  { %7320 = vmatprep.subr.bf16.mxu0 %v13497_v47  ;;  %v334_v14 = vsel %vm290_vm5, %v333_v27, %v332_v13  ;;  %v310_v9 = vsel %vm275_vm0, %v309_v44, %v8642_v17  ;;  %v321_v42 = vrot.slane %v8644_v36, 1  ;;  %v13275_v13 = vunpack.c.l.b16 %v8635_v39 }
  0x35   :  { %v336_v28 = vsel %vm293_vm6, %v335_v51, %v334_v14  ;;  %v312_v35 = vsel %vm278_vm1, %v311_v45, %v310_v9  ;;  %v248_v27 = vunpack.c.l.b16 %v8640_v46  ;;  %v13276_v36 = vunpack.c.l.b16 %v8652_v15 }
  0x36   :  { %v354_v44 = vpack.c.b16 %v336_v28, %v336_v28  ;;  %v13277_v58 = vunpack.c.l.b16 %v8657_v20  ;;  %v13278_v49 = vunpack.c.l.b16 %v8665_v30  ;;  %v268_v14 = vunpack.c.l.b16 %v8670_v52  ;;  %v13540_v52 = vld [vmem:[#allocation29_spill] sm:$0xff] }
  0x37   :  { %7321 = vmatpush3.bf16.msra.mxu0 %v8618_v21  ;;  %v314_v21 = vsel %vm281_vm2, %v313_v18, %v312_v35  ;;  %v273_v9 = vunpack.c.l.b16 %v8675_v22  ;;  %v337_v18 = vrot.slane %v13275_v13, 7  ;;  %v339_v35 = vrot.slane %v248_v27, 6  ;;  %v7722_v22 = vld [vmem:[%s13236_s3 + $0x8] sm:$0xff]  }
  0x38   :  { %7322 = vmatprep.subr.bf16.mxu0 %v13497_v47  ;;  %v316_v25 = vsel %vm284_vm3, %v315_v11, %v314_v21  ;;  %652 = vmatprep.mubr.bf16.mxu1 %v354_v44  ;;  %v341_v11 = vrot.slane %v13276_v36, 5  ;;  %v748_v21 = vrot.slane %v8587_v34, 1  ;;  %v343_v28 = vrot.slane %v13277_v58, 4 }
  0x39   :  { %v318_v45 = vsel %vm287_vm4, %v317_v41, %v316_v25  ;;  %v345_v41 = vrot.slane %v13278_v49, 3  ;;  %v13503_v44 = vunpack.c.l.b16 %v8623_v19  ;;  %v347_v36 = vrot.slane %v268_v14, 2 }
  0x3a   :  { %v320_v51 = vsel %vm290_vm5, %v319_v16, %v318_v45  ;;  %v13504_v34 = vrot.slane %v8486_v59, 1  ;;  %v722_v49 = vrot.slane %v8482_v56, 7  ;;  %v732_v56 = vrot.slane %v8498_v33, 2 }
  0x3b   :  { %7323 = vmatpush3.bf16.msra.mxu0 %v8693_v31  ;;  %v322_v25 = vsel %vm293_vm6, %v321_v42, %v320_v51  ;;  %v338_v13 = vsel %vm275_vm0, %v337_v18, %v13503_v44  ;;  %v349_v18 = vrot.slane %v273_v9, 1  ;;  %v726_v51 = vrot.slane %v8488_v60, 5 }
  0x3c   :  { %6552 = vmatprep.subr.bf16.mxu0 %v8270_v1  ;;  %v721_v16 = vsel %vm275_vm0, %v8480_v53, %v13504_v34  ;;  %v353_v45 = vpack.c.b16 %v322_v25, %v322_v25  ;;  %v340_v58 = vsel %vm278_vm1, %v339_v35, %v338_v13  ;;  %v724_v1 = vrot.slane %v8484_v57, 6 }
  0x3d   :  { %v342_v42 = vsel %vm281_vm2, %v341_v11, %v340_v58  ;;  %v728_v44 = vrot.slane %v8490_v61, 4  ;;  %v723_v53 = vsel %vm278_vm1, %v722_v49, %v721_v16  ;;  %v730_v13 = vrot.slane %v8496_v32, 3 }
  0x3e   :  { %653 = vmatmul.mubr.bf16.vlgmr.msra.gmra.mxu1 %v353_v45  ;;  %v344_v59 = vsel %vm284_vm3, %v343_v28, %v342_v42  ;;  %v725_v58 = vsel %vm281_vm2, %v724_v1, %v723_v53  ;;  %v749_v60 = vsel %vm275_vm0, %v8578_v24, %v748_v21  ;;  %v750_v32 = vrot.slane %v8580_v62, 7  ;;  %v13507_v45 = vld [vmem:[#allocation7_spill] sm:$0xff] }
  0x3f   :  { %6531 = vmatpush3.bf16.msra.mxu1 %v8276_v2  ;;  %v346_v57 = vsel %vm287_vm4, %v345_v41, %v344_v59  ;;  %v727_v49 = vsel %vm284_vm3, %v726_v51, %v725_v58  ;;  %v706_v33 = vrot.slane %v8508_v40, 1  ;;  %v752_v11 = vrot.slane %v8589_v29, 6  ;;  %v13508_v1 = vld [vmem:[#allocation23_spill] sm:$0xff]  ;;  %v13512_v59 = vld [vmem:[#allocation24_spill] sm:$0xff] }
  0x40   :  { %6532 = vmatprep.subr.bf16.mxu1 %v8288_v4  ;;  %v348_v61 = vsel %vm290_vm5, %v347_v36, %v346_v57  ;;  %v729_v35 = vsel %vm287_vm4, %v728_v44, %v727_v49  ;;  %v751_v4 = vsel %vm278_vm1, %v750_v32, %v749_v60  ;;  %v754_v62 = vrot.slane %v8591_v43, 5  ;;  %v13511_v44 = vld [vmem:[#allocation9_spill] sm:$0xff]  ;;  %v13515_v57 = vld [vmem:[#allocation6_spill] sm:$0xff]  ;;  %v13517_v49 = vld [vmem:[#allocation8_spill] sm:$0xff] }
  0x41   :  { %v350_v2 = vsel %vm293_vm6, %v349_v18, %v348_v61  ;;  %v731_v24 = vsel %vm290_vm5, %v730_v13, %v729_v35  ;;  %v753_v21 = vsel %vm281_vm2, %v752_v11, %v751_v4  ;;  %v708_v40 = vrot.slane %v8494_v0, 7  ;;  %v13509_v18 = vld [vmem:[#allocation3_spill] sm:$0xff]  ;;  %v13513_v13 = vld [vmem:[#allocation28_spill] sm:$0xff]  ;;  %v13518_v32 = vld [vmem:[#allocation25_spill] sm:$0xff] }
  0x42   :  { %v355_v28 = vpack.c.b16 %v350_v2, %v350_v2  ;;  %v733_v36 = vsel %vm293_vm6, %v732_v56, %v731_v24  ;;  %v756_v41 = vrot.slane %v8595_v50, 4  ;;  %v758_v25 = vrot.slane %v8597_v54, 3  ;;  %v13514_v56 = vld [vmem:[#allocation11_spill] sm:$0xff]  ;;  %v13519_v2 = vld [vmem:[#allocation30_spill] sm:$0xff]  ;;  %v13520_v11 = vld [vmem:[#allocation13_spill] sm:$0xff] }
  0x43   :  { %6533 = vmatpush3.bf16.msra.mxu1 %v8300_v6  ;;  %v777_v29 = vpack.c.b16 %v733_v36, %v733_v36  ;;  %v707_v6 = vsel %vm275_vm0, %v8492_v63, %v706_v33  ;;  %v755_v34 = vsel %vm284_vm3, %v754_v62, %v753_v21  ;;  %v760_v43 = vrot.slane %v8604_v55, 2  ;;  %v13522_v21 = vld [vmem:[#allocation10_spill] sm:$0xff] }
  0x44   :  { %6534 = vmatprep.subr.bf16.mxu1 %v8312_v8  ;;  %7325 = vmatmul.mubr.msk.bf16.vlgmr.msra.gmra.mxu0 %vm576_vm8, %v355_v28  ;;  %v757_v8 = vsel %vm287_vm4, %v756_v41, %v755_v34  ;;  %v710_v0 = vrot.slane %v8503_v37, 6  ;;  %v734_v50 = vrot.slane %v8642_v17, 1  ;;  %v709_v63 = vsel %vm278_vm1, %v708_v40, %v707_v6  ;;  %v13505_v37 = vld [vmem:[#allocation2_spill] sm:$0xff]  ;;  %v13506_v17 = vld [vmem:[#allocation5_spill] sm:$0xff]  ;;  %v13521_v28 = vld [vmem:[#allocation15_spill] sm:$0xff] }
  0x45   :  { %6553 = vmatpush3.bf16.msra.mxu0 %v8282_v3  ;;  %820 = vmatprep.mubr.bf16.mxu1 %v777_v29  ;;  %v759_v3 = vsel %vm290_vm5, %v758_v25, %v757_v8  ;;  %v712_v55 = vrot.slane %v8505_v38, 5  ;;  %v736_v16 = vrot.slane %v8602_v26, 7  ;;  %v714_v42 = vrot.slane %v13508_v1, 4  ;;  %v13510_v38 = vld [vmem:[#allocation4_spill] sm:$0xff]  ;;  %v13524_v40 = vld [vmem:[#allocation31_spill] sm:$0xff]  ;;  %v13526_v25 = vld [vmem:[#allocation17_spill] sm:$0xff] }
  0x46   :  { %6554 = vmatprep.subr.bf16.mxu0 %v8294_v5  ;;  %v761_v54 = vsel %vm293_vm6, %v760_v43, %v759_v3  ;;  %v716_v53 = vrot.slane %v13512_v59, 3  ;;  %v13516_v60 = vunpack.c.l.b16 %v8623_v19  ;;  %v718_v33 = vrot.slane %v13518_v32, 2  ;;  %v13525_v41 = vld [vmem:[#allocation12_spill] sm:$0xff]  ;;  %v7724_v59 = vld [vmem:[%s13236_s3 + $0x18] sm:$0xff]  }
  0x47   :  { %6535 = vmatpush3.bf16.msra.mxu1 %v8324_v10  ;;  %v779_v5 = vpack.c.b16 %v761_v54, %v761_v54  ;;  %v711_v10 = vsel %vm281_vm2, %v710_v0, %v709_v63  ;;  %v742_v35 = vrot.slane %v13519_v2, 4  ;;  %v764_v36 = vrot.slane %v248_v27, 7  ;;  %v13528_v27 = vld [vmem:[#allocation19_spill] sm:$0xff]  ;;  %v13531_v63 = vld [vmem:[#allocation16_spill] sm:$0xff] }
  0x48   :  { %6536 = vmatprep.subr.bf16.mxu1 %v8336_v12  ;;  %v735_v12 = vsel %vm275_vm0, %v8593_v48, %v734_v50  ;;  %v713_v26 = vsel %vm284_vm3, %v712_v55, %v711_v10  ;;  %v740_v48 = vrot.slane %v13513_v13, 5  ;;  %v762_v61 = vrot.slane %v13516_v60, 1  ;;  %v13530_v50 = vld [vmem:[#allocation14_spill] sm:$0xff]  ;;  %v8891_v13 = vld [vmem:[%s13234_s1 + $0x78] sm:$0xff]  }
  0x49   :  { %6555 = vmatpush3.bf16.msra.mxu0 %v8306_v7  ;;  %860 = vmatprep.mubr.bf16.mxu0 %v779_v5  ;;  %v738_v7 = vrot.slane %v8609_v23, 6  ;;  %v737_v51 = vsel %vm278_vm1, %v736_v16, %v735_v12  ;;  %v715_v23 = vsel %vm287_vm4, %v714_v42, %v713_v26  ;;  %v13523_v19 = vunpack.c.l.b16 %v8635_v39  ;;  %v13529_v39 = vld [vmem:[#allocation32_spill] sm:$0xff]  ;;  %v13533_v16 = vld [vmem:[#allocation21_spill] sm:$0xff]  ;;  %13541 = vst [vmem:[#allocation2_spill] sm:$0xff] %v8891_v13 }
  0x4a   :  { %6556 = vmatprep.subr.bf16.mxu0 %v13505_v37  ;;  %v717_v24 = vsel %vm290_vm5, %v716_v53, %v715_v23  ;;  %v744_v29 = vrot.slane %v13524_v40, 3  ;;  %v13527_v43 = vunpack.c.l.b16 %v8652_v15  ;;  %v746_v0 = vrot.slane %v13529_v39, 2  ;;  %v13534_v37 = vld [vmem:[#allocation18_spill] sm:$0xff]  ;;  %v7725_v53 = vld [vmem:[%s13236_s3 + $0x10] sm:$0xff]   ;;  %v8916_v60 = vld [vmem:[%s13235_s0 + $0x58] sm:$0x22] }
  0x4b   :  { %6537 = vmatpush3.bf16.msra.mxu1 %v13506_v17  ;;  %v739_v58 = vsel %vm281_vm2, %v738_v7, %v737_v51  ;;  %v763_v62 = vsel %vm275_vm0, %v13523_v19, %v762_v61  ;;  %v719_v6 = vsel %vm293_vm6, %v718_v33, %v717_v24  ;;  %v13532_v5 = vunpack.c.l.b16 %v8657_v20  ;;  %v13537_v20 = vld [vmem:[#allocation26_spill] sm:$0xff]  ;;  %v8925_v33 = vld [vmem:[%s13235_s0 + $0xa8] sm:$0x22] }
  0x4c   :  { %6538 = vmatprep.subr.bf16.mxu1 %v13507_v45  ;;  %v741_v4 = vsel %vm284_vm3, %v740_v48, %v739_v58  ;;  %v766_v46 = vrot.slane %v13527_v43, 6  ;;  %v765_v8 = vsel %vm278_vm1, %v764_v36, %v763_v62  ;;  %v776_v3 = vpack.c.b16 %v719_v6, %v719_v6  ;;  %v13536_v45 = vld [vmem:[#allocation20_spill] sm:$0xff]  ;;  %v8897_v48 = vld [vmem:[%s13235_s0 + $0x8] sm:$0x22]  ;;  %v8911_v58 = vld [vmem:[%s13235_s0 + $0x80] sm:$0x22] }
  0x4d   :  { %6557 = vmatpush3.bf16.msra.mxu0 %v13509_v18  ;;  %v743_v34 = vsel %vm287_vm4, %v742_v35, %v741_v4  ;;  %v768_v55 = vrot.slane %v13532_v5, 5  ;;  %v13535_v10 = vunpack.c.l.b16 %v8665_v30  ;;  %v772_v7 = vrot.slane %v268_v14, 3  ;;  %v13538_v18 = vld [vmem:[#allocation22_spill] sm:$0xff]  ;;  %v8936_v36 = vld [vmem:[%s13235_s0 + $0xd0] sm:$0x22] }
  0x4e   :  { %6558 = vmatprep.subr.bf16.mxu0 %v13510_v38  ;;  %v745_v54 = vsel %vm290_vm5, %v744_v29, %v743_v34  ;;  %v767_v15 = vsel %vm281_vm2, %v766_v46, %v765_v8  ;;  %v13539_v38 = vld [vmem:[#allocation27_spill] sm:$0xff]  ;;  %v774_v26 = vrot.slane %v273_v9, 2  ;;  %v7723_v9 = vld [vmem:[%s13236_s3] sm:$0xff]   ;;  %v6102_v2 = vcombine.high %v8911_v58, %v8911_v58  ;;  %v8947_v29 = vld [vmem:[%s13235_s0 + $0xf8] sm:$0x22] }
  0x4f   :  { %6539 = vmatpush3.bf16.msra.mxu1 %v13511_v44  ;;  %v747_v17 = vsel %vm293_vm6, %v746_v0, %v745_v54  ;;  %v770_v12 = vrot.slane %v13535_v10, 4  ;;  %v769_v1 = vsel %vm284_vm3, %v768_v55, %v767_v15  ;;  %v8958_v43 = vld [vmem:[%s13235_s0 + $0x120] sm:$0x22]  ;;  %v6117_v46 = vcombine.high %v8947_v29, %v8947_v29  ;;  %v8976_v5 = vld [vmem:[%s13237_s2] ss:$0 sm:$0xff] }
  0x50   :  { %6540 = vmatprep.subr.bf16.mxu1 %v13514_v56  ;;  %v778_v42 = vpack.c.b16 %v747_v17, %v747_v17  ;;  %v8902_v56 = vld [vmem:[%s13235_s0 + $0x30] sm:$0x22]  ;;  %v8940_v19 = vunpack.c.l.b16 %v6102_v2  ;;  %v6122_v0 = vcombine.high %v8958_v43, %v8958_v43  ;;  %v6096_v2 = vcombine.low %v8916_v60, %v8916_v60 }
  0x51   :  { %6559 = vmatpush3.bf16.msra.mxu0 %v13515_v57  ;;  %v771_v30 = vsel %vm287_vm4, %v770_v12, %v769_v1  ;;  %v6087_v57 = vcombine.high %v8897_v48, %v8897_v48  ;;  %v6092_v23 = vcombine.high %v8902_v56, %v8902_v56 }
  0x52   :  { %6560 = vmatprep.subr.bf16.mxu0 %v13517_v49  ;;  %v773_v51 = vsel %vm290_vm5, %v772_v7, %v771_v30  ;;  %v1240_v34 = vrot.slane %v8940_v19, 7 }
  0x53   :  { %6541 = vmatpush3.bf16.msra.mxu1 %v13520_v11  ;;  %v775_v14 = vsel %vm293_vm6, %v774_v26, %v773_v51  ;;  %v8918_v61 = vunpack.c.l.b16 %v6087_v57  ;;  %v8920_v49 = vunpack.c.l.b16 %v6092_v23  ;;  %v6097_v11 = vcombine.high %v8916_v60, %v8916_v60  ;;  %v9029_v60 = vld [vmem:[%s13234_s1 + $0xb0] sm:$0xff]  }
  0x54   :  { %6542 = vmatprep.subr.bf16.mxu1 %v13521_v28  ;;  %v780_v44 = vpack.c.b16 %v775_v14, %v775_v14  ;;  %v6091_v14 = vcombine.low %v8902_v56, %v8902_v56  ;;  %v9007_v56 = vld [vmem:[%s13234_s1 + $0xf0] sm:$0xff]  }
  0x55   :  { %6561 = vmatpush3.bf16.msra.mxu0 %v13522_v21  ;;  %v1236_v28 = vrot.slane %v8918_v61, 2  ;;  %v1237_v24 = vrot.slane %v8920_v49, 1  ;;  %v6107_v21 = vcombine.high %v8925_v33, %v8925_v33  ;;  %v8942_v40 = vunpack.c.l.b16 %v6097_v11 }
  0x56   :  { %6562 = vmatprep.subr.bf16.mxu0 %v13525_v41  ;;  %v6112_v41 = vcombine.high %v8936_v36, %v8936_v36  ;;  %v8993_v23 = vunpack.c.l.b16 %v6091_v14  ;;  %v9127_v14 = vld [vmem:[%s13234_s1 + $0x98] sm:$0xff]  }
  0x57   :  { %6543 = vmatpush3.bf16.msra.mxu1 %v13526_v25  ;;  %v1238_v25 = vsel %vm275_vm0, %v1237_v24, %v1236_v28  ;;  %v8952_v6 = vunpack.c.l.b16 %v6107_v21  ;;  %v6106_v24 = vcombine.low %v8925_v33, %v8925_v33  ;;  %v9037_v21 = vld [vmem:[%s13234_s1 + $0xe8] sm:$0xff]  }
  0x58   :  { %6544 = vmatprep.subr.bf16.mxu1 %v13528_v27  ;;  %v1239_v27 = vsel %vm278_vm1, %v8942_v40, %v1238_v25  ;;  %v8964_v8 = vunpack.c.l.b16 %v6112_v41  ;;  %v1223_v28 = vrot.slane %v8993_v23, 1  ;;  %v9044_v41 = vunpack.c.l.b16 %v6096_v2 }
  0x59   :  { %6563 = vmatpush3.bf16.msra.mxu0 %v13530_v50  ;;  %v1242_v39 = vrot.slane %v8952_v6, 6  ;;  %v1241_v50 = vsel %vm281_vm2, %v1240_v34, %v1239_v27  ;;  %v6111_v25 = vcombine.low %v8936_v36, %v8936_v36  ;;  %v9054_v27 = vld [vmem:[%s13234_s1 + $0xa8] sm:$0xff]   ;;  %v9066_v36 = vld [vmem:[%s13234_s1 + $0xe0] sm:$0xff]  }
  0x5a   :  { %6564 = vmatprep.subr.bf16.mxu0 %v13531_v63  ;;  %v1244_v54 = vrot.slane %v8964_v8, 5 }
  0x5b   :  { %6545 = vmatpush3.bf16.msra.mxu1 %v13533_v16  ;;  %v1243_v55 = vsel %vm284_vm3, %v1242_v39, %v1241_v50  ;;  %v8979_v16 = vunpack.c.l.b16 %v6122_v0  ;;  %v9060_v39 = vld [vmem:[%s13235_s0 + $0x78] sm:$0x22]  ;;  %v9072_v50 = vld [vmem:[%s13235_s0 + $0x50] sm:$0x22] }
  0x5c   :  { %7328 = vmatprep.subr.bf16.mxu1 %v13497_v47  ;;  %v1245_v10 = vsel %vm287_vm4, %v1244_v54, %v1243_v55  ;;  %v6116_v55 = vcombine.low %v8947_v29, %v8947_v29  ;;  %v6095_v29 = vcombine.high %v9072_v50, %v9072_v50 }
  0x5d   :  { %6565 = vmatpush3.bf16.msra.mxu0 %v13534_v37  ;;  %v1248_v1 = vrot.slane %v8979_v16, 3 }
  0x5e   :  { %821 = vmatmul.mubr.bf16.vlgmr.msra.gmra.mxu1 %v776_v3  ;;  %6566 = vmatprep.subr.bf16.mxu0 %v13536_v45  ;;  %v8970_v3 = vunpack.c.l.b16 %v6117_v46  ;;  %v9049_v46 = vunpack.c.l.b16 %v6106_v24 }
  0x5f   :  { %7329 = vmatpush3.bf16.msra.mxu1 %v13537_v20  ;;  %7336 = vmatprep.mubr.msk.bf16.mxu1 %vm8221_vm7, %v13497_v47 }
  0x60   :  { %7330 = vmatprep.subr.bf16.mxu1 %v13497_v47  ;;  %v1246_v37 = vrot.slane %v8970_v3, 4 }
  0x61   :  { %6567 = vmatpush3.bf16.msra.mxu0 %v13538_v18 }
  0x62   :  { %7340 = vmatprep.subr.bf16.mxu0 %v13497_v47 }
  0x63   :  { %7331 = vmatpush3.bf16.msra.mxu1 %v13539_v38 }
  0x64   :  { %7332 = vmatprep.subr.bf16.mxu1 %v13497_v47  ;;  %861 = vmatmul.mubr.bf16.vlgmr.msra.gmra.mxu0 %v778_v42  ;;  %v1247_v42 = vsel %vm290_vm5, %v1246_v37, %v1245_v10  ;;  %v9082_v37 = vunpack.c.l.b16 %v6111_v25  ;;  %v6100_v10 = vcombine.high %v9060_v39, %v9060_v39  ;;  %v9156_v25 = vld [vmem:[%s13234_s1 + $0x90] sm:$0xff]  }
  0x65   :  { %7344 = vmatprep.mubr.msk.bf16.mxu0 %vm8221_vm7, %v13497_v47  ;;  %7341 = vmatpush3.bf16.msra.mxu0 %v7724_v59  ;;  %v1249_v26 = vsel %vm293_vm6, %v1248_v1, %v1247_v42  ;;  %v6121_v1 = vcombine.low %v8958_v43, %v8958_v43  ;;  %v9106_v42 = vld [vmem:[%s13234_s1 + $0xd8] sm:$0xff]   ;;  %13544 = vst [vmem:[#allocation23_spill] sm:$0xff] %v9156_v25 }
  0x66   :  { %7342 = vmatprep.subr.bf16.mxu0 %v13497_v47 }
  0x67   :  { %7333 = vmatpush3.bf16.msra.mxu1 %v13540_v52  ;;  %v6086_v52 = vcombine.low %v8897_v48, %v8897_v48  ;;  %v6101_v48 = vcombine.low %v8911_v58, %v8911_v58  ;;  %v9020_v58 = vld [vmem:[%s13235_s0 + $0x28] sm:$0x22] }
  0x68   :  { %7334 = vmatprep.subr.bf16.mxu1 %v13497_v47  ;;  %v6090_v33 = vcombine.high %v9020_v58, %v9020_v58 }
  0x69   :  { %7343 = vmatpush3.bf16.msra.mxu0 %v7725_v53  ;;  %v8991_v57 = vunpack.c.l.b16 %v6086_v52 }
  0x6a   :  { %6585 = vmatprep.subr.bf16.mxu0 %v8891_v13  ;;  %v9076_v54 = vunpack.c.l.b16 %v6090_v33 }
  0x6b   :  { %7335 = vmatpush3.bf16.msra.mxu1 %v8693_v31  ;;  %v8878_v31 = vld [vmem:[%s13234_s1 + $0xf8] sm:$0xff]   ;;  %v1222_v11 = vrot.slane %v8991_v57, 2 }
  0x6c   :  { %7348 = vmatprep.subr.bf16.mxu1 %v13497_v47 }
  0x6d   :  { %v1224_v34 = vsel %vm275_vm0, %v1223_v28, %v1222_v11 }
  0x6e   :  { %7337 = vmatmul.mubr.msk.bf16.vlgmr.msra.gmra.mxu1 %vm576_vm8, %v780_v44 }
  0x6f   :  { %7352 = vmatprep.mubr.msk.bf16.mxu1 %vm8221_vm7, %v13497_v47  ;;  %7349 = vmatpush3.bf16.msra.mxu1 %v7722_v22 }
  0x70   :  { %7350 = vmatprep.subr.bf16.mxu1 %v13497_v47 }
  0x73   :  { %7351 = vmatpush3.bf16.msra.mxu1 %v7723_v9  ;;  %v1267_v9 = vpack.c.b16 %v1249_v26, %v1249_v26  ;;  %v1230_v26 = vrot.slane %v9082_v37, 5 }
  0x74   :  { %6607 = vmatprep.subr.bf16.mxu1 %v8878_v31 }
  0xee   :  { %v6497_v32 = vpop.f32.mrf.mxu0 }
  0xf0   :  { %v6498_v35 = vpop.f32.mrf.mxu0 }
  0xf1   :  { %v6499_v63 = vadd.f32 %v6498_v35, %v6497_v32  ;;  %v8999_v32 = vld [vmem:[%s13234_s1 + $0xb8] sm:$0xff]   ;;  %v9015_v35 = vld [vmem:[%s13235_s0] sm:$0x22] }
  0xf2   :  { %v6500_v4 = vpop.f32.mrf.mxu0 }
  0xf3   :  { %v615_v17 = vadd.f32 %v6499_v63, %v8976_v5  ;;  %v9032_v4 = vunpack.c.l.b16 %v6101_v48 }
  0xf4   :  { %v6501_v62 = vpop.f32.mrf.mxu0 }
  0xf5   :  { %v6085_v62 = vcombine.high %v9015_v35, %v9015_v35  ;;  %v1226_v0 = vrot.slane %v9032_v4, 7 }
  0xf7   :  { %v9074_v63 = vunpack.c.l.b16 %v6085_v62 }
  0xfe   :  { %v6519_v15 = vpop.f32.mrf.mxu1 }
 0x100   :  { %v6520_v12 = vpop.f32.mrf.mxu1 }
 0x101   :  { %v6521_v45 = vadd.f32 %v6520_v12, %v6519_v15  ;;  %v1225_v15 = vsel %vm278_vm1, %v9044_v41, %v1224_v34  ;;  %v1228_v12 = vrot.slane %v9049_v46, 6  ;;  %v9162_v34 = vld [vmem:[%s13235_s0 + $0x118] sm:$0x22] }
 0x102   :  { %v6522_v20 = vpop.f32.mrf.mxu1 }
 0x103   :  { %v655_v7 = vadd.f32 %v6521_v45, %v615_v17  ;;  %v9087_v17 = vld [vmem:[%s13235_s0 + $0xa0] sm:$0x22]  ;;  %v1227_v20 = vsel %vm281_vm2, %v1226_v0, %v1225_v15 }
 0x104   :  { %v6523_v18 = vpop.f32.mrf.mxu1  ;;  %v694_v30 = vpop.f32.mrf.mxu0  ;;  %v9095_v45 = vld [vmem:[%s13234_s1 + $0xa0] sm:$0xff]   ;;  %v6105_v43 = vcombine.high %v9087_v17, %v9087_v17  ;;  %v1229_v52 = vsel %vm284_vm3, %v1228_v12, %v1227_v20 }
 0x105   :  { %v695_v38 = vadd.f32 %v694_v30, %v655_v7  ;;  %v1208_v7 = vrot.slane %v9074_v63, 2  ;;  %v1209_v18 = vrot.slane %v9076_v54, 1  ;;  %v9111_v30 = vunpack.c.l.b16 %v6116_v55 }
 0x106   :  { %v7326_v51 = vpop.f32.mrf.mxu0  ;;  %v9149_v28 = vunpack.c.l.b16 %v6105_v43  ;;  %v1231_v24 = vsel %vm287_vm4, %v1230_v26, %v1229_v52  ;;  %v9185_v52 = vld [vmem:[%s13234_s1 + $0x88] sm:$0xff]  }
 0x107   :  { %v700_v44 = vmax.f32 %v695_v38, 0.0  ;;  %v9116_v38 = vld [vmem:[%s13235_s0 + $0xc8] sm:$0x22]  ;;  %v9121_v51 = vunpack.c.l.b16 %v6100_v10  ;;  %v1210_v48 = vsel %vm275_vm0, %v1209_v18, %v1208_v7  ;;  %v1232_v2 = vrot.slane %v9111_v30, 4  ;;  %13546 = vst [vmem:[#allocation4_spill] sm:$0xff] %v9185_v52 }
 0x108   :  { %v697_v22 = vpop.f32.mrf.mxu0  ;;  %13543 = vst [vmem:[#allocation7_spill] sm:$0xff] %v9149_v28  ;;  %v9172_v10 = vld [vmem:[%s13234_s1 + $0xc8] sm:$0xff]   ;;  %v1214_v20 = vrot.slane %v9149_v28, 6  ;;  %v6120_v7 = vcombine.high %v9162_v34, %v9162_v34 }
 0x109   :  { %v701_v59 = vpack.c.bf16 %v700_v44, %v700_v44  ;;  %13542 = vst [vmem:[#allocation5_spill] sm:$0xff] %v9121_v51  ;;  %v9130_v44 = vunpack.c.l.b16 %v6095_v29  ;;  %v9132_v22 = vunpack.c.l.b16 %v6121_v1  ;;  %v1212_v62 = vrot.slane %v9121_v51, 7  ;;  %13545 = vst [vmem:[#allocation3_spill] sm:$0xff] %v9172_v10 }
 0x10a   :  { %v7327_v53 = vpop.f32.mrf.mxu0  ;;  %v1233_v29 = vsel %vm290_vm5, %v1232_v2, %v1231_v24  ;;  %v9194_v24 = vld [vmem:[%s13234_s1 + $0xc0] sm:$0xff]   ;;  %v9199_v51 = vunpack.c.l.b16 %v6120_v7 }
 0x10b   :  { %7353 = vmatmul.mubr.msk.bf16.vlgmr.msra.gmra.mxu1 %vm927_vm9, %v701_v59  ;;  %v9143_v59 = vld [vmem:[%s13235_s0 + $0xf0] sm:$0x22]  ;;  %v6110_v53 = vcombine.high %v9116_v38, %v9116_v38  ;;  %v1211_v55 = vsel %vm278_vm1, %v9130_v44, %v1210_v48  ;;  %v1234_v15 = vrot.slane %v9132_v22, 3  ;;  %13548 = vst [vmem:[#allocation24_spill] sm:$0xff] %v9194_v24 }
 0x10c   :  { %6608 = vmatpush3.bf16.msra.mxu1 %v8999_v32  ;;  %1348 = vmatprep.mubr.bf16.mxu1 %v1267_v9  ;;  %v9137_v9 = vld [vmem:[%s13234_s1 + $0xd0] sm:$0xff]   ;;  %v6115_v0 = vcombine.high %v9143_v59, %v9143_v59  ;;  %v1213_v18 = vsel %vm281_vm2, %v1212_v62, %v1211_v55 }
 0x10d   :  { %6609 = vmatprep.subr.bf16.mxu1 %v9007_v56  ;;  %v9175_v12 = vunpack.c.l.b16 %v6110_v53  ;;  %v1235_v48 = vsel %vm293_vm6, %v1234_v15, %v1233_v29 }
 0x10e   :  { %v9188_v53 = vunpack.c.l.b16 %v6115_v0  ;;  %v1266_v0 = vpack.c.b16 %v1235_v48, %v1235_v48 }
 0x10f   :  { %v1216_v62 = vrot.slane %v9175_v12, 5 }
 0x110   :  { %6610 = vmatpush3.bf16.msra.mxu1 %v9029_v60  ;;  %13547 = vst [vmem:[#allocation9_spill] sm:$0xff] %v9188_v53  ;;  %v1218_v15 = vrot.slane %v9188_v53, 4 }
 0x111   :  { %6611 = vmatprep.subr.bf16.mxu1 %v9037_v21 }
 0x114   :  { %6612 = vmatpush3.bf16.msra.mxu1 %v9054_v27 }
 0x115   :  { %6613 = vmatprep.subr.bf16.mxu1 %v9066_v36 }
 0x118   :  { %6614 = vmatpush3.bf16.msra.mxu1 %v9095_v45 }
 0x119   :  { %6615 = vmatprep.subr.bf16.mxu1 %v9106_v42 }
 0x11c   :  { %6616 = vmatpush3.bf16.msra.mxu1 %v9127_v14 }
 0x11d   :  { %6617 = vmatprep.subr.bf16.mxu1 %v9137_v9 }
 0x11e   :  { %v6546_v11 = vpop.f32.mrf.mxu1 }
 0x120   :  { %v6547_v33 = vpop.f32.mrf.mxu1  ;;  %6618 = vmatpush3.bf16.msra.mxu1 %v9156_v25 }
 0x121   :  { %6619 = vmatprep.subr.bf16.mxu1 %v9172_v10  ;;  %v6548_v2 = vadd.f32 %v6547_v33, %v6546_v11  ;;  %v9205_v11 = vld [vmem:[%s13234_s1 + $0x80] sm:$0xff]  }
 0x122   :  { %v6549_v1 = vpop.f32.mrf.mxu1  ;;  %13549 = vst [vmem:[#allocation28_spill] sm:$0xff] %v9205_v11 }
 0x123   :  { %v1215_v1 = vsel %vm284_vm3, %v1214_v20, %v1213_v18  ;;  %v823_v33 = vadd.f32 %v6548_v2, %v8976_v5  ;;  %v1220_v18 = vrot.slane %v9199_v51, 3  ;;  %v6084_v2 = vcombine.low %v9015_v35, %v9015_v35 }
 0x124   :  { %v6550_v43 = vpop.f32.mrf.mxu1  ;;  %v6568_v26 = vpop.f32.mrf.mxu0  ;;  %6620 = vmatpush3.bf16.msra.mxu1 %v9185_v52  ;;  %v1217_v29 = vsel %vm287_vm4, %v1216_v62, %v1215_v1  ;;  %v6089_v62 = vcombine.low %v9020_v58, %v9020_v58  ;;  %v6099_v35 = vcombine.low %v9060_v39, %v9060_v39  ;;  %v9236_v58 = vld [vmem:[%s13234_s1 + $0x70] sm:$0xff]  }
 0x125   :  { %6621 = vmatprep.subr.bf16.mxu1 %v9194_v24  ;;  %v9248_v39 = vld [vmem:[%s13234_s1 + $0x30] sm:$0xff]  }
 0x126   :  { %v6569_v55 = vpop.f32.mrf.mxu0 }
 0x127   :  { %v6570_v43 = vadd.f32 %v6569_v55, %v6568_v26 }
 0x128   :  { %v6571_v28 = vpop.f32.mrf.mxu0  ;;  %6622 = vmatpush3.bf16.msra.mxu1 %v9205_v11 }
 0x129   :  { %7368 = vmatprep.subr.bf16.mxu1 %v13497_v47  ;;  %v863_v7 = vadd.f32 %v6570_v43, %v823_v33  ;;  %v1219_v28 = vsel %vm290_vm5, %v1218_v15, %v1217_v29  ;;  %v9220_v15 = vunpack.c.l.b16 %v6084_v2  ;;  %v9222_v29 = vunpack.c.l.b16 %v6089_v62 }
 0x12a   :  { %v6572_v20 = vpop.f32.mrf.mxu0  ;;  %v1221_v55 = vsel %vm293_vm6, %v1220_v18, %v1219_v28 }
 0x12b   :  { %1349 = vmatmul.mubr.bf16.vlgmr.msra.gmra.mxu1 %v1266_v0  ;;  %v1265_v33 = vpack.c.b16 %v1221_v55, %v1221_v55  ;;  %v1194_v18 = vrot.slane %v9220_v15, 2  ;;  %v1195_v28 = vrot.slane %v9222_v29, 1 }
 0x12c   :  { %7372 = vmatprep.mubr.msk.bf16.mxu1 %vm8221_vm7, %v13497_v47 }
 0x12d   :  { %v1196_v2 = vsel %vm275_vm0, %v1195_v28, %v1194_v18  ;;  %v6119_v28 = vcombine.low %v9162_v34, %v9162_v34  ;;  %v9320_v34 = vld [vmem:[%s13234_s1 + $0x18] sm:$0xff]  }
 0x12e   :  { %v902_v26 = vpop.f32.mrf.mxu1  ;;  %13559 = vst [vmem:[#allocation12_spill] sm:$0xff] %v9320_v34 }
 0x12f   :  { %v903_v48 = vadd.f32 %v902_v26, %v863_v7  ;;  %v6094_v7 = vcombine.low %v9072_v50, %v9072_v50  ;;  %v6104_v26 = vcombine.low %v9087_v17, %v9087_v17  ;;  %v9256_v50 = vld [vmem:[%s13234_s1 + $0x68] sm:$0xff]   ;;  %v6109_v17 = vcombine.low %v9116_v38, %v9116_v38 }
 0x130   :  { %v7338_v53 = vpop.f32.mrf.mxu1  ;;  %v6114_v38 = vcombine.low %v9143_v59, %v9143_v59  ;;  %v9299_v59 = vld [vmem:[%s13234_s1 + $0x20] sm:$0xff]  }
 0x131   :  { %v908_v1 = vmax.f32 %v903_v48, 0.0  ;;  %v9228_v53 = vld [vmem:[%s13234_s1 + $0x38] sm:$0xff]   ;;  %v9251_v48 = vunpack.c.l.b16 %v6099_v35  ;;  %v9259_v55 = vunpack.c.l.b16 %v6094_v7  ;;  %v9264_v62 = vunpack.c.l.b16 %v6104_v26  ;;  %v9288_v35 = vld [vmem:[%s13235_s0 + $0x10] ss:$0 sps:$4 sm:$0x22]   ;;  %13556 = vst [vmem:[#allocation15_spill] sm:$0xff] %v9299_v59 }
 0x132   :  { %v905_v43 = vpop.f32.mrf.mxu1  ;;  %13554 = vst [vmem:[#allocation30_spill] sm:$0xff] %v9288_v35  ;;  %v9293_v7 = vld [vmem:[%s13235_s0 + $0x38] ss:$0 sps:$4 sm:$0x22]  }
 0x133   :  { %v909_v0 = vpack.c.bf16 %v908_v1, %v908_v1  ;;  %13550 = vst [vmem:[#allocation11_spill] sm:$0xff] %v9251_v48  ;;  %13551 = vst [vmem:[#allocation6_spill] sm:$0xff] %v9264_v62  ;;  %v9269_v1 = vld [vmem:[%s13234_s1 + $0x28] sm:$0xff]   ;;  %v1198_v43 = vrot.slane %v9251_v48, 7  ;;  %v1200_v18 = vrot.slane %v9264_v62, 6  ;;  %v13294_v62 = vunpack.c.l.b16 %v9288_v35 }
 0x134   :  { %v7339_v20 = vpop.f32.mrf.mxu1  ;;  %13555 = vst [vmem:[#allocation13_spill] sm:$0xff] %v9293_v7  ;;  %v9371_v35 = vld [vmem:[%s13235_s0 + $0xd8] ss:$0 sps:$4 sm:$0x22]  }
 0x135   :  { %7345 = vmatmul.mubr.msk.bf16.vlgmr.msra.gmra.mxu0 %vm927_vm9, %v909_v0  ;;  %v1197_v0 = vsel %vm278_vm1, %v9259_v55, %v1196_v2  ;;  %v9283_v20 = vunpack.c.l.b16 %v6109_v17  ;;  %v9308_v17 = vld [vmem:[%s13234_s1 + $0x58] sm:$0xff]   ;;  %v9311_v2 = vunpack.c.l.b16 %v6114_v38  ;;  %v9328_v38 = vld [vmem:[%s13235_s0 + $0x88] ss:$0 sps:$4 sm:$0x22]  }
 0x136   :  { %6586 = vmatpush3.bf16.msra.mxu0 %v9228_v53  ;;  %1308 = vmatprep.mubr.bf16.mxu0 %v1265_v33  ;;  %v9276_v33 = vld [vmem:[%s13234_s1 + $0x60] sm:$0xff]   ;;  %v1199_v26 = vsel %vm281_vm2, %v1198_v43, %v1197_v0  ;;  %13557 = vst [vmem:[#allocation10_spill] sm:$0xff] %v9308_v17  ;;  %v9323_v43 = vunpack.c.l.b16 %v6119_v28  ;;  %13561 = vst [vmem:[#allocation19_spill] sm:$0xff] %v9328_v38  ;;  %v9333_v0 = vld [vmem:[%s13234_s1 + $0x50] sm:$0xff]  }
 0x137   :  { %6587 = vmatprep.subr.bf16.mxu0 %v9236_v58  ;;  %13552 = vst [vmem:[#allocation8_spill] sm:$0xff] %v9276_v33  ;;  %13553 = vst [vmem:[#allocation25_spill] sm:$0xff] %v9283_v20  ;;  %v1202_v48 = vrot.slane %v9283_v20, 5 }
 0x138   :  { %13558 = vst [vmem:[#allocation31_spill] sm:$0xff] %v9311_v2  ;;  %13560 = vst [vmem:[#allocation17_spill] sm:$0xff] %v9323_v43 }
 0x13a   :  { %6588 = vmatpush3.bf16.msra.mxu0 %v9248_v39 }
 0x13b   :  { %6589 = vmatprep.subr.bf16.mxu0 %v9256_v50 }
 0x13e   :  { %6590 = vmatpush3.bf16.msra.mxu0 %v9269_v1 }
 0x13f   :  { %6591 = vmatprep.subr.bf16.mxu0 %v9276_v33  ;;  %v1201_v33 = vsel %vm284_vm3, %v1200_v18, %v1199_v26  ;;  %v1204_v18 = vrot.slane %v9311_v2, 4  ;;  %v9340_v26 = vld [vmem:[%s13235_s0 + $0x60] ss:$0 sps:$4 sm:$0x22]   ;;  %v9355_v2 = vld [vmem:[%s13234_s1 + $0x10] sm:$0xff]  }
 0x140   :  { %v1203_v28 = vsel %vm287_vm4, %v1202_v48, %v1201_v33  ;;  %13563 = vst [vmem:[#allocation32_spill] sm:$0xff] %v9355_v2  ;;  %v1206_v48 = vrot.slane %v9323_v43, 3 }
 0x142   :  { %6592 = vmatpush3.bf16.msra.mxu0 %v9299_v59  ;;  %v1250_v59 = vrot.slane %v13294_v62, 2  ;;  %v1205_v62 = vsel %vm290_vm5, %v1204_v18, %v1203_v28  ;;  %v13566_v28 = vunpack.c.l.b16 %v9328_v38 }
 0x143   :  { %6593 = vmatprep.subr.bf16.mxu0 %v9308_v17  ;;  %v9350_v17 = vld [vmem:[%s13235_s0 + $0xb0] ss:$0 sps:$4 sm:$0x22]   ;;  %v1207_v18 = vsel %vm293_vm6, %v1206_v48, %v1205_v62  ;;  %v13309_v62 = vunpack.c.l.b16 %v9371_v35 }
 0x144   :  { %v1264_v48 = vpack.c.b16 %v1207_v18, %v1207_v18 }
 0x146   :  { %6594 = vmatpush3.bf16.msra.mxu0 %v9320_v34  ;;  %v13562_v34 = vunpack.c.l.b16 %v9293_v7  ;;  %v1254_v7 = vrot.slane %v13566_v28, 7  ;;  %v13569_v28 = vunpack.c.l.b16 %v9350_v17 }
 0x147   :  { %6595 = vmatprep.subr.bf16.mxu0 %v9333_v0 }
 0x148   :  { %v1251_v20 = vrot.slane %v13562_v34, 1  ;;  %v9363_v34 = vld [vmem:[%s13234_s1 + $0x48] sm:$0xff]   ;;  %v1256_v38 = vrot.slane %v13569_v28, 6 }
 0x149   :  { %13564 = vst [vmem:[#allocation14_spill] sm:$0xff] %v9363_v34 }
 0x14a   :  { %6596 = vmatpush3.bf16.msra.mxu0 %v9355_v2  ;;  %v1252_v43 = vsel %vm275_vm0, %v1251_v20, %v1250_v59  ;;  %v9378_v2 = vld [vmem:[%s13234_s1 + $0x8] sm:$0xff]   ;;  %v9393_v20 = vld [vmem:[%s13235_s0 + $0x100] ss:$0 sps:$4 sm:$0x22]   ;;  %v13568_v59 = vunpack.c.l.b16 %v9340_v26 }
 0x14b   :  { %6597 = vmatprep.subr.bf16.mxu0 %v9363_v34  ;;  %13565 = vst [vmem:[#allocation16_spill] sm:$0xff] %v9378_v2  ;;  %v9387_v34 = vld [vmem:[%s13234_s1 + $0x40] sm:$0xff]   ;;  %v13310_v18 = vunpack.c.l.b16 %v9393_v20 }
 0x14c   :  { %13567 = vst [vmem:[#allocation21_spill] sm:$0xff] %v9387_v34  ;;  %v1253_v33 = vsel %vm278_vm1, %v13568_v59, %v1252_v43  ;;  %v1258_v59 = vrot.slane %v13309_v62, 5 }
 0x14d   :  { %v1255_v43 = vsel %vm281_vm2, %v1254_v7, %v1253_v33  ;;  %v1260_v33 = vrot.slane %v13310_v18, 4  ;;  %v9444_v18 = vld [vmem:[%s13234_s1 + $0x108] sm:$0xff]  }
 0x14e   :  { %6598 = vmatpush3.bf16.msra.mxu0 %v9378_v2  ;;  %v9404_v2 = vld [vmem:[%s13234_s1] sm:$0xff]   ;;  %v1257_v28 = vsel %vm284_vm3, %v1256_v38, %v1255_v43  ;;  %v9434_v38 = vld [vmem:[%s13234_s1 + $0x110] sm:$0xff]  }
 0x14f   :  { %6599 = vmatprep.subr.bf16.mxu0 %v9387_v34  ;;  %13570 = vst [vmem:[#allocation18_spill] sm:$0xff] %v9404_v2  ;;  %v9410_v34 = vld [vmem:[%s13235_s0 + $0x128] ss:$0 sps:$4 sm:$0x22]  }
 0x150   :  { %v13311_v7 = vunpack.c.l.b16 %v9410_v34 }
 0x152   :  { %6600 = vmatpush3.bf16.msra.mxu0 %v9404_v2  ;;  %v9421_v2 = vld [vmem:[%s13234_s1 + $0x118] sm:$0xff]   ;;  %v1262_v43 = vrot.slane %v13311_v7, 3  ;;  %v9452_v7 = vld [vmem:[%s13234_s1 + $0x100] sm:$0xff]  }
 0x153   :  { %7356 = vmatprep.subr.bf16.mxu0 %v13497_v47 }
 0x155   :  { %1309 = vmatmul.mubr.bf16.vlgmr.msra.gmra.mxu0 %v1264_v48  ;;  %v1259_v48 = vsel %vm287_vm4, %v1258_v59, %v1257_v28 }
 0x156   :  { %7357 = vmatpush3.bf16.msra.mxu0 %v9421_v2  ;;  %7364 = vmatprep.mubr.msk.bf16.mxu0 %vm8221_vm7, %v13497_v47  ;;  %v1261_v62 = vsel %vm290_vm5, %v1260_v33, %v1259_v48  ;;  %v7767_v33 = vld [vmem:[%s13236_s3 + $0x20] sm:$0xff]   ;;  %v1501_v48 = vrot.slane %v8918_v61, 3 }
 0x157   :  { %7358 = vmatprep.subr.bf16.mxu0 %v13497_v47  ;;  %v1263_v59 = vsel %vm293_vm6, %v1262_v43, %v1261_v62  ;;  %v7766_v62 = vld [vmem:[%s13236_s3 + $0x28] sm:$0xff]   ;;  %v1502_v43 = vrot.slane %v8920_v49, 2  ;;  %v1513_v49 = vrot.slane %v8979_v16, 4  ;;  %v1495_v16 = vrot.slane %v9082_v37, 6 }
 0x158   :  { %v1268_v28 = vpack.c.b16 %v1263_v59, %v1263_v59  ;;  %7369 = vmatpush3.bf16.msra.mxu1 %v7766_v62  ;;  %v1504_v59 = vrot.slane %v8942_v40, 1  ;;  %v1507_v62 = vrot.slane %v8952_v6, 7  ;;  %v1487_v40 = vrot.slane %v8991_v57, 3 }
 0x159   :  { %7370 = vmatprep.subr.bf16.mxu1 %v13497_v47  ;;  %v1488_v6 = vrot.slane %v8993_v23, 2 }
 0x15a   :  { %7359 = vmatpush3.bf16.msra.mxu0 %v9434_v38 }
 0x15b   :  { %7360 = vmatprep.subr.bf16.mxu0 %v13497_v47 }
 0x15c   :  { %7371 = vmatpush3.bf16.msra.mxu1 %v7767_v33 }
 0x15d   :  { %6637 = vmatprep.subr.bf16.mxu1 %v8891_v13  ;;  %v1511_v13 = vrot.slane %v8970_v3, 5 }
 0x15e   :  { %7361 = vmatpush3.bf16.msra.mxu0 %v9444_v18 }
 0x15f   :  { %7362 = vmatprep.subr.bf16.mxu0 %v13497_v47 }
 0x162   :  { %7363 = vmatpush3.bf16.msra.mxu0 %v9452_v7 }
 0x163   :  { %6659 = vmatprep.subr.bf16.mxu0 %v8878_v31 }
 0x165   :  { %7365 = vmatmul.mubr.msk.bf16.vlgmr.msra.gmra.mxu0 %vm576_vm8, %v1268_v28 }
 0x166   :  { %6660 = vmatpush3.bf16.msra.mxu0 %v8999_v32 }
 0x167   :  { %6661 = vmatprep.subr.bf16.mxu0 %v9007_v56 }
 0x16a   :  { %6662 = vmatpush3.bf16.msra.mxu0 %v9029_v60 }
 0x16b   :  { %6663 = vmatprep.subr.bf16.mxu0 %v9037_v21 }
 0x16e   :  { %6664 = vmatpush3.bf16.msra.mxu0 %v9054_v27 }
 0x16f   :  { %6665 = vmatprep.subr.bf16.mxu0 %v9066_v36 }
 0x172   :  { %6666 = vmatpush3.bf16.msra.mxu0 %v9095_v45 }
 0x173   :  { %6667 = vmatprep.subr.bf16.mxu0 %v9106_v42 }
 0x176   :  { %6668 = vmatpush3.bf16.msra.mxu0 %v9127_v14 }
 0x177   :  { %6669 = vmatprep.subr.bf16.mxu0 %v9137_v9 }
 0x17a   :  { %6670 = vmatpush3.bf16.msra.mxu0 %v9156_v25 }
 0x17b   :  { %6671 = vmatprep.subr.bf16.mxu0 %v9172_v10 }
 0x17e   :  { %6672 = vmatpush3.bf16.msra.mxu0 %v9185_v52  ;;  %v1509_v52 = vrot.slane %v8964_v8, 6 }
 0x17f   :  { %6673 = vmatprep.subr.bf16.mxu0 %v9194_v24 }
 0x182   :  { %6674 = vmatpush3.bf16.msra.mxu0 %v9205_v11  ;;  %v1503_v11 = vsel %vm275_vm0, %v1502_v43, %v1501_v48 }
 0x183   :  { %7388 = vmatprep.subr.bf16.mxu0 %v13497_v47  ;;  %v1505_v24 = vsel %vm278_vm1, %v1504_v59, %v1503_v11  ;;  %v1490_v11 = vrot.slane %v9044_v41, 1  ;;  %v1499_v41 = vrot.slane %v9132_v22, 4 }
 0x184   :  { %v1506_v33 = vsel %vm281_vm2, %v8940_v19, %v1505_v24  ;;  %v1489_v24 = vsel %vm275_vm0, %v1488_v6, %v1487_v40  ;;  %v1473_v6 = vrot.slane %v9074_v63, 3  ;;  %v1481_v63 = vrot.slane %v9175_v12, 6 }
 0x185   :  { %v1508_v61 = vsel %vm284_vm3, %v1507_v62, %v1506_v33  ;;  %v1491_v57 = vsel %vm278_vm1, %v1490_v11, %v1489_v24  ;;  %v1474_v11 = vrot.slane %v9076_v54, 2 }
 0x186   :  { %v1510_v48 = vsel %vm287_vm4, %v1509_v52, %v1508_v61  ;;  %v1492_v23 = vsel %vm281_vm2, %v9032_v4, %v1491_v57 }
 0x187   :  { %v1512_v8 = vsel %vm290_vm5, %v1511_v13, %v1510_v48 }
 0x188   :  { %v1514_v3 = vsel %vm293_vm6, %v1513_v49, %v1512_v8  ;;  %v1476_v8 = vrot.slane %v9130_v44, 1 }
 0x189   :  { %v1532_v43 = vpack.c.b16 %v1514_v3, %v1514_v3 }
 0x18b   :  { %1613 = vmatprep.mubr.bf16.mxu0 %v1532_v43  ;;  %v13571_v43 = vld [vmem:[#allocation7_spill] sm:$0xff] }
 0x18c   :  { %v1479_v57 = vrot.slane %v13571_v43, 7  ;;  %v13576_v43 = vld [vmem:[#allocation15_spill] sm:$0xff] }
 0x1cb   :  { %v1020_v28 = vpop.f32.mrf.mxu1 }
 0x1cd   :  { %v7354_v10 = vpop.f32.mrf.mxu1 }
 0x1ce   :  { %v1493_v10 = vrot.slane %v9049_v46, 7 }
 0x1cf   :  { %v1023_v25 = vpop.f32.mrf.mxu1 }
 0x1d0   :  { %v1497_v25 = vrot.slane %v9111_v30, 5  ;;  %v1494_v13 = vsel %vm284_vm3, %v1493_v10, %v1492_v23  ;;  %v1475_v10 = vsel %vm275_vm0, %v1474_v11, %v1473_v6 }
 0x1d1   :  { %v7355_v19 = vpop.f32.mrf.mxu1  ;;  %v1496_v46 = vsel %vm287_vm4, %v1495_v16, %v1494_v13  ;;  %v1477_v24 = vsel %vm278_vm1, %v1476_v8, %v1475_v10  ;;  %v13573_v13 = vld [vmem:[#allocation9_spill] sm:$0xff] }
 0x1d2   :  { %v1498_v52 = vsel %vm290_vm5, %v1497_v25, %v1496_v46  ;;  %v1483_v44 = vrot.slane %v13573_v13, 5  ;;  %v13582_v13 = vld [vmem:[#allocation30_spill] sm:$0xff] }
 0x1d3   :  { %v1500_v59 = vsel %vm293_vm6, %v1499_v41, %v1498_v52 }
 0x1d4   :  { %v1531_v37 = vpack.c.b16 %v1500_v59, %v1500_v59 }
 0x1d6   :  { %1614 = vmatmul.mubr.bf16.vlgmr.msra.gmra.mxu0 %v1531_v37  ;;  %v1485_v37 = vrot.slane %v9199_v51, 4  ;;  %v1460_v51 = vrot.slane %v9222_v29, 2 }
 0x1d7   :  { %7392 = vmatprep.mubr.msk.bf16.mxu0 %vm8221_vm7, %v13497_v47 }
 0x1eb   :  { %v6623_v30 = vpop.f32.mrf.mxu1 }
 0x1ed   :  { %v6624_v62 = vpop.f32.mrf.mxu1 }
 0x1ee   :  { %v6625_v52 = vadd.f32 %v6624_v62, %v6623_v30  ;;  %v1462_v30 = vrot.slane %v9259_v55, 1 }
 0x1ef   :  { %v6626_v33 = vpop.f32.mrf.mxu1 }
 0x1f1   :  { %v6627_v4 = vpop.f32.mrf.mxu1 }
 0x1f5   :  { %v965_v61 = vpop.f32.mrf.mxu0 }
 0x1f6   :  { %v9513_v22 = vadd.f32 %v1020_v28, %v965_v61  ;;  %v13572_v28 = vld [vmem:[#allocation5_spill] sm:$0xff] }
 0x1f7   :  { %v7346_v49 = vpop.f32.mrf.mxu0  ;;  %v1478_v25 = vsel %vm281_vm2, %v13572_v28, %v1477_v24  ;;  %v13575_v24 = vld [vmem:[#allocation6_spill] sm:$0xff]  ;;  %v13579_v28 = vld [vmem:[#allocation25_spill] sm:$0xff] }
 0x1f8   :  { %v1480_v54 = vsel %vm284_vm3, %v1479_v57, %v1478_v25  ;;  %v13578_v57 = vld [vmem:[#allocation10_spill] sm:$0xff]  ;;  %v1467_v25 = vrot.slane %v13579_v28, 6 }
 0x1f9   :  { %v968_v40 = vpop.f32.mrf.mxu0  ;;  %v1482_v59 = vsel %vm287_vm4, %v1481_v63, %v1480_v54 }
 0x1fa   :  { %v1484_v33 = vsel %vm290_vm5, %v1483_v44, %v1482_v59  ;;  %v13583_v44 = vunpack.c.l.b16 %v13582_v13 }
 0x1fb   :  { %v7347_v48 = vpop.f32.mrf.mxu0  ;;  %v1486_v40 = vsel %vm293_vm6, %v1485_v37, %v1484_v33  ;;  %v13586_v33 = vld [vmem:[#allocation32_spill] sm:$0xff] }
 0x1fc   :  { %v1530_v11 = vpack.c.b16 %v1486_v40, %v1486_v40 }
 0x215   :  { %v6601_v19 = vpop.f32.mrf.mxu0 }
 0x217   :  { %v6602_v3 = vpop.f32.mrf.mxu0 }
 0x218   :  { %v6603_v41 = vadd.f32 %v6602_v3, %v6601_v19  ;;  %v13574_v19 = vld [vmem:[#allocation8_spill] sm:$0xff] }
 0x219   :  { %v6604_v16 = vpop.f32.mrf.mxu0 }
 0x21a   :  { %v1311_v46 = vadd.f32 %v6603_v41, %v8976_v5  ;;  %v1459_v5 = vrot.slane %v9220_v15, 3  ;;  %v1465_v16 = vrot.slane %v13575_v24, 7  ;;  %v13577_v15 = vld [vmem:[#allocation11_spill] sm:$0xff] }
 0x21b   :  { %v6605_v23 = vpop.f32.mrf.mxu0  ;;  %v13581_v41 = vld [vmem:[#allocation31_spill] sm:$0xff] }
 0x21c   :  { %v1351_v4 = vadd.f32 %v6625_v52, %v1311_v46  ;;  %v1461_v62 = vsel %vm275_vm0, %v1460_v51, %v1459_v5  ;;  %v13580_v23 = vld [vmem:[#allocation12_spill] sm:$0xff]  ;;  %v1469_v63 = vrot.slane %v13581_v41, 5  ;;  %v1515_v46 = vrot.slane %v13583_v44, 3  ;;  %v13584_v52 = vld [vmem:[#allocation13_spill] sm:$0xff]  ;;  %v13594_v24 = vld [vmem:[#allocation19_spill] sm:$0xff] }
 0x21d   :  { %v1463_v3 = vsel %vm278_vm1, %v1462_v30, %v1461_v62  ;;  %v13585_v59 = vunpack.c.l.b16 %v13584_v52  ;;  %v13592_v30 = vunpack.c.l.b16 %v9350_v17  ;;  %v13597_v17 = vunpack.c.l.b16 %v9393_v20  ;;  %v13604_v20 = vld [vmem:[#allocation2_spill] sm:$0xff]  ;;  %v1725_v44 = vld [vmem:[%s13235_s0 + $0x8] sm:$0x44]  ;;  %v1731_v52 = vld [vmem:[%s13235_s0 + $0x58] sm:$0x44] }
 0x21e   :  { %v1464_v29 = vsel %vm281_vm2, %v13577_v15, %v1463_v3  ;;  %v13593_v3 = vld [vmem:[#allocation18_spill] sm:$0xff]  ;;  %v13596_v15 = vunpack.c.l.b16 %v9371_v35  ;;  %v13598_v35 = vunpack.c.l.b16 %v9410_v34  ;;  %v7769_v34 = vld [vmem:[%s13236_s3 + $0x30] sm:$0xff]  }
 0x21f   :  { %v1466_v55 = vsel %vm284_vm3, %v1465_v16, %v1464_v29  ;;  %v1516_v37 = vrot.slane %v13585_v59, 2  ;;  %v1521_v62 = vrot.slane %v13592_v30, 7  ;;  %v13595_v16 = vunpack.c.l.b16 %v13594_v24  ;;  %v1734_v59 = vld [vmem:[%s13235_s0 + $0x80] sm:$0x44] }
 0x220   :  { %v1468_v54 = vsel %vm287_vm4, %v1467_v25, %v1466_v55  ;;  %v1523_v29 = vrot.slane %v13596_v15, 6  ;;  %v1525_v25 = vrot.slane %v13597_v17, 5  ;;  %v1527_v41 = vrot.slane %v13598_v35, 4 }
 0x221   :  { %v1470_v40 = vsel %vm290_vm5, %v1469_v63, %v1468_v54  ;;  %v6157_v30 = vcombine.low %v1734_v59, %v1734_v59 }
 0x225   :  { %v1390_v61 = vpop.f32.mrf.mxu0 }
 0x226   :  { %v1391_v49 = vadd.f32 %v1390_v61, %v1351_v4  ;;  %v13587_v4 = vld [vmem:[#allocation17_spill] sm:$0xff] }
 0x227   :  { %v7366_v48 = vpop.f32.mrf.mxu0  ;;  %v1471_v61 = vrot.slane %v13587_v4, 4  ;;  %v1740_v4 = vld [vmem:[%s13235_s0 + $0xd0] sm:$0x44] }
 0x228   :  { %v1396_v12 = vmax.f32 %v1391_v49, 0.0  ;;  %v13588_v49 = vld [vmem:[#allocation14_spill] sm:$0xff]  ;;  %v13589_v48 = vunpack.c.l.b16 %v9340_v26 }
 0x229   :  { %v1393_v6 = vpop.f32.mrf.mxu0 }
 0x22a   :  { %v1397_v8 = vpack.c.bf16 %v1396_v12, %v1396_v12  ;;  %v1518_v12 = vrot.slane %v13589_v48, 1  ;;  %v1517_v6 = vsel %vm275_vm0, %v1516_v37, %v1515_v46  ;;  %v1728_v46 = vld [vmem:[%s13235_s0 + $0x30] sm:$0x44]  ;;  %v1737_v37 = vld [vmem:[%s13235_s0 + $0xa8] sm:$0x44] }
 0x22b   :  { %v7367_v10 = vpop.f32.mrf.mxu0  ;;  %v1746_v48 = vld [vmem:[%s13235_s0 + $0x120] sm:$0x44]  ;;  %v6163_v24 = vcombine.high %v1737_v37, %v1737_v37 }
 0x22c   :  { %7373 = vmatmul.mubr.msk.bf16.vlgmr.msra.gmra.mxu1 %vm927_vm9, %v1397_v8  ;;  %v1472_v8 = vsel %vm293_vm6, %v1471_v61, %v1470_v40  ;;  %v13591_v10 = vld [vmem:[#allocation21_spill] sm:$0xff]  ;;  %v1519_v5 = vsel %vm278_vm1, %v1518_v12, %v1517_v6  ;;  %v6143_v40 = vcombine.high %v1725_v44, %v1725_v44  ;;  %v6142_v12 = vcombine.low %v1725_v44, %v1725_v44 }
 0x22d   :  { %6638 = vmatpush3.bf16.msra.mxu1 %v9228_v53  ;;  %1573 = vmatprep.mubr.bf16.mxu1 %v1530_v11  ;;  %v13590_v11 = vld [vmem:[#allocation16_spill] sm:$0xff]  ;;  %v1529_v51 = vpack.c.b16 %v1472_v8, %v1472_v8  ;;  %v1520_v26 = vsel %vm281_vm2, %v13595_v16, %v1519_v5  ;;  %v1743_v61 = vld [vmem:[%s13235_s0 + $0xf8] sm:$0x44]  ;;  %v6148_v6 = vcombine.high %v1728_v46, %v1728_v46 }
 0x22e   :  { %6639 = vmatprep.subr.bf16.mxu1 %v9236_v58  ;;  %v1522_v28 = vsel %vm284_vm3, %v1521_v62, %v1520_v26  ;;  %v6153_v8 = vcombine.high %v1731_v52, %v1731_v52  ;;  %v6147_v5 = vcombine.low %v1728_v46, %v1728_v46  ;;  %v6158_v62 = vcombine.high %v1734_v59, %v1734_v59 }
 0x22f   :  { %v1524_v55 = vsel %vm287_vm4, %v1523_v29, %v1522_v28  ;;  %v6167_v16 = vcombine.low %v1740_v4, %v1740_v4  ;;  %v6168_v26 = vcombine.high %v1740_v4, %v1740_v4  ;;  %v6173_v15 = vcombine.high %v1743_v61, %v1743_v61 }
 0x230   :  { %v1526_v63 = vsel %vm290_vm5, %v1525_v25, %v1524_v55  ;;  %v6162_v29 = vcombine.low %v1737_v37, %v1737_v37  ;;  %v6172_v28 = vcombine.low %v1743_v61, %v1743_v61  ;;  %v6178_v17 = vcombine.high %v1746_v48, %v1746_v48 }
 0x231   :  { %6640 = vmatpush3.bf16.msra.mxu1 %v9248_v39  ;;  %v1528_v54 = vsel %vm293_vm6, %v1527_v41, %v1526_v63  ;;  %v9647_v25 = vunpack.c.l.b16 %v6143_v40  ;;  %v6177_v55 = vcombine.low %v1746_v48, %v1746_v48  ;;  %v9649_v35 = vunpack.c.l.b16 %v6142_v12 }
 0x232   :  { %6641 = vmatprep.subr.bf16.mxu1 %v9256_v50  ;;  %v1533_v13 = vpack.c.b16 %v1528_v54, %v1528_v54  ;;  %v9651_v41 = vunpack.c.l.b16 %v6148_v6  ;;  %v9653_v63 = vunpack.c.l.b16 %v6153_v8  ;;  %v9655_v54 = vunpack.c.l.b16 %v6147_v5 }
 0x233   :  { %v1920_v46 = vrot.slane %v9649_v35, 4  ;;  %v9686_v61 = vunpack.c.l.b16 %v6162_v29 }
 0x234   :  { %v1921_v37 = vrot.slane %v9655_v54, 3 }
 0x235   :  { %6642 = vmatpush3.bf16.msra.mxu1 %v9269_v1 }
 0x236   :  { %6643 = vmatprep.subr.bf16.mxu1 %v13574_v19  ;;  %v1922_v5 = vsel %vm275_vm0, %v1921_v37, %v1920_v46 }
 0x239   :  { %6644 = vmatpush3.bf16.msra.mxu1 %v13576_v43 }
 0x23a   :  { %6645 = vmatprep.subr.bf16.mxu1 %v13578_v57 }
 0x23d   :  { %6646 = vmatpush3.bf16.msra.mxu1 %v13580_v23 }
 0x23e   :  { %6647 = vmatprep.subr.bf16.mxu1 %v9333_v0 }
 0x241   :  { %6648 = vmatpush3.bf16.msra.mxu1 %v13586_v33 }
 0x242   :  { %6649 = vmatprep.subr.bf16.mxu1 %v13588_v49 }
 0x245   :  { %6650 = vmatpush3.bf16.msra.mxu1 %v13590_v11 }
 0x246   :  { %6651 = vmatprep.subr.bf16.mxu1 %v13591_v10 }
 0x249   :  { %6652 = vmatpush3.bf16.msra.mxu1 %v13593_v3 }
 0x24a   :  { %7376 = vmatprep.subr.bf16.mxu1 %v13497_v47 }
 0x24c   :  { %1574 = vmatmul.mubr.bf16.vlgmr.msra.gmra.mxu1 %v1529_v51  ;;  %v6152_v51 = vcombine.low %v1731_v52, %v1731_v52 }
 0x24d   :  { %7377 = vmatpush3.bf16.msra.mxu1 %v9421_v2  ;;  %7384 = vmatprep.mubr.msk.bf16.mxu1 %vm8221_vm7, %v13497_v47 }
 0x24e   :  { %7378 = vmatprep.subr.bf16.mxu1 %v13497_v47 }
 0x251   :  { %7379 = vmatpush3.bf16.msra.mxu1 %v9434_v38 }
 0x252   :  { %7380 = vmatprep.subr.bf16.mxu1 %v13497_v47 }
 0x255   :  { %7381 = vmatpush3.bf16.msra.mxu1 %v9444_v18 }
 0x256   :  { %7382 = vmatprep.subr.bf16.mxu1 %v13497_v47 }
 0x259   :  { %7383 = vmatpush3.bf16.msra.mxu1 %v9452_v7 }
 0x25a   :  { %6711 = vmatprep.subr.bf16.mxu1 %v8878_v31  ;;  %v13599_v31 = vld [vmem:[#allocation23_spill] sm:$0xff] }
 0x25c   :  { %7385 = vmatmul.mubr.msk.bf16.vlgmr.msra.gmra.mxu1 %vm576_vm8, %v1533_v13  ;;  %v9657_v13 = vunpack.c.l.b16 %v6152_v51 }
 0x25d   :  { %6712 = vmatpush3.bf16.msra.mxu1 %v8999_v32  ;;  %v13600_v32 = vld [vmem:[#allocation3_spill] sm:$0xff] }
 0x25e   :  { %6713 = vmatprep.subr.bf16.mxu1 %v9007_v56  ;;  %v13601_v56 = vld [vmem:[#allocation4_spill] sm:$0xff]  ;;  %v1923_v4 = vrot.slane %v9657_v13, 2 }
 0x261   :  { %6714 = vmatpush3.bf16.msra.mxu1 %v9029_v60  ;;  %v13602_v60 = vld [vmem:[#allocation24_spill] sm:$0xff] }
 0x262   :  { %6715 = vmatprep.subr.bf16.mxu1 %v9037_v21  ;;  %v13603_v21 = vld [vmem:[#allocation28_spill] sm:$0xff] }
 0x265   :  { %6716 = vmatpush3.bf16.msra.mxu1 %v9054_v27  ;;  %v7768_v27 = vld [vmem:[%s13236_s3 + $0x38] sm:$0xff]  }
 0x266   :  { %6717 = vmatprep.subr.bf16.mxu1 %v9066_v36  ;;  %7389 = vmatpush3.bf16.msra.mxu0 %v7768_v27  ;;  %v9669_v27 = vunpack.c.l.b16 %v6173_v15 }
 0x267   :  { %7390 = vmatprep.subr.bf16.mxu0 %v13497_v47 }
 0x268   :  { %v1944_v48 = vrot.slane %v9669_v27, 6 }
 0x269   :  { %6718 = vmatpush3.bf16.msra.mxu1 %v9095_v45 }
 0x26a   :  { %6719 = vmatprep.subr.bf16.mxu1 %v9106_v42  ;;  %7391 = vmatpush3.bf16.msra.mxu0 %v7769_v34  ;;  %v9676_v34 = vunpack.c.l.b16 %v6172_v28 }
 0x26b   :  { %6689 = vmatprep.subr.bf16.mxu0 %v13604_v20  ;;  %v9678_v20 = vunpack.c.l.b16 %v6177_v55 }
 0x26d   :  { %6720 = vmatpush3.bf16.msra.mxu1 %v9127_v14  ;;  %13606 = vst [vmem:[#allocation26_spill] sm:$0xff] %v9678_v20  ;;  %v1932_v15 = vrot.slane %v9678_v20, 5 }
 0x26e   :  { %6721 = vmatprep.subr.bf16.mxu1 %v9137_v9 }
 0x271   :  { %6722 = vmatpush3.bf16.msra.mxu1 %v13599_v31  ;;  %v9659_v31 = vunpack.c.l.b16 %v6157_v30 }
 0x272   :  { %6723 = vmatprep.subr.bf16.mxu1 %v13600_v32  ;;  %v9661_v32 = vunpack.c.l.b16 %v6158_v62  ;;  %v1924_v62 = vsel %vm278_vm1, %v1923_v4, %v1922_v5 }
 0x273   :  { %v1925_v12 = vrot.slane %v9659_v31, 1 }
 0x274   :  { %v1939_v44 = vrot.slane %v9661_v32, 1 }
 0x275   :  { %6724 = vmatpush3.bf16.msra.mxu1 %v13601_v56  ;;  %v9663_v56 = vunpack.c.l.b16 %v6163_v24  ;;  %v1930_v24 = vrot.slane %v9676_v34, 6 }
 0x276   :  { %6725 = vmatprep.subr.bf16.mxu1 %v13602_v60  ;;  %v9665_v60 = vunpack.c.l.b16 %v6167_v16 }
 0x278   :  { %13605 = vst [vmem:[#allocation20_spill] sm:$0xff] %v9665_v60  ;;  %v1928_v51 = vrot.slane %v9665_v60, 7 }
 0x279   :  { %6726 = vmatpush3.bf16.msra.mxu1 %v13603_v21  ;;  %v9667_v21 = vunpack.c.l.b16 %v6168_v26  ;;  %v1926_v26 = vsel %vm281_vm2, %v1925_v12, %v1924_v62  ;;  %v1730_v12 = vld [vmem:[%s13235_s0 + $0x50] sm:$0x44] }
 0x27a   :  { %7408 = vmatprep.subr.bf16.mxu1 %v13497_v47  ;;  %v1927_v28 = vsel %vm284_vm3, %v9686_v61, %v1926_v26  ;;  %v6151_v5 = vcombine.high %v1730_v12, %v1730_v12 }
 0x27b   :  { %v1942_v59 = vrot.slane %v9667_v21, 7  ;;  %v1929_v55 = vsel %vm287_vm4, %v1928_v51, %v1927_v28 }
 0x296   :  { %v6675_v36 = vpop.f32.mrf.mxu0 }
 0x298   :  { %v6676_v45 = vpop.f32.mrf.mxu0 }
 0x299   :  { %v9617_v42 = vadd.f32 %v6676_v45, %v6675_v36  ;;  %v9671_v36 = vunpack.c.l.b16 %v6178_v17  ;;  %v1934_v45 = vrot.slane %v9647_v25, 4 }
 0x29a   :  { %v6678_v14 = vpop.f32.mrf.mxu0 }
 0x29b   :  { %v1935_v14 = vrot.slane %v9651_v41, 3  ;;  %v1946_v8 = vrot.slane %v9671_v36, 5 }
 0x29c   :  { %v6679_v9 = vpop.f32.mrf.mxu0 }
 0x29d   :  { %v1937_v9 = vrot.slane %v9653_v63, 2  ;;  %v1936_v52 = vsel %vm275_vm0, %v1935_v14, %v1934_v45  ;;  %v1931_v14 = vsel %vm290_vm5, %v1930_v24, %v1929_v55  ;;  %v9734_v24 = vunpack.c.l.b16 %v6151_v5  ;;  %v9754_v55 = vld [vmem:[%s13235_s0 + $0xf0] sm:$0x44] }
 0x29f   :  { %v1938_v40 = vsel %vm278_vm1, %v1937_v9, %v1936_v52  ;;  %v1933_v9 = vsel %vm293_vm6, %v1932_v15, %v1931_v14  ;;  %13610 = vst [vmem:[#allocation7_spill] sm:$0xff] %v9734_v24  ;;  %v9741_v15 = vld [vmem:[%s13235_s0 + $0xc8] sm:$0x44] }
 0x2a0   :  { %v1940_v6 = vsel %vm281_vm2, %v1939_v44, %v1938_v40  ;;  %v1964_v44 = vpack.c.b16 %v1933_v9, %v1933_v9  ;;  %v1724_v40 = vld [vmem:[%s13235_s0] sm:$0x44] }
 0x2a1   :  { %v1941_v30 = vsel %vm284_vm3, %v9663_v56, %v1940_v6  ;;  %v6141_v6 = vcombine.high %v1724_v40, %v1724_v40 }
 0x2a2   :  { %v1943_v16 = vsel %vm287_vm4, %v1942_v59, %v1941_v30 }
 0x2a3   :  { %v1945_v29 = vsel %vm290_vm5, %v1944_v48, %v1943_v16  ;;  %v1727_v48 = vld [vmem:[%s13235_s0 + $0x28] sm:$0x44]  ;;  %v9728_v51 = vunpack.c.l.b16 %v6141_v6 }
 0x2a4   :  { %v1947_v17 = vsel %vm293_vm6, %v1946_v8, %v1945_v29  ;;  %v6146_v8 = vcombine.high %v1727_v48, %v1727_v48  ;;  %v9746_v29 = vld [vmem:[%s13235_s0 + $0xa0] sm:$0x44] }
 0x2a5   :  { %v1965_v45 = vpack.c.b16 %v1947_v17, %v1947_v17  ;;  %13608 = vst [vmem:[#allocation27_spill] sm:$0xff] %v9728_v51  ;;  %v1906_v16 = vrot.slane %v9728_v51, 4  ;;  %v1909_v17 = vrot.slane %v9734_v24, 2 }
 0x2a6   :  { %v9730_v30 = vunpack.c.l.b16 %v6146_v8 }
 0x2a7   :  { %2046 = vmatprep.mubr.bf16.mxu1 %v1965_v45  ;;  %v6166_v45 = vcombine.high %v9741_v15, %v9741_v15 }
 0x2a8   :  { %2047 = vmatmul.mubr.bf16.vlgmr.msra.gmra.mxu1 %v1964_v44  ;;  %13609 = vst [vmem:[#allocation29_spill] sm:$0xff] %v9730_v30  ;;  %v1907_v26 = vrot.slane %v9730_v30, 3  ;;  %v6161_v44 = vcombine.high %v9746_v29, %v9746_v29 }
 0x2a9   :  { %7412 = vmatprep.mubr.msk.bf16.mxu1 %vm8221_vm7, %v13497_v47  ;;  %v9770_v8 = vunpack.c.l.b16 %v6166_v45 }
 0x2aa   :  { %v1908_v14 = vsel %vm275_vm0, %v1907_v26, %v1906_v16 }
 0x2ab   :  { %v1910_v6 = vsel %vm278_vm1, %v1909_v17, %v1908_v14  ;;  %13612 = vst [vmem:[#allocation9_spill] sm:$0xff] %v9770_v8  ;;  %v1914_v51 = vrot.slane %v9770_v8, 7  ;;  %v9788_v14 = vld [vmem:[%s13237_s2] ss:$0 sm:$0xff]  ;;  %v6145_v8 = vcombine.low %v1727_v48, %v1727_v48 }
 0x2ac   :  { %13615 = vst [vmem:[#allocation15_spill] sm:$0xff] %v9788_v14 }
 0x2ec   :  { %v1452_v46 = vpop.f32.mrf.mxu1 }
 0x2ed   :  { %v9712_v52 = vadd.f32 %v1452_v46, %v9513_v22  ;;  %v9726_v22 = vld [vmem:[%s13235_s0 + $0x78] sm:$0x44] }
 0x2ee   :  { %v7374_v59 = vpop.f32.mrf.mxu1  ;;  %v6156_v62 = vcombine.high %v9726_v22, %v9726_v22 }
 0x2ef   :  { %13607 = vst [vmem:[#allocation22_spill] sm:$0xff] %v9712_v52 }
 0x2f0   :  { %v1455_v37 = vpop.f32.mrf.mxu1  ;;  %v9748_v28 = vunpack.c.l.b16 %v6156_v62  ;;  %v9772_v62 = vunpack.c.l.b16 %v6161_v44 }
 0x2f1   :  { %v9765_v37 = vld [vmem:[%s13235_s0 + $0x118] sm:$0x44] }
 0x2f2   :  { %v7375_v4 = vpop.f32.mrf.mxu1  ;;  %13611 = vst [vmem:[#allocation5_spill] sm:$0xff] %v9748_v28  ;;  %v1911_v46 = vrot.slane %v9748_v28, 1  ;;  %13613 = vst [vmem:[#allocation8_spill] sm:$0xff] %v9772_v62  ;;  %v6176_v16 = vcombine.high %v9765_v37, %v9765_v37 }
 0x2f3   :  { %v6171_v4 = vcombine.high %v9754_v55, %v9754_v55 }
 0x2f4   :  { %v1912_v26 = vsel %vm281_vm2, %v1911_v46, %v1910_v6  ;;  %v9782_v17 = vunpack.c.l.b16 %v6176_v16 }
 0x2f5   :  { %v9777_v24 = vunpack.c.l.b16 %v6171_v4  ;;  %v1913_v52 = vsel %vm284_vm3, %v9772_v62, %v1912_v26  ;;  %v6140_v26 = vcombine.low %v1724_v40, %v1724_v40 }
 0x2f7   :  { %13614 = vst [vmem:[#allocation6_spill] sm:$0xff] %v9777_v24  ;;  %v1916_v45 = vrot.slane %v9777_v24, 6 }
 0x30c   :  { %v6653_v9 = vpop.f32.mrf.mxu1 }
 0x30e   :  { %v6654_v59 = vpop.f32.mrf.mxu1 }
 0x30f   :  { %v6655_v30 = vadd.f32 %v6654_v59, %v6653_v9  ;;  %v1918_v9 = vrot.slane %v9782_v17, 5 }
 0x310   :  { %v6656_v5 = vpop.f32.mrf.mxu1 }
 0x311   :  { %v1576_v44 = vadd.f32 %v9788_v14, %v6655_v30  ;;  %v6150_v30 = vcombine.low %v1730_v12, %v1730_v12 }
 0x312   :  { %v6657_v28 = vpop.f32.mrf.mxu1 }
 0x313   :  { %v1915_v28 = vsel %vm287_vm4, %v1914_v51, %v1913_v52  ;;  %v1616_v59 = vadd.f32 %v9617_v42, %v1576_v44  ;;  %v9796_v52 = vunpack.c.l.b16 %v6140_v26  ;;  %v9798_v51 = vunpack.c.l.b16 %v6145_v8  ;;  %v9882_v26 = vld [vmem:[%s13235_s0 + $0xd8] ss:$0 sps:$4 sm:$0x44]  }
 0x314   :  { %v1917_v46 = vsel %vm290_vm5, %v1916_v45, %v1915_v28  ;;  %v6155_v42 = vcombine.low %v9726_v22, %v9726_v22  ;;  %v9805_v40 = vunpack.c.l.b16 %v6150_v30  ;;  %v9849_v45 = vld [vmem:[%s13235_s0 + $0x60] ss:$0 sps:$4 sm:$0x44]  }
 0x315   :  { %v1919_v5 = vsel %vm293_vm6, %v1918_v9, %v1917_v46  ;;  %v1892_v48 = vrot.slane %v9796_v52, 4  ;;  %v1893_v12 = vrot.slane %v9798_v51, 3  ;;  %v13334_v46 = vunpack.c.l.b16 %v9849_v45 }
 0x316   :  { %v1963_v60 = vpack.c.b16 %v1919_v5, %v1919_v5 }
 0x31c   :  { %v1655_v4 = vpop.f32.mrf.mxu1 }
 0x31d   :  { %v1656_v6 = vadd.f32 %v1655_v4, %v1616_v59 }
 0x31e   :  { %v7386_v16 = vpop.f32.mrf.mxu1 }
 0x31f   :  { %v1661_v24 = vmax.f32 %v1656_v6, 0.0  ;;  %v1951_v16 = vrot.slane %v13334_v46, 2  ;;  %v2209_v46 = vrot.slane %v9669_v27, 7 }
 0x320   :  { %v1658_v62 = vpop.f32.mrf.mxu1 }
 0x321   :  { %v1662_v20 = vpack.c.bf16 %v1661_v24, %v1661_v24  ;;  %v9810_v24 = vunpack.c.l.b16 %v6155_v42 }
 0x322   :  { %v7387_v14 = vpop.f32.mrf.mxu1 }
 0x323   :  { %7393 = vmatmul.mubr.msk.bf16.vlgmr.msra.gmra.mxu0 %vm927_vm9, %v1662_v20  ;;  %v6165_v20 = vcombine.low %v9741_v15, %v9741_v15  ;;  %v1897_v22 = vrot.slane %v9810_v24, 1  ;;  %v9830_v15 = vld [vmem:[%s13235_s0 + $0x10] ss:$0 sps:$4 sm:$0x44]  }
 0x324   :  { %6690 = vmatpush3.bf16.msra.mxu0 %v9228_v53  ;;  %2006 = vmatprep.mubr.bf16.mxu0 %v1963_v60  ;;  %v1895_v53 = vrot.slane %v9805_v40, 2  ;;  %v1894_v60 = vsel %vm275_vm0, %v1893_v12, %v1892_v48  ;;  %v1856_v44 = vunpack.c.l.b16 %v9830_v15  ;;  %v9898_v48 = vld [vmem:[%s13235_s0 + $0x100] ss:$0 sps:$4 sm:$0x44]   ;;  %v13630_v15 = vunpack.c.l.b16 %v9849_v45 }
 0x325   :  { %6691 = vmatprep.subr.bf16.mxu0 %v9236_v58  ;;  %v6160_v58 = vcombine.low %v9746_v29, %v9746_v29  ;;  %v9825_v8 = vunpack.c.l.b16 %v6165_v20 }
 0x326   :  { %v1948_v4 = vrot.slane %v1856_v44, 4 }
 0x327   :  { %v9837_v29 = vunpack.c.l.b16 %v6160_v58  ;;  %v1900_v14 = vrot.slane %v9825_v8, 7  ;;  %v13331_v58 = vunpack.c.l.b16 %v9898_v48 }
 0x328   :  { %6692 = vmatpush3.bf16.msra.mxu0 %v9248_v39  ;;  %v6170_v39 = vcombine.low %v9754_v55, %v9754_v55 }
 0x329   :  { %6693 = vmatprep.subr.bf16.mxu0 %v9256_v50  ;;  %v1896_v50 = vsel %vm278_vm1, %v1895_v53, %v1894_v60  ;;  %v13330_v53 = vunpack.c.l.b16 %v9882_v26 }
 0x32a   :  { %v1898_v55 = vsel %vm281_vm2, %v1897_v22, %v1896_v50  ;;  %v9844_v62 = vunpack.c.l.b16 %v6170_v39  ;;  %v1958_v50 = vrot.slane %v13331_v58, 6 }
 0x32b   :  { %v1956_v22 = vrot.slane %v13330_v53, 7  ;;  %v2202_v53 = vrot.slane %v9653_v63, 3  ;;  %v2186_v63 = vrot.slane %v9655_v54, 4 }
 0x32c   :  { %6694 = vmatpush3.bf16.msra.mxu0 %v9269_v1  ;;  %v9835_v1 = vld [vmem:[%s13235_s0 + $0x38] ss:$0 sps:$4 sm:$0x44]   ;;  %v1902_v9 = vrot.slane %v9844_v62, 6 }
 0x32d   :  { %6695 = vmatprep.subr.bf16.mxu0 %v13574_v19  ;;  %v6175_v19 = vcombine.low %v9765_v37, %v9765_v37  ;;  %v1899_v37 = vsel %vm284_vm3, %v9837_v29, %v1898_v55 }
 0x32e   :  { %v1901_v59 = vsel %vm287_vm4, %v1900_v14, %v1899_v37 }
 0x32f   :  { %v9857_v28 = vunpack.c.l.b16 %v6175_v19 }
 0x330   :  { %6696 = vmatpush3.bf16.msra.mxu0 %v13576_v43  ;;  %v1861_v43 = vunpack.c.l.b16 %v9835_v1  ;;  %v2216_v1 = vrot.slane %v13630_v15, 3 }
 0x331   :  { %6697 = vmatprep.subr.bf16.mxu0 %v13578_v57  ;;  %v9862_v57 = vld [vmem:[%s13235_s0 + $0x88] ss:$0 sps:$4 sm:$0x44]   ;;  %v1904_v6 = vrot.slane %v9857_v28, 5 }
 0x332   :  { %v13333_v5 = vunpack.c.l.b16 %v9862_v57 }
 0x334   :  { %6698 = vmatpush3.bf16.msra.mxu0 %v13580_v23  ;;  %v1949_v23 = vrot.slane %v1861_v43, 3  ;;  %v1953_v42 = vrot.slane %v13333_v5, 1  ;;  %v2206_v5 = vrot.slane %v9663_v56, 1  ;;  %v2192_v56 = vrot.slane %v9686_v61, 1 }
 0x335   :  { %6699 = vmatprep.subr.bf16.mxu0 %v9333_v0  ;;  %v1903_v0 = vsel %vm290_vm5, %v1902_v9, %v1901_v59  ;;  %v9956_v9 = vld [vmem:[%s13234_s1 + $0xb0] sm:$0xff]   ;;  %v9962_v59 = vld [vmem:[%s13234_s1 + $0xe8] sm:$0xff]  }
 0x336   :  { %v1950_v30 = vsel %vm275_vm0, %v1949_v23, %v1948_v4  ;;  %v9968_v4 = vld [vmem:[%s13234_s1 + $0xa8] sm:$0xff]   ;;  %v9974_v23 = vld [vmem:[%s13234_s1 + $0xe0] sm:$0xff]  }
 0x337   :  { %v1952_v12 = vsel %vm278_vm1, %v1951_v16, %v1950_v30  ;;  %v9992_v16 = vld [vmem:[%s13234_s1 + $0x98] sm:$0xff]   ;;  %v9998_v30 = vld [vmem:[%s13234_s1 + $0xd0] sm:$0xff]  }
 0x338   :  { %6700 = vmatpush3.bf16.msra.mxu0 %v13586_v33  ;;  %v9888_v33 = vld [vmem:[%s13235_s0 + $0xb0] ss:$0 sps:$4 sm:$0x44]  }
 0x339   :  { %6701 = vmatprep.subr.bf16.mxu0 %v13588_v49  ;;  %v1905_v49 = vsel %vm293_vm6, %v1904_v6, %v1903_v0  ;;  %v13332_v60 = vunpack.c.l.b16 %v9888_v33  ;;  %v9980_v6 = vld [vmem:[%s13234_s1 + $0xa0] sm:$0xff]   ;;  %v9986_v0 = vld [vmem:[%s13234_s1 + $0xd8] sm:$0xff]  }
 0x33a   :  { %v1962_v20 = vpack.c.b16 %v1905_v49, %v1905_v49  ;;  %v10004_v49 = vld [vmem:[%s13234_s1 + $0x90] sm:$0xff]  }
 0x33c   :  { %6702 = vmatpush3.bf16.msra.mxu0 %v13590_v11  ;;  %v9907_v11 = vld [vmem:[%s13235_s0 + $0x128] ss:$0 sps:$4 sm:$0x44]  }
 0x33d   :  { %6703 = vmatprep.subr.bf16.mxu0 %v13591_v10  ;;  %v1954_v10 = vsel %vm281_vm2, %v1953_v42, %v1952_v12  ;;  %v10010_v42 = vld [vmem:[%s13234_s1 + $0xc8] sm:$0xff]  }
 0x33e   :  { %v1955_v39 = vsel %vm284_vm3, %v13332_v60, %v1954_v10  ;;  %v10016_v12 = vld [vmem:[%s13234_s1 + $0x88] sm:$0xff]   ;;  %v10028_v10 = vld [vmem:[%s13234_s1 + $0x80] sm:$0xff]   ;;  %v2204_v60 = vrot.slane %v9661_v32, 2 }
 0x33f   :  { %v1957_v19 = vsel %vm287_vm4, %v1956_v22, %v1955_v39  ;;  %13617 = vst [vmem:[#allocation10_spill] sm:$0xff] %v10028_v10  ;;  %v7810_v22 = vld [vmem:[%s13236_s3 + $0x48] sm:$0xff]   ;;  %v7811_v39 = vld [vmem:[%s13236_s3 + $0x40] sm:$0xff]  }
 0x340   :  { %6704 = vmatpush3.bf16.msra.mxu0 %v13593_v3  ;;  %v13329_v3 = vunpack.c.l.b16 %v9907_v11  ;;  %7409 = vmatpush3.bf16.msra.mxu1 %v7810_v22  ;;  %v2199_v22 = vrot.slane %v9647_v25, 5  ;;  %v2185_v25 = vrot.slane %v9649_v35, 5 }
 0x341   :  { %7396 = vmatprep.subr.bf16.mxu0 %v13497_v47  ;;  %7410 = vmatprep.subr.bf16.mxu1 %v13497_v47 }
 0x342   :  { %v1960_v55 = vrot.slane %v13329_v3, 5  ;;  %v2200_v3 = vrot.slane %v9651_v41, 4 }
 0x343   :  { %2007 = vmatmul.mubr.bf16.vlgmr.msra.gmra.mxu0 %v1962_v20  ;;  %v10022_v20 = vld [vmem:[%s13234_s1 + $0xc0] sm:$0xff]  }
 0x344   :  { %7397 = vmatpush3.bf16.msra.mxu0 %v9421_v2  ;;  %7404 = vmatprep.mubr.msk.bf16.mxu0 %vm8221_vm7, %v13497_v47  ;;  %v1959_v2 = vsel %vm290_vm5, %v1958_v50, %v1957_v19  ;;  %13616 = vst [vmem:[#allocation11_spill] sm:$0xff] %v10022_v20  ;;  %v10042_v50 = vld [vmem:[%s13234_s1 + $0x78] sm:$0xff]  }
 0x345   :  { %7398 = vmatprep.subr.bf16.mxu0 %v13497_v47  ;;  %v1961_v14 = vsel %vm293_vm6, %v1960_v55, %v1959_v2  ;;  %7411 = vmatpush3.bf16.msra.mxu1 %v7811_v39  ;;  %13618 = vst [vmem:[#allocation25_spill] sm:$0xff] %v10042_v50  ;;  %v2201_v39 = vsel %vm275_vm0, %v2200_v3, %v2199_v22  ;;  %v2188_v3 = vrot.slane %v9657_v13, 3 }
 0x346   :  { %v1966_v37 = vpack.c.b16 %v1961_v14, %v1961_v14  ;;  %6741 = vmatprep.subr.bf16.mxu1 %v10042_v50  ;;  %v2203_v58 = vsel %vm278_vm1, %v2202_v53, %v2201_v39  ;;  %v2190_v53 = vrot.slane %v9659_v31, 2  ;;  %v13621_v39 = vld [vmem:[#allocation22_spill] sm:$0xff] }
 0x348   :  { %7399 = vmatpush3.bf16.msra.mxu0 %v9434_v38  ;;  %v9937_v38 = vld [vmem:[%s13234_s1 + $0xf8] sm:$0xff]  }
 0x349   :  { %7400 = vmatprep.subr.bf16.mxu0 %v13497_v47 }
 0x34c   :  { %7401 = vmatpush3.bf16.msra.mxu0 %v9444_v18  ;;  %v9944_v18 = vld [vmem:[%s13234_s1 + $0xb8] sm:$0xff]  }
 0x34d   :  { %7402 = vmatprep.subr.bf16.mxu0 %v13497_v47 }
 0x350   :  { %7403 = vmatpush3.bf16.msra.mxu0 %v9452_v7  ;;  %v9950_v7 = vld [vmem:[%s13234_s1 + $0xf0] sm:$0xff]  }
 0x351   :  { %6763 = vmatprep.subr.bf16.mxu0 %v9937_v38 }
 0x353   :  { %7405 = vmatmul.mubr.msk.bf16.vlgmr.msra.gmra.mxu0 %vm576_vm8, %v1966_v37 }
 0x354   :  { %6764 = vmatpush3.bf16.msra.mxu0 %v9944_v18 }
 0x355   :  { %6765 = vmatprep.subr.bf16.mxu0 %v9950_v7 }
 0x358   :  { %6766 = vmatpush3.bf16.msra.mxu0 %v9956_v9 }
 0x359   :  { %6767 = vmatprep.subr.bf16.mxu0 %v9962_v59 }
 0x35c   :  { %6768 = vmatpush3.bf16.msra.mxu0 %v9968_v4 }
 0x35d   :  { %6769 = vmatprep.subr.bf16.mxu0 %v9974_v23 }
 0x360   :  { %6770 = vmatpush3.bf16.msra.mxu0 %v9980_v6 }
 0x361   :  { %6771 = vmatprep.subr.bf16.mxu0 %v9986_v0 }
 0x364   :  { %6772 = vmatpush3.bf16.msra.mxu0 %v9992_v16 }
 0x365   :  { %6773 = vmatprep.subr.bf16.mxu0 %v9998_v30 }
 0x368   :  { %6774 = vmatpush3.bf16.msra.mxu0 %v10004_v49  ;;  %v6727_v19 = vpop.f32.mrf.mxu1 }
 0x369   :  { %6775 = vmatprep.subr.bf16.mxu0 %v10010_v42 }
 0x36a   :  { %v6728_v55 = vpop.f32.mrf.mxu1 }
 0x36b   :  { %v6729_v2 = vadd.f32 %v6728_v55, %v6727_v19  ;;  %v2205_v19 = vsel %vm281_vm2, %v2204_v60, %v2203_v58  ;;  %v2211_v55 = vrot.slane %v9671_v36, 6  ;;  %v2187_v60 = vsel %vm275_vm0, %v2186_v63, %v2185_v25  ;;  %v13619_v58 = vld [vmem:[#allocation26_spill] sm:$0xff]  ;;  %v13622_v63 = vld [vmem:[#allocation27_spill] sm:$0xff] }
 0x36c   :  { %6776 = vmatpush3.bf16.msra.mxu0 %v10016_v12  ;;  %v6730_v14 = vpop.f32.mrf.mxu1  ;;  %v2207_v41 = vsel %vm284_vm3, %v2206_v5, %v2205_v19  ;;  %v2189_v35 = vsel %vm278_vm1, %v2188_v3, %v2187_v60  ;;  %v2195_v5 = vrot.slane %v9676_v34, 7  ;;  %v2197_v31 = vrot.slane %v13619_v58, 6 }
 0x36d   :  { %6777 = vmatprep.subr.bf16.mxu0 %v10022_v20  ;;  %v2208_v32 = vsel %vm287_vm4, %v9667_v21, %v2207_v41  ;;  %v2191_v13 = vsel %vm281_vm2, %v2190_v53, %v2189_v35  ;;  %v13620_v21 = vld [vmem:[#allocation20_spill] sm:$0xff]  ;;  %v2171_v3 = vrot.slane %v13622_v63, 5  ;;  %v13623_v53 = vld [vmem:[#allocation29_spill] sm:$0xff]  ;;  %v2183_v63 = vrot.slane %v9782_v17, 6 }
 0x36e   :  { %v6731_v37 = vpop.f32.mrf.mxu1  ;;  %v2210_v27 = vsel %vm290_vm5, %v2209_v46, %v2208_v32  ;;  %v2193_v14 = vsel %vm284_vm3, %v2192_v56, %v2191_v13  ;;  %v2172_v32 = vrot.slane %v13623_v53, 4  ;;  %v13624_v56 = vld [vmem:[#allocation7_spill] sm:$0xff]  ;;  %v13625_v35 = vld [vmem:[#allocation5_spill] sm:$0xff]  ;;  %v10106_v17 = vld [vmem:[%s13234_s1 + $0x70] sm:$0xff]  }
 0x36f   :  { %v2212_v36 = vsel %vm293_vm6, %v2211_v55, %v2210_v27  ;;  %v2194_v61 = vsel %vm287_vm4, %v13620_v21, %v2193_v14  ;;  %v2174_v27 = vrot.slane %v13624_v56, 3 }
 0x370   :  { %6778 = vmatpush3.bf16.msra.mxu0 %v10028_v10  ;;  %v2230_v54 = vpack.c.b16 %v2212_v36, %v2212_v36  ;;  %v2196_v46 = vsel %vm290_vm5, %v2195_v5, %v2194_v61  ;;  %v2173_v60 = vsel %vm275_vm0, %v2172_v32, %v2171_v3  ;;  %v2176_v5 = vrot.slane %v13625_v35, 2 }
 0x371   :  { %7428 = vmatprep.subr.bf16.mxu0 %v13497_v47  ;;  %v2198_v37 = vsel %vm293_vm6, %v2197_v31, %v2196_v46  ;;  %v2175_v13 = vsel %vm278_vm1, %v2174_v27, %v2173_v60  ;;  %v13626_v31 = vld [vmem:[#allocation8_spill] sm:$0xff] }
 0x372   :  { %2311 = vmatprep.mubr.bf16.mxu0 %v2230_v54  ;;  %v2229_v22 = vpack.c.b16 %v2198_v37, %v2198_v37  ;;  %v2178_v14 = vrot.slane %v13626_v31, 1  ;;  %v2177_v21 = vsel %vm281_vm2, %v2176_v5, %v2175_v13  ;;  %v2158_v31 = vrot.slane %v9798_v51, 4  ;;  %v10128_v51 = vld [vmem:[%s13234_s1 + $0x28] sm:$0xff]  }
 0x374   :  { %2312 = vmatmul.mubr.bf16.vlgmr.msra.gmra.mxu0 %v2229_v22  ;;  %v2179_v37 = vsel %vm284_vm3, %v2178_v14, %v2177_v21  ;;  %v13627_v22 = vld [vmem:[#allocation6_spill] sm:$0xff]  ;;  %v10114_v14 = vld [vmem:[%s13234_s1 + $0x30] sm:$0xff]   ;;  %v10120_v21 = vld [vmem:[%s13234_s1 + $0x68] sm:$0xff]  }
 0x375   :  { %7432 = vmatprep.mubr.msk.bf16.mxu0 %vm8221_vm7, %v13497_v47 }
 0x3e3   :  { %v1717_v34 = vpop.f32.mrf.mxu0 }
 0x3e4   :  { %v10078_v19 = vadd.f32 %v1717_v34, %v13621_v39  ;;  %v2181_v34 = vrot.slane %v13627_v22, 7  ;;  %v13628_v39 = vld [vmem:[#allocation15_spill] sm:$0xff]  ;;  %v2164_v22 = vrot.slane %v9837_v29, 1  ;;  %v10157_v29 = vld [vmem:[%s13234_s1 + $0x18] sm:$0xff]  }
 0x3e5   :  { %v7394_v55 = vpop.f32.mrf.mxu0 }
 0x3e7   :  { %v1720_v25 = vpop.f32.mrf.mxu0 }
 0x3e8   :  { %v13629_v25 = vld [vmem:[#allocation9_spill] sm:$0xff] }
 0x3e9   :  { %v7395_v41 = vpop.f32.mrf.mxu0 }
 0x3ea   :  { %v2180_v41 = vsel %vm287_vm4, %v13629_v25, %v2179_v37  ;;  %v10135_v37 = vld [vmem:[%s13234_s1 + $0x60] sm:$0xff]  }
 0x3eb   :  { %v2182_v3 = vsel %vm290_vm5, %v2181_v34, %v2180_v41  ;;  %v10143_v34 = vld [vmem:[%s13234_s1 + $0x20] sm:$0xff]   ;;  %v10163_v41 = vld [vmem:[%s13234_s1 + $0x50] sm:$0xff]  }
 0x3ec   :  { %v2184_v27 = vsel %vm293_vm6, %v2183_v63, %v2182_v3  ;;  %v2167_v63 = vrot.slane %v9844_v62, 7  ;;  %v10183_v62 = vld [vmem:[%s13234_s1 + $0x48] sm:$0xff]  }
 0x3ed   :  { %v2228_v5 = vpack.c.b16 %v2184_v27, %v2184_v27  ;;  %v2169_v27 = vrot.slane %v9857_v28, 6 }
 0x403   :  { %v6705_v36 = vpop.f32.mrf.mxu0 }
 0x405   :  { %v6706_v54 = vpop.f32.mrf.mxu0 }
 0x406   :  { %v6707_v46 = vadd.f32 %v6706_v54, %v6705_v36 }
 0x407   :  { %v6708_v58 = vpop.f32.mrf.mxu0 }
 0x408   :  { %v2009_v55 = vadd.f32 %v13628_v39, %v6707_v46  ;;  %v10100_v58 = vld [vmem:[%s13234_s1 + $0x38] sm:$0xff]   ;;  %v2162_v46 = vrot.slane %v9810_v24, 2 }
 0x409   :  { %v6709_v61 = vpop.f32.mrf.mxu0 }
 0x40a   :  { %v2049_v53 = vadd.f32 %v6729_v2, %v2009_v55  ;;  %v2157_v2 = vrot.slane %v9796_v52, 5  ;;  %v2160_v61 = vrot.slane %v9805_v40, 3  ;;  %v10150_v55 = vld [vmem:[%s13234_s1 + $0x58] sm:$0xff]  }
 0x40c   :  { %v2159_v52 = vsel %vm275_vm0, %v2158_v31, %v2157_v2  ;;  %v10211_v2 = vld [vmem:[%s13234_s1] sm:$0xff]  }
 0x40d   :  { %v2161_v40 = vsel %vm278_vm1, %v2160_v61, %v2159_v52  ;;  %v10220_v61 = vld [vmem:[%s13234_s1 + $0x118] sm:$0xff]  }
 0x40e   :  { %v2163_v24 = vsel %vm281_vm2, %v2162_v46, %v2161_v40  ;;  %v13634_v46 = vunpack.c.l.b16 %v9882_v26  ;;  %v10244_v26 = vld [vmem:[%s13234_s1 + $0x108] sm:$0xff]  }
 0x40f   :  { %v2165_v25 = vsel %vm284_vm3, %v2164_v22, %v2163_v24  ;;  %v10234_v22 = vld [vmem:[%s13234_s1 + $0x110] sm:$0xff]   ;;  %v13635_v24 = vunpack.c.l.b16 %v9907_v11  ;;  %v10252_v11 = vld [vmem:[%s13234_s1 + $0x100] sm:$0xff]  }
 0x410   :  { %v2166_v3 = vsel %vm287_vm4, %v9825_v8, %v2165_v25 }
 0x411   :  { %v2168_v8 = vsel %vm290_vm5, %v2167_v63, %v2166_v3  ;;  %v2225_v25 = vrot.slane %v13635_v24, 6 }
 0x412   :  { %v2170_v28 = vsel %vm293_vm6, %v2169_v27, %v2168_v8 }
 0x413   :  { %v2088_v32 = vpop.f32.mrf.mxu0 }
 0x414   :  { %v2089_v56 = vadd.f32 %v2088_v32, %v2049_v53  ;;  %v2213_v53 = vrot.slane %v1856_v44, 5  ;;  %v2214_v32 = vrot.slane %v1861_v43, 4  ;;  %v10193_v43 = vld [vmem:[%s13234_s1 + $0x8] sm:$0xff]  }
 0x415   :  { %v7406_v60 = vpop.f32.mrf.mxu0 }
 0x416   :  { %v2094_v36 = vmax.f32 %v2089_v56, 0.0  ;;  %v10176_v56 = vld [vmem:[%s13234_s1 + $0x10] sm:$0xff]   ;;  %v2215_v44 = vsel %vm275_vm0, %v2214_v32, %v2213_v53  ;;  %v13631_v60 = vunpack.c.l.b16 %v9862_v57  ;;  %v7812_v53 = vld [vmem:[%s13236_s3 + $0x58] sm:$0xff]  }
 0x417   :  { %v2091_v35 = vpop.f32.mrf.mxu0  ;;  %v2217_v45 = vsel %vm278_vm1, %v2216_v1, %v2215_v44  ;;  %7429 = vmatpush3.bf16.msra.mxu0 %v7812_v53  ;;  %v7813_v44 = vld [vmem:[%s13236_s3 + $0x50] sm:$0xff]  }
 0x418   :  { %v2095_v54 = vpack.c.bf16 %v2094_v36, %v2094_v36  ;;  %v2218_v36 = vrot.slane %v13631_v60, 2  ;;  %v10202_v35 = vld [vmem:[%s13234_s1 + $0x40] sm:$0xff]   ;;  %7430 = vmatprep.subr.bf16.mxu0 %v13497_v47  ;;  %v2426_v60 = vld [vmem:[%s13235_s0 + $0x30] sm:$0x88] }
 0x419   :  { %v7407_v13 = vpop.f32.mrf.mxu0 }
 0x41a   :  { %7413 = vmatmul.mubr.msk.bf16.vlgmr.msra.gmra.mxu1 %vm927_vm9, %v2095_v54  ;;  %v13632_v54 = vunpack.c.l.b16 %v9888_v33  ;;  %v2219_v57 = vsel %vm281_vm2, %v2218_v36, %v2217_v45  ;;  %v13633_v33 = vunpack.c.l.b16 %v9898_v48  ;;  %v2429_v36 = vld [vmem:[%s13235_s0 + $0x58] sm:$0x88]  ;;  %v2432_v45 = vld [vmem:[%s13235_s0 + $0x80] sm:$0x88] }
 0x41b   :  { %6742 = vmatpush3.bf16.msra.mxu1 %v10100_v58  ;;  %2271 = vmatprep.mubr.bf16.mxu1 %v2228_v5  ;;  %v2227_v5 = vpack.c.b16 %v2170_v28, %v2170_v28  ;;  %v2423_v28 = vld [vmem:[%s13235_s0 + $0x8] sm:$0x88]  ;;  %v6208_v24 = vcombine.low %v2429_v36, %v2429_v36 }
 0x41c   :  { %6743 = vmatprep.subr.bf16.mxu1 %v10106_v17  ;;  %v2220_v13 = vrot.slane %v13632_v54, 1  ;;  %v2223_v52 = vrot.slane %v13633_v33, 7  ;;  %7431 = vmatpush3.bf16.msra.mxu0 %v7813_v44  ;;  %v2438_v54 = vld [vmem:[%s13235_s0 + $0xd0] sm:$0x88]  ;;  %v6198_v33 = vcombine.low %v2423_v28, %v2423_v28 }
 0x41d   :  { %6793 = vmatprep.subr.bf16.mxu0 %v10042_v50  ;;  %v6223_v53 = vcombine.low %v2438_v54, %v2438_v54 }
 0x41e   :  { %v2221_v31 = vsel %vm284_vm3, %v2220_v13, %v2219_v57  ;;  %v6199_v13 = vcombine.high %v2423_v28, %v2423_v28  ;;  %v2441_v57 = vld [vmem:[%s13235_s0 + $0xf8] sm:$0x88] }
 0x41f   :  { %6744 = vmatpush3.bf16.msra.mxu1 %v10114_v14  ;;  %v2222_v40 = vsel %vm287_vm4, %v13634_v46, %v2221_v31  ;;  %v2444_v31 = vld [vmem:[%s13235_s0 + $0x120] sm:$0x88]  ;;  %v6209_v46 = vcombine.high %v2429_v36, %v2429_v36  ;;  %v10317_v36 = vunpack.c.l.b16 %v6208_v24 }
 0x420   :  { %6745 = vmatprep.subr.bf16.mxu1 %v10120_v21  ;;  %v2224_v63 = vsel %vm290_vm5, %v2223_v52, %v2222_v40  ;;  %v6204_v52 = vcombine.high %v2426_v60, %v2426_v60  ;;  %v6203_v40 = vcombine.low %v2426_v60, %v2426_v60  ;;  %v10307_v44 = vunpack.c.l.b16 %v6199_v13 }
 0x421   :  { %v2226_v48 = vsel %vm293_vm6, %v2225_v25, %v2224_v63  ;;  %v6214_v25 = vcombine.high %v2432_v45, %v2432_v45  ;;  %v6233_v50 = vcombine.low %v2444_v31, %v2444_v31  ;;  %v10313_v28 = vunpack.c.l.b16 %v6209_v46  ;;  %13640 = vst [vmem:[#allocation32_spill] sm:$0xff] %v10317_v36 }
 0x422   :  { %v2231_v3 = vpack.c.b16 %v2226_v48, %v2226_v48  ;;  %v6213_v48 = vcombine.low %v2432_v45, %v2432_v45  ;;  %13636 = vst [vmem:[#allocation12_spill] sm:$0xff] %v10307_v44  ;;  %v10315_v60 = vunpack.c.l.b16 %v6203_v40  ;;  %v10327_v13 = vunpack.c.l.b16 %v6223_v53 }
 0x423   :  { %6746 = vmatpush3.bf16.msra.mxu1 %v10128_v51  ;;  %13638 = vst [vmem:[#allocation30_spill] sm:$0xff] %v10313_v28  ;;  %v10319_v45 = vunpack.c.l.b16 %v6214_v25  ;;  %v2635_v40 = vrot.slane %v10313_v28, 4  ;;  %v10336_v24 = vunpack.c.l.b16 %v6233_v50 }
 0x424   :  { %6747 = vmatprep.subr.bf16.mxu1 %v10135_v37  ;;  %13639 = vst [vmem:[#allocation13_spill] sm:$0xff] %v10315_v60  ;;  %13645 = vst [vmem:[#allocation18_spill] sm:$0xff] %v10327_v13 }
 0x425   :  { %13641 = vst [vmem:[#allocation17_spill] sm:$0xff] %v10319_v45  ;;  %13648 = vst [vmem:[#allocation3_spill] sm:$0xff] %v10336_v24  ;;  %v2637_v25 = vrot.slane %v10319_v45, 3 }
 0x427   :  { %6748 = vmatpush3.bf16.msra.mxu1 %v10143_v34 }
 0x428   :  { %6749 = vmatprep.subr.bf16.mxu1 %v10150_v55 }
 0x42b   :  { %6750 = vmatpush3.bf16.msra.mxu1 %v10157_v29 }
 0x42c   :  { %6751 = vmatprep.subr.bf16.mxu1 %v10163_v41 }
 0x42f   :  { %6752 = vmatpush3.bf16.msra.mxu1 %v10176_v56 }
 0x430   :  { %6753 = vmatprep.subr.bf16.mxu1 %v10183_v62 }
 0x433   :  { %6754 = vmatpush3.bf16.msra.mxu1 %v10193_v43 }
 0x434   :  { %6755 = vmatprep.subr.bf16.mxu1 %v10202_v35  ;;  %v6779_v32 = vpop.f32.mrf.mxu0 }
 0x436   :  { %v6780_v27 = vpop.f32.mrf.mxu0 }
 0x437   :  { %6756 = vmatpush3.bf16.msra.mxu1 %v10211_v2  ;;  %v10277_v8 = vadd.f32 %v6780_v27, %v6779_v32  ;;  %v6224_v32 = vcombine.high %v2438_v54, %v2438_v54  ;;  %v6228_v27 = vcombine.low %v2441_v57, %v2441_v57  ;;  %v10323_v54 = vunpack.c.l.b16 %v6213_v48 }
 0x438   :  { %7416 = vmatprep.subr.bf16.mxu1 %v13497_v47  ;;  %v6782_v15 = vpop.f32.mrf.mxu0 }
 0x439   :  { %v6229_v15 = vcombine.high %v2441_v57, %v2441_v57  ;;  %13643 = vst [vmem:[#allocation16_spill] sm:$0xff] %v10323_v54  ;;  %v2623_v50 = vrot.slane %v10323_v54, 3 }
 0x43a   :  { %2272 = vmatmul.mubr.bf16.vlgmr.msra.gmra.mxu1 %v2227_v5  ;;  %v6783_v1 = vpop.f32.mrf.mxu0  ;;  %v2435_v5 = vld [vmem:[%s13235_s0 + $0xa8] sm:$0x88] }
 0x43b   :  { %7417 = vmatpush3.bf16.msra.mxu1 %v10220_v61  ;;  %7424 = vmatprep.mubr.msk.bf16.mxu1 %vm8221_vm7, %v13497_v47  ;;  %v6219_v63 = vcombine.high %v2435_v5, %v2435_v5  ;;  %v6234_v1 = vcombine.high %v2444_v31, %v2444_v31  ;;  %v10329_v31 = vunpack.c.l.b16 %v6224_v32  ;;  %v2619_v32 = vrot.slane %v10315_v60, 5 }
 0x43c   :  { %7418 = vmatprep.subr.bf16.mxu1 %v13497_v47 }
 0x43d   :  { %13646 = vst [vmem:[#allocation19_spill] sm:$0xff] %v10329_v31  ;;  %v2641_v53 = vrot.slane %v10329_v31, 1  ;;  %v10354_v31 = vunpack.c.l.b16 %v6228_v27 }
 0x43f   :  { %7419 = vmatpush3.bf16.msra.mxu1 %v10234_v22  ;;  %13650 = vst [vmem:[#allocation24_spill] sm:$0xff] %v10354_v31 }
 0x440   :  { %7420 = vmatprep.subr.bf16.mxu1 %v13497_v47 }
 0x443   :  { %7421 = vmatpush3.bf16.msra.mxu1 %v10244_v26 }
 0x444   :  { %7422 = vmatprep.subr.bf16.mxu1 %v13497_v47 }
 0x447   :  { %7423 = vmatpush3.bf16.msra.mxu1 %v10252_v11 }
 0x448   :  { %6815 = vmatprep.subr.bf16.mxu1 %v9937_v38 }
 0x44a   :  { %7425 = vmatmul.mubr.msk.bf16.vlgmr.msra.gmra.mxu1 %vm576_vm8, %v2231_v3  ;;  %v6218_v3 = vcombine.low %v2435_v5, %v2435_v5  ;;  %v10321_v5 = vunpack.c.l.b16 %v6219_v63 }
 0x44b   :  { %6816 = vmatpush3.bf16.msra.mxu1 %v9944_v18 }
 0x44c   :  { %6817 = vmatprep.subr.bf16.mxu1 %v9950_v7  ;;  %13642 = vst [vmem:[#allocation14_spill] sm:$0xff] %v10321_v5  ;;  %v10325_v57 = vunpack.c.l.b16 %v6218_v3  ;;  %v2639_v63 = vrot.slane %v10321_v5, 2 }
 0x44e   :  { %13644 = vst [vmem:[#allocation21_spill] sm:$0xff] %v10325_v57  ;;  %v2625_v45 = vrot.slane %v10325_v57, 2  ;;  %v2630_v57 = vrot.slane %v10336_v24, 7 }
 0x44f   :  { %6818 = vmatpush3.bf16.msra.mxu1 %v9956_v9 }
 0x450   :  { %6819 = vmatprep.subr.bf16.mxu1 %v9962_v59 }
 0x453   :  { %6820 = vmatpush3.bf16.msra.mxu1 %v9968_v4 }
 0x454   :  { %6821 = vmatprep.subr.bf16.mxu1 %v9974_v23 }
 0x457   :  { %6822 = vmatpush3.bf16.msra.mxu1 %v9980_v6 }
 0x458   :  { %6823 = vmatprep.subr.bf16.mxu1 %v9986_v0 }
 0x45b   :  { %6824 = vmatpush3.bf16.msra.mxu1 %v9992_v16 }
 0x45c   :  { %6825 = vmatprep.subr.bf16.mxu1 %v9998_v30 }
 0x45f   :  { %6826 = vmatpush3.bf16.msra.mxu1 %v10004_v49 }
 0x460   :  { %6827 = vmatprep.subr.bf16.mxu1 %v10010_v42 }
 0x463   :  { %6828 = vmatpush3.bf16.msra.mxu1 %v10016_v12 }
 0x464   :  { %6829 = vmatprep.subr.bf16.mxu1 %v10022_v20  ;;  %v10311_v20 = vunpack.c.l.b16 %v6204_v52  ;;  %v2632_v52 = vrot.slane %v10307_v44, 6  ;;  %v10345_v44 = vunpack.c.l.b16 %v6229_v15 }
 0x466   :  { %v2633_v46 = vrot.slane %v10311_v20, 5  ;;  %13649 = vst [vmem:[#allocation4_spill] sm:$0xff] %v10345_v44 }
 0x467   :  { %6830 = vmatpush3.bf16.msra.mxu1 %v10028_v10  ;;  %v10309_v10 = vunpack.c.l.b16 %v6198_v33  ;;  %v10331_v33 = vunpack.c.l.b16 %v6234_v1  ;;  %v2621_v1 = vrot.slane %v10317_v36, 4 }
 0x468   :  { %7448 = vmatprep.subr.bf16.mxu1 %v13497_v47  ;;  %v2634_v3 = vsel %vm275_vm0, %v2633_v46, %v2632_v52  ;;  %v2627_v46 = vrot.slane %v10327_v13, 1 }
 0x469   :  { %13637 = vst [vmem:[#allocation31_spill] sm:$0xff] %v10309_v10  ;;  %13647 = vst [vmem:[#allocation23_spill] sm:$0xff] %v10331_v33  ;;  %v2618_v48 = vrot.slane %v10309_v10, 6  ;;  %v2636_v28 = vsel %vm278_vm1, %v2635_v40, %v2634_v3  ;;  %v2644_v10 = vrot.slane %v10331_v33, 7 }
 0x46a   :  { %v2638_v5 = vsel %vm281_vm2, %v2637_v25, %v2636_v28 }
 0x46b   :  { %v2620_v52 = vsel %vm275_vm0, %v2619_v32, %v2618_v48  ;;  %v2640_v36 = vsel %vm284_vm3, %v2639_v63, %v2638_v5 }
 0x46c   :  { %v2622_v15 = vsel %vm278_vm1, %v2621_v1, %v2620_v52  ;;  %v2642_v40 = vsel %vm287_vm4, %v2641_v53, %v2640_v36  ;;  %v2422_v52 = vld [vmem:[%s13235_s0] sm:$0x88] }
 0x46d   :  { %v2624_v3 = vsel %vm281_vm2, %v2623_v50, %v2622_v15  ;;  %v2643_v28 = vsel %vm290_vm5, %v10345_v44, %v2642_v40  ;;  %v6197_v15 = vcombine.high %v2422_v52, %v2422_v52 }
 0x46e   :  { %v2626_v25 = vsel %vm284_vm3, %v2625_v45, %v2624_v3  ;;  %v2645_v48 = vsel %vm293_vm6, %v2644_v10, %v2643_v28 }
 0x46f   :  { %v2628_v27 = vsel %vm287_vm4, %v2627_v46, %v2626_v25  ;;  %v2663_v32 = vpack.c.b16 %v2645_v48, %v2645_v48  ;;  %v2428_v46 = vld [vmem:[%s13235_s0 + $0x50] sm:$0x88]  ;;  %v10388_v28 = vunpack.c.l.b16 %v6197_v15  ;;  %v10395_v48 = vld [vmem:[%s13235_s0 + $0xa0] sm:$0x88] }
 0x470   :  { %v2629_v5 = vsel %vm290_vm5, %v10354_v31, %v2628_v27  ;;  %v6207_v3 = vcombine.high %v2428_v46, %v2428_v46 }
 0x471   :  { %v2631_v63 = vsel %vm293_vm6, %v2630_v57, %v2629_v5  ;;  %2744 = vmatprep.mubr.bf16.mxu1 %v2663_v32  ;;  %v2425_v57 = vld [vmem:[%s13235_s0 + $0x28] sm:$0x88]  ;;  %13652 = vst [vmem:[#allocation2_spill] sm:$0xff] %v10388_v28  ;;  %v2604_v5 = vrot.slane %v10388_v28, 6 }
 0x472   :  { %v2662_v36 = vpack.c.b16 %v2631_v63, %v2631_v63  ;;  %v6202_v40 = vcombine.high %v2425_v57, %v2425_v57  ;;  %v10399_v32 = vunpack.c.l.b16 %v6207_v3 }
 0x474   :  { %2745 = vmatmul.mubr.bf16.vlgmr.msra.gmra.mxu1 %v2662_v36  ;;  %v10390_v25 = vunpack.c.l.b16 %v6202_v40  ;;  %13654 = vst [vmem:[#allocation20_spill] sm:$0xff] %v10399_v32  ;;  %v10406_v36 = vld [vmem:[%s13235_s0 + $0xc8] sm:$0x88] }
 0x475   :  { %7452 = vmatprep.mubr.msk.bf16.mxu1 %vm8221_vm7, %v13497_v47 }
 0x476   :  { %13653 = vst [vmem:[#allocation26_spill] sm:$0xff] %v10390_v25  ;;  %v2605_v63 = vrot.slane %v10390_v25, 5 }
 0x478   :  { %v2606_v15 = vsel %vm275_vm0, %v2605_v63, %v2604_v5 }
 0x4da   :  { %v2150_v53 = vpop.f32.mrf.mxu1 }
 0x4db   :  { %v10372_v1 = vadd.f32 %v2150_v53, %v10078_v19  ;;  %v10386_v19 = vld [vmem:[%s13235_s0 + $0x78] sm:$0x88]  ;;  %v6217_v53 = vcombine.high %v10395_v48, %v10395_v48 }
 0x4dc   :  { %v7414_v45 = vpop.f32.mrf.mxu1  ;;  %v6212_v27 = vcombine.high %v10386_v19, %v10386_v19 }
 0x4dd   :  { %13651 = vst [vmem:[#allocation28_spill] sm:$0xff] %v10372_v1  ;;  %v10416_v3 = vunpack.c.l.b16 %v6217_v53  ;;  %v10422_v1 = vld [vmem:[%s13235_s0 + $0x118] sm:$0x88] }
 0x4de   :  { %v2153_v10 = vpop.f32.mrf.mxu1  ;;  %v10410_v45 = vunpack.c.l.b16 %v6212_v27  ;;  %v6232_v53 = vcombine.high %v10422_v1, %v10422_v1 }
 0x4df   :  { %v2607_v10 = vrot.slane %v10399_v32, 4  ;;  %13656 = vst [vmem:[#allocation27_spill] sm:$0xff] %v10416_v3  ;;  %v10428_v32 = vld [vmem:[%s13235_s0 + $0xf0] sm:$0x88]  ;;  %v2611_v63 = vrot.slane %v10416_v3, 2 }
 0x4e0   :  { %v7415_v50 = vpop.f32.mrf.mxu1  ;;  %13655 = vst [vmem:[#allocation22_spill] sm:$0xff] %v10410_v45  ;;  %v2609_v25 = vrot.slane %v10410_v45, 3  ;;  %v6227_v33 = vcombine.high %v10428_v32, %v10428_v32  ;;  %v10440_v54 = vunpack.c.l.b16 %v6232_v53  ;;  %v6201_v53 = vcombine.low %v2425_v57, %v2425_v57 }
 0x4e1   :  { %v6222_v50 = vcombine.high %v10406_v36, %v10406_v36  ;;  %v2608_v27 = vsel %vm278_vm1, %v2607_v10, %v2606_v15  ;;  %v6216_v57 = vcombine.low %v10395_v48, %v10395_v48 }
 0x4e2   :  { %v2610_v45 = vsel %vm281_vm2, %v2609_v25, %v2608_v27  ;;  %13658 = vst [vmem:[#allocation7_spill] sm:$0xff] %v10440_v54  ;;  %v2616_v60 = vrot.slane %v10440_v54, 7  ;;  %v10453_v54 = vunpack.c.l.b16 %v6201_v53  ;;  %v10503_v53 = vld [vmem:[%s13235_s0 + $0x60] ss:$0 sps:$4 sm:$0x88]  }
 0x4e3   :  { %v10430_v24 = vunpack.c.l.b16 %v6222_v50  ;;  %v2612_v13 = vsel %vm284_vm3, %v2611_v63, %v2610_v45  ;;  %v10442_v50 = vunpack.c.l.b16 %v6227_v33  ;;  %v6196_v63 = vcombine.low %v2422_v52, %v2422_v52 }
 0x4e4   :  { %v2591_v52 = vrot.slane %v10453_v54, 5 }
 0x4e5   :  { %13657 = vst [vmem:[#allocation29_spill] sm:$0xff] %v10430_v24  ;;  %v2613_v15 = vrot.slane %v10430_v24, 1 }
 0x4e7   :  { %v2614_v3 = vsel %vm287_vm4, %v2613_v15, %v2612_v13  ;;  %v10451_v15 = vunpack.c.l.b16 %v6196_v63  ;;  %v6226_v63 = vcombine.low %v10428_v32, %v10428_v32  ;;  %v10515_v32 = vld [vmem:[%s13235_s0 + $0x88] ss:$0 sps:$4 sm:$0x88]  }
 0x4fa   :  { %v6757_v40 = vpop.f32.mrf.mxu1 }
 0x4fc   :  { %v6758_v28 = vpop.f32.mrf.mxu1 }
 0x4fd   :  { %v6759_v10 = vadd.f32 %v6758_v28, %v6757_v40 }
 0x4fe   :  { %v6760_v5 = vpop.f32.mrf.mxu1 }
 0x4ff   :  { %v2274_v5 = vadd.f32 %v13628_v39, %v6759_v10  ;;  %v6206_v10 = vcombine.low %v2428_v46, %v2428_v46 }
 0x500   :  { %v6761_v31 = vpop.f32.mrf.mxu1 }
 0x501   :  { %v2615_v31 = vsel %vm290_vm5, %v10442_v50, %v2614_v3  ;;  %v2314_v25 = vadd.f32 %v10277_v8, %v2274_v5  ;;  %v6211_v8 = vcombine.low %v10386_v19, %v10386_v19  ;;  %v10474_v5 = vunpack.c.l.b16 %v6216_v57 }
 0x502   :  { %v2617_v27 = vsel %vm293_vm6, %v2616_v60, %v2615_v31  ;;  %v10460_v60 = vunpack.c.l.b16 %v6206_v10 }
 0x503   :  { %v2661_v44 = vpack.c.b16 %v2617_v27, %v2617_v27  ;;  %v10467_v46 = vunpack.c.l.b16 %v6211_v8  ;;  %v6231_v27 = vcombine.low %v10422_v1, %v10422_v1  ;;  %v10518_v8 = vunpack.c.l.b16 %v6226_v63 }
 0x504   :  { %v2593_v19 = vrot.slane %v10460_v60, 4 }
 0x505   :  { %v2595_v31 = vrot.slane %v10467_v46, 3 }
 0x50a   :  { %v2353_v28 = vpop.f32.mrf.mxu1 }
 0x50b   :  { %v2354_v40 = vadd.f32 %v2353_v28, %v2314_v25  ;;  %v10485_v28 = vld [vmem:[%s13235_s0 + $0x10] ss:$0 sps:$4 sm:$0x88]  }
 0x50c   :  { %v7426_v45 = vpop.f32.mrf.mxu1 }
 0x50d   :  { %v2359_v33 = vmax.f32 %v2354_v40, 0.0  ;;  %v2597_v40 = vrot.slane %v10474_v5, 2 }
 0x50e   :  { %v2356_v24 = vpop.f32.mrf.mxu1 }
 0x50f   :  { %v2360_v39 = vpack.c.bf16 %v2359_v33, %v2359_v33  ;;  %v2590_v24 = vrot.slane %v10451_v15, 6 }
 0x510   :  { %v7427_v13 = vpop.f32.mrf.mxu1 }
 0x511   :  { %7433 = vmatmul.mubr.msk.bf16.vlgmr.msra.gmra.mxu0 %vm927_vm9, %v2360_v39  ;;  %v2592_v3 = vsel %vm275_vm0, %v2591_v52, %v2590_v24  ;;  %v13362_v39 = vunpack.c.l.b16 %v10485_v28  ;;  %v10510_v13 = vunpack.c.l.b16 %v6231_v27  ;;  %v13360_v24 = vunpack.c.l.b16 %v10503_v53  ;;  %v10542_v27 = vld [vmem:[%s13235_s0 + $0xd8] ss:$0 sps:$4 sm:$0x88]  }
 0x512   :  { %6794 = vmatpush3.bf16.msra.mxu0 %v10100_v58  ;;  %2704 = vmatprep.mubr.bf16.mxu0 %v2661_v44  ;;  %v6221_v44 = vcombine.low %v10406_v36, %v10406_v36  ;;  %v2594_v48 = vsel %vm278_vm1, %v2593_v19, %v2592_v3  ;;  %v10490_v36 = vld [vmem:[%s13235_s0 + $0x38] ss:$0 sps:$4 sm:$0x88]  }
 0x513   :  { %6795 = vmatprep.subr.bf16.mxu0 %v10106_v17  ;;  %v2596_v45 = vsel %vm281_vm2, %v2595_v31, %v2594_v48  ;;  %v13361_v10 = vunpack.c.l.b16 %v10490_v36  ;;  %v2646_v57 = vrot.slane %v13362_v39, 6  ;;  %v2602_v3 = vrot.slane %v10510_v13, 7 }
 0x514   :  { %v10480_v25 = vunpack.c.l.b16 %v6221_v44  ;;  %v2598_v1 = vsel %vm284_vm3, %v2597_v40, %v2596_v45  ;;  %v10529_v44 = vld [vmem:[%s13235_s0 + $0xb0] ss:$0 sps:$4 sm:$0x88]   ;;  %v2569_v31 = vunpack.c.l.b16 %v10515_v32  ;;  %v2649_v40 = vrot.slane %v13360_v24, 4 }
 0x515   :  { %v2647_v19 = vrot.slane %v13361_v10, 5  ;;  %v2574_v63 = vunpack.c.l.b16 %v10529_v44  ;;  %v2579_v24 = vunpack.c.l.b16 %v10542_v27  ;;  %v10763_v44 = vld [vmem:[%s13234_s1 + $0xe8] sm:$0xff]   ;;  %v10775_v27 = vld [vmem:[%s13234_s1 + $0xe0] sm:$0xff]  }
 0x516   :  { %6796 = vmatpush3.bf16.msra.mxu0 %v10114_v14  ;;  %v2599_v33 = vrot.slane %v10480_v25, 1 }
 0x517   :  { %6797 = vmatprep.subr.bf16.mxu0 %v10120_v21  ;;  %v2648_v45 = vsel %vm275_vm0, %v2647_v19, %v2646_v57  ;;  %v2653_v39 = vrot.slane %v2574_v63, 2  ;;  %v10559_v57 = vld [vmem:[%s13235_s0 + $0x128] ss:$0 sps:$4 sm:$0x88]  }
 0x518   :  { %v2600_v52 = vsel %vm287_vm4, %v2599_v33, %v2598_v1  ;;  %v2651_v1 = vrot.slane %v2569_v31, 3 }
 0x519   :  { %v2601_v48 = vsel %vm290_vm5, %v10518_v8, %v2600_v52  ;;  %v2650_v52 = vsel %vm278_vm1, %v2649_v40, %v2648_v45  ;;  %v2589_v45 = vunpack.c.l.b16 %v10559_v57  ;;  %v10787_v57 = vld [vmem:[%s13234_s1 + $0xd8] sm:$0xff]  }
 0x51a   :  { %6798 = vmatpush3.bf16.msra.mxu0 %v10128_v51  ;;  %v2603_v33 = vsel %vm293_vm6, %v2602_v3, %v2601_v48  ;;  %v2652_v19 = vsel %vm281_vm2, %v2651_v1, %v2650_v52  ;;  %v10566_v3 = vld [vmem:[%s13235_s0 + $0x100] ss:$0 sps:$4 sm:$0x88]   ;;  %v2655_v48 = vrot.slane %v2579_v24, 1 }
 0x51b   :  { %6799 = vmatprep.subr.bf16.mxu0 %v10135_v37  ;;  %v2660_v10 = vpack.c.b16 %v2603_v33, %v2603_v33  ;;  %v2654_v40 = vsel %vm284_vm3, %v2653_v39, %v2652_v19  ;;  %v2584_v33 = vunpack.c.l.b16 %v10566_v3  ;;  %v10793_v3 = vld [vmem:[%s13234_s1 + $0x98] sm:$0xff]  }
 0x51c   :  { %v2656_v1 = vsel %vm287_vm4, %v2655_v48, %v2654_v40  ;;  %v13664_v40 = vld [vmem:[#allocation17_spill] sm:$0xff] }
 0x51d   :  { %v2657_v39 = vsel %vm290_vm5, %v2584_v33, %v2656_v1  ;;  %v2902_v1 = vrot.slane %v13664_v40, 4  ;;  %v13671_v40 = vld [vmem:[#allocation16_spill] sm:$0xff] }
 0x51e   :  { %6800 = vmatpush3.bf16.msra.mxu0 %v10143_v34 }
 0x51f   :  { %6801 = vmatprep.subr.bf16.mxu0 %v10150_v55 }
 0x522   :  { %6802 = vmatpush3.bf16.msra.mxu0 %v10157_v29 }
 0x523   :  { %6803 = vmatprep.subr.bf16.mxu0 %v10163_v41 }
 0x526   :  { %6804 = vmatpush3.bf16.msra.mxu0 %v10176_v56 }
 0x527   :  { %6805 = vmatprep.subr.bf16.mxu0 %v10183_v62 }
 0x52a   :  { %6806 = vmatpush3.bf16.msra.mxu0 %v10193_v43 }
 0x52b   :  { %6807 = vmatprep.subr.bf16.mxu0 %v10202_v35 }
 0x52e   :  { %6808 = vmatpush3.bf16.msra.mxu0 %v10211_v2 }
 0x52f   :  { %7436 = vmatprep.subr.bf16.mxu0 %v13497_v47 }
 0x531   :  { %2705 = vmatmul.mubr.bf16.vlgmr.msra.gmra.mxu0 %v2660_v10  ;;  %v2658_v10 = vrot.slane %v2589_v45, 7 }
 0x532   :  { %7437 = vmatpush3.bf16.msra.mxu0 %v10220_v61  ;;  %7444 = vmatprep.mubr.msk.bf16.mxu0 %vm8221_vm7, %v13497_v47 }
 0x533   :  { %7438 = vmatprep.subr.bf16.mxu0 %v13497_v47  ;;  %v2659_v52 = vsel %vm293_vm6, %v2658_v10, %v2657_v39  ;;  %v13665_v39 = vld [vmem:[#allocation14_spill] sm:$0xff] }
 0x534   :  { %v2664_v19 = vpack.c.b16 %v2659_v52, %v2659_v52  ;;  %v2904_v52 = vrot.slane %v13665_v39, 3  ;;  %v13672_v39 = vld [vmem:[#allocation21_spill] sm:$0xff] }
 0x536   :  { %7439 = vmatpush3.bf16.msra.mxu0 %v10234_v22 }
 0x537   :  { %7440 = vmatprep.subr.bf16.mxu0 %v13497_v47 }
 0x53a   :  { %7441 = vmatpush3.bf16.msra.mxu0 %v10244_v26 }
 0x53b   :  { %7442 = vmatprep.subr.bf16.mxu0 %v13497_v47 }
 0x53e   :  { %7443 = vmatpush3.bf16.msra.mxu0 %v10252_v11 }
 0x53f   :  { %6867 = vmatprep.subr.bf16.mxu0 %v9937_v38  ;;  %v13659_v38 = vld [vmem:[#allocation11_spill] sm:$0xff] }
 0x541   :  { %7445 = vmatmul.mubr.msk.bf16.vlgmr.msra.gmra.mxu0 %vm576_vm8, %v2664_v19 }
 0x542   :  { %6868 = vmatpush3.bf16.msra.mxu0 %v9944_v18  ;;  %v13660_v18 = vld [vmem:[#allocation10_spill] sm:$0xff] }
 0x543   :  { %6869 = vmatprep.subr.bf16.mxu0 %v9950_v7  ;;  %v7854_v7 = vld [vmem:[%s13236_s3 + $0x68] sm:$0xff]  }
 0x544   :  { %7449 = vmatpush3.bf16.msra.mxu1 %v7854_v7 }
 0x545   :  { %7450 = vmatprep.subr.bf16.mxu1 %v13497_v47 }
 0x546   :  { %6870 = vmatpush3.bf16.msra.mxu0 %v9956_v9  ;;  %v7855_v9 = vld [vmem:[%s13236_s3 + $0x60] sm:$0xff]  }
 0x547   :  { %6871 = vmatprep.subr.bf16.mxu0 %v9962_v59  ;;  %v13661_v59 = vld [vmem:[#allocation25_spill] sm:$0xff] }
 0x548   :  { %7451 = vmatpush3.bf16.msra.mxu1 %v7855_v9  ;;  %v13667_v9 = vld [vmem:[#allocation4_spill] sm:$0xff] }
 0x549   :  { %6845 = vmatprep.subr.bf16.mxu1 %v13661_v59  ;;  %v2908_v59 = vrot.slane %v13667_v9, 1  ;;  %v13674_v9 = vld [vmem:[#allocation23_spill] sm:$0xff] }
 0x54a   :  { %6872 = vmatpush3.bf16.msra.mxu0 %v9968_v4  ;;  %v6831_v4 = vpop.f32.mrf.mxu1 }
 0x54b   :  { %6873 = vmatprep.subr.bf16.mxu0 %v9974_v23 }
 0x54c   :  { %v6832_v23 = vpop.f32.mrf.mxu1 }
 0x54e   :  { %6874 = vmatpush3.bf16.msra.mxu0 %v9980_v6  ;;  %v6833_v6 = vadd.f32 %v6832_v23, %v6831_v4  ;;  %v13668_v4 = vld [vmem:[#allocation31_spill] sm:$0xff] }
 0x54f   :  { %6875 = vmatprep.subr.bf16.mxu0 %v9986_v0  ;;  %v6834_v0 = vpop.f32.mrf.mxu1  ;;  %v2883_v23 = vrot.slane %v13668_v4, 7 }
 0x550   :  { %v13669_v0 = vld [vmem:[#allocation13_spill] sm:$0xff] }
 0x552   :  { %6876 = vmatpush3.bf16.msra.mxu0 %v9992_v16  ;;  %v6835_v16 = vpop.f32.mrf.mxu1 }
 0x553   :  { %6877 = vmatprep.subr.bf16.mxu0 %v9998_v30  ;;  %v13662_v30 = vld [vmem:[#allocation12_spill] sm:$0xff]  ;;  %v2884_v16 = vrot.slane %v13669_v0, 6 }
 0x556   :  { %6878 = vmatpush3.bf16.msra.mxu0 %v10004_v49  ;;  %v2897_v49 = vrot.slane %v13662_v30, 7  ;;  %v13670_v30 = vld [vmem:[#allocation32_spill] sm:$0xff] }
 0x557   :  { %6879 = vmatprep.subr.bf16.mxu0 %v10010_v42  ;;  %v2898_v42 = vrot.slane %v10311_v20, 6 }
 0x559   :  { %v2899_v10 = vsel %vm275_vm0, %v2898_v42, %v2897_v49  ;;  %v2888_v49 = vrot.slane %v13671_v40, 4 }
 0x55a   :  { %6880 = vmatpush3.bf16.msra.mxu0 %v10016_v12  ;;  %v13663_v12 = vld [vmem:[#allocation30_spill] sm:$0xff] }
 0x55b   :  { %6881 = vmatprep.subr.bf16.mxu0 %v13659_v38  ;;  %v2900_v48 = vrot.slane %v13663_v12, 5  ;;  %v13666_v38 = vld [vmem:[#allocation19_spill] sm:$0xff]  ;;  %v2886_v12 = vrot.slane %v13670_v30, 5 }
 0x55d   :  { %v2901_v19 = vsel %vm278_vm1, %v2900_v48, %v2899_v10  ;;  %v2890_v48 = vrot.slane %v13672_v39, 3  ;;  %v13677_v39 = vld [vmem:[#allocation28_spill] sm:$0xff] }
 0x55e   :  { %6882 = vmatpush3.bf16.msra.mxu0 %v13660_v18  ;;  %v2906_v18 = vrot.slane %v13666_v38, 2  ;;  %v2903_v7 = vsel %vm281_vm2, %v2902_v1, %v2901_v19  ;;  %v2885_v1 = vsel %vm275_vm0, %v2884_v16, %v2883_v23  ;;  %v13673_v19 = vld [vmem:[#allocation18_spill] sm:$0xff]  ;;  %v13676_v23 = vld [vmem:[#allocation3_spill] sm:$0xff] }
 0x55f   :  { %7468 = vmatprep.subr.bf16.mxu0 %v13497_v47  ;;  %v2905_v20 = vsel %vm284_vm3, %v2904_v52, %v2903_v7  ;;  %v2892_v38 = vrot.slane %v13673_v19, 2  ;;  %v2887_v52 = vsel %vm278_vm1, %v2886_v12, %v2885_v1  ;;  %v13675_v7 = vld [vmem:[#allocation24_spill] sm:$0xff]  ;;  %v13678_v19 = vld [vmem:[#allocation2_spill] sm:$0xff] }
 0x560   :  { %v2907_v42 = vsel %vm287_vm4, %v2906_v18, %v2905_v20  ;;  %v2894_v0 = vrot.slane %v13675_v7, 1  ;;  %v2889_v40 = vsel %vm281_vm2, %v2888_v49, %v2887_v52  ;;  %v13680_v52 = vld [vmem:[#allocation20_spill] sm:$0xff] }
 0x561   :  { %v2909_v10 = vsel %vm290_vm5, %v2908_v59, %v2907_v42  ;;  %v2891_v18 = vsel %vm284_vm3, %v2890_v48, %v2889_v40  ;;  %v2872_v7 = vrot.slane %v13680_v52, 5  ;;  %v13681_v40 = vld [vmem:[#allocation22_spill] sm:$0xff] }
 0x562   :  { %v2910_v4 = vsel %vm293_vm6, %v13674_v9, %v2909_v10  ;;  %v2893_v20 = vsel %vm287_vm4, %v2892_v38, %v2891_v18  ;;  %v2869_v9 = vrot.slane %v13678_v19, 7  ;;  %v13679_v38 = vld [vmem:[#allocation26_spill] sm:$0xff]  ;;  %v2874_v18 = vrot.slane %v13681_v40, 4 }
 0x563   :  { %v2928_v30 = vpack.c.b16 %v2910_v4, %v2910_v4  ;;  %v2895_v59 = vsel %vm290_vm5, %v2894_v0, %v2893_v20  ;;  %v2870_v4 = vrot.slane %v13679_v38, 6  ;;  %v2880_v38 = vrot.slane %v10442_v50, 1 }
 0x564   :  { %v2896_v16 = vsel %vm293_vm6, %v13676_v23, %v2895_v59 }
 0x565   :  { %3009 = vmatprep.mubr.bf16.mxu0 %v2928_v30  ;;  %v2927_v42 = vpack.c.b16 %v2896_v16, %v2896_v16  ;;  %v2871_v0 = vsel %vm275_vm0, %v2870_v4, %v2869_v9  ;;  %v13682_v16 = vld [vmem:[#allocation27_spill] sm:$0xff]  ;;  %v10664_v9 = vld [vmem:[%s13237_s2] ss:$0 sm:$0xff] }
 0x566   :  { %v2873_v59 = vsel %vm278_vm1, %v2872_v7, %v2871_v0 }
 0x567   :  { %3010 = vmatmul.mubr.bf16.vlgmr.msra.gmra.mxu0 %v2927_v42  ;;  %v2876_v42 = vrot.slane %v13682_v16, 3 }
 0x568   :  { %7472 = vmatprep.mubr.msk.bf16.mxu0 %vm8221_vm7, %v13497_v47 }
 0x5d1   :  { %v2415_v12 = vpop.f32.mrf.mxu0 }
 0x5d2   :  { %v10648_v10 = vadd.f32 %v2415_v12, %v13677_v39  ;;  %v2875_v12 = vsel %vm281_vm2, %v2874_v18, %v2873_v59  ;;  %v13684_v18 = vld [vmem:[#allocation7_spill] sm:$0xff] }
 0x5d3   :  { %v7434_v49 = vpop.f32.mrf.mxu0  ;;  %v2877_v19 = vsel %vm284_vm3, %v2876_v42, %v2875_v12 }
 0x5d5   :  { %v2418_v1 = vpop.f32.mrf.mxu0 }
 0x5d6   :  { %v13683_v1 = vld [vmem:[#allocation29_spill] sm:$0xff] }
 0x5d7   :  { %v7435_v48 = vpop.f32.mrf.mxu0 }
 0x5d8   :  { %v2878_v48 = vrot.slane %v13683_v1, 2 }
 0x5da   :  { %v2879_v52 = vsel %vm287_vm4, %v2878_v48, %v2877_v19  ;;  %v2860_v48 = vrot.slane %v10467_v46, 4  ;;  %v10811_v19 = vld [vmem:[%s13234_s1 + $0xc8] sm:$0xff]  }
 0x5db   :  { %v2881_v7 = vsel %vm290_vm5, %v2880_v38, %v2879_v52  ;;  %13690 = vst [vmem:[#allocation6_spill] sm:$0xff] %v10811_v19  ;;  %v10817_v38 = vld [vmem:[%s13234_s1 + $0x88] sm:$0xff]   ;;  %v10829_v52 = vld [vmem:[%s13234_s1 + $0x80] sm:$0xff]  }
 0x5dc   :  { %13691 = vst [vmem:[#allocation15_spill] sm:$0xff] %v10817_v38  ;;  %13693 = vst [vmem:[#allocation11_spill] sm:$0xff] %v10829_v52 }
 0x5f1   :  { %v6809_v30 = vpop.f32.mrf.mxu0 }
 0x5f3   :  { %v6810_v20 = vpop.f32.mrf.mxu0 }
 0x5f4   :  { %v6811_v49 = vadd.f32 %v6810_v20, %v6809_v30  ;;  %v2882_v20 = vsel %vm293_vm6, %v13684_v18, %v2881_v7  ;;  %v7856_v7 = vld [vmem:[%s13236_s3 + $0x78] sm:$0xff]  }
 0x5f5   :  { %v6812_v23 = vpop.f32.mrf.mxu0  ;;  %v2926_v16 = vpack.c.b16 %v2882_v20, %v2882_v20  ;;  %7469 = vmatpush3.bf16.msra.mxu0 %v7856_v7 }
 0x5f6   :  { %v2707_v4 = vadd.f32 %v10664_v9, %v6811_v49  ;;  %v2858_v49 = vrot.slane %v10460_v60, 5  ;;  %7470 = vmatprep.subr.bf16.mxu0 %v13497_v47 }
 0x5f7   :  { %v6813_v39 = vpop.f32.mrf.mxu0 }
 0x5f8   :  { %v2747_v0 = vadd.f32 %v6833_v6, %v2707_v4  ;;  %v2855_v6 = vrot.slane %v10451_v15, 7  ;;  %v2856_v39 = vrot.slane %v10453_v54, 6  ;;  %v13685_v15 = vunpack.c.l.b16 %v10485_v28  ;;  %v10823_v4 = vld [vmem:[%s13234_s1 + $0xc0] sm:$0xff]  }
 0x5f9   :  { %v2916_v28 = vrot.slane %v2569_v31, 4  ;;  %v10769_v31 = vld [vmem:[%s13234_s1 + $0xa8] sm:$0xff]   ;;  %13692 = vst [vmem:[#allocation9_spill] sm:$0xff] %v10823_v4 }
 0x5fa   :  { %v2857_v1 = vsel %vm275_vm0, %v2856_v39, %v2855_v6  ;;  %v2911_v60 = vrot.slane %v13685_v15, 7  ;;  %v3133_v6 = vld [vmem:[%s13235_s0 + $0xbc] sm:$0x11]  ;;  %v3136_v39 = vld [vmem:[%s13235_s0 + $0xe4] sm:$0x11] }
 0x5fb   :  { %v6274_v15 = vcombine.low %v3133_v6, %v3133_v6 }
 0x601   :  { %v2786_v40 = vpop.f32.mrf.mxu0 }
 0x602   :  { %v2787_v30 = vadd.f32 %v2786_v40, %v2747_v0 }
 0x603   :  { %v7446_v59 = vpop.f32.mrf.mxu0 }
 0x604   :  { %v2792_v23 = vmax.f32 %v2787_v30, 0.0  ;;  %v7857_v59 = vld [vmem:[%s13236_s3 + $0x70] sm:$0xff]  }
 0x605   :  { %v2789_v50 = vpop.f32.mrf.mxu0  ;;  %7471 = vmatpush3.bf16.msra.mxu0 %v7857_v59 }
 0x606   :  { %v2793_v42 = vpack.c.bf16 %v2792_v23, %v2792_v23  ;;  %v10845_v23 = vld [vmem:[%s13234_s1 + $0x78] sm:$0xff]  }
 0x607   :  { %v7447_v12 = vpop.f32.mrf.mxu0  ;;  %13694 = vst [vmem:[#allocation10_spill] sm:$0xff] %v10845_v23  ;;  %6897 = vmatprep.subr.bf16.mxu0 %v10845_v23  ;;  %v3121_v50 = vld [vmem:[%s13235_s0 + $0x1c] sm:$0x11] }
 0x608   :  { %7453 = vmatmul.mubr.msk.bf16.vlgmr.msra.gmra.mxu1 %vm927_vm9, %v2793_v42  ;;  %v3127_v42 = vld [vmem:[%s13235_s0 + $0x6c] sm:$0x11]  ;;  %v3130_v12 = vld [vmem:[%s13235_s0 + $0x94] sm:$0x11] }
 0x609   :  { %6846 = vmatpush3.bf16.msra.mxu1 %v10100_v58  ;;  %2969 = vmatprep.mubr.bf16.mxu1 %v2926_v16  ;;  %v2859_v58 = vsel %vm278_vm1, %v2858_v49, %v2857_v1  ;;  %v3124_v16 = vld [vmem:[%s13235_s0 + $0x44] sm:$0x11]  ;;  %v3139_v49 = vld [vmem:[%s13235_s0 + $0x10c] sm:$0x11]  ;;  %v3142_v1 = vld [vmem:[%s13235_s0 + $0x134] sm:$0x11] }
 0x60a   :  { %6847 = vmatprep.subr.bf16.mxu1 %v10106_v17  ;;  %v2862_v17 = vrot.slane %v10474_v5, 3 }
 0x60d   :  { %6848 = vmatpush3.bf16.msra.mxu1 %v10114_v14  ;;  %v2861_v14 = vsel %vm281_vm2, %v2860_v48, %v2859_v58  ;;  %v6254_v48 = vcombine.low %v3121_v50, %v3121_v50  ;;  %v6255_v58 = vcombine.high %v3121_v50, %v3121_v50 }
 0x60e   :  { %6849 = vmatprep.subr.bf16.mxu1 %v10120_v21  ;;  %v2864_v21 = vrot.slane %v10480_v25, 2  ;;  %v2863_v54 = vsel %vm284_vm3, %v2862_v17, %v2861_v14  ;;  %v6259_v17 = vcombine.low %v3124_v16, %v3124_v16  ;;  %v6260_v14 = vcombine.high %v3124_v16, %v3124_v16 }
 0x611   :  { %6850 = vmatpush3.bf16.msra.mxu1 %v10128_v51  ;;  %v2866_v51 = vrot.slane %v10518_v8, 1 }
 0x612   :  { %6851 = vmatprep.subr.bf16.mxu1 %v10135_v37  ;;  %v2865_v37 = vsel %vm287_vm4, %v2864_v21, %v2863_v54  ;;  %v6264_v21 = vcombine.low %v3127_v42, %v3127_v42  ;;  %v6265_v54 = vcombine.high %v3127_v42, %v3127_v42 }
 0x615   :  { %6852 = vmatpush3.bf16.msra.mxu1 %v10143_v34  ;;  %v13686_v34 = vunpack.c.l.b16 %v10490_v36  ;;  %v2918_v36 = vrot.slane %v2574_v63, 3  ;;  %v10781_v63 = vld [vmem:[%s13234_s1 + $0xa0] sm:$0xff]  }
 0x616   :  { %6853 = vmatprep.subr.bf16.mxu1 %v10150_v55  ;;  %v2867_v55 = vsel %vm290_vm5, %v2866_v51, %v2865_v37  ;;  %v6269_v51 = vcombine.low %v3130_v12, %v3130_v12  ;;  %v6270_v37 = vcombine.high %v3130_v12, %v3130_v12 }
 0x617   :  { %v2912_v46 = vrot.slane %v13686_v34, 6  ;;  %v2868_v25 = vsel %vm293_vm6, %v10510_v13, %v2867_v55  ;;  %v6279_v34 = vcombine.low %v3136_v39, %v3136_v39  ;;  %v6284_v55 = vcombine.low %v3139_v49, %v3139_v49 }
 0x619   :  { %6854 = vmatpush3.bf16.msra.mxu1 %v10157_v29  ;;  %v13687_v29 = vunpack.c.l.b16 %v10503_v53 }
 0x61a   :  { %6855 = vmatprep.subr.bf16.mxu1 %v10163_v41  ;;  %v2913_v41 = vsel %vm275_vm0, %v2912_v46, %v2911_v60  ;;  %v6275_v60 = vcombine.high %v3133_v6, %v3133_v6  ;;  %v6280_v46 = vcombine.high %v3136_v39, %v3136_v39 }
 0x61b   :  { %v2914_v5 = vrot.slane %v13687_v29, 5  ;;  %v6285_v29 = vcombine.high %v3139_v49, %v3139_v49 }
 0x61d   :  { %6856 = vmatpush3.bf16.msra.mxu1 %v10176_v56  ;;  %v2915_v56 = vsel %vm278_vm1, %v2914_v5, %v2913_v41  ;;  %v6289_v5 = vcombine.low %v3142_v1, %v3142_v1  ;;  %v6290_v41 = vcombine.high %v3142_v1, %v3142_v1  ;;  %v10898_v7 = vunpack.c.l.b16 %v6285_v29 }
 0x61e   :  { %6857 = vmatprep.subr.bf16.mxu1 %v10183_v62  ;;  %v2925_v62 = vpack.c.b16 %v2868_v25, %v2868_v25  ;;  %v2917_v53 = vsel %vm281_vm2, %v2916_v28, %v2915_v56  ;;  %v10872_v25 = vunpack.c.l.b16 %v6254_v48  ;;  %v10874_v28 = vunpack.c.l.b16 %v6255_v58 }
 0x61f   :  { %v2919_v13 = vsel %vm284_vm3, %v2918_v36, %v2917_v53  ;;  %v10876_v56 = vunpack.c.l.b16 %v6259_v17  ;;  %v10880_v36 = vunpack.c.l.b16 %v6264_v21  ;;  %v10882_v53 = vunpack.c.l.b16 %v6265_v54 }
 0x620   :  { %v3340_v12 = vrot.slane %v10898_v7, 2 }
 0x621   :  { %6858 = vmatpush3.bf16.msra.mxu1 %v10193_v43  ;;  %v2920_v43 = vrot.slane %v2579_v24, 2  ;;  %v10738_v24 = vld [vmem:[%s13234_s1 + $0xf8] sm:$0xff]   ;;  %v3316_v6 = vrot.slane %v10876_v56, 7  ;;  %v3318_v49 = vrot.slane %v10880_v36, 6 }
 0x622   :  { %6859 = vmatprep.subr.bf16.mxu1 %v10202_v35  ;;  %v2922_v35 = vrot.slane %v2584_v33, 1  ;;  %v10805_v33 = vld [vmem:[%s13234_s1 + $0x90] sm:$0xff]  }
 0x623   :  { %13689 = vst [vmem:[#allocation8_spill] sm:$0xff] %v10805_v33 }
 0x625   :  { %6860 = vmatpush3.bf16.msra.mxu1 %v10211_v2  ;;  %v2921_v2 = vsel %vm287_vm4, %v2920_v43, %v2919_v13  ;;  %v10884_v43 = vunpack.c.l.b16 %v6269_v51  ;;  %v10886_v13 = vunpack.c.l.b16 %v6270_v37 }
 0x626   :  { %7456 = vmatprep.subr.bf16.mxu1 %v13497_v47  ;;  %v2923_v32 = vsel %vm290_vm5, %v2922_v35, %v2921_v2  ;;  %v10888_v35 = vunpack.c.l.b16 %v6274_v15  ;;  %v10890_v2 = vunpack.c.l.b16 %v6275_v60 }
 0x627   :  { %v6883_v0 = vpop.f32.mrf.mxu0  ;;  %v3334_v59 = vrot.slane %v10886_v13, 5  ;;  %v3320_v1 = vrot.slane %v10884_v43, 5 }
 0x628   :  { %2970 = vmatmul.mubr.bf16.vlgmr.msra.gmra.mxu1 %v2925_v62  ;;  %v10878_v62 = vunpack.c.l.b16 %v6260_v14  ;;  %v3336_v50 = vrot.slane %v10890_v2, 4  ;;  %v3322_v48 = vrot.slane %v10888_v35, 4  ;;  %v3317_v14 = vsel %vm275_vm0, %v3316_v6, %v10872_v25 }
 0x629   :  { %7457 = vmatpush3.bf16.msra.mxu1 %v10220_v61  ;;  %7464 = vmatprep.mubr.msk.bf16.mxu1 %vm8221_vm7, %v13497_v47  ;;  %v2924_v61 = vsel %vm293_vm6, %v2589_v45, %v2923_v32  ;;  %v10799_v45 = vld [vmem:[%s13234_s1 + $0xd0] sm:$0xff]   ;;  %v6884_v40 = vpop.f32.mrf.mxu0  ;;  %v10892_v32 = vunpack.c.l.b16 %v6279_v34  ;;  %v3319_v51 = vsel %vm278_vm1, %v3318_v49, %v3317_v14  ;;  %v10945_v49 = vld [vmem:[%s13235_s0 + $0x64] sm:$0x11] }
 0x62a   :  { %7458 = vmatprep.subr.bf16.mxu1 %v13497_v47  ;;  %v2929_v8 = vpack.c.b16 %v2924_v61, %v2924_v61  ;;  %13688 = vst [vmem:[#allocation5_spill] sm:$0xff] %v10799_v45  ;;  %v10837_v30 = vadd.f32 %v6884_v40, %v6883_v0  ;;  %v10894_v61 = vunpack.c.l.b16 %v6280_v46  ;;  %v10900_v0 = vunpack.c.l.b16 %v6290_v41 }
 0x62b   :  { %v6886_v18 = vpop.f32.mrf.mxu0  ;;  %v3330_v40 = vrot.slane %v10878_v62, 7  ;;  %v3324_v21 = vrot.slane %v10892_v32, 3  ;;  %v3321_v60 = vsel %vm281_vm2, %v3320_v1, %v3319_v51 }
 0x62c   :  { %v10903_v18 = vunpack.c.l.b16 %v6289_v5  ;;  %v3338_v42 = vrot.slane %v10894_v61, 3  ;;  %v3342_v17 = vrot.slane %v10900_v0, 1 }
 0x62d   :  { %7459 = vmatpush3.bf16.msra.mxu1 %v10234_v22  ;;  %v10745_v22 = vld [vmem:[%s13234_s1 + $0xb8] sm:$0xff]   ;;  %v6887_v20 = vpop.f32.mrf.mxu0  ;;  %v3331_v16 = vsel %vm275_vm0, %v3330_v40, %v10874_v28 }
 0x62e   :  { %7460 = vmatprep.subr.bf16.mxu1 %v13497_v47  ;;  %v3332_v20 = vrot.slane %v10882_v53, 6  ;;  %v3328_v34 = vrot.slane %v10903_v18, 1 }
 0x630   :  { %v3333_v39 = vsel %vm278_vm1, %v3332_v20, %v3331_v16 }
 0x631   :  { %7461 = vmatpush3.bf16.msra.mxu1 %v10244_v26  ;;  %v10751_v26 = vld [vmem:[%s13234_s1 + $0xf0] sm:$0xff]   ;;  %v3335_v58 = vsel %vm281_vm2, %v3334_v59, %v3333_v39  ;;  %v3123_v39 = vld [vmem:[%s13235_s0 + $0x3c] sm:$0x11] }
 0x632   :  { %7462 = vmatprep.subr.bf16.mxu1 %v13497_v47  ;;  %v3337_v54 = vsel %vm284_vm3, %v3336_v50, %v3335_v58  ;;  %v6258_v1 = vcombine.high %v3123_v39, %v3123_v39  ;;  %v6263_v58 = vcombine.high %v10945_v49, %v10945_v49 }
 0x633   :  { %v3339_v15 = vsel %vm287_vm4, %v3338_v42, %v3337_v54 }
 0x634   :  { %v3341_v46 = vsel %vm290_vm5, %v3340_v12, %v3339_v15  ;;  %v10957_v14 = vunpack.c.l.b16 %v6258_v1  ;;  %v10966_v51 = vunpack.c.l.b16 %v6263_v58 }
 0x635   :  { %7463 = vmatpush3.bf16.msra.mxu1 %v10252_v11  ;;  %v10757_v11 = vld [vmem:[%s13234_s1 + $0xb0] sm:$0xff]   ;;  %v3343_v29 = vsel %vm293_vm6, %v3342_v17, %v3341_v46 }
 0x636   :  { %6919 = vmatprep.subr.bf16.mxu1 %v10738_v24  ;;  %v3361_v41 = vpack.c.b16 %v3343_v29, %v3343_v29  ;;  %13696 = vst [vmem:[#allocation12_spill] sm:$0xff] %v10957_v14  ;;  %13697 = vst [vmem:[#allocation30_spill] sm:$0xff] %v10966_v51  ;;  %v3302_v15 = vrot.slane %v10957_v14, 7  ;;  %v10984_v29 = vld [vmem:[%s13235_s0 + $0x104] sm:$0x11] }
 0x638   :  { %7465 = vmatmul.mubr.msk.bf16.vlgmr.msra.gmra.mxu1 %vm576_vm8, %v2929_v8  ;;  %v10896_v8 = vunpack.c.l.b16 %v6284_v55  ;;  %v3323_v55 = vsel %vm284_vm3, %v3322_v48, %v3321_v60  ;;  %v3120_v48 = vld [vmem:[%s13235_s0 + $0x14] sm:$0x11]  ;;  %v10974_v60 = vld [vmem:[%s13235_s0 + $0xdc] sm:$0x11] }
 0x639   :  { %6920 = vmatpush3.bf16.msra.mxu1 %v10745_v22  ;;  %v3325_v5 = vsel %vm287_vm4, %v3324_v21, %v3323_v55  ;;  %3442 = vmatprep.mubr.bf16.mxu1 %v3361_v41  ;;  %v6253_v17 = vcombine.high %v3120_v48, %v3120_v48  ;;  %v10962_v21 = vld [vmem:[%s13235_s0 + $0xb4] sm:$0x11]  ;;  %v3304_v55 = vrot.slane %v10966_v51, 6 }
 0x63a   :  { %6921 = vmatprep.subr.bf16.mxu1 %v10751_v26  ;;  %v3326_v37 = vrot.slane %v10896_v8, 2 }
 0x63c   :  { %v3327_v40 = vsel %vm290_vm5, %v3326_v37, %v3325_v5  ;;  %v10968_v37 = vunpack.c.l.b16 %v6253_v17  ;;  %v6278_v5 = vcombine.high %v10974_v60, %v10974_v60 }
 0x63d   :  { %6922 = vmatpush3.bf16.msra.mxu1 %v10757_v11  ;;  %v3329_v20 = vsel %vm293_vm6, %v3328_v34, %v3327_v40  ;;  %v6273_v34 = vcombine.high %v10962_v21, %v10962_v21 }
 0x63e   :  { %6923 = vmatprep.subr.bf16.mxu1 %v10763_v44  ;;  %v3360_v59 = vpack.c.b16 %v3329_v20, %v3329_v20  ;;  %13698 = vst [vmem:[#allocation17_spill] sm:$0xff] %v10968_v37  ;;  %v3303_v41 = vsel %vm275_vm0, %v3302_v15, %v10968_v37  ;;  %v11001_v1 = vunpack.c.l.b16 %v6278_v5 }
 0x63f   :  { %v10990_v20 = vunpack.c.l.b16 %v6273_v34 }
 0x640   :  { %13700 = vst [vmem:[#allocation19_spill] sm:$0xff] %v11001_v1  ;;  %v3310_v51 = vrot.slane %v11001_v1, 3 }
 0x641   :  { %6924 = vmatpush3.bf16.msra.mxu1 %v10769_v31  ;;  %v3308_v17 = vrot.slane %v10990_v20, 4 }
 0x642   :  { %6925 = vmatprep.subr.bf16.mxu1 %v10775_v27 }
 0x645   :  { %6926 = vmatpush3.bf16.msra.mxu1 %v10781_v63 }
 0x646   :  { %6927 = vmatprep.subr.bf16.mxu1 %v10787_v57 }
 0x649   :  { %6928 = vmatpush3.bf16.msra.mxu1 %v10793_v3 }
 0x64a   :  { %6929 = vmatprep.subr.bf16.mxu1 %v10799_v45 }
 0x64d   :  { %6930 = vmatpush3.bf16.msra.mxu1 %v10805_v33 }
 0x64e   :  { %6931 = vmatprep.subr.bf16.mxu1 %v10811_v19 }
 0x651   :  { %6932 = vmatpush3.bf16.msra.mxu1 %v10817_v38 }
 0x652   :  { %6933 = vmatprep.subr.bf16.mxu1 %v10823_v4 }
 0x655   :  { %6934 = vmatpush3.bf16.msra.mxu1 %v10829_v52 }
 0x656   :  { %7488 = vmatprep.subr.bf16.mxu1 %v13497_v47 }
 0x658   :  { %3443 = vmatmul.mubr.bf16.vlgmr.msra.gmra.mxu1 %v3360_v59 }
 0x659   :  { %7492 = vmatprep.mubr.msk.bf16.mxu1 %vm8221_vm7, %v13497_v47 }
 0x6c8   :  { %v2848_v50 = vpop.f32.mrf.mxu1 }
 0x6c9   :  { %v10937_v16 = vadd.f32 %v2848_v50, %v10648_v10  ;;  %v10953_v10 = vld [vmem:[%s13235_s0 + $0x8c] sm:$0x11] }
 0x6ca   :  { %v7454_v42 = vpop.f32.mrf.mxu1  ;;  %v6268_v54 = vcombine.high %v10953_v10, %v10953_v10 }
 0x6cb   :  { %13695 = vst [vmem:[#allocation25_spill] sm:$0xff] %v10937_v16  ;;  %v10996_v42 = vld [vmem:[%s13235_s0 + $0x12c] sm:$0x11] }
 0x6cc   :  { %v2851_v12 = vpop.f32.mrf.mxu1  ;;  %v10978_v46 = vunpack.c.l.b16 %v6268_v54  ;;  %v6288_v54 = vcombine.high %v10996_v42, %v10996_v42 }
 0x6cd   :  { %v6283_v12 = vcombine.high %v10984_v29, %v10984_v29 }
 0x6ce   :  { %v7455_v6 = vpop.f32.mrf.mxu1  ;;  %13699 = vst [vmem:[#allocation14_spill] sm:$0xff] %v10978_v46  ;;  %v3306_v59 = vrot.slane %v10978_v46, 5  ;;  %v11011_v16 = vunpack.c.l.b16 %v6288_v54 }
 0x6cf   :  { %v3305_v6 = vsel %vm278_vm1, %v3304_v55, %v3303_v41  ;;  %v11007_v46 = vunpack.c.l.b16 %v6283_v12 }
 0x6d0   :  { %v3307_v15 = vsel %vm281_vm2, %v3306_v59, %v3305_v6  ;;  %13702 = vst [vmem:[#allocation31_spill] sm:$0xff] %v11011_v16 }
 0x6d1   :  { %13701 = vst [vmem:[#allocation4_spill] sm:$0xff] %v11007_v46  ;;  %v3309_v37 = vsel %vm284_vm3, %v3308_v17, %v3307_v15  ;;  %v3312_v55 = vrot.slane %v11007_v46, 2  ;;  %v6257_v17 = vcombine.low %v3123_v39, %v3123_v39  ;;  %v6267_v39 = vcombine.low %v10953_v10, %v10953_v10  ;;  %v11049_v10 = vld [vmem:[%s13234_s1 + $0x30] sm:$0xff]  }
 0x6d2   :  { %v3311_v41 = vsel %vm287_vm4, %v3310_v51, %v3309_v37  ;;  %v6252_v37 = vcombine.low %v3120_v48, %v3120_v48 }
 0x6d3   :  { %v3313_v59 = vsel %vm290_vm5, %v3312_v55, %v3311_v41  ;;  %v11057_v41 = vld [vmem:[%s13234_s1 + $0x68] sm:$0xff]  }
 0x6e8   :  { %v6861_v40 = vpop.f32.mrf.mxu1 }
 0x6ea   :  { %v6862_v50 = vpop.f32.mrf.mxu1 }
 0x6eb   :  { %v6863_v14 = vadd.f32 %v6862_v50, %v6861_v40 }
 0x6ec   :  { %v6864_v58 = vpop.f32.mrf.mxu1 }
 0x6ed   :  { %v2972_v5 = vadd.f32 %v10664_v9, %v6863_v14  ;;  %v3314_v58 = vrot.slane %v11011_v16, 1  ;;  %v6262_v14 = vcombine.low %v10945_v49, %v10945_v49  ;;  %v11022_v16 = vunpack.c.l.b16 %v6257_v17  ;;  %v11036_v49 = vld [vmem:[%s13234_s1 + $0x70] sm:$0xff]  }
 0x6ee   :  { %v6865_v34 = vpop.f32.mrf.mxu1 }
 0x6ef   :  { %v3012_v12 = vadd.f32 %v10837_v30, %v2972_v5  ;;  %v3315_v50 = vsel %vm293_vm6, %v3314_v58, %v3313_v59  ;;  %v11028_v30 = vld [vmem:[%s13234_s1 + $0x38] sm:$0xff]   ;;  %v11039_v48 = vunpack.c.l.b16 %v6262_v14  ;;  %v3288_v55 = vrot.slane %v11022_v16, 7  ;;  %v11094_v14 = vld [vmem:[%s13234_s1 + $0x20] sm:$0xff]  }
 0x6f0   :  { %v3359_v1 = vpack.c.b16 %v3315_v50, %v3315_v50  ;;  %v6272_v5 = vcombine.low %v10962_v21, %v10962_v21  ;;  %v6277_v21 = vcombine.low %v10974_v60, %v10974_v60  ;;  %v11077_v50 = vld [vmem:[%s13234_s1 + $0x60] sm:$0xff]   ;;  %v6282_v60 = vcombine.low %v10984_v29, %v10984_v29 }
 0x6f1   :  { %v3290_v58 = vrot.slane %v11039_v48, 6  ;;  %v6287_v29 = vcombine.low %v10996_v42, %v10996_v42  ;;  %v11117_v42 = vld [vmem:[%s13235_s0 + $0x24] ss:$0 sps:$4 sm:$0x11]  }
 0x6f2   :  { %v11083_v17 = vunpack.c.l.b16 %v6277_v21 }
 0x6f4   :  { %13703 = vst [vmem:[#allocation13_spill] sm:$0xff] %v11083_v17 }
 0x6f8   :  { %v3051_v6 = vpop.f32.mrf.mxu1 }
 0x6f9   :  { %v3052_v40 = vadd.f32 %v3051_v6, %v3012_v12  ;;  %v11065_v12 = vunpack.c.l.b16 %v6272_v5  ;;  %v11070_v6 = vld [vmem:[%s13234_s1 + $0x28] sm:$0xff]   ;;  %v3296_v5 = vrot.slane %v11083_v17, 3 }
 0x6fa   :  { %v7466_v34 = vpop.f32.mrf.mxu1 }
 0x6fb   :  { %v3057_v54 = vmax.f32 %v3052_v40, 0.0 }
 0x6fc   :  { %v3054_v15 = vpop.f32.mrf.mxu1 }
 0x6fd   :  { %v3058_v46 = vpack.c.bf16 %v3057_v54, %v3057_v54  ;;  %v11088_v54 = vld [vmem:[%s13235_s0 + $0x4c] ss:$0 sps:$4 sm:$0x11]   ;;  %v3294_v15 = vrot.slane %v11065_v12, 4 }
 0x6fe   :  { %v7467_v51 = vpop.f32.mrf.mxu1  ;;  %13704 = vst [vmem:[#allocation32_spill] sm:$0xff] %v11088_v54 }
 0x6ff   :  { %7473 = vmatmul.mubr.msk.bf16.vlgmr.msra.gmra.mxu0 %vm927_vm9, %v3058_v46  ;;  %v11041_v46 = vunpack.c.l.b16 %v6252_v37  ;;  %v11103_v37 = vld [vmem:[%s13234_s1 + $0x58] sm:$0xff]  }
 0x700   :  { %6898 = vmatpush3.bf16.msra.mxu0 %v11028_v30  ;;  %3402 = vmatprep.mubr.bf16.mxu0 %v3359_v1  ;;  %v11052_v1 = vunpack.c.l.b16 %v6267_v39  ;;  %13705 = vst [vmem:[#allocation16_spill] sm:$0xff] %v11103_v37  ;;  %v11106_v39 = vunpack.c.l.b16 %v6282_v60  ;;  %v11132_v60 = vld [vmem:[%s13235_s0 + $0x9c] ss:$0 sps:$4 sm:$0x11]  }
 0x701   :  { %6899 = vmatprep.subr.bf16.mxu0 %v11036_v49  ;;  %v3289_v59 = vsel %vm275_vm0, %v3288_v55, %v11041_v46  ;;  %v11111_v55 = vld [vmem:[%s13235_s0 + $0x74] ss:$0 sps:$4 sm:$0x11]   ;;  %13710 = vst [vmem:[#allocation3_spill] sm:$0xff] %v11132_v60 }
 0x702   :  { %v3292_v40 = vrot.slane %v11052_v1, 5  ;;  %v3291_v34 = vsel %vm278_vm1, %v3290_v58, %v3289_v59  ;;  %13706 = vst [vmem:[#allocation21_spill] sm:$0xff] %v11106_v39  ;;  %13707 = vst [vmem:[#allocation18_spill] sm:$0xff] %v11111_v55  ;;  %v11124_v59 = vld [vmem:[%s13234_s1 + $0x18] sm:$0xff]  }
 0x703   :  { %13708 = vst [vmem:[#allocation23_spill] sm:$0xff] %v11124_v59 }
 0x704   :  { %6900 = vmatpush3.bf16.msra.mxu0 %v11049_v10  ;;  %v3293_v51 = vsel %vm281_vm2, %v3292_v40, %v3291_v34  ;;  %v11127_v40 = vunpack.c.l.b16 %v6287_v29  ;;  %v11137_v34 = vld [vmem:[%s13234_s1 + $0x50] sm:$0xff]   ;;  %v13715_v29 = vunpack.c.l.b16 %v11111_v55  ;;  %v11189_v55 = vld [vmem:[%s13234_s1 + $0x40] sm:$0xff]  }
 0x705   :  { %6901 = vmatprep.subr.bf16.mxu0 %v11057_v41  ;;  %v3295_v21 = vsel %vm284_vm3, %v3294_v15, %v3293_v51  ;;  %13711 = vst [vmem:[#allocation28_spill] sm:$0xff] %v11137_v34  ;;  %v3298_v15 = vrot.slane %v11106_v39, 2  ;;  %13718 = vst [vmem:[#allocation20_spill] sm:$0xff] %v11189_v55 }
 0x706   :  { %13709 = vst [vmem:[#allocation24_spill] sm:$0xff] %v11127_v40  ;;  %v3297_v58 = vsel %vm287_vm4, %v3296_v5, %v3295_v21  ;;  %v3300_v51 = vrot.slane %v11127_v40, 1  ;;  %v11162_v21 = vld [vmem:[%s13234_s1 + $0x48] sm:$0xff]   ;;  %v13716_v40 = vunpack.c.l.b16 %v11117_v42 }
 0x707   :  { %13714 = vst [vmem:[#allocation26_spill] sm:$0xff] %v11162_v21 }
 0x708   :  { %6902 = vmatpush3.bf16.msra.mxu0 %v11070_v6 }
 0x709   :  { %6903 = vmatprep.subr.bf16.mxu0 %v11077_v50 }
 0x70c   :  { %6904 = vmatpush3.bf16.msra.mxu0 %v11094_v14 }
 0x70d   :  { %6905 = vmatprep.subr.bf16.mxu0 %v11103_v37  ;;  %v11149_v37 = vld [vmem:[%s13235_s0 + $0xc4] ss:$0 sps:$4 sm:$0x11]  }
 0x710   :  { %6906 = vmatpush3.bf16.msra.mxu0 %v11124_v59  ;;  %v13712_v59 = vunpack.c.l.b16 %v11088_v54  ;;  %v3346_v54 = vrot.slane %v13715_v29, 6 }
 0x711   :  { %6907 = vmatprep.subr.bf16.mxu0 %v11137_v34  ;;  %v11154_v34 = vld [vmem:[%s13234_s1 + $0x10] sm:$0xff]  }
 0x712   :  { %v3344_v17 = vrot.slane %v13712_v59, 7  ;;  %13713 = vst [vmem:[#allocation2_spill] sm:$0xff] %v11154_v34  ;;  %v3299_v59 = vsel %vm290_vm5, %v3298_v15, %v3297_v58  ;;  %v13717_v15 = vunpack.c.l.b16 %v11132_v60  ;;  %v11204_v60 = vld [vmem:[%s13234_s1] sm:$0xff]  }
 0x713   :  { %v3301_v58 = vsel %vm293_vm6, %v3300_v51, %v3299_v59  ;;  %v13719_v59 = vunpack.c.l.b16 %v11149_v37  ;;  %13720 = vst [vmem:[#allocation22_spill] sm:$0xff] %v11204_v60 }
 0x714   :  { %6908 = vmatpush3.bf16.msra.mxu0 %v11154_v34  ;;  %v11171_v34 = vld [vmem:[%s13235_s0 + $0xec] ss:$0 sps:$4 sm:$0x11]   ;;  %v3345_v5 = vsel %vm275_vm0, %v3344_v17, %v13716_v40  ;;  %v3348_v29 = vrot.slane %v13717_v15, 5  ;;  %v3358_v51 = vpack.c.b16 %v3301_v58, %v3301_v58 }
 0x715   :  { %6909 = vmatprep.subr.bf16.mxu0 %v11162_v21  ;;  %v11180_v21 = vld [vmem:[%s13234_s1 + $0x8] sm:$0xff]   ;;  %v11195_v17 = vld [vmem:[%s13235_s0 + $0x114] ss:$0 sps:$4 sm:$0x11]   ;;  %v3347_v40 = vsel %vm278_vm1, %v3346_v54, %v3345_v5  ;;  %v13390_v39 = vunpack.c.l.b16 %v11171_v34  ;;  %v3350_v15 = vrot.slane %v13719_v59, 4 }
 0x716   :  { %v3349_v54 = vsel %vm281_vm2, %v3348_v29, %v3347_v40  ;;  %v13391_v5 = vunpack.c.l.b16 %v11195_v17 }
 0x717   :  { %v3352_v58 = vrot.slane %v13390_v39, 3  ;;  %v3351_v59 = vsel %vm284_vm3, %v3350_v15, %v3349_v54  ;;  %v11234_v15 = vld [vmem:[%s13234_s1 + $0x110] sm:$0xff]  }
 0x718   :  { %6910 = vmatpush3.bf16.msra.mxu0 %v11180_v21  ;;  %v3354_v40 = vrot.slane %v13391_v5, 2  ;;  %v11244_v5 = vld [vmem:[%s13234_s1 + $0x108] sm:$0xff]  }
 0x719   :  { %6911 = vmatprep.subr.bf16.mxu0 %v11189_v55  ;;  %v11210_v55 = vld [vmem:[%s13235_s0 + $0x13c] ss:$0 sps:$4 sm:$0x11]  }
 0x71a   :  { %v13392_v29 = vunpack.c.l.b16 %v11210_v55 }
 0x71c   :  { %6912 = vmatpush3.bf16.msra.mxu0 %v11204_v60  ;;  %v11221_v60 = vld [vmem:[%s13234_s1 + $0x118] sm:$0xff]   ;;  %v3356_v54 = vrot.slane %v13392_v29, 1  ;;  %v11252_v29 = vld [vmem:[%s13234_s1 + $0x100] sm:$0xff]  }
 0x71d   :  { %7476 = vmatprep.subr.bf16.mxu0 %v13497_v47 }
 0x71f   :  { %3403 = vmatmul.mubr.bf16.vlgmr.msra.gmra.mxu0 %v3358_v51  ;;  %v3353_v51 = vsel %vm287_vm4, %v3352_v58, %v3351_v59 }
 0x720   :  { %7477 = vmatpush3.bf16.msra.mxu0 %v11221_v60  ;;  %7484 = vmatprep.mubr.msk.bf16.mxu0 %vm8221_vm7, %v13497_v47  ;;  %v3355_v39 = vsel %vm290_vm5, %v3354_v40, %v3353_v51  ;;  %v7899_v40 = vld [vmem:[%s13236_s3 + $0x80] sm:$0xff]   ;;  %v6935_v51 = vpop.f32.mrf.mxu1 }
 0x721   :  { %7478 = vmatprep.subr.bf16.mxu0 %v13497_v47  ;;  %v3357_v58 = vsel %vm293_vm6, %v3356_v54, %v3355_v39  ;;  %v7898_v39 = vld [vmem:[%s13236_s3 + $0x88] sm:$0xff]  }
 0x722   :  { %v3362_v59 = vpack.c.b16 %v3357_v58, %v3357_v58  ;;  %7489 = vmatpush3.bf16.msra.mxu1 %v7898_v39  ;;  %v6936_v54 = vpop.f32.mrf.mxu1  ;;  %v3597_v39 = vrot.slane %v10882_v53, 7 }
 0x723   :  { %7490 = vmatprep.subr.bf16.mxu1 %v13497_v47  ;;  %v6937_v58 = vadd.f32 %v6936_v54, %v6935_v51  ;;  %v3607_v51 = vrot.slane %v10900_v0, 2  ;;  %v13721_v54 = vld [vmem:[#allocation25_spill] sm:$0xff] }
 0x724   :  { %7479 = vmatpush3.bf16.msra.mxu0 %v11234_v15 }
 0x725   :  { %7480 = vmatprep.subr.bf16.mxu0 %v13497_v47 }
 0x726   :  { %7491 = vmatpush3.bf16.msra.mxu1 %v7899_v40  ;;  %v3603_v40 = vrot.slane %v10894_v61, 4  ;;  %v3589_v61 = vrot.slane %v10892_v32, 4 }
 0x727   :  { %6949 = vmatprep.subr.bf16.mxu1 %v10845_v23 }
 0x728   :  { %7481 = vmatpush3.bf16.msra.mxu0 %v11244_v5 }
 0x729   :  { %7482 = vmatprep.subr.bf16.mxu0 %v13497_v47 }
 0x72c   :  { %7483 = vmatpush3.bf16.msra.mxu0 %v11252_v29 }
 0x72d   :  { %6971 = vmatprep.subr.bf16.mxu0 %v10738_v24 }
 0x72f   :  { %7485 = vmatmul.mubr.msk.bf16.vlgmr.msra.gmra.mxu0 %vm576_vm8, %v3362_v59  ;;  %v6938_v59 = vpop.f32.mrf.mxu1 }
 0x730   :  { %6972 = vmatpush3.bf16.msra.mxu0 %v10745_v22 }
 0x731   :  { %6973 = vmatprep.subr.bf16.mxu0 %v10751_v26 }
 0x734   :  { %6974 = vmatpush3.bf16.msra.mxu0 %v10757_v11 }
 0x735   :  { %6975 = vmatprep.subr.bf16.mxu0 %v10763_v44 }
 0x738   :  { %6976 = vmatpush3.bf16.msra.mxu0 %v10769_v31 }
 0x739   :  { %6977 = vmatprep.subr.bf16.mxu0 %v10775_v27 }
 0x73c   :  { %6978 = vmatpush3.bf16.msra.mxu0 %v10781_v63 }
 0x73d   :  { %6979 = vmatprep.subr.bf16.mxu0 %v10787_v57 }
 0x740   :  { %6980 = vmatpush3.bf16.msra.mxu0 %v10793_v3 }
 0x741   :  { %6981 = vmatprep.subr.bf16.mxu0 %v10799_v45  ;;  %v3605_v45 = vrot.slane %v10898_v7, 3 }
 0x744   :  { %6982 = vmatpush3.bf16.msra.mxu0 %v10805_v33  ;;  %v3601_v33 = vrot.slane %v10890_v2, 5 }
 0x745   :  { %6983 = vmatprep.subr.bf16.mxu0 %v10811_v19  ;;  %v3599_v19 = vrot.slane %v10886_v13, 6  ;;  %v3587_v13 = vrot.slane %v10888_v35, 5 }
 0x748   :  { %6984 = vmatpush3.bf16.msra.mxu0 %v10817_v38 }
 0x749   :  { %6985 = vmatprep.subr.bf16.mxu0 %v10823_v4  ;;  %v3595_v4 = vrot.slane %v10874_v28, 1  ;;  %v3581_v28 = vrot.slane %v10872_v25, 1 }
 0x74b   :  { %v3596_v38 = vsel %vm275_vm0, %v10878_v62, %v3595_v4  ;;  %v3583_v4 = vrot.slane %v10880_v36, 7  ;;  %v3585_v62 = vrot.slane %v10884_v43, 6 }
 0x74c   :  { %6986 = vmatpush3.bf16.msra.mxu0 %v10829_v52  ;;  %v6939_v52 = vpop.f32.mrf.mxu1  ;;  %v3598_v23 = vsel %vm278_vm1, %v3597_v39, %v3596_v38  ;;  %v3582_v38 = vsel %vm275_vm0, %v10876_v56, %v3581_v28  ;;  %v13723_v28 = vld [vmem:[#allocation30_spill] sm:$0xff] }
 0x74d   :  { %7508 = vmatprep.subr.bf16.mxu0 %v13497_v47  ;;  %v3600_v52 = vsel %vm281_vm2, %v3599_v19, %v3598_v23  ;;  %v3584_v19 = vsel %vm278_vm1, %v3583_v4, %v3582_v38  ;;  %v3591_v23 = vrot.slane %v10896_v8, 3  ;;  %v3569_v4 = vrot.slane %v13723_v28, 7 }
 0x74e   :  { %v3602_v53 = vsel %vm284_vm3, %v3601_v33, %v3600_v52  ;;  %v3586_v36 = vsel %vm281_vm2, %v3585_v62, %v3584_v19  ;;  %v3593_v33 = vrot.slane %v10903_v18, 2  ;;  %v13724_v62 = vld [vmem:[#allocation12_spill] sm:$0xff] }
 0x74f   :  { %v3604_v2 = vsel %vm287_vm4, %v3603_v40, %v3602_v53  ;;  %v3588_v35 = vsel %vm284_vm3, %v3587_v13, %v3586_v36 }
 0x750   :  { %v3606_v7 = vsel %vm290_vm5, %v3605_v45, %v3604_v2  ;;  %v3590_v0 = vsel %vm287_vm4, %v3589_v61, %v3588_v35  ;;  %v13725_v2 = vld [vmem:[#allocation14_spill] sm:$0xff] }
 0x751   :  { %v3608_v25 = vsel %vm293_vm6, %v3607_v51, %v3606_v7  ;;  %v3592_v56 = vsel %vm290_vm5, %v3591_v23, %v3590_v0  ;;  %v13722_v51 = vld [vmem:[#allocation17_spill] sm:$0xff]  ;;  %v3571_v38 = vrot.slane %v13725_v2, 6  ;;  %v3573_v23 = vrot.slane %v10990_v20, 5 }
 0x752   :  { %v3626_v43 = vpack.c.b16 %v3608_v25, %v3608_v25  ;;  %v3594_v45 = vsel %vm293_vm6, %v3593_v33, %v3592_v56  ;;  %v3567_v52 = vrot.slane %v13722_v51, 1  ;;  %v13727_v56 = vld [vmem:[#allocation4_spill] sm:$0xff] }
 0x753   :  { %v3625_v32 = vpack.c.b16 %v3594_v45, %v3594_v45  ;;  %v3577_v45 = vrot.slane %v13727_v56, 3  ;;  %v13735_v56 = vld [vmem:[#allocation2_spill] sm:$0xff] }
 0x754   :  { %3707 = vmatprep.mubr.bf16.mxu0 %v3626_v43  ;;  %v3568_v53 = vsel %vm275_vm0, %v13724_v62, %v3567_v52  ;;  %v13726_v43 = vld [vmem:[#allocation19_spill] sm:$0xff] }
 0x755   :  { %3708 = vmatmul.mubr.bf16.vlgmr.msra.gmra.mxu0 %v3625_v32  ;;  %v3570_v7 = vsel %vm278_vm1, %v3569_v4, %v3568_v53  ;;  %v3575_v35 = vrot.slane %v13726_v43, 4 }
 0x756   :  { %7512 = vmatprep.mubr.msk.bf16.mxu0 %vm8221_vm7, %v13497_v47  ;;  %v3572_v25 = vsel %vm281_vm2, %v3571_v38, %v3570_v7 }
 0x757   :  { %v3574_v0 = vsel %vm284_vm3, %v3573_v23, %v3572_v25  ;;  %v13729_v23 = vld [vmem:[#allocation16_spill] sm:$0xff] }
 0x7bf   :  { %v3113_v8 = vpop.f32.mrf.mxu0 }
 0x7c0   :  { %v11314_v59 = vadd.f32 %v3113_v8, %v13721_v54  ;;  %v3576_v8 = vsel %vm287_vm4, %v3575_v35, %v3574_v0  ;;  %v13728_v54 = vld [vmem:[#allocation31_spill] sm:$0xff] }
 0x7c1   :  { %v7474_v18 = vpop.f32.mrf.mxu0 }
 0x7c2   :  { %v3579_v18 = vrot.slane %v13728_v54, 2 }
 0x7c3   :  { %v3116_v39 = vpop.f32.mrf.mxu0 }
 0x7c4   :  { %v3578_v39 = vsel %vm290_vm5, %v3577_v45, %v3576_v8  ;;  %v13736_v45 = vld [vmem:[#allocation24_spill] sm:$0xff]  ;;  %v13737_v8 = vld [vmem:[#allocation26_spill] sm:$0xff] }
 0x7c5   :  { %v7475_v40 = vpop.f32.mrf.mxu0  ;;  %v3580_v52 = vsel %vm293_vm6, %v3579_v18, %v3578_v39  ;;  %v13738_v18 = vld [vmem:[#allocation18_spill] sm:$0xff] }
 0x7c6   :  { %v3624_v53 = vpack.c.b16 %v3580_v52, %v3580_v52  ;;  %v13739_v39 = vunpack.c.l.b16 %v13738_v18  ;;  %v3828_v18 = vld [vmem:[%s13235_s0 + $0x94] sm:$0x22] }
 0x7df   :  { %v6913_v13 = vpop.f32.mrf.mxu0 }
 0x7e1   :  { %v6914_v61 = vpop.f32.mrf.mxu0 }
 0x7e2   :  { %v6915_v33 = vadd.f32 %v6914_v61, %v6913_v13  ;;  %v3557_v61 = vrot.slane %v11052_v1, 6  ;;  %v13733_v1 = vld [vmem:[#allocation21_spill] sm:$0xff] }
 0x7e3   :  { %v6916_v19 = vpop.f32.mrf.mxu0  ;;  %v3563_v43 = vrot.slane %v13733_v1, 3 }
 0x7e4   :  { %v3405_v32 = vadd.f32 %v10664_v9, %v6915_v33  ;;  %v3553_v9 = vrot.slane %v11041_v46, 1  ;;  %v3559_v19 = vrot.slane %v11065_v12, 5  ;;  %v13732_v33 = vld [vmem:[#allocation28_spill] sm:$0xff]  ;;  %v13734_v12 = vunpack.c.l.b16 %v11117_v42 }
 0x7e5   :  { %v6917_v36 = vpop.f32.mrf.mxu0 }
 0x7e6   :  { %v3445_v40 = vadd.f32 %v6937_v58, %v3405_v32  ;;  %v3555_v58 = vrot.slane %v11039_v48, 7  ;;  %v3554_v38 = vsel %vm275_vm0, %v11022_v16, %v3553_v9  ;;  %v13730_v48 = vld [vmem:[#allocation13_spill] sm:$0xff]  ;;  %v13731_v36 = vld [vmem:[#allocation23_spill] sm:$0xff]  ;;  %v3609_v0 = vrot.slane %v13734_v12, 1  ;;  %v7901_v12 = vld [vmem:[%s13236_s3 + $0x90] sm:$0xff]  }
 0x7e7   :  { %v3561_v25 = vrot.slane %v13730_v48, 4  ;;  %v3565_v32 = vrot.slane %v13736_v45, 2  ;;  %v13745_v9 = vunpack.c.l.b16 %v11149_v37  ;;  %v13748_v37 = vunpack.c.l.b16 %v11195_v17  ;;  %v3819_v45 = vld [vmem:[%s13235_s0 + $0x1c] sm:$0x22] }
 0x7e8   :  { %v3556_v7 = vsel %vm278_vm1, %v3555_v58, %v3554_v38  ;;  %v13746_v38 = vld [vmem:[#allocation22_spill] sm:$0xff] }
 0x7e9   :  { %v3558_v46 = vsel %vm281_vm2, %v3557_v61, %v3556_v7  ;;  %v3615_v58 = vrot.slane %v13745_v9, 5  ;;  %v13747_v7 = vunpack.c.l.b16 %v11171_v34  ;;  %v3619_v48 = vrot.slane %v13748_v37, 3 }
 0x7ea   :  { %v3560_v16 = vsel %vm284_vm3, %v3559_v19, %v3558_v46  ;;  %v13749_v34 = vunpack.c.l.b16 %v11210_v55  ;;  %v13751_v55 = vld [vmem:[#allocation8_spill] sm:$0xff] }
 0x7eb   :  { %v3562_v35 = vsel %vm287_vm4, %v3561_v25, %v3560_v16  ;;  %v3617_v19 = vrot.slane %v13747_v7, 4 }
 0x7ec   :  { %v3564_v54 = vsel %vm290_vm5, %v3563_v43, %v3562_v35  ;;  %v3621_v16 = vrot.slane %v13749_v34, 2 }
 0x7ed   :  { %v3566_v42 = vsel %vm293_vm6, %v3565_v32, %v3564_v54  ;;  %v3822_v32 = vld [vmem:[%s13235_s0 + $0x44] sm:$0x22]  ;;  %v3825_v54 = vld [vmem:[%s13235_s0 + $0x6c] sm:$0x22] }
 0x7ef   :  { %v3484_v20 = vpop.f32.mrf.mxu0 }
 0x7f0   :  { %v3485_v51 = vadd.f32 %v3484_v20, %v3445_v40  ;;  %v3611_v40 = vrot.slane %v13739_v39, 7  ;;  %v13740_v20 = vld [vmem:[#allocation32_spill] sm:$0xff]  ;;  %v3831_v39 = vld [vmem:[%s13235_s0 + $0xbc] sm:$0x22] }
 0x7f1   :  { %v7486_v28 = vpop.f32.mrf.mxu0  ;;  %v6331_v9 = vcombine.high %v3831_v39, %v3831_v39 }
 0x7f2   :  { %v3490_v4 = vmax.f32 %v3485_v51, 0.0  ;;  %v13741_v51 = vunpack.c.l.b16 %v13740_v20  ;;  %v13742_v28 = vld [vmem:[#allocation3_spill] sm:$0xff] }
 0x7f3   :  { %v3487_v62 = vpop.f32.mrf.mxu0  ;;  %v3837_v20 = vld [vmem:[%s13235_s0 + $0x10c] sm:$0x22] }
 0x7f4   :  { %v3491_v13 = vpack.c.bf16 %v3490_v4, %v3490_v4  ;;  %v3610_v52 = vsel %vm275_vm0, %v13741_v51, %v3609_v0  ;;  %v13743_v4 = vunpack.c.l.b16 %v13742_v28  ;;  %v13756_v0 = vld [vmem:[#allocation10_spill] sm:$0xff]  ;;  %v6311_v51 = vcombine.high %v3819_v45, %v3819_v45 }
 0x7f5   :  { %v7487_v2 = vpop.f32.mrf.mxu0  ;;  %v6315_v28 = vcombine.low %v3822_v32, %v3822_v32  ;;  %v6340_v37 = vcombine.low %v3837_v20, %v3837_v20 }
 0x7f6   :  { %7493 = vmatmul.mubr.msk.bf16.vlgmr.msra.gmra.mxu1 %vm927_vm9, %v3491_v13  ;;  %v3613_v62 = vrot.slane %v13743_v4, 6  ;;  %v3612_v13 = vsel %vm278_vm1, %v3611_v40, %v3610_v52  ;;  %v3623_v2 = vpack.c.b16 %v3566_v42, %v3566_v42  ;;  %v3834_v40 = vld [vmem:[%s13235_s0 + $0xe4] sm:$0x22]  ;;  %v3840_v52 = vld [vmem:[%s13235_s0 + $0x134] sm:$0x22]  ;;  %v6310_v42 = vcombine.low %v3819_v45, %v3819_v45 }
 0x7f7   :  { %6950 = vmatpush3.bf16.msra.mxu1 %v11028_v30  ;;  %3667 = vmatprep.mubr.bf16.mxu1 %v3624_v53  ;;  %v13744_v53 = vld [vmem:[#allocation20_spill] sm:$0xff]  ;;  %v6316_v4 = vcombine.high %v3822_v32, %v3822_v32  ;;  %v6336_v7 = vcombine.high %v3834_v40, %v3834_v40  ;;  %v6345_v34 = vcombine.low %v3840_v52, %v3840_v52 }
 0x7f8   :  { %6951 = vmatprep.subr.bf16.mxu1 %v11036_v49  ;;  %v3614_v61 = vsel %vm281_vm2, %v3613_v62, %v3612_v13  ;;  %v6320_v62 = vcombine.low %v3825_v54, %v3825_v54  ;;  %v6321_v13 = vcombine.high %v3825_v54, %v3825_v54 }
 0x7f9   :  { %v3616_v46 = vsel %vm284_vm3, %v3615_v58, %v3614_v61  ;;  %v6325_v58 = vcombine.low %v3828_v18, %v3828_v18  ;;  %v6330_v61 = vcombine.low %v3831_v39, %v3831_v39 }
 0x7fa   :  { %v3618_v25 = vsel %vm287_vm4, %v3617_v19, %v3616_v46  ;;  %v6341_v19 = vcombine.high %v3837_v20, %v3837_v20  ;;  %v6335_v46 = vcombine.low %v3834_v40, %v3834_v40 }
 0x7fb   :  { %6952 = vmatpush3.bf16.msra.mxu1 %v11049_v10  ;;  %v3620_v1 = vsel %vm290_vm5, %v3619_v48, %v3618_v25  ;;  %v6346_v48 = vcombine.high %v3840_v52, %v3840_v52  ;;  %v11448_v25 = vunpack.c.l.b16 %v6311_v51 }
 0x7fc   :  { %6953 = vmatprep.subr.bf16.mxu1 %v11057_v41  ;;  %v3622_v43 = vsel %vm293_vm6, %v3621_v16, %v3620_v1  ;;  %v11450_v16 = vunpack.c.l.b16 %v6310_v42  ;;  %v11452_v1 = vunpack.c.l.b16 %v6315_v28 }
 0x7fd   :  { %v3627_v35 = vpack.c.b16 %v3622_v43, %v3622_v43  ;;  %v11454_v43 = vunpack.c.l.b16 %v6316_v4 }
 0x7fe   :  { %v4014_v39 = vrot.slane %v11450_v16, 2  ;;  %v4015_v40 = vrot.slane %v11452_v1, 1 }
 0x7ff   :  { %6954 = vmatpush3.bf16.msra.mxu1 %v11070_v6 }
 0x800   :  { %6955 = vmatprep.subr.bf16.mxu1 %v11077_v50 }
 0x803   :  { %6956 = vmatpush3.bf16.msra.mxu1 %v11094_v14 }
 0x804   :  { %6957 = vmatprep.subr.bf16.mxu1 %v13729_v23 }
 0x807   :  { %6958 = vmatpush3.bf16.msra.mxu1 %v13731_v36 }
 0x808   :  { %6959 = vmatprep.subr.bf16.mxu1 %v13732_v33 }
 0x80b   :  { %6960 = vmatpush3.bf16.msra.mxu1 %v13735_v56 }
 0x80c   :  { %6961 = vmatprep.subr.bf16.mxu1 %v13737_v8 }
 0x80f   :  { %6962 = vmatpush3.bf16.msra.mxu1 %v11180_v21 }
 0x810   :  { %6963 = vmatprep.subr.bf16.mxu1 %v13744_v53 }
 0x813   :  { %6964 = vmatpush3.bf16.msra.mxu1 %v13746_v38 }
 0x814   :  { %7496 = vmatprep.subr.bf16.mxu1 %v13497_v47 }
 0x816   :  { %3668 = vmatmul.mubr.bf16.vlgmr.msra.gmra.mxu1 %v3623_v2  ;;  %v6326_v2 = vcombine.high %v3828_v18, %v3828_v18 }
 0x817   :  { %7497 = vmatpush3.bf16.msra.mxu1 %v11221_v60  ;;  %7504 = vmatprep.mubr.msk.bf16.mxu1 %vm8221_vm7, %v13497_v47 }
 0x818   :  { %7498 = vmatprep.subr.bf16.mxu1 %v13497_v47 }
 0x81b   :  { %7499 = vmatpush3.bf16.msra.mxu1 %v11234_v15 }
 0x81c   :  { %7500 = vmatprep.subr.bf16.mxu1 %v13497_v47 }
 0x81f   :  { %7501 = vmatpush3.bf16.msra.mxu1 %v11244_v5 }
 0x820   :  { %7502 = vmatprep.subr.bf16.mxu1 %v13497_v47 }
 0x823   :  { %7503 = vmatpush3.bf16.msra.mxu1 %v11252_v29 }
 0x824   :  { %7023 = vmatprep.subr.bf16.mxu1 %v10738_v24  ;;  %v13750_v24 = vld [vmem:[#allocation5_spill] sm:$0xff] }
 0x826   :  { %7505 = vmatmul.mubr.msk.bf16.vlgmr.msra.gmra.mxu1 %vm576_vm8, %v3627_v35  ;;  %v11456_v35 = vunpack.c.l.b16 %v6320_v62  ;;  %v4016_v62 = vsel %vm275_vm0, %v4015_v40, %v4014_v39 }
 0x827   :  { %7024 = vmatpush3.bf16.msra.mxu1 %v10745_v22  ;;  %v13752_v22 = vld [vmem:[#allocation6_spill] sm:$0xff] }
 0x828   :  { %7025 = vmatprep.subr.bf16.mxu1 %v10751_v26  ;;  %v13753_v26 = vld [vmem:[#allocation15_spill] sm:$0xff] }
 0x82b   :  { %7026 = vmatpush3.bf16.msra.mxu1 %v10757_v11  ;;  %v13754_v11 = vld [vmem:[#allocation9_spill] sm:$0xff] }
 0x82c   :  { %7027 = vmatprep.subr.bf16.mxu1 %v10763_v44  ;;  %v13755_v44 = vld [vmem:[#allocation11_spill] sm:$0xff] }
 0x82f   :  { %7028 = vmatpush3.bf16.msra.mxu1 %v10769_v31  ;;  %v7900_v31 = vld [vmem:[%s13236_s3 + $0x98] sm:$0xff]  }
 0x830   :  { %7029 = vmatprep.subr.bf16.mxu1 %v10775_v27  ;;  %7509 = vmatpush3.bf16.msra.mxu0 %v7900_v31  ;;  %v6987_v27 = vpop.f32.mrf.mxu0  ;;  %v11470_v31 = vunpack.c.l.b16 %v6341_v19 }
 0x831   :  { %7510 = vmatprep.subr.bf16.mxu0 %v13497_v47 }
 0x832   :  { %v4038_v51 = vrot.slane %v11470_v31, 4 }
 0x833   :  { %7030 = vmatpush3.bf16.msra.mxu1 %v10781_v63  ;;  %v6988_v63 = vpop.f32.mrf.mxu0 }
 0x834   :  { %7031 = vmatprep.subr.bf16.mxu1 %v10787_v57  ;;  %v11418_v57 = vadd.f32 %v6988_v63, %v6987_v27  ;;  %7511 = vmatpush3.bf16.msra.mxu0 %v7901_v12  ;;  %v11472_v27 = vunpack.c.l.b16 %v6335_v46  ;;  %v11474_v63 = vunpack.c.l.b16 %v6346_v48  ;;  %v11478_v12 = vunpack.c.l.b16 %v6340_v37 }
 0x835   :  { %7001 = vmatprep.subr.bf16.mxu0 %v13756_v0  ;;  %v11480_v0 = vunpack.c.l.b16 %v6345_v34 }
 0x836   :  { %v4040_v4 = vrot.slane %v11474_v63, 3 }
 0x837   :  { %7032 = vmatpush3.bf16.msra.mxu1 %v10793_v3  ;;  %v6990_v3 = vpop.f32.mrf.mxu0  ;;  %13758 = vst [vmem:[#allocation29_spill] sm:$0xff] %v11480_v0  ;;  %v4026_v19 = vrot.slane %v11480_v0, 3 }
 0x838   :  { %7033 = vmatprep.subr.bf16.mxu1 %v13750_v24  ;;  %v11458_v24 = vunpack.c.l.b16 %v6321_v13  ;;  %v4028_v3 = vrot.slane %v11448_v25, 2  ;;  %v4022_v13 = vrot.slane %v11472_v27, 5 }
 0x839   :  { %v6991_v17 = vpop.f32.mrf.mxu0 }
 0x83a   :  { %v4029_v17 = vrot.slane %v11454_v43, 1 }
 0x83b   :  { %7034 = vmatpush3.bf16.msra.mxu1 %v13751_v55  ;;  %v11460_v55 = vunpack.c.l.b16 %v6326_v2 }
 0x83c   :  { %7035 = vmatprep.subr.bf16.mxu1 %v13752_v22  ;;  %v11462_v22 = vunpack.c.l.b16 %v6331_v9  ;;  %v4030_v54 = vsel %vm275_vm0, %v4029_v17, %v4028_v3  ;;  %v4017_v9 = vsel %vm278_vm1, %v11456_v35, %v4016_v62 }
 0x83d   :  { %v4032_v45 = vrot.slane %v11460_v55, 7  ;;  %v4031_v20 = vsel %vm278_vm1, %v11458_v24, %v4030_v54 }
 0x83e   :  { %v4034_v32 = vrot.slane %v11462_v22, 6 }
 0x83f   :  { %7036 = vmatpush3.bf16.msra.mxu1 %v13753_v26  ;;  %v11464_v26 = vunpack.c.l.b16 %v6325_v58  ;;  %v4033_v28 = vsel %vm281_vm2, %v4032_v45, %v4031_v20  ;;  %v4024_v58 = vrot.slane %v11478_v12, 4 }
 0x840   :  { %7037 = vmatprep.subr.bf16.mxu1 %v13754_v11  ;;  %v11466_v11 = vunpack.c.l.b16 %v6330_v61  ;;  %v4035_v2 = vsel %vm284_vm3, %v4034_v32, %v4033_v28 }
 0x841   :  { %13757 = vst [vmem:[#allocation27_spill] sm:$0xff] %v11464_v26  ;;  %v4018_v52 = vrot.slane %v11464_v26, 7 }
 0x842   :  { %v4020_v42 = vrot.slane %v11466_v11, 6 }
 0x843   :  { %7038 = vmatpush3.bf16.msra.mxu1 %v13755_v44  ;;  %v11468_v44 = vunpack.c.l.b16 %v6336_v7  ;;  %v4019_v7 = vsel %vm281_vm2, %v4018_v52, %v4017_v9  ;;  %v3821_v52 = vld [vmem:[%s13235_s0 + $0x3c] sm:$0x22] }
 0x844   :  { %7528 = vmatprep.subr.bf16.mxu1 %v13497_v47  ;;  %v4021_v37 = vsel %vm284_vm3, %v4020_v42, %v4019_v7  ;;  %v6314_v28 = vcombine.high %v3821_v52, %v3821_v52 }
 0x845   :  { %v4036_v18 = vrot.slane %v11468_v44, 5  ;;  %v4023_v34 = vsel %vm287_vm4, %v4022_v13, %v4021_v37 }
 0x846   :  { %v4025_v17 = vsel %vm290_vm5, %v4024_v58, %v4023_v34  ;;  %v11533_v13 = vunpack.c.l.b16 %v6314_v28  ;;  %v11560_v34 = vld [vmem:[%s13235_s0 + $0x104] sm:$0x22] }
 0x847   :  { %v4037_v61 = vsel %vm287_vm4, %v4036_v18, %v4035_v2  ;;  %v4027_v45 = vsel %vm293_vm6, %v4026_v19, %v4025_v17  ;;  %v11538_v2 = vld [vmem:[%s13235_s0 + $0xb4] sm:$0x22]  ;;  %v11549_v19 = vld [vmem:[%s13235_s0 + $0xdc] sm:$0x22] }
 0x848   :  { %v4039_v46 = vsel %vm290_vm5, %v4038_v51, %v4037_v61  ;;  %v4058_v32 = vpack.c.b16 %v4027_v45, %v4027_v45  ;;  %v3818_v51 = vld [vmem:[%s13235_s0 + $0x14] sm:$0x22]  ;;  %13761 = vst [vmem:[#allocation17_spill] sm:$0xff] %v11533_v13  ;;  %v4001_v7 = vrot.slane %v11533_v13, 1 }
 0x849   :  { %v4041_v48 = vsel %vm293_vm6, %v4040_v4, %v4039_v46  ;;  %v6309_v42 = vcombine.high %v3818_v51, %v3818_v51  ;;  %v11524_v4 = vld [vmem:[%s13235_s0 + $0x8c] sm:$0x22]  ;;  %v6329_v46 = vcombine.high %v11538_v2, %v11538_v2 }
 0x84a   :  { %v4059_v3 = vpack.c.b16 %v4041_v48, %v4041_v48  ;;  %v6324_v9 = vcombine.high %v11524_v4, %v11524_v4 }
 0x84b   :  { %v11531_v62 = vunpack.c.l.b16 %v6309_v42 }
 0x84c   :  { %4140 = vmatprep.mubr.bf16.mxu1 %v4059_v3  ;;  %v11553_v37 = vunpack.c.l.b16 %v6324_v9  ;;  %v6334_v3 = vcombine.high %v11549_v19, %v11549_v19 }
 0x84d   :  { %4141 = vmatmul.mubr.bf16.vlgmr.msra.gmra.mxu1 %v4058_v32  ;;  %13760 = vst [vmem:[#allocation25_spill] sm:$0xff] %v11531_v62  ;;  %v4000_v61 = vrot.slane %v11531_v62, 2  ;;  %v11565_v32 = vunpack.c.l.b16 %v6329_v46 }
 0x84e   :  { %7532 = vmatprep.mubr.msk.bf16.mxu1 %vm8221_vm7, %v13497_v47  ;;  %13762 = vst [vmem:[#allocation30_spill] sm:$0xff] %v11553_v37  ;;  %v11577_v28 = vunpack.c.l.b16 %v6334_v3 }
 0x84f   :  { %v4002_v17 = vsel %vm275_vm0, %v4001_v7, %v4000_v61  ;;  %13764 = vst [vmem:[#allocation14_spill] sm:$0xff] %v11565_v32 }
 0x850   :  { %13765 = vst [vmem:[#allocation19_spill] sm:$0xff] %v11577_v28  ;;  %v4008_v62 = vrot.slane %v11577_v28, 5 }
 0x8b6   :  { %v3546_v54 = vpop.f32.mrf.mxu1 }
 0x8b7   :  { %v11513_v18 = vadd.f32 %v3546_v54, %v11314_v59  ;;  %v11529_v59 = vld [vmem:[%s13235_s0 + $0x64] sm:$0x22]  ;;  %v4004_v54 = vrot.slane %v11553_v37, 7 }
 0x8b8   :  { %v7494_v39 = vpop.f32.mrf.mxu1  ;;  %v6319_v58 = vcombine.high %v11529_v59, %v11529_v59 }
 0x8b9   :  { %13759 = vst [vmem:[#allocation7_spill] sm:$0xff] %v11513_v18 }
 0x8ba   :  { %v3549_v40 = vpop.f32.mrf.mxu1  ;;  %v11555_v48 = vunpack.c.l.b16 %v6319_v58  ;;  %v4006_v58 = vrot.slane %v11565_v32, 6 }
 0x8bb   :  { %v11571_v40 = vld [vmem:[%s13235_s0 + $0x12c] sm:$0x22] }
 0x8bc   :  { %v7495_v20 = vpop.f32.mrf.mxu1  ;;  %13763 = vst [vmem:[#allocation12_spill] sm:$0xff] %v11555_v48  ;;  %v4003_v42 = vsel %vm278_vm1, %v11555_v48, %v4002_v17  ;;  %v6344_v61 = vcombine.high %v11571_v40, %v11571_v40  ;;  %v11593_v17 = vld [vmem:[%s13237_s2] ss:$0 sm:$0xff] }
 0x8bd   :  { %v6339_v20 = vcombine.high %v11560_v34, %v11560_v34  ;;  %v4005_v7 = vsel %vm281_vm2, %v4004_v54, %v4003_v42  ;;  %13767 = vst [vmem:[#allocation31_spill] sm:$0xff] %v11593_v17 }
 0x8be   :  { %v4007_v18 = vsel %vm284_vm3, %v4006_v58, %v4005_v7  ;;  %v11587_v0 = vunpack.c.l.b16 %v6344_v61 }
 0x8bf   :  { %v11583_v37 = vunpack.c.l.b16 %v6339_v20  ;;  %v4009_v54 = vsel %vm287_vm4, %v4008_v62, %v4007_v18 }
 0x8c0   :  { %v4012_v20 = vrot.slane %v11587_v0, 3 }
 0x8c1   :  { %13766 = vst [vmem:[#allocation4_spill] sm:$0xff] %v11583_v37  ;;  %v4010_v3 = vrot.slane %v11583_v37, 4  ;;  %v6313_v37 = vcombine.low %v3821_v52, %v3821_v52 }
 0x8c3   :  { %v11603_v18 = vunpack.c.l.b16 %v6313_v37  ;;  %v6328_v37 = vcombine.low %v11538_v2, %v11538_v2 }
 0x8c5   :  { %v3987_v62 = vrot.slane %v11603_v18, 1 }
 0x8d6   :  { %v6965_v45 = vpop.f32.mrf.mxu1 }
 0x8d8   :  { %v6966_v39 = vpop.f32.mrf.mxu1 }
 0x8d9   :  { %v6967_v13 = vadd.f32 %v6966_v39, %v6965_v45  ;;  %v4011_v45 = vsel %vm290_vm5, %v4010_v3, %v4009_v54 }
 0x8da   :  { %v6968_v9 = vpop.f32.mrf.mxu1  ;;  %v4013_v61 = vsel %vm293_vm6, %v4012_v20, %v4011_v45  ;;  %v11671_v45 = vld [vmem:[%s13235_s0 + $0x74] ss:$0 sps:$4 sm:$0x22]  }
 0x8db   :  { %v3670_v9 = vadd.f32 %v11593_v17, %v6967_v13  ;;  %v4057_v48 = vpack.c.b16 %v4013_v61, %v4013_v61 }
 0x8dc   :  { %v6969_v46 = vpop.f32.mrf.mxu1 }
 0x8dd   :  { %v3710_v39 = vadd.f32 %v11418_v57, %v3670_v9  ;;  %v6308_v46 = vcombine.low %v3818_v51, %v3818_v51  ;;  %v6323_v57 = vcombine.low %v11524_v4, %v11524_v4  ;;  %v6318_v51 = vcombine.low %v11529_v59, %v11529_v59 }
 0x8de   :  { %v11625_v59 = vunpack.c.l.b16 %v6328_v37 }
 0x8df   :  { %v11601_v17 = vunpack.c.l.b16 %v6308_v46  ;;  %v13416_v46 = vunpack.c.l.b16 %v11671_v45 }
 0x8e1   :  { %v3986_v52 = vrot.slane %v11601_v17, 2 }
 0x8e3   :  { %v3988_v4 = vsel %vm275_vm0, %v3987_v62, %v3986_v52  ;;  %v11704_v52 = vld [vmem:[%s13235_s0 + $0x114] ss:$0 sps:$4 sm:$0x22]  }
 0x8e6   :  { %v3749_v42 = vpop.f32.mrf.mxu1 }
 0x8e7   :  { %v3750_v58 = vadd.f32 %v3749_v42, %v3710_v39 }
 0x8e8   :  { %v7506_v7 = vpop.f32.mrf.mxu1 }
 0x8e9   :  { %v3755_v28 = vmax.f32 %v3750_v58, 0.0  ;;  %v11681_v58 = vld [vmem:[%s13235_s0 + $0xc4] ss:$0 sps:$4 sm:$0x22]  }
 0x8ea   :  { %v3752_v32 = vpop.f32.mrf.mxu1 }
 0x8eb   :  { %v3756_v26 = vpack.c.bf16 %v3755_v28, %v3755_v28 }
 0x8ec   :  { %v7507_v13 = vpop.f32.mrf.mxu1 }
 0x8ed   :  { %7513 = vmatmul.mubr.msk.bf16.vlgmr.msra.gmra.mxu0 %vm927_vm9, %v3756_v26  ;;  %v11617_v26 = vunpack.c.l.b16 %v6323_v57  ;;  %v11692_v13 = vld [vmem:[%s13235_s0 + $0xec] ss:$0 sps:$4 sm:$0x22]  }
 0x8ee   :  { %7002 = vmatpush3.bf16.msra.mxu0 %v11028_v30  ;;  %4100 = vmatprep.mubr.bf16.mxu0 %v4057_v48  ;;  %v11620_v30 = vunpack.c.l.b16 %v6318_v51  ;;  %v13415_v51 = vunpack.c.l.b16 %v11681_v58  ;;  %v13413_v37 = vunpack.c.l.b16 %v11692_v13 }
 0x8ef   :  { %7003 = vmatprep.subr.bf16.mxu0 %v11036_v49  ;;  %v6333_v49 = vcombine.low %v11549_v19, %v11549_v19  ;;  %v3990_v48 = vrot.slane %v11617_v26, 7  ;;  %v11639_v19 = vld [vmem:[%s13235_s0 + $0x24] ss:$0 sps:$4 sm:$0x22]  }
 0x8f0   :  { %v3950_v9 = vunpack.c.l.b16 %v11639_v19 }
 0x8f1   :  { %v11634_v2 = vunpack.c.l.b16 %v6333_v49 }
 0x8f2   :  { %7004 = vmatpush3.bf16.msra.mxu0 %v11049_v10  ;;  %v6338_v10 = vcombine.low %v11560_v34, %v11560_v34  ;;  %v6343_v34 = vcombine.low %v11571_v40, %v11571_v40  ;;  %v11664_v40 = vld [vmem:[%s13235_s0 + $0x9c] ss:$0 sps:$4 sm:$0x22]  }
 0x8f3   :  { %7005 = vmatprep.subr.bf16.mxu0 %v11057_v41  ;;  %v3989_v41 = vsel %vm278_vm1, %v11620_v30, %v3988_v4  ;;  %v3994_v3 = vrot.slane %v11634_v2, 5  ;;  %v13414_v61 = vunpack.c.l.b16 %v11664_v40 }
 0x8f4   :  { %v3991_v32 = vsel %vm281_vm2, %v3990_v48, %v3989_v41  ;;  %v11652_v28 = vunpack.c.l.b16 %v6338_v10  ;;  %v13412_v48 = vunpack.c.l.b16 %v11704_v52  ;;  %v4050_v10 = vrot.slane %v13413_v37, 5 }
 0x8f6   :  { %7006 = vmatpush3.bf16.msra.mxu0 %v11070_v6  ;;  %v11644_v6 = vld [vmem:[%s13235_s0 + $0x4c] ss:$0 sps:$4 sm:$0x22]  }
 0x8f7   :  { %7007 = vmatprep.subr.bf16.mxu0 %v11077_v50  ;;  %v3992_v50 = vrot.slane %v11625_v59, 6  ;;  %v3955_v54 = vunpack.c.l.b16 %v11644_v6  ;;  %v13782_v6 = vunpack.c.l.b16 %v11671_v45 }
 0x8f9   :  { %v3993_v20 = vsel %vm284_vm3, %v3992_v50, %v3991_v32  ;;  %v4043_v42 = vrot.slane %v3955_v54, 1  ;;  %v4052_v50 = vrot.slane %v13412_v48, 4  ;;  %v4296_v48 = vrot.slane %v11458_v24, 1 }
 0x8fa   :  { %7008 = vmatpush3.bf16.msra.mxu0 %v11094_v14  ;;  %v11659_v14 = vunpack.c.l.b16 %v6343_v34  ;;  %v3995_v39 = vsel %vm287_vm4, %v3994_v3, %v3993_v20  ;;  %v4279_v24 = vrot.slane %v11450_v16, 3  ;;  %v13771_v16 = vld [vmem:[#allocation27_spill] sm:$0xff] }
 0x8fb   :  { %7009 = vmatprep.subr.bf16.mxu0 %v13729_v23  ;;  %v3996_v23 = vrot.slane %v11652_v28, 4 }
 0x8fd   :  { %v3997_v7 = vsel %vm290_vm5, %v3996_v23, %v3995_v39  ;;  %v11763_v23 = vld [vmem:[%s13234_s1 + $0xb0] sm:$0xff]   ;;  %v11769_v39 = vld [vmem:[%s13234_s1 + $0xe8] sm:$0xff]  }
 0x8fe   :  { %7010 = vmatpush3.bf16.msra.mxu0 %v13731_v36  ;;  %v4042_v36 = vrot.slane %v3950_v9, 2 }
 0x8ff   :  { %7011 = vmatprep.subr.bf16.mxu0 %v13732_v33  ;;  %v3998_v33 = vrot.slane %v11659_v14, 3 }
 0x900   :  { %v4044_v57 = vsel %vm275_vm0, %v4043_v42, %v4042_v36  ;;  %v11775_v36 = vld [vmem:[%s13234_s1 + $0xa8] sm:$0xff]   ;;  %v11781_v42 = vld [vmem:[%s13234_s1 + $0xe0] sm:$0xff]  }
 0x901   :  { %v4045_v62 = vsel %vm278_vm1, %v13416_v46, %v4044_v57  ;;  %v11799_v57 = vld [vmem:[%s13234_s1 + $0x98] sm:$0xff]   ;;  %v4301_v46 = vrot.slane %v11468_v44, 6 }
 0x902   :  { %7012 = vmatpush3.bf16.msra.mxu0 %v13735_v56  ;;  %v3999_v56 = vsel %vm293_vm6, %v3998_v33, %v3997_v7  ;;  %v11787_v33 = vld [vmem:[%s13234_s1 + $0xa0] sm:$0xff]   ;;  %v11793_v7 = vld [vmem:[%s13234_s1 + $0xd8] sm:$0xff]  }
 0x903   :  { %7013 = vmatprep.subr.bf16.mxu0 %v13737_v8  ;;  %v4046_v8 = vrot.slane %v13414_v61, 7  ;;  %v4056_v49 = vpack.c.b16 %v3999_v56, %v3999_v56  ;;  %v11805_v56 = vld [vmem:[%s13234_s1 + $0xd0] sm:$0xff]   ;;  %v4299_v61 = vrot.slane %v11462_v22, 7 }
 0x905   :  { %v4047_v4 = vsel %vm281_vm2, %v4046_v8, %v4045_v62  ;;  %v11811_v8 = vld [vmem:[%s13234_s1 + $0x90] sm:$0xff]   ;;  %v11817_v62 = vld [vmem:[%s13234_s1 + $0xc8] sm:$0xff]  }
 0x906   :  { %7014 = vmatpush3.bf16.msra.mxu0 %v11180_v21  ;;  %v4048_v21 = vrot.slane %v13415_v51, 6 }
 0x907   :  { %7015 = vmatprep.subr.bf16.mxu0 %v13744_v53  ;;  %v11716_v53 = vld [vmem:[%s13235_s0 + $0x13c] ss:$0 sps:$4 sm:$0x22]  }
 0x908   :  { %v4049_v41 = vsel %vm284_vm3, %v4048_v21, %v4047_v4  ;;  %v11829_v21 = vld [vmem:[%s13234_s1 + $0xc0] sm:$0xff]  }
 0x909   :  { %v4051_v34 = vsel %vm287_vm4, %v4050_v10, %v4049_v41  ;;  %13768 = vst [vmem:[#allocation16_spill] sm:$0xff] %v11829_v21  ;;  %v11835_v4 = vld [vmem:[%s13234_s1 + $0x80] sm:$0xff]   ;;  %v7942_v10 = vld [vmem:[%s13236_s3 + $0xa8] sm:$0xff]  }
 0x90a   :  { %7016 = vmatpush3.bf16.msra.mxu0 %v13746_v38  ;;  %v13411_v38 = vunpack.c.l.b16 %v11716_v53  ;;  %13769 = vst [vmem:[#allocation13_spill] sm:$0xff] %v11835_v4  ;;  %7529 = vmatpush3.bf16.msra.mxu1 %v7942_v10  ;;  %v7943_v41 = vld [vmem:[%s13236_s3 + $0xa0] sm:$0xff]   ;;  %v4293_v10 = vrot.slane %v11448_v25, 3  ;;  %v4305_v25 = vrot.slane %v11474_v63, 4 }
 0x90b   :  { %7516 = vmatprep.subr.bf16.mxu0 %v13497_v47  ;;  %7530 = vmatprep.subr.bf16.mxu1 %v13497_v47 }
 0x90c   :  { %v4054_v32 = vrot.slane %v13411_v38, 3  ;;  %v4294_v38 = vrot.slane %v11454_v43, 2 }
 0x90d   :  { %4101 = vmatmul.mubr.bf16.vlgmr.msra.gmra.mxu0 %v4056_v49  ;;  %v11823_v49 = vld [vmem:[%s13234_s1 + $0x88] sm:$0xff]  }
 0x90e   :  { %7517 = vmatpush3.bf16.msra.mxu0 %v11221_v60  ;;  %7524 = vmatprep.mubr.msk.bf16.mxu0 %vm8221_vm7, %v13497_v47  ;;  %v4053_v60 = vsel %vm290_vm5, %v4052_v50, %v4051_v34  ;;  %v11849_v50 = vld [vmem:[%s13234_s1 + $0x78] sm:$0xff]   ;;  %v7039_v34 = vpop.f32.mrf.mxu1 }
 0x90f   :  { %7518 = vmatprep.subr.bf16.mxu0 %v13497_v47  ;;  %v4055_v3 = vsel %vm293_vm6, %v4054_v32, %v4053_v60  ;;  %7531 = vmatpush3.bf16.msra.mxu1 %v7943_v41  ;;  %13770 = vst [vmem:[#allocation23_spill] sm:$0xff] %v11849_v50  ;;  %v4295_v41 = vsel %vm275_vm0, %v4294_v38, %v4293_v10  ;;  %v4280_v38 = vrot.slane %v11452_v1, 2 }
 0x910   :  { %v4060_v20 = vpack.c.b16 %v4055_v3, %v4055_v3  ;;  %7053 = vmatprep.subr.bf16.mxu1 %v11849_v50  ;;  %v7040_v32 = vpop.f32.mrf.mxu1  ;;  %v4297_v37 = vsel %vm278_vm1, %v4296_v48, %v4295_v41  ;;  %v4282_v48 = vrot.slane %v11456_v35, 1  ;;  %v13773_v41 = vld [vmem:[#allocation7_spill] sm:$0xff] }
 0x911   :  { %v7041_v60 = vadd.f32 %v7040_v32, %v7039_v34  ;;  %v4298_v51 = vsel %vm281_vm2, %v11460_v55, %v4297_v37  ;;  %v4303_v32 = vrot.slane %v11470_v31, 5  ;;  %v4285_v55 = vrot.slane %v11466_v11, 7  ;;  %v13772_v37 = vld [vmem:[#allocation29_spill] sm:$0xff] }
 0x912   :  { %7519 = vmatpush3.bf16.msra.mxu0 %v11234_v15  ;;  %v11744_v15 = vld [vmem:[%s13234_s1 + $0xf8] sm:$0xff]   ;;  %v7042_v3 = vpop.f32.mrf.mxu1  ;;  %v4300_v34 = vsel %vm284_vm3, %v4299_v61, %v4298_v51  ;;  %v4281_v61 = vsel %vm275_vm0, %v4280_v38, %v4279_v24  ;;  %v4287_v31 = vrot.slane %v11472_v27, 6  ;;  %v4291_v35 = vrot.slane %v13772_v37, 4  ;;  %v13778_v37 = vld [vmem:[#allocation30_spill] sm:$0xff] }
 0x913   :  { %7520 = vmatprep.subr.bf16.mxu0 %v13497_v47  ;;  %v4302_v43 = vsel %vm287_vm4, %v4301_v46, %v4300_v34  ;;  %v4283_v63 = vsel %vm278_vm1, %v4282_v48, %v4281_v61  ;;  %v4289_v46 = vrot.slane %v11478_v12, 5  ;;  %v13774_v24 = vld [vmem:[#allocation25_spill] sm:$0xff] }
 0x914   :  { %v4304_v22 = vsel %vm290_vm5, %v4303_v32, %v4302_v43  ;;  %v4284_v1 = vsel %vm281_vm2, %v13771_v16, %v4283_v63  ;;  %v4265_v38 = vrot.slane %v13774_v24, 3  ;;  %v13775_v48 = vld [vmem:[#allocation17_spill] sm:$0xff]  ;;  %v13777_v16 = vld [vmem:[#allocation14_spill] sm:$0xff]  ;;  %v4277_v24 = vrot.slane %v11587_v0, 4  ;;  %v11913_v0 = vld [vmem:[%s13234_s1 + $0x70] sm:$0xff]  }
 0x915   :  { %v4306_v44 = vsel %vm293_vm6, %v4305_v25, %v4304_v22  ;;  %v4286_v3 = vsel %vm284_vm3, %v4285_v55, %v4284_v1  ;;  %v4266_v22 = vrot.slane %v13775_v48, 2  ;;  %v13776_v55 = vld [vmem:[#allocation12_spill] sm:$0xff]  ;;  %v4271_v1 = vrot.slane %v13777_v16, 7 }
 0x916   :  { %7521 = vmatpush3.bf16.msra.mxu0 %v11244_v5  ;;  %v11751_v5 = vld [vmem:[%s13234_s1 + $0xb8] sm:$0xff]   ;;  %v4324_v51 = vpack.c.b16 %v4306_v44, %v4306_v44  ;;  %v4288_v11 = vsel %vm287_vm4, %v4287_v31, %v4286_v3  ;;  %v4268_v44 = vrot.slane %v13776_v55, 1 }
 0x917   :  { %7522 = vmatprep.subr.bf16.mxu0 %v13497_v47  ;;  %v4267_v61 = vsel %vm275_vm0, %v4266_v22, %v4265_v38 }
 0x918   :  { %v4269_v63 = vsel %vm278_vm1, %v4268_v44, %v4267_v61 }
 0x91a   :  { %7523 = vmatpush3.bf16.msra.mxu0 %v11252_v29  ;;  %v11757_v29 = vld [vmem:[%s13234_s1 + $0xf0] sm:$0xff]  }
 0x91b   :  { %7075 = vmatprep.subr.bf16.mxu0 %v11744_v15 }
 0x91d   :  { %7525 = vmatmul.mubr.msk.bf16.vlgmr.msra.gmra.mxu0 %vm576_vm8, %v4060_v20  ;;  %v7043_v20 = vpop.f32.mrf.mxu1 }
 0x91e   :  { %7076 = vmatpush3.bf16.msra.mxu0 %v11751_v5  ;;  %4405 = vmatprep.mubr.bf16.mxu0 %v4324_v51  ;;  %v4290_v20 = vsel %vm290_vm5, %v4289_v46, %v4288_v11 }
 0x91f   :  { %7077 = vmatprep.subr.bf16.mxu0 %v11757_v29  ;;  %v4292_v10 = vsel %vm293_vm6, %v4291_v35, %v4290_v20  ;;  %v4270_v35 = vsel %vm281_vm2, %v13778_v37, %v4269_v63  ;;  %v13779_v20 = vld [vmem:[#allocation19_spill] sm:$0xff]  ;;  %v4252_v37 = vrot.slane %v11603_v18, 2 }
 0x920   :  { %v4323_v27 = vpack.c.b16 %v4292_v10, %v4292_v10  ;;  %v4273_v10 = vrot.slane %v13779_v20, 6  ;;  %v11935_v18 = vld [vmem:[%s13234_s1 + $0x28] sm:$0xff]   ;;  %v11941_v20 = vld [vmem:[%s13234_s1 + $0x60] sm:$0xff]  }
 0x922   :  { %7078 = vmatpush3.bf16.msra.mxu0 %v11763_v23 }
 0x923   :  { %7079 = vmatprep.subr.bf16.mxu0 %v11769_v39 }
 0x926   :  { %7080 = vmatpush3.bf16.msra.mxu0 %v11775_v36 }
 0x927   :  { %7081 = vmatprep.subr.bf16.mxu0 %v11781_v42 }
 0x92a   :  { %7082 = vmatpush3.bf16.msra.mxu0 %v11787_v33 }
 0x92b   :  { %7083 = vmatprep.subr.bf16.mxu0 %v11793_v7 }
 0x92e   :  { %7084 = vmatpush3.bf16.msra.mxu0 %v11799_v57 }
 0x92f   :  { %7085 = vmatprep.subr.bf16.mxu0 %v11805_v56 }
 0x932   :  { %7086 = vmatpush3.bf16.msra.mxu0 %v11811_v8 }
 0x933   :  { %7087 = vmatprep.subr.bf16.mxu0 %v11817_v62 }
 0x936   :  { %7088 = vmatpush3.bf16.msra.mxu0 %v11823_v49 }
 0x937   :  { %7089 = vmatprep.subr.bf16.mxu0 %v11829_v21 }
 0x93a   :  { %7090 = vmatpush3.bf16.msra.mxu0 %v11835_v4 }
 0x93b   :  { %7548 = vmatprep.subr.bf16.mxu0 %v13497_v47 }
 0x93d   :  { %4406 = vmatmul.mubr.bf16.vlgmr.msra.gmra.mxu0 %v4323_v27  ;;  %v4272_v27 = vsel %vm284_vm3, %v4271_v1, %v4270_v35  ;;  %v11907_v1 = vld [vmem:[%s13234_s1 + $0x38] sm:$0xff]   ;;  %v11921_v35 = vld [vmem:[%s13234_s1 + $0x30] sm:$0xff]  }
 0x93e   :  { %7552 = vmatprep.mubr.msk.bf16.mxu0 %vm8221_vm7, %v13497_v47 }
 0x9ad   :  { %v3811_v12 = vpop.f32.mrf.mxu0 }
 0x9ae   :  { %v11885_v34 = vadd.f32 %v3811_v12, %v13773_v41  ;;  %v13780_v12 = vld [vmem:[#allocation4_spill] sm:$0xff] }
 0x9af   :  { %v7514_v32 = vpop.f32.mrf.mxu0  ;;  %v4275_v41 = vrot.slane %v13780_v12, 5 }
 0x9b0   :  { %v13781_v32 = vld [vmem:[#allocation31_spill] sm:$0xff] }
 0x9b1   :  { %v3814_v25 = vpop.f32.mrf.mxu0 }
 0x9b3   :  { %v7515_v43 = vpop.f32.mrf.mxu0 }
 0x9b4   :  { %v4274_v43 = vsel %vm287_vm4, %v4273_v10, %v4272_v27  ;;  %v11949_v27 = vld [vmem:[%s13234_s1 + $0x20] sm:$0xff]  }
 0x9b5   :  { %v4276_v38 = vsel %vm290_vm5, %v4275_v41, %v4274_v43  ;;  %v11957_v41 = vld [vmem:[%s13234_s1 + $0x58] sm:$0xff]  }
 0x9b6   :  { %v4278_v44 = vsel %vm293_vm6, %v4277_v24, %v4276_v38  ;;  %v11965_v43 = vld [vmem:[%s13234_s1 + $0x18] sm:$0xff]   ;;  %v4261_v24 = vrot.slane %v11652_v28, 5  ;;  %v4307_v38 = vrot.slane %v3950_v9, 3  ;;  %v11990_v28 = vld [vmem:[%s13234_s1 + $0x48] sm:$0xff]   ;;  %v4310_v9 = vrot.slane %v13782_v6, 1 }
 0x9b7   :  { %v4322_v63 = vpack.c.b16 %v4278_v44, %v4278_v44  ;;  %v12000_v44 = vld [vmem:[%s13234_s1 + $0x8] sm:$0xff]  }
 0x9cd   :  { %v7017_v31 = vpop.f32.mrf.mxu0 }
 0x9cf   :  { %v7018_v51 = vpop.f32.mrf.mxu0 }
 0x9d0   :  { %v7019_v11 = vadd.f32 %v7018_v51, %v7017_v31 }
 0x9d1   :  { %v7020_v46 = vpop.f32.mrf.mxu0 }
 0x9d2   :  { %v4103_v25 = vadd.f32 %v13781_v32, %v7019_v11  ;;  %v4254_v11 = vrot.slane %v11620_v30, 1  ;;  %v4257_v30 = vrot.slane %v11625_v59, 7 }
 0x9d3   :  { %v7021_v3 = vpop.f32.mrf.mxu0 }
 0x9d4   :  { %v4143_v48 = vadd.f32 %v7041_v60, %v4103_v25  ;;  %v4251_v60 = vrot.slane %v11601_v17, 3  ;;  %v11927_v3 = vld [vmem:[%s13234_s1 + $0x68] sm:$0xff]   ;;  %v4259_v25 = vrot.slane %v11634_v2, 6 }
 0x9d6   :  { %v4253_v17 = vsel %vm275_vm0, %v4252_v37, %v4251_v60  ;;  %v13785_v37 = vunpack.c.l.b16 %v11692_v13 }
 0x9d7   :  { %v4255_v10 = vsel %vm278_vm1, %v4254_v11, %v4253_v17  ;;  %v12029_v17 = vld [vmem:[%s13234_s1 + $0x118] sm:$0xff]  }
 0x9d8   :  { %v4256_v12 = vsel %vm281_vm2, %v11617_v26, %v4255_v10  ;;  %v11971_v26 = vld [vmem:[%s13234_s1 + $0x50] sm:$0xff]   ;;  %v4315_v11 = vrot.slane %v13785_v37, 6 }
 0x9d9   :  { %v4258_v59 = vsel %vm284_vm3, %v4257_v30, %v4256_v12  ;;  %v12041_v30 = vld [vmem:[%s13234_s1 + $0x110] sm:$0xff]   ;;  %v13787_v12 = vunpack.c.l.b16 %v11716_v53  ;;  %v12059_v53 = vld [vmem:[%s13234_s1 + $0x100] sm:$0xff]  }
 0x9da   :  { %v4260_v2 = vsel %vm287_vm4, %v4259_v25, %v4258_v59 }
 0x9db   :  { %v4262_v19 = vsel %vm290_vm5, %v4261_v24, %v4260_v2  ;;  %v4319_v25 = vrot.slane %v13787_v12, 4 }
 0x9dd   :  { %v4182_v22 = vpop.f32.mrf.mxu0 }
 0x9de   :  { %v4183_v55 = vadd.f32 %v4182_v22, %v4143_v48  ;;  %v4308_v48 = vrot.slane %v3955_v54, 2  ;;  %v11983_v22 = vld [vmem:[%s13234_s1 + $0x10] sm:$0xff]  }
 0x9df   :  { %v7526_v61 = vpop.f32.mrf.mxu0 }
 0x9e0   :  { %v4188_v31 = vmax.f32 %v4183_v55, 0.0  ;;  %v4263_v55 = vrot.slane %v11659_v14, 4  ;;  %v4309_v54 = vsel %vm275_vm0, %v4308_v48, %v4307_v38  ;;  %v12007_v61 = vld [vmem:[%s13234_s1 + $0x40] sm:$0xff]   ;;  %v7944_v38 = vld [vmem:[%s13236_s3 + $0xb8] sm:$0xff]  }
 0x9e1   :  { %v4185_v51 = vpop.f32.mrf.mxu0  ;;  %v4311_v45 = vsel %vm278_vm1, %v4310_v9, %v4309_v54  ;;  %7549 = vmatpush3.bf16.msra.mxu0 %v7944_v38  ;;  %v7945_v54 = vld [vmem:[%s13236_s3 + $0xb0] sm:$0xff]  }
 0x9e2   :  { %v4189_v46 = vpack.c.bf16 %v4188_v31, %v4188_v31  ;;  %v4264_v14 = vsel %vm293_vm6, %v4263_v55, %v4262_v19  ;;  %v13783_v51 = vunpack.c.l.b16 %v11681_v58  ;;  %7550 = vmatprep.subr.bf16.mxu0 %v13497_v47 }
 0x9e3   :  { %v7527_v16 = vpop.f32.mrf.mxu0  ;;  %v4321_v31 = vpack.c.b16 %v4264_v14, %v4264_v14  ;;  %v4517_v14 = vld [vmem:[%s13235_s0 + $0x1c] sm:$0x44] }
 0x9e4   :  { %7533 = vmatmul.mubr.msk.bf16.vlgmr.msra.gmra.mxu1 %vm927_vm9, %v4189_v46  ;;  %v12016_v46 = vld [vmem:[%s13234_s1] sm:$0xff]   ;;  %v13784_v16 = vunpack.c.l.b16 %v11664_v40  ;;  %v13786_v40 = vunpack.c.l.b16 %v11704_v52  ;;  %v12051_v52 = vld [vmem:[%s13234_s1 + $0x108] sm:$0xff]   ;;  %v6367_v37 = vcombine.high %v4517_v14, %v4517_v14 }
 0x9e5   :  { %7054 = vmatpush3.bf16.msra.mxu1 %v11907_v1  ;;  %4365 = vmatprep.mubr.bf16.mxu1 %v4322_v63  ;;  %v4313_v63 = vrot.slane %v13783_v51, 7  ;;  %v4526_v51 = vld [vmem:[%s13235_s0 + $0x94] sm:$0x44] }
 0x9e6   :  { %7055 = vmatprep.subr.bf16.mxu1 %v11913_v0  ;;  %v4312_v60 = vsel %vm281_vm2, %v13784_v16, %v4311_v45  ;;  %v4317_v10 = vrot.slane %v13786_v40, 5  ;;  %7551 = vmatpush3.bf16.msra.mxu0 %v7945_v54  ;;  %v4520_v45 = vld [vmem:[%s13235_s0 + $0x44] sm:$0x44]  ;;  %v12114_v54 = vunpack.c.l.b16 %v6367_v37 }
 0x9e7   :  { %v4314_v58 = vsel %vm284_vm3, %v4313_v63, %v4312_v60  ;;  %7105 = vmatprep.subr.bf16.mxu0 %v11849_v50  ;;  %v4529_v63 = vld [vmem:[%s13235_s0 + $0xbc] sm:$0x44]  ;;  %v4532_v16 = vld [vmem:[%s13235_s0 + $0xe4] sm:$0x44]  ;;  %v4535_v60 = vld [vmem:[%s13235_s0 + $0x10c] sm:$0x44]  ;;  %v6372_v40 = vcombine.high %v4520_v45, %v4520_v45 }
 0x9e8   :  { %v4316_v13 = vsel %vm287_vm4, %v4315_v11, %v4314_v58  ;;  %v4538_v11 = vld [vmem:[%s13235_s0 + $0x134] sm:$0x44]  ;;  %v6366_v58 = vcombine.low %v4517_v14, %v4517_v14  ;;  %v6392_v38 = vcombine.high %v4532_v16, %v4532_v16  ;;  %13788 = vst [vmem:[#allocation28_spill] sm:$0xff] %v12114_v54 }
 0x9e9   :  { %7056 = vmatpush3.bf16.msra.mxu1 %v11921_v35  ;;  %v4318_v59 = vsel %vm290_vm5, %v4317_v10, %v4316_v13  ;;  %v6371_v13 = vcombine.low %v4520_v45, %v4520_v45  ;;  %v6401_v50 = vcombine.low %v4538_v11, %v4538_v11 }
 0x9ea   :  { %7057 = vmatprep.subr.bf16.mxu1 %v11927_v3  ;;  %v4320_v24 = vsel %vm293_vm6, %v4319_v25, %v4318_v59  ;;  %v6381_v25 = vcombine.low %v4526_v51, %v4526_v51  ;;  %v6382_v59 = vcombine.high %v4526_v51, %v4526_v51  ;;  %v12134_v37 = vunpack.c.l.b16 %v6392_v38 }
 0x9eb   :  { %v4325_v2 = vpack.c.b16 %v4320_v24, %v4320_v24  ;;  %v6387_v24 = vcombine.high %v4529_v63, %v4529_v63  ;;  %v12122_v45 = vunpack.c.l.b16 %v6371_v13 }
 0x9ec   :  { %v12126_v51 = vunpack.c.l.b16 %v6381_v25  ;;  %13798 = vst [vmem:[#allocation5_spill] sm:$0xff] %v12134_v37  ;;  %v12145_v25 = vunpack.c.l.b16 %v6401_v50  ;;  %v4734_v38 = vrot.slane %v12134_v37, 7 }
 0x9ed   :  { %7058 = vmatpush3.bf16.msra.mxu1 %v11935_v18  ;;  %13792 = vst [vmem:[#allocation26_spill] sm:$0xff] %v12122_v45 }
 0x9ee   :  { %7059 = vmatprep.subr.bf16.mxu1 %v11941_v20  ;;  %13794 = vst [vmem:[#allocation32_spill] sm:$0xff] %v12126_v51  ;;  %13802 = vst [vmem:[#allocation9_spill] sm:$0xff] %v12145_v25  ;;  %v4717_v50 = vrot.slane %v12126_v51, 1  ;;  %v4724_v51 = vrot.slane %v12145_v25, 5 }
 0x9f1   :  { %7060 = vmatpush3.bf16.msra.mxu1 %v11949_v27 }
 0x9f2   :  { %7061 = vmatprep.subr.bf16.mxu1 %v11957_v41 }
 0x9f5   :  { %7062 = vmatpush3.bf16.msra.mxu1 %v11965_v43 }
 0x9f6   :  { %7063 = vmatprep.subr.bf16.mxu1 %v11971_v26 }
 0x9f9   :  { %7064 = vmatpush3.bf16.msra.mxu1 %v11983_v22 }
 0x9fa   :  { %7065 = vmatprep.subr.bf16.mxu1 %v11990_v28 }
 0x9fd   :  { %7066 = vmatpush3.bf16.msra.mxu1 %v12000_v44  ;;  %v7091_v48 = vpop.f32.mrf.mxu0 }
 0x9fe   :  { %7067 = vmatprep.subr.bf16.mxu1 %v12007_v61 }
 0x9ff   :  { %v7092_v55 = vpop.f32.mrf.mxu0 }
 0xa00   :  { %v12084_v19 = vadd.f32 %v7092_v55, %v7091_v48  ;;  %v6397_v48 = vcombine.high %v4535_v60, %v4535_v60  ;;  %v6386_v55 = vcombine.low %v4529_v63, %v4529_v63  ;;  %v12130_v63 = vunpack.c.l.b16 %v6387_v24 }
 0xa01   :  { %7068 = vmatpush3.bf16.msra.mxu1 %v12016_v46  ;;  %v7094_v6 = vpop.f32.mrf.mxu0 }
 0xa02   :  { %7536 = vmatprep.subr.bf16.mxu1 %v13497_v47  ;;  %v6396_v6 = vcombine.low %v4535_v60, %v4535_v60  ;;  %13796 = vst [vmem:[#allocation20_spill] sm:$0xff] %v12130_v63 }
 0xa03   :  { %v7095_v9 = vpop.f32.mrf.mxu0 }
 0xa04   :  { %4366 = vmatmul.mubr.bf16.vlgmr.msra.gmra.mxu1 %v4321_v31  ;;  %v4523_v31 = vld [vmem:[%s13235_s0 + $0x6c] sm:$0x44]  ;;  %v6402_v9 = vcombine.high %v4538_v11, %v4538_v11  ;;  %v12136_v11 = vunpack.c.l.b16 %v6397_v48  ;;  %v4713_v48 = vrot.slane %v12122_v45, 3 }
 0xa05   :  { %7537 = vmatpush3.bf16.msra.mxu1 %v12029_v17  ;;  %7544 = vmatprep.mubr.msk.bf16.mxu1 %vm8221_vm7, %v13497_v47  ;;  %v6377_v10 = vcombine.high %v4523_v31, %v4523_v31  ;;  %v6376_v12 = vcombine.low %v4523_v31, %v4523_v31 }
 0xa06   :  { %7538 = vmatprep.subr.bf16.mxu1 %v13497_v47  ;;  %13799 = vst [vmem:[#allocation8_spill] sm:$0xff] %v12136_v11 }
 0xa07   :  { %v12120_v14 = vunpack.c.l.b16 %v6377_v10  ;;  %v12124_v31 = vunpack.c.l.b16 %v6376_v12  ;;  %v12143_v12 = vunpack.c.l.b16 %v6396_v6  ;;  %v4736_v6 = vrot.slane %v12136_v11, 6 }
 0xa09   :  { %7539 = vmatpush3.bf16.msra.mxu1 %v12041_v30  ;;  %13791 = vst [vmem:[#allocation24_spill] sm:$0xff] %v12120_v14  ;;  %13793 = vst [vmem:[#allocation18_spill] sm:$0xff] %v12124_v31  ;;  %v4729_v13 = vrot.slane %v12120_v14, 2 }
 0xa0a   :  { %7540 = vmatprep.subr.bf16.mxu1 %v13497_v47  ;;  %13801 = vst [vmem:[#allocation15_spill] sm:$0xff] %v12143_v12 }
 0xa0d   :  { %7541 = vmatpush3.bf16.msra.mxu1 %v12051_v52 }
 0xa0e   :  { %7542 = vmatprep.subr.bf16.mxu1 %v13497_v47 }
 0xa11   :  { %7543 = vmatpush3.bf16.msra.mxu1 %v12059_v53 }
 0xa12   :  { %7127 = vmatprep.subr.bf16.mxu1 %v11744_v15 }
 0xa14   :  { %7545 = vmatmul.mubr.msk.bf16.vlgmr.msra.gmra.mxu1 %vm576_vm8, %v4325_v2  ;;  %v6391_v2 = vcombine.low %v4532_v16, %v4532_v16  ;;  %v12128_v16 = vunpack.c.l.b16 %v6382_v59 }
 0xa15   :  { %7128 = vmatpush3.bf16.msra.mxu1 %v11751_v5 }
 0xa16   :  { %7129 = vmatprep.subr.bf16.mxu1 %v11757_v29  ;;  %13795 = vst [vmem:[#allocation3_spill] sm:$0xff] %v12128_v16  ;;  %v12132_v60 = vunpack.c.l.b16 %v6391_v2  ;;  %v4731_v59 = vrot.slane %v12128_v16, 1 }
 0xa18   :  { %13797 = vst [vmem:[#allocation22_spill] sm:$0xff] %v12132_v60 }
 0xa19   :  { %7130 = vmatpush3.bf16.msra.mxu1 %v11763_v23 }
 0xa1a   :  { %7131 = vmatprep.subr.bf16.mxu1 %v11769_v39 }
 0xa1d   :  { %7132 = vmatpush3.bf16.msra.mxu1 %v11775_v36 }
 0xa1e   :  { %7133 = vmatprep.subr.bf16.mxu1 %v11781_v42 }
 0xa21   :  { %7134 = vmatpush3.bf16.msra.mxu1 %v11787_v33 }
 0xa22   :  { %7135 = vmatprep.subr.bf16.mxu1 %v11793_v7 }
 0xa25   :  { %7136 = vmatpush3.bf16.msra.mxu1 %v11799_v57 }
 0xa26   :  { %7137 = vmatprep.subr.bf16.mxu1 %v11805_v56 }
 0xa29   :  { %7138 = vmatpush3.bf16.msra.mxu1 %v11811_v8 }
 0xa2a   :  { %7139 = vmatprep.subr.bf16.mxu1 %v11817_v62 }
 0xa2d   :  { %7140 = vmatpush3.bf16.msra.mxu1 %v11823_v49 }
 0xa2e   :  { %7141 = vmatprep.subr.bf16.mxu1 %v11829_v21  ;;  %v12118_v21 = vunpack.c.l.b16 %v6372_v40  ;;  %v4726_v40 = vrot.slane %v12114_v54, 4  ;;  %v12153_v54 = vunpack.c.l.b16 %v6386_v55 }
 0xa30   :  { %13790 = vst [vmem:[#allocation2_spill] sm:$0xff] %v12118_v21  ;;  %v4727_v10 = vrot.slane %v12118_v21, 3  ;;  %13803 = vst [vmem:[#allocation11_spill] sm:$0xff] %v12153_v54 }
 0xa31   :  { %7142 = vmatpush3.bf16.msra.mxu1 %v11835_v4  ;;  %v12116_v4 = vunpack.c.l.b16 %v6366_v58  ;;  %v12138_v58 = vunpack.c.l.b16 %v6402_v9  ;;  %v4715_v9 = vrot.slane %v12124_v31, 2  ;;  %v4722_v31 = vrot.slane %v12143_v12, 6 }
 0xa32   :  { %7568 = vmatprep.subr.bf16.mxu1 %v13497_v47  ;;  %v4728_v2 = vsel %vm275_vm0, %v4727_v10, %v4726_v40  ;;  %v4720_v10 = vrot.slane %v12132_v60, 7 }
 0xa33   :  { %13789 = vst [vmem:[#allocation21_spill] sm:$0xff] %v12116_v4  ;;  %13800 = vst [vmem:[#allocation6_spill] sm:$0xff] %v12138_v58  ;;  %v4712_v24 = vrot.slane %v12116_v4, 4  ;;  %v4730_v14 = vsel %vm278_vm1, %v4729_v13, %v4728_v2  ;;  %v4738_v4 = vrot.slane %v12138_v58, 5 }
 0xa34   :  { %v4732_v16 = vsel %vm281_vm2, %v4731_v59, %v4730_v14 }
 0xa35   :  { %v4714_v40 = vsel %vm275_vm0, %v4713_v48, %v4712_v24  ;;  %v4733_v37 = vsel %vm284_vm3, %v12130_v63, %v4732_v16 }
 0xa36   :  { %v4716_v55 = vsel %vm278_vm1, %v4715_v9, %v4714_v40  ;;  %v4735_v13 = vsel %vm287_vm4, %v4734_v38, %v4733_v37 }
 0xa37   :  { %v4718_v2 = vsel %vm281_vm2, %v4717_v50, %v4716_v55  ;;  %v4737_v14 = vsel %vm290_vm5, %v4736_v6, %v4735_v13 }
 0xa38   :  { %v4719_v59 = vsel %vm284_vm3, %v12153_v54, %v4718_v2  ;;  %v4739_v24 = vsel %vm293_vm6, %v4738_v4, %v4737_v14 }
 0xa39   :  { %v4721_v48 = vsel %vm287_vm4, %v4720_v10, %v4719_v59  ;;  %v4757_v16 = vpack.c.b16 %v4739_v24, %v4739_v24  ;;  %v4516_v10 = vld [vmem:[%s13235_s0 + $0x14] sm:$0x44] }
 0xa3a   :  { %v4723_v9 = vsel %vm290_vm5, %v4722_v31, %v4721_v48  ;;  %v4519_v31 = vld [vmem:[%s13235_s0 + $0x3c] sm:$0x44]  ;;  %v6365_v13 = vcombine.high %v4516_v10, %v4516_v10 }
 0xa3b   :  { %v4725_v40 = vsel %vm293_vm6, %v4724_v51, %v4723_v9  ;;  %4838 = vmatprep.mubr.bf16.mxu1 %v4757_v16  ;;  %v4522_v51 = vld [vmem:[%s13235_s0 + $0x64] sm:$0x44]  ;;  %v6370_v2 = vcombine.high %v4519_v31, %v4519_v31 }
 0xa3c   :  { %v4756_v37 = vpack.c.b16 %v4725_v40, %v4725_v40  ;;  %v6375_v14 = vcombine.high %v4522_v51, %v4522_v51  ;;  %v12193_v59 = vunpack.c.l.b16 %v6365_v13 }
 0xa3d   :  { %v12195_v24 = vunpack.c.l.b16 %v6370_v2 }
 0xa3e   :  { %4839 = vmatmul.mubr.bf16.vlgmr.msra.gmra.mxu1 %v4756_v37  ;;  %13805 = vst [vmem:[#allocation27_spill] sm:$0xff] %v12193_v59  ;;  %v12197_v16 = vunpack.c.l.b16 %v6375_v14  ;;  %v4698_v9 = vrot.slane %v12193_v59, 4  ;;  %v12204_v37 = vld [vmem:[%s13235_s0 + $0xdc] sm:$0x44] }
 0xa3f   :  { %7572 = vmatprep.mubr.msk.bf16.mxu1 %vm8221_vm7, %v13497_v47  ;;  %13806 = vst [vmem:[#allocation29_spill] sm:$0xff] %v12195_v24  ;;  %v4699_v40 = vrot.slane %v12195_v24, 3  ;;  %v6390_v13 = vcombine.high %v12204_v37, %v12204_v37 }
 0xa40   :  { %13807 = vst [vmem:[#allocation7_spill] sm:$0xff] %v12197_v16 }
 0xa41   :  { %v4700_v2 = vsel %vm275_vm0, %v4699_v40, %v4698_v9  ;;  %v12233_v25 = vunpack.c.l.b16 %v6390_v13 }
 0xa43   :  { %13809 = vst [vmem:[#allocation17_spill] sm:$0xff] %v12233_v25  ;;  %v4706_v11 = vrot.slane %v12233_v25, 7 }
 0xaa4   :  { %v4244_v38 = vpop.f32.mrf.mxu1 }
 0xaa5   :  { %v12179_v6 = vadd.f32 %v4244_v38, %v11885_v34  ;;  %v4525_v34 = vld [vmem:[%s13235_s0 + $0x8c] sm:$0x44]  ;;  %v12209_v38 = vld [vmem:[%s13235_s0 + $0xb4] sm:$0x44] }
 0xaa6   :  { %v7534_v50 = vpop.f32.mrf.mxu1  ;;  %v6380_v48 = vcombine.high %v4525_v34, %v4525_v34  ;;  %v6385_v24 = vcombine.high %v12209_v38, %v12209_v38 }
 0xaa7   :  { %13804 = vst [vmem:[#allocation10_spill] sm:$0xff] %v12179_v6 }
 0xaa8   :  { %v4247_v55 = vpop.f32.mrf.mxu1  ;;  %v12211_v50 = vunpack.c.l.b16 %v6380_v48  ;;  %v12235_v40 = vunpack.c.l.b16 %v6385_v24 }
 0xaa9   :  { %v4701_v55 = vrot.slane %v12197_v16, 2  ;;  %v12228_v16 = vld [vmem:[%s13235_s0 + $0x12c] sm:$0x44] }
 0xaaa   :  { %v7535_v4 = vpop.f32.mrf.mxu1  ;;  %13808 = vst [vmem:[#allocation25_spill] sm:$0xff] %v12211_v50  ;;  %v4703_v59 = vrot.slane %v12211_v50, 1  ;;  %13810 = vst [vmem:[#allocation12_spill] sm:$0xff] %v12235_v40  ;;  %v6400_v12 = vcombine.high %v12228_v16, %v12228_v16 }
 0xaab   :  { %v12217_v4 = vld [vmem:[%s13235_s0 + $0x104] sm:$0x44]  ;;  %v4702_v60 = vsel %vm278_vm1, %v4701_v55, %v4700_v2 }
 0xaac   :  { %v6395_v6 = vcombine.high %v12217_v4, %v12217_v4  ;;  %v4704_v50 = vsel %vm281_vm2, %v4703_v59, %v4702_v60  ;;  %v12245_v55 = vunpack.c.l.b16 %v6400_v12  ;;  %v6369_v12 = vcombine.low %v4519_v31, %v4519_v31 }
 0xaad   :  { %v4705_v63 = vsel %vm284_vm3, %v12235_v40, %v4704_v50  ;;  %v6364_v50 = vcombine.low %v4516_v10, %v4516_v10 }
 0xaae   :  { %v12240_v45 = vunpack.c.l.b16 %v6395_v6  ;;  %v4707_v2 = vsel %vm287_vm4, %v4706_v11, %v4705_v63  ;;  %v12256_v11 = vunpack.c.l.b16 %v6369_v12 }
 0xaaf   :  { %v12254_v63 = vunpack.c.l.b16 %v6364_v50 }
 0xab0   :  { %13811 = vst [vmem:[#allocation14_spill] sm:$0xff] %v12240_v45  ;;  %v4708_v13 = vrot.slane %v12240_v45, 6 }
 0xab1   :  { %v4684_v31 = vrot.slane %v12254_v63, 4 }
 0xac4   :  { %v7069_v14 = vpop.f32.mrf.mxu1 }
 0xac6   :  { %v7070_v48 = vpop.f32.mrf.mxu1 }
 0xac7   :  { %v7071_v58 = vadd.f32 %v7070_v48, %v7069_v14 }
 0xac8   :  { %v7072_v9 = vpop.f32.mrf.mxu1 }
 0xac9   :  { %v4368_v24 = vadd.f32 %v13781_v32, %v7071_v58  ;;  %v4710_v9 = vrot.slane %v12245_v55, 5  ;;  %v6374_v32 = vcombine.low %v4522_v51, %v4522_v51 }
 0xaca   :  { %v7073_v54 = vpop.f32.mrf.mxu1 }
 0xacb   :  { %v4709_v54 = vsel %vm290_vm5, %v4708_v13, %v4707_v2  ;;  %v4408_v60 = vadd.f32 %v12084_v19, %v4368_v24  ;;  %v6379_v19 = vcombine.low %v4525_v34, %v4525_v34  ;;  %v12261_v10 = vunpack.c.l.b16 %v6374_v32  ;;  %v12318_v32 = vld [vmem:[%s13235_s0 + $0x9c] ss:$0 sps:$4 sm:$0x44]  }
 0xacc   :  { %v4711_v14 = vsel %vm293_vm6, %v4710_v9, %v4709_v54  ;;  %v6389_v34 = vcombine.low %v12204_v37, %v12204_v37  ;;  %v6394_v24 = vcombine.low %v12217_v4, %v12217_v4  ;;  %v12286_v37 = vld [vmem:[%s13235_s0 + $0x24] ss:$0 sps:$4 sm:$0x44]   ;;  %v6399_v4 = vcombine.low %v12228_v16, %v12228_v16 }
 0xacd   :  { %v4755_v45 = vpack.c.b16 %v4711_v14, %v4711_v14  ;;  %v12266_v51 = vunpack.c.l.b16 %v6379_v19 }
 0xace   :  { %v12281_v9 = vunpack.c.l.b16 %v6389_v34  ;;  %v12313_v12 = vunpack.c.l.b16 %v6399_v4  ;;  %v12344_v4 = vld [vmem:[%s13235_s0 + $0xc4] ss:$0 sps:$4 sm:$0x44]  }
 0xacf   :  { %v4689_v13 = vrot.slane %v12266_v51, 1 }
 0xad0   :  { %v4692_v14 = vrot.slane %v12281_v9, 7  ;;  %v4696_v34 = vrot.slane %v12313_v12, 5 }
 0xad4   :  { %v4447_v6 = vpop.f32.mrf.mxu1 }
 0xad5   :  { %v4448_v59 = vadd.f32 %v4447_v6, %v4408_v60  ;;  %v12300_v6 = vunpack.c.l.b16 %v6394_v24  ;;  %v12338_v24 = vld [vmem:[%s13235_s0 + $0xec] ss:$0 sps:$4 sm:$0x44]  }
 0xad6   :  { %v7546_v48 = vpop.f32.mrf.mxu1 }
 0xad7   :  { %v4453_v25 = vmax.f32 %v4448_v59, 0.0  ;;  %v12305_v59 = vld [vmem:[%s13235_s0 + $0x74] ss:$0 sps:$4 sm:$0x44]   ;;  %v4648_v48 = vunpack.c.l.b16 %v12286_v37 }
 0xad8   :  { %v4450_v40 = vpop.f32.mrf.mxu1  ;;  %v4658_v19 = vunpack.c.l.b16 %v12305_v59 }
 0xad9   :  { %v4454_v21 = vpack.c.bf16 %v4453_v25, %v4453_v25  ;;  %v4685_v25 = vrot.slane %v12256_v11, 3  ;;  %v6384_v40 = vcombine.low %v12209_v38, %v12209_v38  ;;  %v12291_v38 = vld [vmem:[%s13235_s0 + $0x4c] ss:$0 sps:$4 sm:$0x44]  }
 0xada   :  { %v7547_v58 = vpop.f32.mrf.mxu1  ;;  %v4653_v50 = vunpack.c.l.b16 %v12291_v38 }
 0xadb   :  { %7553 = vmatmul.mubr.msk.bf16.vlgmr.msra.gmra.mxu0 %vm927_vm9, %v4454_v21  ;;  %v4687_v21 = vrot.slane %v12261_v10, 2  ;;  %v12293_v54 = vunpack.c.l.b16 %v6384_v40  ;;  %v4694_v58 = vrot.slane %v12300_v6, 6 }
 0xadc   :  { %7106 = vmatpush3.bf16.msra.mxu0 %v11907_v1  ;;  %4798 = vmatprep.mubr.bf16.mxu0 %v4755_v45  ;;  %v4686_v45 = vsel %vm275_vm0, %v4685_v25, %v4684_v31  ;;  %v4740_v25 = vrot.slane %v4648_v48, 4 }
 0xadd   :  { %7107 = vmatprep.subr.bf16.mxu0 %v11913_v0  ;;  %v4688_v2 = vsel %vm278_vm1, %v4687_v21, %v4686_v45  ;;  %v4741_v21 = vrot.slane %v4653_v50, 3  ;;  %v13443_v45 = vunpack.c.l.b16 %v12318_v32 }
 0xade   :  { %v4690_v60 = vsel %vm281_vm2, %v4689_v13, %v4688_v2  ;;  %v4743_v13 = vrot.slane %v4658_v19, 2 }
 0xadf   :  { %v4691_v16 = vsel %vm284_vm3, %v12293_v54, %v4690_v60  ;;  %v4742_v2 = vsel %vm275_vm0, %v4741_v21, %v4740_v25  ;;  %v13445_v21 = vunpack.c.l.b16 %v12344_v4 }
 0xae0   :  { %7108 = vmatpush3.bf16.msra.mxu0 %v11921_v35  ;;  %v4693_v31 = vsel %vm287_vm4, %v4692_v14, %v4691_v16  ;;  %v4745_v14 = vrot.slane %v13443_v45, 1  ;;  %v12354_v16 = vld [vmem:[%s13235_s0 + $0x114] ss:$0 sps:$4 sm:$0x44]  }
 0xae1   :  { %7109 = vmatprep.subr.bf16.mxu0 %v11927_v3  ;;  %v4695_v40 = vsel %vm290_vm5, %v4694_v58, %v4693_v31  ;;  %v4744_v58 = vsel %vm278_vm1, %v4743_v13, %v4742_v2  ;;  %v13444_v31 = vunpack.c.l.b16 %v12338_v24  ;;  %v4678_v45 = vunpack.c.l.b16 %v12354_v16  ;;  %v12588_v16 = vld [vmem:[%s13234_s1 + $0xd8] sm:$0xff]  }
 0xae2   :  { %v4697_v60 = vsel %vm293_vm6, %v4696_v34, %v4695_v40  ;;  %v12363_v34 = vld [vmem:[%s13235_s0 + $0x13c] ss:$0 sps:$4 sm:$0x44]   ;;  %v4746_v40 = vsel %vm281_vm2, %v4745_v14, %v4744_v58 }
 0xae3   :  { %v4754_v25 = vpack.c.b16 %v4697_v60, %v4697_v60  ;;  %v4748_v13 = vrot.slane %v13444_v31, 7  ;;  %v4747_v2 = vsel %vm284_vm3, %v13445_v21, %v4746_v40  ;;  %v13446_v60 = vunpack.c.l.b16 %v12363_v34 }
 0xae4   :  { %7110 = vmatpush3.bf16.msra.mxu0 %v11935_v18  ;;  %v4750_v14 = vrot.slane %v4678_v45, 6  ;;  %v13842_v59 = vunpack.c.l.b16 %v12363_v34  ;;  %v12594_v34 = vld [vmem:[%s13234_s1 + $0x98] sm:$0xff]  }
 0xae5   :  { %7111 = vmatprep.subr.bf16.mxu0 %v11941_v20  ;;  %v4749_v58 = vsel %vm287_vm4, %v4748_v13, %v4747_v2 }
 0xae6   :  { %v4751_v40 = vsel %vm290_vm5, %v4750_v14, %v4749_v58  ;;  %v13818_v14 = vld [vmem:[#allocation3_spill] sm:$0xff] }
 0xae7   :  { %v4996_v58 = vrot.slane %v13818_v14, 2  ;;  %v13827_v14 = vld [vmem:[#allocation11_spill] sm:$0xff] }
 0xae8   :  { %7112 = vmatpush3.bf16.msra.mxu0 %v11949_v27 }
 0xae9   :  { %7113 = vmatprep.subr.bf16.mxu0 %v11957_v41 }
 0xaec   :  { %7114 = vmatpush3.bf16.msra.mxu0 %v11965_v43 }
 0xaed   :  { %7115 = vmatprep.subr.bf16.mxu0 %v11971_v26 }
 0xaf0   :  { %7116 = vmatpush3.bf16.msra.mxu0 %v11983_v22 }
 0xaf1   :  { %7117 = vmatprep.subr.bf16.mxu0 %v11990_v28 }
 0xaf4   :  { %7118 = vmatpush3.bf16.msra.mxu0 %v12000_v44 }
 0xaf5   :  { %7119 = vmatprep.subr.bf16.mxu0 %v12007_v61 }
 0xaf8   :  { %7120 = vmatpush3.bf16.msra.mxu0 %v12016_v46 }
 0xaf9   :  { %7556 = vmatprep.subr.bf16.mxu0 %v13497_v47 }
 0xafb   :  { %4799 = vmatmul.mubr.bf16.vlgmr.msra.gmra.mxu0 %v4754_v25  ;;  %v4752_v25 = vrot.slane %v13446_v60, 5 }
 0xafc   :  { %7557 = vmatpush3.bf16.msra.mxu0 %v12029_v17  ;;  %7564 = vmatprep.mubr.msk.bf16.mxu0 %vm8221_vm7, %v13497_v47 }
 0xafd   :  { %7558 = vmatprep.subr.bf16.mxu0 %v13497_v47  ;;  %v4753_v31 = vsel %vm293_vm6, %v4752_v25, %v4751_v40  ;;  %v13819_v25 = vld [vmem:[#allocation20_spill] sm:$0xff] }
 0xafe   :  { %v4758_v21 = vpack.c.b16 %v4753_v31, %v4753_v31  ;;  %v13817_v31 = vld [vmem:[#allocation24_spill] sm:$0xff]  ;;  %v4998_v40 = vrot.slane %v13819_v25, 1  ;;  %v4984_v25 = vrot.slane %v13827_v14, 1 }
 0xb00   :  { %7559 = vmatpush3.bf16.msra.mxu0 %v12041_v30 }
 0xb01   :  { %7560 = vmatprep.subr.bf16.mxu0 %v13497_v47 }
 0xb04   :  { %7561 = vmatpush3.bf16.msra.mxu0 %v12051_v52 }
 0xb05   :  { %7562 = vmatprep.subr.bf16.mxu0 %v13497_v47 }
 0xb08   :  { %7563 = vmatpush3.bf16.msra.mxu0 %v12059_v53 }
 0xb09   :  { %7179 = vmatprep.subr.bf16.mxu0 %v11744_v15  ;;  %v13812_v15 = vld [vmem:[#allocation16_spill] sm:$0xff] }
 0xb0b   :  { %7565 = vmatmul.mubr.msk.bf16.vlgmr.msra.gmra.mxu0 %vm576_vm8, %v4758_v21  ;;  %v4994_v21 = vrot.slane %v13817_v31, 3 }
 0xb0c   :  { %7180 = vmatpush3.bf16.msra.mxu0 %v11751_v5  ;;  %v13813_v5 = vld [vmem:[#allocation13_spill] sm:$0xff] }
 0xb0d   :  { %7181 = vmatprep.subr.bf16.mxu0 %v11757_v29  ;;  %v7986_v29 = vld [vmem:[%s13236_s3 + $0xc8] sm:$0xff]  }
 0xb0e   :  { %7569 = vmatpush3.bf16.msra.mxu1 %v7986_v29 }
 0xb0f   :  { %7570 = vmatprep.subr.bf16.mxu1 %v13497_v47 }
 0xb10   :  { %7182 = vmatpush3.bf16.msra.mxu0 %v11763_v23  ;;  %v7987_v23 = vld [vmem:[%s13236_s3 + $0xc0] sm:$0xff]  }
 0xb11   :  { %7183 = vmatprep.subr.bf16.mxu0 %v11769_v39  ;;  %v13814_v39 = vld [vmem:[#allocation23_spill] sm:$0xff] }
 0xb12   :  { %7571 = vmatpush3.bf16.msra.mxu1 %v7987_v23  ;;  %v13821_v23 = vld [vmem:[#allocation6_spill] sm:$0xff] }
 0xb13   :  { %7157 = vmatprep.subr.bf16.mxu1 %v13814_v39  ;;  %v5003_v39 = vrot.slane %v13821_v23, 6 }
 0xb14   :  { %7184 = vmatpush3.bf16.msra.mxu0 %v11775_v36  ;;  %v7143_v36 = vpop.f32.mrf.mxu1 }
 0xb15   :  { %7185 = vmatprep.subr.bf16.mxu0 %v11781_v42 }
 0xb16   :  { %v7144_v42 = vpop.f32.mrf.mxu1 }
 0xb18   :  { %7186 = vmatpush3.bf16.msra.mxu0 %v11787_v33  ;;  %v7145_v33 = vadd.f32 %v7144_v42, %v7143_v36  ;;  %v13822_v36 = vld [vmem:[#allocation21_spill] sm:$0xff] }
 0xb19   :  { %7187 = vmatprep.subr.bf16.mxu0 %v11793_v7  ;;  %v7146_v7 = vpop.f32.mrf.mxu1  ;;  %v4977_v42 = vrot.slane %v13822_v36, 5 }
 0xb1c   :  { %7188 = vmatpush3.bf16.msra.mxu0 %v11799_v57  ;;  %v7147_v57 = vpop.f32.mrf.mxu1 }
 0xb1d   :  { %7189 = vmatprep.subr.bf16.mxu0 %v11805_v56  ;;  %v13815_v56 = vld [vmem:[#allocation28_spill] sm:$0xff]  ;;  %v13823_v57 = vld [vmem:[#allocation26_spill] sm:$0xff] }
 0xb20   :  { %7190 = vmatpush3.bf16.msra.mxu0 %v11811_v8  ;;  %v4991_v8 = vrot.slane %v13815_v56, 5  ;;  %v4978_v56 = vrot.slane %v13823_v57, 4 }
 0xb21   :  { %7191 = vmatprep.subr.bf16.mxu0 %v11817_v62  ;;  %v13816_v62 = vld [vmem:[#allocation2_spill] sm:$0xff] }
 0xb24   :  { %7192 = vmatpush3.bf16.msra.mxu0 %v11823_v49  ;;  %v4992_v49 = vrot.slane %v13816_v62, 4  ;;  %v13824_v62 = vld [vmem:[#allocation18_spill] sm:$0xff] }
 0xb25   :  { %7193 = vmatprep.subr.bf16.mxu0 %v13812_v15  ;;  %v13820_v15 = vld [vmem:[#allocation8_spill] sm:$0xff] }
 0xb26   :  { %v4993_v13 = vsel %vm275_vm0, %v4992_v49, %v4991_v8  ;;  %v4980_v8 = vrot.slane %v13824_v62, 3  ;;  %v13825_v49 = vld [vmem:[#allocation32_spill] sm:$0xff]  ;;  %v13829_v62 = vld [vmem:[#allocation9_spill] sm:$0xff] }
 0xb27   :  { %v4995_v2 = vsel %vm278_vm1, %v4994_v21, %v4993_v13  ;;  %v4982_v31 = vrot.slane %v13825_v49, 2  ;;  %v13826_v21 = vld [vmem:[#allocation5_spill] sm:$0xff]  ;;  %v4989_v49 = vrot.slane %v13829_v62, 6 }
 0xb28   :  { %7194 = vmatpush3.bf16.msra.mxu0 %v13813_v5  ;;  %v5001_v5 = vrot.slane %v13820_v15, 7  ;;  %v4997_v29 = vsel %vm281_vm2, %v4996_v58, %v4995_v2  ;;  %v4979_v2 = vsel %vm275_vm0, %v4978_v56, %v4977_v42 }
 0xb29   :  { %7588 = vmatprep.subr.bf16.mxu0 %v13497_v47  ;;  %v4999_v7 = vsel %vm284_vm3, %v4998_v40, %v4997_v29  ;;  %v4981_v23 = vsel %vm278_vm1, %v4980_v8, %v4979_v2  ;;  %v13828_v40 = vld [vmem:[#allocation15_spill] sm:$0xff]  ;;  %v13831_v8 = vld [vmem:[#allocation10_spill] sm:$0xff] }
 0xb2a   :  { %v5000_v13 = vsel %vm287_vm4, %v13826_v21, %v4999_v7  ;;  %v4987_v29 = vrot.slane %v13828_v40, 7  ;;  %v4983_v57 = vsel %vm281_vm2, %v4982_v31, %v4981_v23  ;;  %v13830_v7 = vld [vmem:[#allocation22_spill] sm:$0xff]  ;;  %v13834_v23 = vld [vmem:[#allocation7_spill] sm:$0xff] }
 0xb2b   :  { %v5002_v15 = vsel %vm290_vm5, %v5001_v5, %v5000_v13  ;;  %v4985_v60 = vsel %vm284_vm3, %v4984_v25, %v4983_v57  ;;  %v4966_v40 = vrot.slane %v13834_v23, 3  ;;  %v13835_v57 = vld [vmem:[#allocation25_spill] sm:$0xff]  ;;  %v4975_v23 = vrot.slane %v12245_v55, 6 }
 0xb2c   :  { %v5004_v58 = vsel %vm293_vm6, %v5003_v39, %v5002_v15  ;;  %v4986_v21 = vsel %vm287_vm4, %v13830_v7, %v4985_v60  ;;  %v13832_v15 = vld [vmem:[#allocation27_spill] sm:$0xff]  ;;  %v4968_v62 = vrot.slane %v13835_v57, 2  ;;  %v4949_v55 = vrot.slane %v12254_v63, 5 }
 0xb2d   :  { %v5022_v36 = vpack.c.b16 %v5004_v58, %v5004_v58  ;;  %v4988_v5 = vsel %vm290_vm5, %v4987_v29, %v4986_v21  ;;  %v4963_v2 = vrot.slane %v13832_v15, 5  ;;  %v13833_v58 = vld [vmem:[#allocation29_spill] sm:$0xff]  ;;  %v12464_v15 = vld [vmem:[%s13237_s2] ss:$0 sm:$0xff]  ;;  %v5005_v63 = vrot.slane %v4648_v48, 5 }
 0xb2e   :  { %v4990_v42 = vsel %vm293_vm6, %v4989_v49, %v4988_v5  ;;  %v4964_v60 = vrot.slane %v13833_v58, 4  ;;  %v13836_v5 = vld [vmem:[#allocation12_spill] sm:$0xff]  ;;  %v13838_v58 = vld [vmem:[#allocation17_spill] sm:$0xff]  ;;  %v5017_v48 = vrot.slane %v13842_v59, 6 }
 0xb2f   :  { %5103 = vmatprep.mubr.bf16.mxu0 %v5022_v36  ;;  %v5021_v39 = vpack.c.b16 %v4990_v42, %v4990_v42  ;;  %v4970_v42 = vrot.slane %v13836_v5, 1 }
 0xb30   :  { %v4965_v29 = vsel %vm275_vm0, %v4964_v60, %v4963_v2 }
 0xb31   :  { %5104 = vmatmul.mubr.bf16.vlgmr.msra.gmra.mxu0 %v5021_v39  ;;  %v4967_v7 = vsel %vm278_vm1, %v4966_v40, %v4965_v29 }
 0xb32   :  { %7592 = vmatprep.mubr.msk.bf16.mxu0 %vm8221_vm7, %v13497_v47  ;;  %v4969_v39 = vsel %vm281_vm2, %v4968_v62, %v4967_v7 }
 0xb9b   :  { %v4509_v56 = vpop.f32.mrf.mxu0 }
 0xb9c   :  { %v12449_v31 = vadd.f32 %v4509_v56, %v13831_v8 }
 0xb9d   :  { %v7554_v13 = vpop.f32.mrf.mxu0 }
 0xb9e   :  { %v4971_v13 = vsel %vm284_vm3, %v4970_v42, %v4969_v39 }
 0xb9f   :  { %v4512_v14 = vpop.f32.mrf.mxu0  ;;  %v4972_v60 = vsel %vm287_vm4, %v13838_v58, %v4971_v13  ;;  %v4954_v13 = vrot.slane %v12266_v51, 2  ;;  %v13839_v51 = vunpack.c.l.b16 %v12318_v32  ;;  %v12558_v32 = vld [vmem:[%s13234_s1 + $0xb0] sm:$0xff]   ;;  %v12618_v58 = vld [vmem:[%s13234_s1 + $0x88] sm:$0xff]  }
 0xba0   :  { %v13837_v14 = vld [vmem:[#allocation14_spill] sm:$0xff] }
 0xba1   :  { %v7555_v25 = vpop.f32.mrf.mxu0 }
 0xba2   :  { %v4973_v25 = vrot.slane %v13837_v14, 7  ;;  %v12600_v14 = vld [vmem:[%s13234_s1 + $0xd0] sm:$0xff]  }
 0xba4   :  { %v4974_v40 = vsel %vm290_vm5, %v4973_v25, %v4972_v60  ;;  %v12606_v25 = vld [vmem:[%s13234_s1 + $0x90] sm:$0xff]   ;;  %v12624_v60 = vld [vmem:[%s13234_s1 + $0xc0] sm:$0xff]  }
 0xba5   :  { %v4976_v62 = vsel %vm293_vm6, %v4975_v23, %v4974_v40  ;;  %v12630_v23 = vld [vmem:[%s13234_s1 + $0x80] sm:$0xff]   ;;  %v7988_v40 = vld [vmem:[%s13236_s3 + $0xd8] sm:$0xff]  }
 0xba6   :  { %v5020_v5 = vpack.c.b16 %v4976_v62, %v4976_v62  ;;  %7589 = vmatpush3.bf16.msra.mxu0 %v7988_v40 }
 0xba7   :  { %7590 = vmatprep.subr.bf16.mxu0 %v13497_v47 }
 0xbbb   :  { %v7121_v36 = vpop.f32.mrf.mxu0 }
 0xbbd   :  { %v7122_v49 = vpop.f32.mrf.mxu0 }
 0xbbe   :  { %v7123_v8 = vadd.f32 %v7122_v49, %v7121_v36 }
 0xbbf   :  { %v7124_v21 = vpop.f32.mrf.mxu0 }
 0xbc0   :  { %v4801_v2 = vadd.f32 %v12464_v15, %v7123_v8 }
 0xbc1   :  { %v7125_v56 = vpop.f32.mrf.mxu0 }
 0xbc2   :  { %v4841_v29 = vadd.f32 %v7145_v33, %v4801_v2  ;;  %v4950_v33 = vrot.slane %v12256_v11, 4  ;;  %v4952_v56 = vrot.slane %v12261_v10, 3  ;;  %v12612_v2 = vld [vmem:[%s13234_s1 + $0xc8] sm:$0xff]  }
 0xbc4   :  { %v4951_v8 = vsel %vm275_vm0, %v4950_v33, %v4949_v55  ;;  %v5224_v55 = vld [vmem:[%s13235_s0 + $0x94] sm:$0x88]  ;;  %v5227_v33 = vld [vmem:[%s13235_s0 + $0xbc] sm:$0x88] }
 0xbcb   :  { %v4880_v36 = vpop.f32.mrf.mxu0 }
 0xbcc   :  { %v4881_v57 = vadd.f32 %v4880_v36, %v4841_v29 }
 0xbcd   :  { %v7566_v49 = vpop.f32.mrf.mxu0 }
 0xbce   :  { %v4886_v7 = vmax.f32 %v4881_v57, 0.0 }
 0xbcf   :  { %v4883_v21 = vpop.f32.mrf.mxu0 }
 0xbd0   :  { %v4887_v42 = vpack.c.bf16 %v4886_v7, %v4886_v7  ;;  %v7989_v7 = vld [vmem:[%s13236_s3 + $0xd0] sm:$0xff]   ;;  %v12646_v21 = vld [vmem:[%s13234_s1 + $0x78] sm:$0xff]  }
 0xbd1   :  { %v7567_v39 = vpop.f32.mrf.mxu0  ;;  %7591 = vmatpush3.bf16.msra.mxu0 %v7989_v7 }
 0xbd2   :  { %7573 = vmatmul.mubr.msk.bf16.vlgmr.msra.gmra.mxu1 %vm927_vm9, %v4887_v42  ;;  %7209 = vmatprep.subr.bf16.mxu0 %v12646_v21  ;;  %v5218_v42 = vld [vmem:[%s13235_s0 + $0x44] sm:$0x88]  ;;  %v5221_v39 = vld [vmem:[%s13235_s0 + $0x6c] sm:$0x88] }
 0xbd3   :  { %7158 = vmatpush3.bf16.msra.mxu1 %v11907_v1  ;;  %5063 = vmatprep.mubr.bf16.mxu1 %v5020_v5  ;;  %v4953_v1 = vsel %vm278_vm1, %v4952_v56, %v4951_v8  ;;  %v5215_v5 = vld [vmem:[%s13235_s0 + $0x1c] sm:$0x88]  ;;  %v5230_v56 = vld [vmem:[%s13235_s0 + $0xe4] sm:$0x88] }
 0xbd4   :  { %7159 = vmatprep.subr.bf16.mxu1 %v11913_v0  ;;  %v4956_v0 = vrot.slane %v12293_v54, 1  ;;  %v6422_v8 = vcombine.low %v5215_v5, %v5215_v5 }
 0xbd7   :  { %7160 = vmatpush3.bf16.msra.mxu1 %v11921_v35  ;;  %v4955_v35 = vsel %vm281_vm2, %v4954_v13, %v4953_v1  ;;  %v6423_v13 = vcombine.high %v5215_v5, %v5215_v5  ;;  %v6427_v1 = vcombine.low %v5218_v42, %v5218_v42 }
 0xbd8   :  { %7161 = vmatprep.subr.bf16.mxu1 %v11927_v3  ;;  %v4957_v3 = vsel %vm284_vm3, %v4956_v0, %v4955_v35  ;;  %v5236_v0 = vld [vmem:[%s13235_s0 + $0x134] sm:$0x88]  ;;  %v6428_v35 = vcombine.high %v5218_v42, %v5218_v42 }
 0xbdb   :  { %7162 = vmatpush3.bf16.msra.mxu1 %v11935_v18  ;;  %v4959_v18 = vrot.slane %v12300_v6, 7  ;;  %v13841_v6 = vunpack.c.l.b16 %v12338_v24  ;;  %v12576_v24 = vld [vmem:[%s13234_s1 + $0xe0] sm:$0xff]  }
 0xbdc   :  { %7163 = vmatprep.subr.bf16.mxu1 %v11941_v20  ;;  %v4958_v20 = vsel %vm287_vm4, %v12281_v9, %v4957_v3  ;;  %v5010_v9 = vrot.slane %v13839_v51, 2  ;;  %v6432_v3 = vcombine.low %v5221_v39, %v5221_v39  ;;  %v12673_v51 = vunpack.c.l.b16 %v6422_v8 }
 0xbde   :  { %v5410_v40 = vrot.slane %v12673_v51, 6 }
 0xbdf   :  { %7164 = vmatpush3.bf16.msra.mxu1 %v11949_v27  ;;  %v5006_v27 = vrot.slane %v4653_v50, 4 }
 0xbe0   :  { %7165 = vmatprep.subr.bf16.mxu1 %v11957_v41  ;;  %v4961_v41 = vrot.slane %v12313_v12, 6 }
 0xbe1   :  { %v5007_v11 = vsel %vm275_vm0, %v5006_v27, %v5005_v63  ;;  %v6437_v63 = vcombine.low %v5224_v55, %v5224_v55  ;;  %v6443_v27 = vcombine.high %v5227_v33, %v5227_v33 }
 0xbe3   :  { %7166 = vmatpush3.bf16.msra.mxu1 %v11965_v43  ;;  %v4960_v43 = vsel %vm290_vm5, %v4959_v18, %v4958_v20  ;;  %v6433_v18 = vcombine.high %v5221_v39, %v5221_v39  ;;  %v6438_v20 = vcombine.high %v5224_v55, %v5224_v55 }
 0xbe4   :  { %7167 = vmatprep.subr.bf16.mxu1 %v11971_v26  ;;  %v5008_v26 = vrot.slane %v4658_v19, 3  ;;  %v4962_v10 = vsel %vm293_vm6, %v4961_v41, %v4960_v43  ;;  %v12564_v19 = vld [vmem:[%s13234_s1 + $0xe8] sm:$0xff]   ;;  %v6442_v43 = vcombine.low %v5227_v33, %v5227_v33 }
 0xbe5   :  { %v5019_v37 = vpack.c.b16 %v4962_v10, %v4962_v10  ;;  %v5233_v41 = vld [vmem:[%s13235_s0 + $0x10c] sm:$0x88]  ;;  %v6458_v10 = vcombine.high %v5236_v0, %v5236_v0 }
 0xbe6   :  { %v6453_v59 = vcombine.high %v5233_v41, %v5233_v41 }
 0xbe7   :  { %7168 = vmatpush3.bf16.msra.mxu1 %v11983_v22  ;;  %v5009_v22 = vsel %vm278_vm1, %v5008_v26, %v5007_v11  ;;  %v6447_v26 = vcombine.low %v5230_v56, %v5230_v56  ;;  %v6448_v11 = vcombine.high %v5230_v56, %v5230_v56 }
 0xbe8   :  { %7169 = vmatprep.subr.bf16.mxu1 %v11990_v28  ;;  %v13840_v28 = vunpack.c.l.b16 %v12344_v4  ;;  %v5011_v54 = vsel %vm281_vm2, %v5010_v9, %v5009_v22  ;;  %v12582_v4 = vld [vmem:[%s13234_s1 + $0xa0] sm:$0xff]   ;;  %v12675_v9 = vunpack.c.l.b16 %v6423_v13  ;;  %v12677_v22 = vunpack.c.l.b16 %v6427_v1 }
 0xbe9   :  { %v12713_v13 = vunpack.c.l.b16 %v6453_v59 }
 0xbea   :  { %v5012_v38 = vrot.slane %v13840_v28, 1  ;;  %v12681_v28 = vunpack.c.l.b16 %v6432_v3 }
 0xbeb   :  { %7170 = vmatpush3.bf16.msra.mxu1 %v12000_v44 }
 0xbec   :  { %7171 = vmatprep.subr.bf16.mxu1 %v12007_v61  ;;  %v5013_v44 = vsel %vm284_vm3, %v5012_v38, %v5011_v54  ;;  %v5015_v61 = vrot.slane %v4678_v45, 7  ;;  %v12570_v45 = vld [vmem:[%s13234_s1 + $0xa8] sm:$0xff]   ;;  %v12683_v38 = vunpack.c.l.b16 %v6433_v18  ;;  %v12685_v54 = vunpack.c.l.b16 %v6438_v20 }
 0xbee   :  { %v5427_v7 = vrot.slane %v12683_v38, 4  ;;  %v5429_v5 = vrot.slane %v12685_v54, 3 }
 0xbef   :  { %7172 = vmatpush3.bf16.msra.mxu1 %v12016_v46  ;;  %v5014_v46 = vsel %vm287_vm4, %v13841_v6, %v5013_v44  ;;  %v6452_v44 = vcombine.low %v5233_v41, %v5233_v41  ;;  %v12687_v6 = vunpack.c.l.b16 %v6437_v63 }
 0xbf0   :  { %7576 = vmatprep.subr.bf16.mxu1 %v13497_v47 }
 0xbf1   :  { %v7195_v29 = vpop.f32.mrf.mxu0  ;;  %v5415_v39 = vrot.slane %v12687_v6, 3  ;;  %v12718_v3 = vunpack.c.l.b16 %v6452_v44 }
 0xbf2   :  { %5064 = vmatmul.mubr.bf16.vlgmr.msra.gmra.mxu1 %v5019_v37  ;;  %v12679_v37 = vunpack.c.l.b16 %v6428_v35 }
 0xbf3   :  { %7577 = vmatpush3.bf16.msra.mxu1 %v12029_v17  ;;  %7584 = vmatprep.mubr.msk.bf16.mxu1 %vm8221_vm7, %v13497_v47  ;;  %v5016_v17 = vsel %vm290_vm5, %v5015_v61, %v5014_v46  ;;  %v7196_v36 = vpop.f32.mrf.mxu0  ;;  %v6457_v61 = vcombine.low %v5236_v0, %v5236_v0  ;;  %v12689_v46 = vunpack.c.l.b16 %v6443_v27 }
 0xbf4   :  { %7578 = vmatprep.subr.bf16.mxu1 %v13497_v47  ;;  %v5018_v50 = vsel %vm293_vm6, %v5017_v48, %v5016_v17  ;;  %v12638_v57 = vadd.f32 %v7196_v36, %v7195_v29  ;;  %v12691_v48 = vunpack.c.l.b16 %v6442_v43  ;;  %v12693_v17 = vunpack.c.l.b16 %v6447_v26 }
 0xbf5   :  { %v5023_v12 = vpack.c.b16 %v5018_v50, %v5018_v50  ;;  %v7198_v62 = vpop.f32.mrf.mxu0  ;;  %v12695_v50 = vunpack.c.l.b16 %v6448_v11  ;;  %v5411_v29 = vrot.slane %v12677_v22, 5  ;;  %v5424_v36 = vrot.slane %v12675_v9, 6 }
 0xbf6   :  { %v5413_v62 = vrot.slane %v12681_v28, 4  ;;  %v12706_v42 = vunpack.c.l.b16 %v6457_v61  ;;  %v5431_v55 = vrot.slane %v12689_v46, 2  ;;  %v5417_v33 = vrot.slane %v12691_v48, 2 }
 0xbf7   :  { %7579 = vmatpush3.bf16.msra.mxu1 %v12041_v30  ;;  %v12539_v30 = vld [vmem:[%s13234_s1 + $0xf8] sm:$0xff]   ;;  %v7199_v49 = vpop.f32.mrf.mxu0  ;;  %v5433_v8 = vrot.slane %v12695_v50, 1  ;;  %v5419_v1 = vrot.slane %v12693_v17, 1  ;;  %v5412_v35 = vsel %vm275_vm0, %v5411_v29, %v5410_v40 }
 0xbf8   :  { %7580 = vmatprep.subr.bf16.mxu1 %v13497_v47  ;;  %v5425_v49 = vrot.slane %v12679_v37, 5  ;;  %v5414_v63 = vsel %vm278_vm1, %v5413_v62, %v5412_v35  ;;  %v5422_v27 = vrot.slane %v12706_v42, 7 }
 0xbf9   :  { %v5416_v43 = vsel %vm281_vm2, %v5415_v39, %v5414_v63 }
 0xbfa   :  { %v5426_v56 = vsel %vm275_vm0, %v5425_v49, %v5424_v36  ;;  %v5418_v11 = vsel %vm284_vm3, %v5417_v33, %v5416_v43  ;;  %v5217_v33 = vld [vmem:[%s13235_s0 + $0x3c] sm:$0x88] }
 0xbfb   :  { %7581 = vmatpush3.bf16.msra.mxu1 %v12051_v52  ;;  %v12546_v52 = vld [vmem:[%s13234_s1 + $0xb8] sm:$0xff]   ;;  %v5428_v0 = vsel %vm278_vm1, %v5427_v7, %v5426_v56  ;;  %v5420_v44 = vsel %vm287_vm4, %v5419_v1, %v5418_v11  ;;  %v12749_v56 = vld [vmem:[%s13235_s0 + $0x64] sm:$0x88]  ;;  %v6426_v1 = vcombine.high %v5217_v33, %v5217_v33 }
 0xbfc   :  { %7582 = vmatprep.subr.bf16.mxu1 %v13497_v47  ;;  %v5430_v18 = vsel %vm281_vm2, %v5429_v5, %v5428_v0  ;;  %v5421_v59 = vsel %vm290_vm5, %v12718_v3, %v5420_v44  ;;  %v6431_v0 = vcombine.high %v12749_v56, %v12749_v56 }
 0xbfd   :  { %v5432_v41 = vsel %vm284_vm3, %v5431_v55, %v5430_v18  ;;  %v5423_v29 = vsel %vm293_vm6, %v5422_v27, %v5421_v59  ;;  %v5214_v55 = vld [vmem:[%s13235_s0 + $0x14] sm:$0x88]  ;;  %v12760_v18 = vunpack.c.l.b16 %v6426_v1 }
 0xbfe   :  { %v5434_v26 = vsel %vm287_vm4, %v5433_v8, %v5432_v41  ;;  %v5454_v36 = vpack.c.b16 %v5423_v29, %v5423_v29  ;;  %v6421_v8 = vcombine.high %v5214_v55, %v5214_v55  ;;  %v12769_v27 = vunpack.c.l.b16 %v6431_v0 }
 0xbff   :  { %7583 = vmatpush3.bf16.msra.mxu1 %v12059_v53  ;;  %v12552_v53 = vld [vmem:[%s13234_s1 + $0xf0] sm:$0xff]   ;;  %13844 = vst [vmem:[#allocation19_spill] sm:$0xff] %v12760_v18  ;;  %v5397_v43 = vrot.slane %v12760_v18, 5 }
 0xc00   :  { %7231 = vmatprep.subr.bf16.mxu1 %v12539_v30  ;;  %v12758_v35 = vunpack.c.l.b16 %v6421_v8  ;;  %13845 = vst [vmem:[#allocation4_spill] sm:$0xff] %v12769_v27  ;;  %v5399_v44 = vrot.slane %v12769_v27, 4 }
 0xc02   :  { %7585 = vmatmul.mubr.msk.bf16.vlgmr.msra.gmra.mxu1 %vm576_vm8, %v5023_v12  ;;  %v12697_v12 = vunpack.c.l.b16 %v6458_v10  ;;  %v5435_v10 = vsel %vm290_vm5, %v12713_v13, %v5434_v26  ;;  %13843 = vst [vmem:[#allocation30_spill] sm:$0xff] %v12758_v35  ;;  %v5396_v41 = vrot.slane %v12758_v35, 6  ;;  %v12776_v26 = vld [vmem:[%s13235_s0 + $0xdc] sm:$0x88] }
 0xc03   :  { %7232 = vmatpush3.bf16.msra.mxu1 %v12546_v52 }
 0xc04   :  { %7233 = vmatprep.subr.bf16.mxu1 %v12552_v53  ;;  %v5436_v20 = vrot.slane %v12697_v12, 7  ;;  %v5398_v59 = vsel %vm275_vm0, %v5397_v43, %v5396_v41 }
 0xc06   :  { %v5437_v61 = vsel %vm293_vm6, %v5436_v20, %v5435_v10  ;;  %v12765_v20 = vld [vmem:[%s13235_s0 + $0xb4] sm:$0x88] }
 0xc07   :  { %7234 = vmatpush3.bf16.msra.mxu1 %v12558_v32  ;;  %v5455_v40 = vpack.c.b16 %v5437_v61, %v5437_v61  ;;  %v6441_v11 = vcombine.high %v12765_v20, %v12765_v20  ;;  %v6446_v61 = vcombine.high %v12776_v26, %v12776_v26 }
 0xc08   :  { %7235 = vmatprep.subr.bf16.mxu1 %v12564_v19 }
 0xc09   :  { %5536 = vmatprep.mubr.bf16.mxu1 %v5455_v40  ;;  %v12786_v29 = vunpack.c.l.b16 %v6441_v11  ;;  %v12800_v8 = vunpack.c.l.b16 %v6446_v61 }
 0xc0b   :  { %7236 = vmatpush3.bf16.msra.mxu1 %v12570_v45  ;;  %13847 = vst [vmem:[#allocation16_spill] sm:$0xff] %v12786_v29  ;;  %13848 = vst [vmem:[#allocation13_spill] sm:$0xff] %v12800_v8  ;;  %v5403_v0 = vrot.slane %v12786_v29, 2 }
 0xc0c   :  { %7237 = vmatprep.subr.bf16.mxu1 %v12576_v24 }
 0xc0f   :  { %7238 = vmatpush3.bf16.msra.mxu1 %v12582_v4 }
 0xc10   :  { %7239 = vmatprep.subr.bf16.mxu1 %v12588_v16 }
 0xc13   :  { %7240 = vmatpush3.bf16.msra.mxu1 %v12594_v34 }
 0xc14   :  { %7241 = vmatprep.subr.bf16.mxu1 %v12600_v14 }
 0xc17   :  { %7242 = vmatpush3.bf16.msra.mxu1 %v12606_v25 }
 0xc18   :  { %7243 = vmatprep.subr.bf16.mxu1 %v12612_v2 }
 0xc1b   :  { %7244 = vmatpush3.bf16.msra.mxu1 %v12618_v58 }
 0xc1c   :  { %7245 = vmatprep.subr.bf16.mxu1 %v12624_v60 }
 0xc1f   :  { %7246 = vmatpush3.bf16.msra.mxu1 %v12630_v23 }
 0xc20   :  { %7608 = vmatprep.subr.bf16.mxu1 %v13497_v47 }
 0xc22   :  { %5537 = vmatmul.mubr.bf16.vlgmr.msra.gmra.mxu1 %v5454_v36 }
 0xc23   :  { %7612 = vmatprep.mubr.msk.bf16.mxu1 %vm8221_vm7, %v13497_v47 }
 0xc92   :  { %v4942_v62 = vpop.f32.mrf.mxu1 }
 0xc93   :  { %v12738_v49 = vadd.f32 %v4942_v62, %v12449_v31  ;;  %v12754_v31 = vld [vmem:[%s13235_s0 + $0x8c] sm:$0x88] }
 0xc94   :  { %v7574_v7 = vpop.f32.mrf.mxu1  ;;  %v6436_v63 = vcombine.high %v12754_v31, %v12754_v31 }
 0xc95   :  { %v12792_v7 = vld [vmem:[%s13235_s0 + $0x12c] sm:$0x88] }
 0xc96   :  { %v4945_v5 = vpop.f32.mrf.mxu1  ;;  %v12780_v10 = vunpack.c.l.b16 %v6436_v63  ;;  %v6456_v63 = vcombine.high %v12792_v7, %v12792_v7 }
 0xc97   :  { %v5400_v5 = vsel %vm278_vm1, %v5399_v44, %v5398_v59  ;;  %v5405_v59 = vrot.slane %v12800_v8, 1 }
 0xc98   :  { %v7575_v39 = vpop.f32.mrf.mxu1  ;;  %13846 = vst [vmem:[#allocation31_spill] sm:$0xff] %v12780_v10  ;;  %v5401_v36 = vrot.slane %v12780_v10, 3  ;;  %v12810_v27 = vunpack.c.l.b16 %v6456_v63  ;;  %v6420_v63 = vcombine.low %v5214_v55, %v5214_v55  ;;  %v6435_v55 = vcombine.low %v12754_v31, %v12754_v31  ;;  %v12851_v31 = vld [vmem:[%s13234_s1 + $0x30] sm:$0xff]  }
 0xc99   :  { %v12798_v39 = vld [vmem:[%s13235_s0 + $0x104] sm:$0x88] }
 0xc9a   :  { %v5402_v41 = vsel %vm281_vm2, %v5401_v36, %v5400_v5  ;;  %v6451_v11 = vcombine.high %v12798_v39, %v12798_v39  ;;  %13849 = vst [vmem:[#allocation23_spill] sm:$0xff] %v12810_v27  ;;  %v5408_v18 = vrot.slane %v12810_v27, 7  ;;  %v12823_v27 = vunpack.c.l.b16 %v6420_v63  ;;  %v12878_v63 = vld [vmem:[%s13234_s1 + $0x60] sm:$0xff]  }
 0xc9b   :  { %v5404_v10 = vsel %vm284_vm3, %v5403_v0, %v5402_v41  ;;  %v6425_v41 = vcombine.low %v5217_v33, %v5217_v33  ;;  %v12839_v33 = vld [vmem:[%s13234_s1 + $0x70] sm:$0xff]   ;;  %13851 = vst [vmem:[#allocation2_spill] sm:$0xff] %v12878_v63 }
 0xc9c   :  { %v12812_v61 = vunpack.c.l.b16 %v6451_v11  ;;  %v5406_v29 = vsel %vm287_vm4, %v5405_v59, %v5404_v10  ;;  %v6430_v10 = vcombine.low %v12749_v56, %v12749_v56 }
 0xc9e   :  { %v5407_v36 = vsel %vm290_vm5, %v12812_v61, %v5406_v29  ;;  %v12825_v29 = vunpack.c.l.b16 %v6425_v41  ;;  %v12842_v56 = vunpack.c.l.b16 %v6430_v10 }
 0xcb2   :  { %v7173_v40 = vpop.f32.mrf.mxu1 }
 0xcb4   :  { %v7174_v62 = vpop.f32.mrf.mxu1 }
 0xcb5   :  { %v7175_v44 = vadd.f32 %v7174_v62, %v7173_v40 }
 0xcb6   :  { %v7176_v1 = vpop.f32.mrf.mxu1 }
 0xcb7   :  { %v5066_v1 = vadd.f32 %v12464_v15, %v7175_v44 }
 0xcb8   :  { %v7177_v43 = vpop.f32.mrf.mxu1 }
 0xcb9   :  { %v5106_v5 = vadd.f32 %v12638_v57, %v5066_v1  ;;  %v5409_v43 = vsel %vm293_vm6, %v5408_v18, %v5407_v36  ;;  %v12831_v57 = vld [vmem:[%s13234_s1 + $0x38] sm:$0xff]   ;;  %v5382_v18 = vrot.slane %v12823_v27, 6  ;;  %v6440_v1 = vcombine.low %v12765_v20, %v12765_v20  ;;  %v12859_v36 = vld [vmem:[%s13234_s1 + $0x68] sm:$0xff]  }
 0xcba   :  { %v5453_v35 = vpack.c.b16 %v5409_v43, %v5409_v43  ;;  %v6445_v20 = vcombine.low %v12776_v26, %v12776_v26  ;;  %v12871_v43 = vld [vmem:[%s13234_s1 + $0x28] sm:$0xff]  }
 0xcbb   :  { %13850 = vst [vmem:[#allocation28_spill] sm:$0xff] %v12871_v43 }
 0xcbc   :  { %v12882_v41 = vunpack.c.l.b16 %v6445_v20 }
 0xcbe   :  { %v5391_v20 = vrot.slane %v12882_v41, 1 }
 0xcc2   :  { %v5145_v40 = vpop.f32.mrf.mxu1 }
 0xcc3   :  { %v5146_v62 = vadd.f32 %v5145_v40, %v5106_v5  ;;  %v5385_v5 = vrot.slane %v12842_v56, 4 }
 0xcc4   :  { %v7586_v0 = vpop.f32.mrf.mxu1 }
 0xcc5   :  { %v5151_v11 = vmax.f32 %v5146_v62, 0.0  ;;  %v12866_v62 = vunpack.c.l.b16 %v6440_v1  ;;  %v6450_v1 = vcombine.low %v12798_v39, %v12798_v39 }
 0xcc6   :  { %v5148_v8 = vpop.f32.mrf.mxu1 }
 0xcc7   :  { %v5152_v44 = vpack.c.bf16 %v5151_v11, %v5151_v11  ;;  %v5383_v8 = vrot.slane %v12825_v29, 5  ;;  %v12887_v11 = vld [vmem:[%s13235_s0 + $0x24] ss:$0 sps:$4 sm:$0x88]   ;;  %v5389_v10 = vrot.slane %v12866_v62, 2 }
 0xcc8   :  { %v7587_v59 = vpop.f32.mrf.mxu1  ;;  %13852 = vst [vmem:[#allocation24_spill] sm:$0xff] %v12887_v11 }
 0xcc9   :  { %7593 = vmatmul.mubr.msk.bf16.vlgmr.msra.gmra.mxu0 %vm927_vm9, %v5152_v44  ;;  %v5384_v40 = vsel %vm275_vm0, %v5383_v8, %v5382_v18  ;;  %v12892_v44 = vld [vmem:[%s13235_s0 + $0x4c] ss:$0 sps:$4 sm:$0x88]   ;;  %v12898_v59 = vld [vmem:[%s13234_s1 + $0x20] sm:$0xff]   ;;  %v12907_v8 = vld [vmem:[%s13234_s1 + $0x58] sm:$0xff]  }
 0xcca   :  { %7210 = vmatpush3.bf16.msra.mxu0 %v12831_v57  ;;  %5496 = vmatprep.mubr.bf16.mxu0 %v5453_v35  ;;  %v12854_v35 = vunpack.c.l.b16 %v6435_v55  ;;  %v5386_v26 = vsel %vm278_vm1, %v5385_v5, %v5384_v40  ;;  %13853 = vst [vmem:[#allocation3_spill] sm:$0xff] %v12892_v44  ;;  %13854 = vst [vmem:[#allocation20_spill] sm:$0xff] %v12898_v59  ;;  %v6455_v55 = vcombine.low %v12792_v7, %v12792_v7  ;;  %v12915_v5 = vld [vmem:[%s13235_s0 + $0x74] ss:$0 sps:$4 sm:$0x88]  }
 0xccb   :  { %7211 = vmatprep.subr.bf16.mxu0 %v12839_v33  ;;  %13855 = vst [vmem:[#allocation8_spill] sm:$0xff] %v12907_v8  ;;  %13856 = vst [vmem:[#allocation6_spill] sm:$0xff] %v12915_v5  ;;  %v12937_v40 = vld [vmem:[%s13234_s1 + $0x50] sm:$0xff]  }
 0xccc   :  { %v5387_v0 = vrot.slane %v12854_v35, 3  ;;  %v12927_v39 = vunpack.c.l.b16 %v6455_v55  ;;  %13859 = vst [vmem:[#allocation18_spill] sm:$0xff] %v12937_v40  ;;  %v13860_v55 = vunpack.c.l.b16 %v12887_v11  ;;  %v12981_v11 = vld [vmem:[%s13234_s1 + $0x8] sm:$0xff]  }
 0xccd   :  { %13864 = vst [vmem:[#allocation11_spill] sm:$0xff] %v12981_v11 }
 0xcce   :  { %7212 = vmatpush3.bf16.msra.mxu0 %v12851_v31  ;;  %v5388_v18 = vsel %vm281_vm2, %v5387_v0, %v5386_v26  ;;  %v12924_v26 = vld [vmem:[%s13234_s1 + $0x18] sm:$0xff]   ;;  %13858 = vst [vmem:[#allocation26_spill] sm:$0xff] %v12927_v39 }
 0xccf   :  { %7213 = vmatprep.subr.bf16.mxu0 %v12859_v36  ;;  %v5390_v0 = vsel %vm284_vm3, %v5389_v10, %v5388_v18  ;;  %13857 = vst [vmem:[#allocation21_spill] sm:$0xff] %v12924_v26  ;;  %v12940_v10 = vunpack.c.l.b16 %v6450_v1  ;;  %v13463_v18 = vunpack.c.l.b16 %v12915_v5  ;;  %v12956_v1 = vld [vmem:[%s13234_s1 + $0x10] sm:$0xff]  }
 0xcd0   :  { %v5392_v7 = vsel %vm287_vm4, %v5391_v20, %v5390_v0  ;;  %13862 = vst [vmem:[#allocation32_spill] sm:$0xff] %v12956_v1  ;;  %v5394_v20 = vrot.slane %v12927_v39, 7 }
 0xcd2   :  { %7214 = vmatpush3.bf16.msra.mxu0 %v12871_v43  ;;  %v12951_v43 = vld [vmem:[%s13235_s0 + $0xc4] ss:$0 sps:$4 sm:$0x88]  }
 0xcd3   :  { %7215 = vmatprep.subr.bf16.mxu0 %v12878_v63 }
 0xcd6   :  { %7216 = vmatpush3.bf16.msra.mxu0 %v12898_v59  ;;  %v13861_v59 = vunpack.c.l.b16 %v12892_v44  ;;  %v5441_v44 = vrot.slane %v13463_v18, 4 }
 0xcd7   :  { %7217 = vmatprep.subr.bf16.mxu0 %v12907_v8  ;;  %v12932_v8 = vld [vmem:[%s13235_s0 + $0x9c] ss:$0 sps:$4 sm:$0x88]  }
 0xcd8   :  { %v5439_v63 = vrot.slane %v13861_v59, 5  ;;  %v12964_v59 = vld [vmem:[%s13234_s1 + $0x48] sm:$0xff]   ;;  %v13865_v18 = vunpack.c.l.b16 %v12932_v8 }
 0xcd9   :  { %13863 = vst [vmem:[#allocation5_spill] sm:$0xff] %v12964_v59 }
 0xcda   :  { %7218 = vmatpush3.bf16.msra.mxu0 %v12924_v26  ;;  %v5438_v26 = vrot.slane %v13860_v55, 6  ;;  %v5393_v55 = vsel %vm290_vm5, %v12940_v10, %v5392_v7  ;;  %v5443_v5 = vrot.slane %v13865_v18, 3  ;;  %v13006_v18 = vld [vmem:[%s13235_s0 + $0x13c] ss:$0 sps:$4 sm:$0x88]  }
 0xcdb   :  { %7219 = vmatprep.subr.bf16.mxu0 %v12937_v40  ;;  %v5395_v7 = vsel %vm293_vm6, %v5394_v20, %v5393_v55  ;;  %v13866_v40 = vunpack.c.l.b16 %v12951_v43  ;;  %v13000_v20 = vld [vmem:[%s13234_s1] sm:$0xff]  }
 0xcdc   :  { %v5440_v0 = vsel %vm275_vm0, %v5439_v63, %v5438_v26  ;;  %v5452_v39 = vpack.c.b16 %v5395_v7, %v5395_v7  ;;  %v13021_v7 = vld [vmem:[%s13234_s1 + $0x118] sm:$0xff]  }
 0xcdd   :  { %v5442_v63 = vsel %vm278_vm1, %v5441_v44, %v5440_v0 }
 0xcde   :  { %7220 = vmatpush3.bf16.msra.mxu0 %v12956_v1  ;;  %v12974_v1 = vld [vmem:[%s13235_s0 + $0xec] ss:$0 sps:$4 sm:$0x88]   ;;  %v5444_v44 = vsel %vm281_vm2, %v5443_v5, %v5442_v63  ;;  %v13470_v5 = vunpack.c.l.b16 %v13006_v18 }
 0xcdf   :  { %7221 = vmatprep.subr.bf16.mxu0 %v12964_v59  ;;  %v12990_v59 = vld [vmem:[%s13234_s1 + $0x40] sm:$0xff]   ;;  %v13468_v26 = vunpack.c.l.b16 %v12974_v1 }
 0xce1   :  { %v5447_v0 = vrot.slane %v13468_v26, 1 }
 0xce2   :  { %7222 = vmatpush3.bf16.msra.mxu0 %v12981_v11  ;;  %v5445_v11 = vrot.slane %v13866_v40, 2  ;;  %v13013_v40 = vld [vmem:[%s13235_s0 + $0x114] ss:$0 sps:$4 sm:$0x88]  }
 0xce3   :  { %7223 = vmatprep.subr.bf16.mxu0 %v12990_v59  ;;  %v5376_v63 = vunpack.c.l.b16 %v13013_v40 }
 0xce4   :  { %v5446_v55 = vsel %vm284_vm3, %v5445_v11, %v5444_v44  ;;  %v13033_v11 = vld [vmem:[%s13234_s1 + $0x110] sm:$0xff]   ;;  %v5450_v44 = vrot.slane %v13470_v5, 7  ;;  %v13053_v5 = vld [vmem:[%s13234_s1 + $0x100] sm:$0xff]  }
 0xce5   :  { %13867 = vst [vmem:[#allocation15_spill] sm:$0xff] %v13033_v11 }
 0xce6   :  { %7224 = vmatpush3.bf16.msra.mxu0 %v13000_v20 }
 0xce7   :  { %7596 = vmatprep.subr.bf16.mxu0 %v13497_v47 }
 0xce9   :  { %5497 = vmatmul.mubr.bf16.vlgmr.msra.gmra.mxu0 %v5452_v39  ;;  %v5448_v39 = vsel %vm287_vm4, %v5447_v0, %v5446_v55  ;;  %v13045_v0 = vld [vmem:[%s13234_s1 + $0x108] sm:$0xff]  }
 0xcea   :  { %7597 = vmatpush3.bf16.msra.mxu0 %v13021_v7  ;;  %7604 = vmatprep.mubr.msk.bf16.mxu0 %vm8221_vm7, %v13497_v47  ;;  %v5449_v26 = vsel %vm290_vm5, %v5376_v63, %v5448_v39 }
 0xceb   :  { %7598 = vmatprep.subr.bf16.mxu0 %v13497_v47  ;;  %v5451_v55 = vsel %vm293_vm6, %v5450_v44, %v5449_v26  ;;  %v5684_v44 = vrot.slane %v12693_v17, 2 }
 0xcee   :  { %7599 = vmatpush3.bf16.msra.mxu0 %v13033_v11  ;;  %v5456_v11 = vpack.c.b16 %v5451_v55, %v5451_v55 }
 0xcef   :  { %7600 = vmatprep.subr.bf16.mxu0 %v13497_v47 }
 0xcf2   :  { %7601 = vmatpush3.bf16.msra.mxu0 %v13045_v0 }
 0xcf3   :  { %7602 = vmatprep.subr.bf16.mxu0 %v13497_v47 }
 0xcf6   :  { %7603 = vmatpush3.bf16.msra.mxu0 %v13053_v5 }
 0xcf7   :  { %7283 = vmatprep.subr.bf16.mxu0 %v12539_v30  ;;  %v8030_v30 = vld [vmem:[%s13236_s3 + $0xe8] sm:$0xff]  }
 0xcf8   :  { %7609 = vmatpush3.bf16.msra.mxu1 %v8030_v30 }
 0xcf9   :  { %7605 = vmatmul.mubr.msk.bf16.vlgmr.msra.gmra.mxu0 %vm576_vm8, %v5456_v11  ;;  %7610 = vmatprep.subr.bf16.mxu1 %v13497_v47  ;;  %v5698_v11 = vrot.slane %v12695_v50, 2 }
 0xcfa   :  { %7284 = vmatpush3.bf16.msra.mxu0 %v12546_v52  ;;  %v8031_v52 = vld [vmem:[%s13236_s3 + $0xe0] sm:$0xff]  }
 0xcfb   :  { %7285 = vmatprep.subr.bf16.mxu0 %v12552_v53  ;;  %v7247_v53 = vpop.f32.mrf.mxu1 }
 0xcfc   :  { %7611 = vmatpush3.bf16.msra.mxu1 %v8031_v52 }
 0xcfd   :  { %7261 = vmatprep.subr.bf16.mxu1 %v12646_v21 }
 0xcfe   :  { %7286 = vmatpush3.bf16.msra.mxu0 %v12558_v32  ;;  %v7248_v32 = vpop.f32.mrf.mxu1 }
 0xcff   :  { %7287 = vmatprep.subr.bf16.mxu0 %v12564_v19  ;;  %v13082_v19 = vadd.f32 %v7248_v32, %v7247_v53 }
 0xd02   :  { %7288 = vmatpush3.bf16.msra.mxu0 %v12570_v45  ;;  %v7250_v45 = vpop.f32.mrf.mxu1 }
 0xd03   :  { %7289 = vmatprep.subr.bf16.mxu0 %v12576_v24 }
 0xd04   :  { %v7251_v24 = vpop.f32.mrf.mxu1 }
 0xd06   :  { %7290 = vmatpush3.bf16.msra.mxu0 %v12582_v4  ;;  %v5647_v4 = vrot.slane %v12823_v27, 7  ;;  %v5692_v27 = vrot.slane %v12683_v38, 5  ;;  %v5694_v38 = vrot.slane %v12685_v54, 4  ;;  %v5686_v54 = vrot.slane %v12718_v3, 1 }
 0xd07   :  { %7291 = vmatprep.subr.bf16.mxu0 %v12588_v16  ;;  %v5648_v16 = vrot.slane %v12825_v29, 6  ;;  %v5675_v29 = vrot.slane %v12673_v51, 7  ;;  %v5696_v51 = vrot.slane %v12689_v46, 3 }
 0xd09   :  { %v5649_v21 = vsel %vm275_vm0, %v5648_v16, %v5647_v4 }
 0xd0a   :  { %7292 = vmatpush3.bf16.msra.mxu0 %v12594_v34  ;;  %v5650_v34 = vrot.slane %v12842_v56, 5  ;;  %v5676_v56 = vrot.slane %v12677_v22, 6  ;;  %v5682_v22 = vrot.slane %v12691_v48, 3 }
 0xd0b   :  { %7293 = vmatprep.subr.bf16.mxu0 %v12600_v14  ;;  %v5652_v14 = vrot.slane %v12854_v35, 4 }
 0xd0c   :  { %v5651_v35 = vsel %vm278_vm1, %v5650_v34, %v5649_v21  ;;  %v5677_v30 = vsel %vm275_vm0, %v5676_v56, %v5675_v29  ;;  %v13870_v21 = vld [vmem:[#allocation4_spill] sm:$0xff]  ;;  %v13871_v56 = vld [vmem:[#allocation31_spill] sm:$0xff] }
 0xd0e   :  { %7294 = vmatpush3.bf16.msra.mxu0 %v12606_v25  ;;  %v5654_v25 = vrot.slane %v12866_v62, 3 }
 0xd0f   :  { %7295 = vmatprep.subr.bf16.mxu0 %v12612_v2  ;;  %v5689_v2 = vrot.slane %v12675_v9, 7  ;;  %v5678_v9 = vrot.slane %v12681_v28, 5  ;;  %v5700_v28 = vrot.slane %v12713_v13, 1 }
 0xd11   :  { %v5679_v48 = vsel %vm278_vm1, %v5678_v9, %v5677_v30 }
 0xd12   :  { %7296 = vmatpush3.bf16.msra.mxu0 %v12618_v58  ;;  %v5690_v58 = vrot.slane %v12679_v37, 6  ;;  %v5653_v37 = vsel %vm281_vm2, %v5652_v14, %v5651_v35  ;;  %v5666_v35 = vrot.slane %v13871_v56, 4  ;;  %v13891_v56 = vunpack.c.l.b16 %v12932_v8 }
 0xd13   :  { %7297 = vmatprep.subr.bf16.mxu0 %v12624_v60  ;;  %v5656_v60 = vrot.slane %v12882_v41, 2  ;;  %v5655_v26 = vsel %vm284_vm3, %v5654_v25, %v5653_v37 }
 0xd14   :  { %v5691_v62 = vsel %vm275_vm0, %v5690_v58, %v5689_v2  ;;  %v13868_v2 = vld [vmem:[#allocation30_spill] sm:$0xff] }
 0xd15   :  { %v5693_v41 = vsel %vm278_vm1, %v5692_v27, %v5691_v62  ;;  %v5657_v39 = vsel %vm287_vm4, %v5656_v60, %v5655_v26  ;;  %v5661_v58 = vrot.slane %v13868_v2, 7  ;;  %v13869_v60 = vld [vmem:[#allocation19_spill] sm:$0xff]  ;;  %v5664_v27 = vrot.slane %v13870_v21, 5  ;;  %v13885_v2 = vld [vmem:[#allocation32_spill] sm:$0xff] }
 0xd16   :  { %7298 = vmatpush3.bf16.msra.mxu0 %v12630_v23  ;;  %v5658_v23 = vrot.slane %v12940_v10, 1  ;;  %v5680_v10 = vrot.slane %v12687_v6, 4  ;;  %v5695_v6 = vsel %vm281_vm2, %v5694_v38, %v5693_v41 }
 0xd17   :  { %7628 = vmatprep.subr.bf16.mxu0 %v13497_v47  ;;  %v5697_v46 = vsel %vm284_vm3, %v5696_v51, %v5695_v6  ;;  %v13873_v51 = vld [vmem:[#allocation13_spill] sm:$0xff] }
 0xd18   :  { %v13112_v55 = vsel %vm290_vm5, %v5658_v23, %v5657_v39  ;;  %v5699_v52 = vsel %vm287_vm4, %v5698_v11, %v5697_v46  ;;  %v5681_v50 = vsel %vm281_vm2, %v5680_v10, %v5679_v48  ;;  %v5662_v23 = vrot.slane %v13869_v60, 6  ;;  %v13874_v48 = vld [vmem:[#allocation23_spill] sm:$0xff] }
 0xd19   :  { %v5701_v13 = vsel %vm290_vm5, %v5700_v28, %v5699_v52  ;;  %v5683_v17 = vsel %vm284_vm3, %v5682_v22, %v5681_v50  ;;  %v5670_v22 = vrot.slane %v13873_v51, 2  ;;  %v5672_v11 = vrot.slane %v12812_v61, 1  ;;  %v13875_v61 = vld [vmem:[#allocation28_spill] sm:$0xff] }
 0xd1a   :  { %v5702_v53 = vsel %vm293_vm6, %v12697_v12, %v5701_v13  ;;  %v5685_v32 = vsel %vm287_vm4, %v5684_v44, %v5683_v17 }
 0xd1b   :  { %v5720_v45 = vpack.c.b16 %v5702_v53, %v5702_v53  ;;  %v5687_v3 = vsel %vm290_vm5, %v5686_v54, %v5685_v32 }
 0xd1c   :  { %v5688_v24 = vsel %vm293_vm6, %v12706_v42, %v5687_v3  ;;  %v5663_v42 = vsel %vm275_vm0, %v5662_v23, %v5661_v58  ;;  %v13877_v3 = vld [vmem:[#allocation20_spill] sm:$0xff]  ;;  %v13887_v58 = vld [vmem:[#allocation6_spill] sm:$0xff] }
 0xd1d   :  { %5801 = vmatprep.mubr.bf16.mxu0 %v5720_v45  ;;  %v5719_v4 = vpack.c.b16 %v5688_v24, %v5688_v24  ;;  %v5665_v9 = vsel %vm278_vm1, %v5664_v27, %v5663_v42  ;;  %v13878_v24 = vld [vmem:[#allocation8_spill] sm:$0xff]  ;;  %v13888_v60 = vunpack.c.l.b16 %v13887_v58  ;;  %v13889_v27 = vld [vmem:[#allocation11_spill] sm:$0xff]  ;;  %v13890_v42 = vld [vmem:[#allocation26_spill] sm:$0xff] }
 0xd1e   :  { %v5667_v10 = vsel %vm281_vm2, %v5666_v35, %v5665_v9  ;;  %v5708_v35 = vrot.slane %v13891_v56, 4 }
 0xd1f   :  { %5802 = vmatmul.mubr.bf16.vlgmr.msra.gmra.mxu0 %v5719_v4  ;;  %v13879_v4 = vld [vmem:[#allocation21_spill] sm:$0xff]  ;;  %v5706_v23 = vrot.slane %v13888_v60, 5 }
 0xd20   :  { %7632 = vmatprep.mubr.msk.bf16.mxu0 %vm8221_vm7, %v13497_v47 }
 0xd89   :  { %v5207_v16 = vpop.f32.mrf.mxu0 }
 0xd8a   :  { %v13132_v34 = vadd.f32 %v5207_v16, %v12738_v49  ;;  %v13872_v49 = vld [vmem:[#allocation16_spill] sm:$0xff]  ;;  %v13880_v16 = vld [vmem:[#allocation18_spill] sm:$0xff] }
 0xd8b   :  { %v7594_v14 = vpop.f32.mrf.mxu0  ;;  %v5668_v41 = vrot.slane %v13872_v49, 3 }
 0xd8d   :  { %v5210_v12 = vpop.f32.mrf.mxu0  ;;  %v5669_v39 = vsel %vm284_vm3, %v5668_v41, %v5667_v10  ;;  %v13893_v10 = vunpack.c.l.b16 %v12974_v1 }
 0xd8e   :  { %v5671_v44 = vsel %vm287_vm4, %v5670_v22, %v5669_v39  ;;  %v8033_v39 = vld [vmem:[%s13236_s3 + $0xf0] sm:$0xff]  }
 0xd8f   :  { %v7595_v25 = vpop.f32.mrf.mxu0  ;;  %v5673_v6 = vsel %vm290_vm5, %v5672_v11, %v5671_v44 }
 0xd90   :  { %v5674_v52 = vsel %vm293_vm6, %v13874_v48, %v5673_v6 }
 0xd91   :  { %v5718_v53 = vpack.c.b16 %v5674_v52, %v5674_v52 }
 0xda9   :  { %v7225_v29 = vpop.f32.mrf.mxu0 }
 0xdab   :  { %v7226_v62 = vpop.f32.mrf.mxu0 }
 0xdac   :  { %v7227_v38 = vadd.f32 %v7226_v62, %v7225_v29  ;;  %v5660_v29 = vsel %vm293_vm6, %v13890_v42, %v13112_v55  ;;  %v5712_v55 = vrot.slane %v13893_v10, 2 }
 0xdad   :  { %v7228_v37 = vpop.f32.mrf.mxu0  ;;  %v5717_v9 = vpack.c.b16 %v5660_v29, %v5660_v29 }
 0xdae   :  { %v5499_v28 = vadd.f32 %v12464_v15, %v7227_v38  ;;  %v13892_v37 = vunpack.c.l.b16 %v12951_v43  ;;  %v5714_v43 = vrot.slane %v5376_v63, 1  ;;  %v8032_v63 = vld [vmem:[%s13236_s3 + $0xf8] sm:$0xff]  }
 0xdaf   :  { %v7229_v26 = vpop.f32.mrf.mxu0  ;;  %7629 = vmatpush3.bf16.msra.mxu0 %v8032_v63 }
 0xdb0   :  { %v5539_v30 = vadd.f32 %v13082_v19, %v5499_v28  ;;  %v13876_v19 = vld [vmem:[#allocation2_spill] sm:$0xff]  ;;  %v5710_v49 = vrot.slane %v13892_v37, 3  ;;  %7630 = vmatprep.subr.bf16.mxu0 %v13497_v47 }
 0xdb3   :  { %7631 = vmatpush3.bf16.msra.mxu0 %v8033_v39 }
 0xdb4   :  { %7636 = vmatprep.subr.bf16.mxu0 %v13497_v47 }
 0xdb9   :  { %v5578_v54 = vpop.f32.mrf.mxu0 }
 0xdba   :  { %v5579_v46 = vadd.f32 %v5578_v54, %v5539_v30 }
 0xdbb   :  { %v7606_v50 = vpop.f32.mrf.mxu0 }
 0xdbc   :  { %v5584_v13 = vmax.f32 %v5579_v46, 0.0 }
 0xdbd   :  { %v5581_v17 = vpop.f32.mrf.mxu0 }
 0xdbe   :  { %v5585_v32 = vpack.c.bf16 %v5584_v13, %v5584_v13 }
 0xdbf   :  { %v7607_v45 = vpop.f32.mrf.mxu0 }
 0xdc0   :  { %7613 = vmatmul.mubr.msk.bf16.vlgmr.msra.gmra.mxu1 %vm927_vm9, %v5585_v32 }
 0xdc1   :  { %7262 = vmatpush3.bf16.msra.mxu1 %v12831_v57  ;;  %5761 = vmatprep.mubr.bf16.mxu1 %v5718_v53  ;;  %v13881_v57 = vld [vmem:[#allocation24_spill] sm:$0xff] }
 0xdc2   :  { %7263 = vmatprep.subr.bf16.mxu1 %v12839_v33  ;;  %v13882_v14 = vunpack.c.l.b16 %v13881_v57  ;;  %v13883_v33 = vld [vmem:[#allocation3_spill] sm:$0xff] }
 0xdc3   :  { %v13884_v25 = vunpack.c.l.b16 %v13883_v33 }
 0xdc4   :  { %v5703_v12 = vrot.slane %v13882_v14, 7 }
 0xdc5   :  { %7264 = vmatpush3.bf16.msra.mxu1 %v12851_v31  ;;  %v5704_v31 = vrot.slane %v13884_v25, 6 }
 0xdc6   :  { %7265 = vmatprep.subr.bf16.mxu1 %v12859_v36  ;;  %v13886_v36 = vld [vmem:[#allocation5_spill] sm:$0xff] }
 0xdc7   :  { %v5705_v21 = vsel %vm275_vm0, %v5704_v31, %v5703_v12 }
 0xdc8   :  { %v5707_v62 = vsel %vm278_vm1, %v5706_v23, %v5705_v21 }
 0xdc9   :  { %7266 = vmatpush3.bf16.msra.mxu1 %v13875_v61  ;;  %v5709_v41 = vsel %vm281_vm2, %v5708_v35, %v5707_v62 }
 0xdca   :  { %7267 = vmatprep.subr.bf16.mxu1 %v13876_v19  ;;  %v5711_v8 = vsel %vm284_vm3, %v5710_v49, %v5709_v41 }
 0xdcd   :  { %7268 = vmatpush3.bf16.msra.mxu1 %v13877_v3 }
 0xdce   :  { %7269 = vmatprep.subr.bf16.mxu1 %v13878_v24 }
 0xdd1   :  { %7270 = vmatpush3.bf16.msra.mxu1 %v13879_v4  ;;  %v6476_v4 = vld [vmem:[%s13239_s4] ss:$0 sm:$0xff] }
 0xdd2   :  { %7271 = vmatprep.subr.bf16.mxu1 %v13880_v16 }
 0xdd5   :  { %7272 = vmatpush3.bf16.msra.mxu1 %v13885_v2 }
 0xdd6   :  { %7273 = vmatprep.subr.bf16.mxu1 %v13886_v36 }
 0xdd9   :  { %7274 = vmatpush3.bf16.msra.mxu1 %v13889_v27 }
 0xdda   :  { %7275 = vmatprep.subr.bf16.mxu1 %v12990_v59  ;;  %v5713_v59 = vsel %vm287_vm4, %v5712_v55, %v5711_v8 }
 0xddb   :  { %v5715_v1 = vsel %vm290_vm5, %v5714_v43, %v5713_v59 }
 0xddd   :  { %7276 = vmatpush3.bf16.msra.mxu1 %v13000_v20  ;;  %v13894_v20 = vld [vmem:[#allocation15_spill] sm:$0xff] }
 0xdde   :  { %7616 = vmatprep.subr.bf16.mxu1 %v13497_v47 }
 0xddf   :  { %v7299_v40 = vpop.f32.mrf.mxu0 }
 0xde0   :  { %5762 = vmatmul.mubr.bf16.vlgmr.msra.gmra.mxu1 %v5717_v9 }
 0xde1   :  { %7617 = vmatpush3.bf16.msra.mxu1 %v13021_v7  ;;  %7624 = vmatprep.mubr.msk.bf16.mxu1 %vm8221_vm7, %v13497_v47  ;;  %v13895_v7 = vunpack.c.l.b16 %v13006_v18  ;;  %v7300_v51 = vpop.f32.mrf.mxu0 }
 0xde2   :  { %7618 = vmatprep.subr.bf16.mxu1 %v13497_v47  ;;  %v7301_v22 = vadd.f32 %v7300_v51, %v7299_v40 }
 0xde3   :  { %v5716_v26 = vsel %vm293_vm6, %v13895_v7, %v5715_v1 }
 0xde4   :  { %v5721_v38 = vpack.c.b16 %v5716_v26, %v5716_v26 }
 0xde5   :  { %7619 = vmatpush3.bf16.msra.mxu1 %v13894_v20 }
 0xde6   :  { %7620 = vmatprep.subr.bf16.mxu1 %v13497_v47 }
 0xde9   :  { %7621 = vmatpush3.bf16.msra.mxu1 %v13045_v0  ;;  %v7302_v0 = vpop.f32.mrf.mxu0 }
 0xdea   :  { %7622 = vmatprep.subr.bf16.mxu1 %v13497_v47 }
 0xdeb   :  { %v7303_v18 = vpop.f32.mrf.mxu0 }
 0xded   :  { %7623 = vmatpush3.bf16.msra.mxu1 %v13053_v5 }
 0xdf0   :  { %7625 = vmatmul.mubr.msk.bf16.vlgmr.msra.gmra.mxu1 %vm576_vm8, %v5721_v38 }
 0xe80   :  { %v5640_v5 = vpop.f32.mrf.mxu1 }
 0xe81   :  { %v5646_v11 = vadd.f32 %v5640_v5, %v13132_v34  ;;  %v8034_v34 = vld [vmem:[%s13238_s5 + $0x8] sm:$0xff]  }
 0xe82   :  { %v7614_v28 = vpop.f32.mrf.mxu1 }
 0xe84   :  { %v5643_v44 = vpop.f32.mrf.mxu1 }
 0xe86   :  { %v7615_v6 = vpop.f32.mrf.mxu1 }
 0xea0   :  { %v7277_v30 = vpop.f32.mrf.mxu1 }
 0xea2   :  { %v7278_v54 = vpop.f32.mrf.mxu1 }
 0xea3   :  { %v7279_v52 = vadd.f32 %v7278_v54, %v7277_v30 }
 0xea4   :  { %v7280_v46 = vpop.f32.mrf.mxu1 }
 0xea5   :  { %v5764_v50 = vadd.f32 %v12464_v15, %v7279_v52  ;;  %v8035_v15 = vld [vmem:[%s13238_s5] sm:$0xff]  }
 0xea6   :  { %v7281_v48 = vpop.f32.mrf.mxu1 }
 0xea7   :  { %v5804_v13 = vadd.f32 %v7301_v22, %v5764_v50 }
 0xeb0   :  { %v5843_v17 = vpop.f32.mrf.mxu1 }
 0xeb1   :  { %v5844_v53 = vadd.f32 %v5843_v17, %v5804_v13 }
 0xeb2   :  { %v7626_v32 = vpop.f32.mrf.mxu1 }
 0xeb3   :  { %v5849_v45 = vmax.f32 %v5844_v53, 0.0 }
 0xeb4   :  { %v5846_v61 = vpop.f32.mrf.mxu1 }
 0xeb5   :  { %v5850_v19 = vpack.c.bf16 %v5849_v45, %v5849_v45 }
 0xeb6   :  { %v7627_v3 = vpop.f32.mrf.mxu1 }
 0xeb7   :  { %7633 = vmatmul.mubr.msk.bf16.vlgmr.msra.gmra.mxu0 %vm927_vm9, %v5850_v19 }
 0xeb8   :  { %7640 = vmatprep.mubr.msk.bf16.mxu0 %vm8221_vm7, %v13497_v47  ;;  %7637 = vmatpush3.bf16.msra.mxu0 %v8034_v34 }
 0xeb9   :  { %7638 = vmatprep.subr.bf16.mxu0 %v13497_v47  ;;  %v6477_v47 = vld [vmem:[%s13240_s6] ss:$0 sm:$0xff] }
 0xebc   :  { %7639 = vmatpush3.bf16.msra.mxu0 %v8035_v15 }
 0xf77   :  { %v5905_v24 = vpop.f32.mrf.mxu0 }
 0xf78   :  { %v5911_v16 = vadd.f32 %v5905_v24, %v5646_v11 }
 0xf79   :  { %v7634_v57 = vpop.f32.mrf.mxu0 }
 0xf7a   :  { %v5919_v14 = vadd.f32 %v6476_v4, %v5911_v16 }
 0xf7b   :  { %v5908_v12 = vpop.f32.mrf.mxu0 }
 0xf7c   :  { %v5920_v33 = vmax.f32 %v5919_v14, 0.0 }
 0xf7d   :  { %v7635_v25 = vpop.f32.mrf.mxu0 }
 0xf7e   :  { %v5921_v31 = vpack.c.bf16 %v5920_v33, %v5920_v33 }
 0xf80   :  { %7641 = vmatmul.mubr.msk.bf16.vlgmr.msra.gmra.mxu0 %vm927_vm9, %v5921_v31 }
0x1040   :  { %v5982_v2 = vpop.f32.mrf.mxu0 }
0x1041   :  { %v5983_v36 = vadd.f32 %v6477_v47, %v5982_v2 }
0x1042   :  { %v7642_v58 = vpop.f32.mrf.mxu0 }
0x1043   :  { %v5988_v60 = vmax.f32 %v5983_v36, 0.0 }
0x1044   :  { %v5985_v23 = vpop.f32.mrf.mxu0 }
0x1045   :  { %5990 = vst.msk [vmem:[%s13241_s7] sm:$0xff] %vm5989_vm10, %v5988_v60 }
0x1046   :  { %v7643_v21 = vpop.f32.mrf.mxu0 }

</bundles_post_ra>
